<compile_context>
chip_gen: v6e
topology: v6e:2x2x1
jax: 0.10.0
libtpu: 0.0.40
codegen_flags: <defaults>
</compile_context>

<pallas_src>
import functools

import jax
import jax.numpy as jnp
from jax.experimental import pallas as pl
from jax.experimental.pallas import tpu as pltpu

# ---------------- config ----------------
VOCAB = 64
VOCAB_PAD = 128                 # lane-dense logits (pad 64 -> 128, slice in glue)
N_EMBD = 128
N_HEAD = 4
HEAD_SIZE = N_EMBD // N_HEAD    # 32
N_LAYER = 2
BLOCK_SIZE = 16
B, T = 32, 8                    # BT = 256 tokens
NUM_BATCH_BLOCKS = 2            # leading "parallel" grid axis (v7x megacore)
LN_EPS = 1e-5
# dropout = 0.2 in the PyTorch module; identity in eval-mode forward.


# ---------------- fused kernel ----------------
def _layernorm(x, g, b):
    mean = jnp.mean(x, axis=-1, keepdims=True)
    var = jnp.mean((x - mean) ** 2, axis=-1, keepdims=True)
    return (x - mean) * jax.lax.rsqrt(var + LN_EPS) * g + b


def gpt_kernel(x_emb_ref, mask_ref, const_ref, wqkv_ref, wo_ref, w1_ref,
               w2_ref, lnf_ref, wlm_ref, logits_ref, x_vmem):
    """Grid = (batch_block, layer).  One step == one transformer block on one
    batch block; the activation x is carried in VMEM scratch across layers.
    The last layer step additionally applies ln_f + lm_head and writes logits.

    const_ref rows (per layer), width 4*D:
      0: ln1_g  1: ln1_b  2: ln2_g  3: ln2_b
      4: attn proj bias   5: ffn second bias   6: ffn first bias (full 4D)  7: pad
    lnf_ref rows (width D): [lnf_g, lnf_b, lm_head_bias(padded), 0, ...]
    mask_ref: additive f32 bias (0 / -1e30), block-diagonal causal, loop-invariant.
    """
    layer = pl.program_id(1)
    bt = x_vmem.shape[0]

    @pl.when(layer == 0)
    def _():
        x_vmem[...] = x_emb_ref[...]

    x = x_vmem[...]                                  # (BT, D) f32
    cp = const_ref[0]                                # (8, 4D) f32

    # ---- self-attention: ln1 fused, single bf16 QKV matmul ----
    xn1 = _layernorm(x, cp[0:1, :N_EMBD], cp[1:2, :N_EMBD])
    qkv = jnp.dot(xn1.astype(jnp.bfloat16), wqkv_ref[0],
                  preferred_element_type=jnp.float32)          # (BT, 3D) f32

    # head-major (H, BT, HS) views; batched attention (2 MXU pushes, 2 XLU
    # reductions per layer instead of 8).
    q = qkv[:, 0:N_EMBD].reshape(bt, N_HEAD, HEAD_SIZE)
    k = qkv[:, N_EMBD:2 * N_EMBD].reshape(bt, N_HEAD, HEAD_SIZE)
    v = qkv[:, 2 * N_EMBD:3 * N_EMBD].reshape(bt, N_HEAD, HEAD_SIZE)
    qh = pltpu.einshape("qhd->hqd", q).astype(jnp.bfloat16)    # (H, BT, HS)
    kh = pltpu.einshape("khd->hkd", k).astype(jnp.bfloat16)
    vh = pltpu.einshape("khd->hkd", v).astype(jnp.bfloat16)

    s = jnp.einsum('hqd,hkd->hqk', qh, kh,
                   preferred_element_type=jnp.float32)         # (H, BT, BT)
    s = s * (HEAD_SIZE ** -0.5) + mask_ref[...][None, :, :]    # additive mask
    s = s - jnp.max(s, axis=-1, keepdims=True)
    p = jnp.exp(s)
    # approx reciprocal (EUP slot); ~1e-3 rel. error vs exact softmax division.
    p = p * pl.reciprocal(jnp.sum(p, axis=-1, keepdims=True), approx=True)
    oh = jnp.einsum('hqk,hkd->hqd', p.astype(jnp.bfloat16), vh,
                    preferred_element_type=jnp.float32)        # (H, BT, HS)
    attn = pltpu.einshape("hqd->qhd", oh).reshape(bt, N_EMBD)  # lane-dense (BT, D)

    # ---- output projection + residual (proj bias in row 4) ----
    x = x + jnp.dot(attn.astype(jnp.bfloat16), wo_ref[0],
                    preferred_element_type=jnp.float32) + cp[4:5, :N_EMBD]

    # ---- feed-forward: ln2 fused, ReLU, residual (biases in rows 6 / 5) ----
    xn2 = _layernorm(x, cp[2:3, :N_EMBD], cp[3:4, :N_EMBD])
    hdn = jnp.dot(xn2.astype(jnp.bfloat16), w1_ref[0],
                  preferred_element_type=jnp.float32) + cp[6:7, :]
    hdn = jnp.maximum(hdn, 0.0)
    x = x + jnp.dot(hdn.astype(jnp.bfloat16), w2_ref[0],
                    preferred_element_type=jnp.float32) + cp[5:6, :N_EMBD]

    x_vmem[...] = x

    # ---- final LN + LM head (128-lane padded logits), only on last layer ----
    @pl.when(layer == pl.num_programs(1) - 1)
    def _():
        lnf = lnf_ref[...]                           # (8, D)
        xf = _layernorm(x, lnf[0:1], lnf[1:2])
        logits = jnp.dot(xf.astype(jnp.bfloat16), wlm_ref[...],
                         preferred_element_type=jnp.float32) + lnf[2:3]
        logits_ref[...] = logits.astype(logits_ref.dtype)


def gpt_pallas_forward(params, x_emb2d, mask, bt_block):
    d = N_EMBD
    bt_total = x_emb2d.shape[0]
    nb = bt_total // bt_block
    return pl.pallas_call(
        gpt_kernel,
        out_shape=jax.ShapeDtypeStruct((bt_total, VOCAB_PAD), jnp.float32),
        grid=(nb, N_LAYER),
        in_specs=[
            pl.BlockSpec((bt_block, d), lambda b, l: (b, 0)),          # embeddings
            pl.BlockSpec((bt_block, bt_block), lambda b, l: (0, 0)),   # mask bias (resident)
            pl.BlockSpec((1, 8, 4 * d), lambda b, l: (l, 0, 0)),       # ln/bias slab (f32)
            pl.BlockSpec((1, d, 3 * d), lambda b, l: (l, 0, 0)),       # QKV weight (bf16)
            pl.BlockSpec((1, d, d), lambda b, l: (l, 0, 0)),           # attn proj weight (bf16)
            pl.BlockSpec((1, d, 4 * d), lambda b, l: (l, 0, 0)),       # FFN w1 (bf16)
            pl.BlockSpec((1, 4 * d, d), lambda b, l: (l, 0, 0)),       # FFN w2 (bf16)
            pl.BlockSpec((8, d), lambda b, l: (0, 0)),                 # final-LN / lm bias
            pl.BlockSpec((d, VOCAB_PAD), lambda b, l: (0, 0)),         # lm head weight (bf16)
        ],
        out_specs=pl.BlockSpec((bt_block, VOCAB_PAD), lambda b, l: (b, 0)),
        scratch_shapes=[pltpu.VMEM((bt_block, d), jnp.float32)],
        compiler_params=pltpu.CompilerParams(
            dimension_semantics=("parallel", "arbitrary"),
            vmem_limit_bytes=32 * 1024 * 1024),
    )(x_emb2d, mask,
      params["const"], params["wqkv"], params["wo"],
      params["w1"], params["w2"], params["lnf"], params["wlm"])


# ---------------- parameters ----------------
def init_params(key):
    keys = iter(jax.random.split(key, 4 + 6 * N_LAYER))

    def nrm(shape):
        return 0.02 * jax.random.normal(next(keys), shape, jnp.float32)

    tok_emb = nrm((VOCAB, N_EMBD))
    pos_emb = nrm((BLOCK_SIZE, N_EMBD))

    ones = jnp.ones((N_EMBD,), jnp.float32)
    zeros = jnp.zeros((N_EMBD,), jnp.float32)
    pad_row = jnp.zeros((4 * N_EMBD,), jnp.float32)

    def widen(v):  # place a D-vector in the first D lanes of a 4D-wide row
        return jnp.zeros((4 * N_EMBD,), jnp.float32).at[:N_EMBD].set(v)

    consts, wqkv, wo, w1, w2 = [], [], [], [], []
    for _ in range(N_LAYER):
        # per-head q/k/v Linear(n_embd, head_size, bias=False), concatenated over heads
        wq = nrm((N_EMBD, N_HEAD * HEAD_SIZE))
        wk = nrm((N_EMBD, N_HEAD * HEAD_SIZE))
        wv = nrm((N_EMBD, N_HEAD * HEAD_SIZE))
        wqkv.append(jnp.concatenate([wq, wk, wv], axis=1))        # (D, 3D)
        wo.append(nrm((N_EMBD, N_EMBD)))
        w1.append(nrm((N_EMBD, 4 * N_EMBD)))
        w2.append(nrm((4 * N_EMBD, N_EMBD)))
        b1 = jnp.zeros((4 * N_EMBD,), jnp.float32)                # Linear bias init = 0
        # rows: ln1_g, ln1_b, ln2_g, ln2_b, proj_bias, ffn_b2, ffn_b1(full 4D), pad
        consts.append(jnp.stack([widen(ones), widen(zeros),
                                 widen(ones), widen(zeros),
                                 widen(zeros), widen(zeros),
                                 b1, pad_row]))                    # (8, 4D)

    w_lm = nrm((N_EMBD, VOCAB))
    wlm_pad = jnp.zeros((N_EMBD, VOCAB_PAD), jnp.float32).at[:, :VOCAB].set(w_lm)
    b_lm_pad = jnp.zeros((VOCAB_PAD,), jnp.float32)               # lm bias init = 0
    lnf = jnp.stack([ones, zeros, b_lm_pad,
                     zeros, zeros, zeros, zeros, zeros])          # (8, D)

    return {
        "tok_emb": tok_emb,
        "pos_emb": pos_emb,
        "const": jnp.stack(consts),                       # (L, 8, 4D) f32
        "wqkv": jnp.stack(wqkv).astype(jnp.bfloat16),     # (L, D, 3D) bf16
        "wo": jnp.stack(wo).astype(jnp.bfloat16),         # (L, D, D)  bf16
        "w1": jnp.stack(w1).astype(jnp.bfloat16),         # (L, D, 4D) bf16
        "w2": jnp.stack(w2).astype(jnp.bfloat16),         # (L, 4D, D) bf16
        "lnf": lnf,                                       # (8, D) f32
        "wlm": wlm_pad.astype(jnp.bfloat16),              # (D, 128) bf16
    }


# ---------------- model forward ----------------
def _causal_block_mask(bt_block, seqlen):
    # Additive bias: 0 where (same sequence AND key <= query), else -1e30.
    row = jnp.arange(bt_block)[:, None]
    col = jnp.arange(bt_block)[None, :]
    allow = ((row // seqlen) == (col // seqlen)) & (col <= row)
    return jnp.where(allow, 0.0, -1e30).astype(jnp.float32)


def gpt_forward(params, idx, targets=None):
    b, t = idx.shape
    # TODO(synk): token/position embedding gathers are plain-JAX glue (no clean Pallas gather).
    tok = params["tok_emb"][idx]                 # (B, T, D)
    pos = params["pos_emb"][:t]                  # (T, D)
    x = (tok + pos[None, :, :]).reshape(b * t, N_EMBD).astype(jnp.float32)

    assert b % NUM_BATCH_BLOCKS == 0, "batch must split evenly across batch blocks"
    bt_block = (b // NUM_BATCH_BLOCKS) * t
    mask = _causal_block_mask(bt_block, t)       # loop-invariant, hoisted out of the kernel grid

    logits_pad = gpt_pallas_forward(params, x, mask, bt_block)   # (B*T, 128)
    logits = logits_pad[:, :VOCAB].reshape(b, t, VOCAB)

    if targets is None:
        loss = None
    else:
        # cross-entropy glue, matches F.cross_entropy on flattened logits
        lg = logits.reshape(b * t, VOCAB)
        logz = jax.nn.logsumexp(lg, axis=-1)
        picked = jnp.take_along_axis(lg, targets.reshape(b * t, 1), axis=-1)[:, 0]
        loss = jnp.mean(logz - picked)
    return logits, loss


if __name__ == "__main__":
    key = jax.random.PRNGKey(0)
    pkey, ikey = jax.random.split(key)
    params = init_params(pkey)
    idx = jax.random.randint(ikey, (B, T), 0, VOCAB, dtype=jnp.int32)

    logits, loss = gpt_forward(params, idx, targets=None)
    logits = jax.block_until_ready(logits)
    assert logits.shape == (B, T, VOCAB)
    assert loss is None
    assert bool(jnp.all(jnp.isfinite(logits)))
    print("KERNEL_OK")
</pallas_src>

<mosaic_0001>
module attributes {stable_mosaic.version = 11 : i64} {
  func.func @gpt_kernel(%arg0: i32, %arg1: i32, %arg2: memref<128x128xf32, #tpu.memory_space<vmem>>, %arg3: memref<128x128xf32, #tpu.memory_space<vmem>>, %arg4: memref<1x8x512xf32, #tpu.memory_space<vmem>>, %arg5: memref<1x128x384xbf16, #tpu.memory_space<vmem>>, %arg6: memref<1x128x128xbf16, #tpu.memory_space<vmem>>, %arg7: memref<1x128x512xbf16, #tpu.memory_space<vmem>>, %arg8: memref<1x512x128xbf16, #tpu.memory_space<vmem>>, %arg9: memref<8x128xf32, #tpu.memory_space<vmem>>, %arg10: memref<128x128xbf16, #tpu.memory_space<vmem>>, %arg11: memref<128x128xf32, #tpu.memory_space<vmem>>, %arg12: memref<128x128xf32, #tpu.memory_space<vmem>>) attributes {dimension_semantics = [#tpu.dimension_semantics<parallel>, #tpu.dimension_semantics<arbitrary>], iteration_bounds = array<i64: 2, 2>, scalar_prefetch = 0 : i64, scratch_operands = 1 : i64, tpu.core_type = #tpu.core_type<tc>, window_params = [{transform_indices = @transform_0, window_bounds = array<i64: 128, 128>}, {pipeline_mode = #tpu.pipeline_mode<synchronous>, transform_indices = @transform_1, window_bounds = array<i64: 128, 128>}, {transform_indices = @transform_2, window_bounds = array<i64: 1, 8, 512>}, {transform_indices = @transform_3, window_bounds = array<i64: 1, 128, 384>}, {transform_indices = @transform_4, window_bounds = array<i64: 1, 128, 128>}, {transform_indices = @transform_5, window_bounds = array<i64: 1, 128, 512>}, {transform_indices = @transform_6, window_bounds = array<i64: 1, 512, 128>}, {pipeline_mode = #tpu.pipeline_mode<synchronous>, transform_indices = @transform_7, window_bounds = array<i64: 8, 128>}, {pipeline_mode = #tpu.pipeline_mode<synchronous>, transform_indices = @transform_8, window_bounds = array<i64: 128, 128>}, {transform_indices = @transform_9, window_bounds = array<i64: 128, 128>}]} {
    %c0_i32 = arith.constant 0 : i32
    %0 = arith.cmpi eq, %arg1, %c0_i32 : i32
    %1 = arith.extui %0 : i1 to i32
    %c0_i32_0 = arith.constant 0 : i32
    %2 = arith.cmpi ne, %1, %c0_i32_0 : i32
    scf.if %2 {
      %c0_41 = arith.constant 0 : index
      %c0_42 = arith.constant 0 : index
      %120 = vector.load %arg2[%c0_41, %c0_42] : memref<128x128xf32, #tpu.memory_space<vmem>>, vector<128x128xf32>
      %c0_43 = arith.constant 0 : index
      %c0_44 = arith.constant 0 : index
      %121 = vector.load %arg12[%c0_43, %c0_44] : memref<128x128xf32, #tpu.memory_space<vmem>>, vector<128x128xf32>
      tpu.vector_store %arg12[%c0_43, %c0_44], %120 {strides = array<i32>} : memref<128x128xf32, #tpu.memory_space<vmem>>, vector<128x128xf32>,
    } else {
    }
    %c0 = arith.constant 0 : index
    %c0_1 = arith.constant 0 : index
    %3 = vector.load %arg12[%c0, %c0_1] : memref<128x128xf32, #tpu.memory_space<vmem>>, vector<128x128xf32>
    %c0_2 = arith.constant 0 : index
    %c0_3 = arith.constant 0 : index
    %c0_4 = arith.constant 0 : index
    %4 = vector.load %arg4[%c0_2, %c0_3, %c0_4] : memref<1x8x512xf32, #tpu.memory_space<vmem>>, vector<1x8x512xf32>
    %5 = vector.shape_cast %4 : vector<1x8x512xf32> to vector<8x512xf32>
    %6 = vector.extract_strided_slice %5 {offsets = [0, 0], sizes = [1, 128], strides = [1, 1]} : vector<8x512xf32> to vector<1x128xf32>
    %7 = vector.extract_strided_slice %5 {offsets = [1, 0], sizes = [1, 128], strides = [1, 1]} : vector<8x512xf32> to vector<1x128xf32>
    %cst = arith.constant dense<0.000000e+00> : vector<128xf32>
    %8 = vector.multi_reduction <add>, %3, %cst [1] : vector<128x128xf32> to vector<128xf32>
    %9 = vector.shape_cast %8 : vector<128xf32> to vector<128x1xf32>
    %cst_5 = arith.constant 1.280000e+02 : f32
    %10 = vector.broadcast %cst_5 : f32 to vector<128x1xf32>
    %11 = arith.divf %9, %10 : vector<128x1xf32>
    %12 = vector.broadcast %11 : vector<128x1xf32> to vector<128x128xf32>
    %13 = arith.subf %3, %12 : vector<128x128xf32>
    %14 = arith.mulf %13, %13 : vector<128x128xf32>
    %cst_6 = arith.constant dense<0.000000e+00> : vector<128xf32>
    %15 = vector.multi_reduction <add>, %14, %cst_6 [1] : vector<128x128xf32> to vector<128xf32>
    %16 = vector.shape_cast %15 : vector<128xf32> to vector<128x1xf32>
    %cst_7 = arith.constant 1.280000e+02 : f32
    %17 = vector.broadcast %cst_7 : f32 to vector<128x1xf32>
    %18 = arith.divf %16, %17 : vector<128x1xf32>
    %19 = vector.broadcast %11 : vector<128x1xf32> to vector<128x128xf32>
    %20 = arith.subf %3, %19 : vector<128x128xf32>
    %cst_8 = arith.constant 9.99999974E-6 : f32
    %21 = vector.broadcast %cst_8 : f32 to vector<128x1xf32>
    %22 = arith.addf %18, %21 : vector<128x1xf32>
    %23 = math.rsqrt %22 : vector<128x1xf32>
    %24 = vector.broadcast %23 : vector<128x1xf32> to vector<128x128xf32>
    %25 = arith.mulf %20, %24 : vector<128x128xf32>
    %26 = vector.broadcast %6 : vector<1x128xf32> to vector<128x128xf32>
    %27 = arith.mulf %25, %26 : vector<128x128xf32>
    %28 = vector.broadcast %7 : vector<1x128xf32> to vector<128x128xf32>
    %29 = arith.addf %27, %28 : vector<128x128xf32>
    %30 = arith.truncf %29 : vector<128x128xf32> to vector<128x128xbf16>
    %c0_9 = arith.constant 0 : index
    %c0_10 = arith.constant 0 : index
    %c0_11 = arith.constant 0 : index
    %31 = vector.load %arg5[%c0_9, %c0_10, %c0_11] : memref<1x128x384xbf16, #tpu.memory_space<vmem>>, vector<1x128x384xbf16>
    %32 = vector.shape_cast %31 : vector<1x128x384xbf16> to vector<128x384xbf16>
    %cst_12 = arith.constant dense<0.000000e+00> : vector<128x384xf32>
    %33 = tpu.matmul %30, %32, %cst_12 {dimension_numbers = #tpu.dot_dimension_numbers<[1], [0], [0], [1], [0, 0, 1, 1], [], []>} : vector<128x128xbf16>, vector<128x384xbf16>, vector<128x384xf32> -> vector<128x384xf32>
    %34 = vector.extract_strided_slice %33 {offsets = [0, 0], sizes = [128, 128], strides = [1, 1]} : vector<128x384xf32> to vector<128x128xf32>
    %35 = vector.shape_cast %34 : vector<128x128xf32> to vector<128x4x32xf32>
    %36 = vector.extract_strided_slice %33 {offsets = [0, 128], sizes = [128, 128], strides = [1, 1]} : vector<128x384xf32> to vector<128x128xf32>
    %37 = vector.shape_cast %36 : vector<128x128xf32> to vector<128x4x32xf32>
    %38 = vector.extract_strided_slice %33 {offsets = [0, 256], sizes = [128, 128], strides = [1, 1]} : vector<128x384xf32> to vector<128x128xf32>
    %39 = vector.shape_cast %38 : vector<128x128xf32> to vector<128x4x32xf32>
    %40 = tpu.transpose %35, [1, 0, 2] : vector<128x4x32xf32> -> vector<4x128x32xf32>
    %41 = arith.truncf %40 : vector<4x128x32xf32> to vector<4x128x32xbf16>
    %42 = tpu.transpose %37, [1, 0, 2] : vector<128x4x32xf32> -> vector<4x128x32xf32>
    %43 = arith.truncf %42 : vector<4x128x32xf32> to vector<4x128x32xbf16>
    %44 = tpu.transpose %39, [1, 0, 2] : vector<128x4x32xf32> -> vector<4x128x32xf32>
    %45 = arith.truncf %44 : vector<4x128x32xf32> to vector<4x128x32xbf16>
    "tpu.trace_start"() <{level = 10 : i32, message = "hqd,hkd->hqk"}> : () -> ()
    %cst_13 = arith.constant dense<0.000000e+00> : vector<4x128x128xf32>
    %46 = tpu.matmul %41, %43, %cst_13 {dimension_numbers = #tpu.dot_dimension_numbers<[2], [2], [1], [1], [0, 0, 0, 1, 1, 1], [0], [0]>} : vector<4x128x32xbf16>, vector<4x128x32xbf16>, vector<4x128x128xf32> -> vector<4x128x128xf32>
    "tpu.trace_stop"() : () -> ()
    %cst_14 = arith.constant 0.176776692 : f32
    %47 = vector.broadcast %cst_14 : f32 to vector<4x128x128xf32>
    %48 = arith.mulf %46, %47 : vector<4x128x128xf32>
    %c0_15 = arith.constant 0 : index
    %c0_16 = arith.constant 0 : index
    %49 = vector.load %arg3[%c0_15, %c0_16] : memref<128x128xf32, #tpu.memory_space<vmem>>, vector<128x128xf32>
    %50 = vector.shape_cast %49 : vector<128x128xf32> to vector<1x128x128xf32>
    %51 = vector.broadcast %50 : vector<1x128x128xf32> to vector<4x128x128xf32>
    %52 = arith.addf %48, %51 : vector<4x128x128xf32>
    %cst_17 = arith.constant dense<0xFF800000> : vector<4x128xf32>
    %53 = vector.multi_reduction <maximumf>, %52, %cst_17 [2] : vector<4x128x128xf32> to vector<4x128xf32>
    %54 = vector.shape_cast %53 : vector<4x128xf32> to vector<4x128x1xf32>
    %55 = vector.broadcast %54 : vector<4x128x1xf32> to vector<4x128x128xf32>
    %56 = arith.subf %52, %55 : vector<4x128x128xf32>
    %57 = math.exp %56 : vector<4x128x128xf32>
    %cst_18 = arith.constant dense<0.000000e+00> : vector<4x128xf32>
    %58 = vector.multi_reduction <add>, %57, %cst_18 [2] : vector<4x128x128xf32> to vector<4x128xf32>
    %59 = vector.shape_cast %58 : vector<4x128xf32> to vector<4x128x1xf32>
    %60 = tpu.reciprocal %59 {approx = true} : vector<4x128x1xf32> -> vector<4x128x1xf32>
    %61 = vector.broadcast %60 : vector<4x128x1xf32> to vector<4x128x128xf32>
    %62 = arith.mulf %57, %61 : vector<4x128x128xf32>
    %63 = arith.truncf %62 : vector<4x128x128xf32> to vector<4x128x128xbf16>
    "tpu.trace_start"() <{level = 10 : i32, message = "hqk,hkd->hqd"}> : () -> ()
    %cst_19 = arith.constant dense<0.000000e+00> : vector<4x128x32xf32>
    %64 = tpu.matmul %63, %45, %cst_19 {dimension_numbers = #tpu.dot_dimension_numbers<[2], [1], [1], [2], [0, 0, 0, 1, 1, 2], [0], [0]>} : vector<4x128x128xbf16>, vector<4x128x32xbf16>, vector<4x128x32xf32> -> vector<4x128x32xf32>
    "tpu.trace_stop"() : () -> ()
    %65 = tpu.transpose %64, [1, 0, 2] : vector<4x128x32xf32> -> vector<128x4x32xf32>
    %66 = vector.shape_cast %65 : vector<128x4x32xf32> to vector<128x128xf32>
    %67 = arith.truncf %66 : vector<128x128xf32> to vector<128x128xbf16>
    %c0_20 = arith.constant 0 : index
    %c0_21 = arith.constant 0 : index
    %c0_22 = arith.constant 0 : index
    %68 = vector.load %arg6[%c0_20, %c0_21, %c0_22] : memref<1x128x128xbf16, #tpu.memory_space<vmem>>, vector<1x128x128xbf16>
    %69 = vector.shape_cast %68 : vector<1x128x128xbf16> to vector<128x128xbf16>
    %cst_23 = arith.constant dense<0.000000e+00> : vector<128x128xf32>
    %70 = tpu.matmul %67, %69, %cst_23 {dimension_numbers = #tpu.dot_dimension_numbers<[1], [0], [0], [1], [0, 0, 1, 1], [], []>} : vector<128x128xbf16>, vector<128x128xbf16>, vector<128x128xf32> -> vector<128x128xf32>
    %71 = arith.addf %3, %70 : vector<128x128xf32>
    %72 = vector.extract_strided_slice %5 {offsets = [4, 0], sizes = [1, 128], strides = [1, 1]} : vector<8x512xf32> to vector<1x128xf32>
    %73 = vector.broadcast %72 : vector<1x128xf32> to vector<128x128xf32>
    %74 = arith.addf %71, %73 : vector<128x128xf32>
    %75 = vector.extract_strided_slice %5 {offsets = [2, 0], sizes = [1, 128], strides = [1, 1]} : vector<8x512xf32> to vector<1x128xf32>
    %76 = vector.extract_strided_slice %5 {offsets = [3, 0], sizes = [1, 128], strides = [1, 1]} : vector<8x512xf32> to vector<1x128xf32>
    %cst_24 = arith.constant dense<0.000000e+00> : vector<128xf32>
    %77 = vector.multi_reduction <add>, %74, %cst_24 [1] : vector<128x128xf32> to vector<128xf32>
    %78 = vector.shape_cast %77 : vector<128xf32> to vector<128x1xf32>
    %cst_25 = arith.constant 1.280000e+02 : f32
    %79 = vector.broadcast %cst_25 : f32 to vector<128x1xf32>
    %80 = arith.divf %78, %79 : vector<128x1xf32>
    %81 = vector.broadcast %80 : vector<128x1xf32> to vector<128x128xf32>
    %82 = arith.subf %74, %81 : vector<128x128xf32>
    %83 = arith.mulf %82, %82 : vector<128x128xf32>
    %cst_26 = arith.constant dense<0.000000e+00> : vector<128xf32>
    %84 = vector.multi_reduction <add>, %83, %cst_26 [1] : vector<128x128xf32> to vector<128xf32>
    %85 = vector.shape_cast %84 : vector<128xf32> to vector<128x1xf32>
    %cst_27 = arith.constant 1.280000e+02 : f32
    %86 = vector.broadcast %cst_27 : f32 to vector<128x1xf32>
    %87 = arith.divf %85, %86 : vector<128x1xf32>
    %88 = vector.broadcast %80 : vector<128x1xf32> to vector<128x128xf32>
    %89 = arith.subf %74, %88 : vector<128x128xf32>
    %cst_28 = arith.constant 9.99999974E-6 : f32
    %90 = vector.broadcast %cst_28 : f32 to vector<128x1xf32>
    %91 = arith.addf %87, %90 : vector<128x1xf32>
    %92 = math.rsqrt %91 : vector<128x1xf32>
    %93 = vector.broadcast %92 : vector<128x1xf32> to vector<128x128xf32>
    %94 = arith.mulf %89, %93 : vector<128x128xf32>
    %95 = vector.broadcast %75 : vector<1x128xf32> to vector<128x128xf32>
    %96 = arith.mulf %94, %95 : vector<128x128xf32>
    %97 = vector.broadcast %76 : vector<1x128xf32> to vector<128x128xf32>
    %98 = arith.addf %96, %97 : vector<128x128xf32>
    %99 = arith.truncf %98 : vector<128x128xf32> to vector<128x128xbf16>
    %c0_29 = arith.constant 0 : index
    %c0_30 = arith.constant 0 : index
    %c0_31 = arith.constant 0 : index
    %100 = vector.load %arg7[%c0_29, %c0_30, %c0_31] : memref<1x128x512xbf16, #tpu.memory_space<vmem>>, vector<1x128x512xbf16>
    %101 = vector.shape_cast %100 : vector<1x128x512xbf16> to vector<128x512xbf16>
    %cst_32 = arith.constant dense<0.000000e+00> : vector<128x512xf32>
    %102 = tpu.matmul %99, %101, %cst_32 {dimension_numbers = #tpu.dot_dimension_numbers<[1], [0], [0], [1], [0, 0, 1, 1], [], []>} : vector<128x128xbf16>, vector<128x512xbf16>, vector<128x512xf32> -> vector<128x512xf32>
    %103 = vector.extract_strided_slice %5 {offsets = [6, 0], sizes = [1, 512], strides = [1, 1]} : vector<8x512xf32> to vector<1x512xf32>
    %104 = vector.broadcast %103 : vector<1x512xf32> to vector<128x512xf32>
    %105 = arith.addf %102, %104 : vector<128x512xf32>
    %cst_33 = arith.constant 0.000000e+00 : f32
    %106 = vector.broadcast %cst_33 : f32 to vector<128x512xf32>
    %107 = arith.maximumf %105, %106 : vector<128x512xf32>
    %108 = arith.truncf %107 : vector<128x512xf32> to vector<128x512xbf16>
    %c0_34 = arith.constant 0 : index
    %c0_35 = arith.constant 0 : index
    %c0_36 = arith.constant 0 : index
    %109 = vector.load %arg8[%c0_34, %c0_35, %c0_36] : memref<1x512x128xbf16, #tpu.memory_space<vmem>>, vector<1x512x128xbf16>
    %110 = vector.shape_cast %109 : vector<1x512x128xbf16> to vector<512x128xbf16>
    %cst_37 = arith.constant dense<0.000000e+00> : vector<128x128xf32>
    %111 = tpu.matmul %108, %110, %cst_37 {dimension_numbers = #tpu.dot_dimension_numbers<[1], [0], [0], [1], [0, 0, 1, 1], [], []>} : vector<128x512xbf16>, vector<512x128xbf16>, vector<128x128xf32> -> vector<128x128xf32>
    %112 = arith.addf %74, %111 : vector<128x128xf32>
    %113 = vector.extract_strided_slice %5 {offsets = [5, 0], sizes = [1, 128], strides = [1, 1]} : vector<8x512xf32> to vector<1x128xf32>
    %114 = vector.broadcast %113 : vector<1x128xf32> to vector<128x128xf32>
    %115 = arith.addf %112, %114 : vector<128x128xf32>
    %c0_38 = arith.constant 0 : index
    %c0_39 = arith.constant 0 : index
    %116 = vector.load %arg12[%c0_38, %c0_39] : memref<128x128xf32, #tpu.memory_space<vmem>>, vector<128x128xf32>
    tpu.vector_store %arg12[%c0_38, %c0_39], %115 {strides = array<i32>} : memref<128x128xf32, #tpu.memory_space<vmem>>, vector<128x128xf32>,
    %c1_i32 = arith.constant 1 : i32
    %117 = arith.cmpi eq, %arg1, %c1_i32 : i32
    %118 = arith.extui %117 : i1 to i32
    %c0_i32_40 = arith.constant 0 : i32
    %119 = arith.cmpi ne, %118, %c0_i32_40 : i32
    scf.if %119 {
      %c0_41 = arith.constant 0 : index
      %c0_42 = arith.constant 0 : index
      %120 = vector.load %arg9[%c0_41, %c0_42] : memref<8x128xf32, #tpu.memory_space<vmem>>, vector<8x128xf32>
      %121 = vector.extract_strided_slice %120 {offsets = [0, 0], sizes = [1, 128], strides = [1, 1]} : vector<8x128xf32> to vector<1x128xf32>
      %122 = vector.extract_strided_slice %120 {offsets = [1, 0], sizes = [1, 128], strides = [1, 1]} : vector<8x128xf32> to vector<1x128xf32>
      %cst_43 = arith.constant dense<0.000000e+00> : vector<128xf32>
      %123 = vector.multi_reduction <add>, %115, %cst_43 [1] : vector<128x128xf32> to vector<128xf32>
      %124 = vector.shape_cast %123 : vector<128xf32> to vector<128x1xf32>
      %cst_44 = arith.constant 1.280000e+02 : f32
      %125 = vector.broadcast %cst_44 : f32 to vector<128x1xf32>
      %126 = arith.divf %124, %125 : vector<128x1xf32>
      %127 = vector.broadcast %126 : vector<128x1xf32> to vector<128x128xf32>
      %128 = arith.subf %115, %127 : vector<128x128xf32>
      %129 = arith.mulf %128, %128 : vector<128x128xf32>
      %cst_45 = arith.constant dense<0.000000e+00> : vector<128xf32>
      %130 = vector.multi_reduction <add>, %129, %cst_45 [1] : vector<128x128xf32> to vector<128xf32>
      %131 = vector.shape_cast %130 : vector<128xf32> to vector<128x1xf32>
      %cst_46 = arith.constant 1.280000e+02 : f32
      %132 = vector.broadcast %cst_46 : f32 to vector<128x1xf32>
      %133 = arith.divf %131, %132 : vector<128x1xf32>
      %134 = vector.broadcast %126 : vector<128x1xf32> to vector<128x128xf32>
      %135 = arith.subf %115, %134 : vector<128x128xf32>
      %cst_47 = arith.constant 9.99999974E-6 : f32
      %136 = vector.broadcast %cst_47 : f32 to vector<128x1xf32>
      %137 = arith.addf %133, %136 : vector<128x1xf32>
      %138 = math.rsqrt %137 : vector<128x1xf32>
      %139 = vector.broadcast %138 : vector<128x1xf32> to vector<128x128xf32>
      %140 = arith.mulf %135, %139 : vector<128x128xf32>
      %141 = vector.broadcast %121 : vector<1x128xf32> to vector<128x128xf32>
      %142 = arith.mulf %140, %141 : vector<128x128xf32>
      %143 = vector.broadcast %122 : vector<1x128xf32> to vector<128x128xf32>
      %144 = arith.addf %142, %143 : vector<128x128xf32>
      %145 = arith.truncf %144 : vector<128x128xf32> to vector<128x128xbf16>
      %c0_48 = arith.constant 0 : index
      %c0_49 = arith.constant 0 : index
      %146 = vector.load %arg10[%c0_48, %c0_49] : memref<128x128xbf16, #tpu.memory_space<vmem>>, vector<128x128xbf16>
      %cst_50 = arith.constant dense<0.000000e+00> : vector<128x128xf32>
      %147 = tpu.matmul %145, %146, %cst_50 {dimension_numbers = #tpu.dot_dimension_numbers<[1], [0], [0], [1], [0, 0, 1, 1], [], []>} : vector<128x128xbf16>, vector<128x128xbf16>, vector<128x128xf32> -> vector<128x128xf32>
      %148 = vector.extract_strided_slice %120 {offsets = [2, 0], sizes = [1, 128], strides = [1, 1]} : vector<8x128xf32> to vector<1x128xf32>
      %149 = vector.broadcast %148 : vector<1x128xf32> to vector<128x128xf32>
      %150 = arith.addf %147, %149 : vector<128x128xf32>
      %c0_51 = arith.constant 0 : index
      %c0_52 = arith.constant 0 : index
      %151 = vector.load %arg11[%c0_51, %c0_52] : memref<128x128xf32, #tpu.memory_space<vmem>>, vector<128x128xf32>
      tpu.vector_store %arg11[%c0_51, %c0_52], %150 {strides = array<i32>} : memref<128x128xf32, #tpu.memory_space<vmem>>, vector<128x128xf32>,
    } else {
    }
    return
  }
  func.func @transform_0(%arg0: i32, %arg1: i32) -> (i32, i32) {
    %c0_i32 = arith.constant 0 : i32
    %c0_i32_0 = arith.constant 0 : i32
    return %arg0, %c0_i32 : i32, i32
  }
  func.func @transform_1(%arg0: i32, %arg1: i32) -> (i32, i32) {
    %c0_i32 = arith.constant 0 : i32
    %c0_i32_0 = arith.constant 0 : i32
    %c0_i32_1 = arith.constant 0 : i32
    return %c0_i32, %c0_i32_0 : i32, i32
  }
  func.func @transform_2(%arg0: i32, %arg1: i32) -> (i32, i32, i32) {
    %c0_i32 = arith.constant 0 : i32
    %c0_i32_0 = arith.constant 0 : i32
    %c0_i32_1 = arith.constant 0 : i32
    return %arg1, %c0_i32, %c0_i32_0 : i32, i32, i32
  }
  func.func @transform_3(%arg0: i32, %arg1: i32) -> (i32, i32, i32) {
    %c0_i32 = arith.constant 0 : i32
    %c0_i32_0 = arith.constant 0 : i32
    %c0_i32_1 = arith.constant 0 : i32
    return %arg1, %c0_i32, %c0_i32_0 : i32, i32, i32
  }
  func.func @transform_4(%arg0: i32, %arg1: i32) -> (i32, i32, i32) {
    %c0_i32 = arith.constant 0 : i32
    %c0_i32_0 = arith.constant 0 : i32
    %c0_i32_1 = arith.constant 0 : i32
    return %arg1, %c0_i32, %c0_i32_0 : i32, i32, i32
  }
  func.func @transform_5(%arg0: i32, %arg1: i32) -> (i32, i32, i32) {
    %c0_i32 = arith.constant 0 : i32
    %c0_i32_0 = arith.constant 0 : i32
    %c0_i32_1 = arith.constant 0 : i32
    return %arg1, %c0_i32, %c0_i32_0 : i32, i32, i32
  }
  func.func @transform_6(%arg0: i32, %arg1: i32) -> (i32, i32, i32) {
    %c0_i32 = arith.constant 0 : i32
    %c0_i32_0 = arith.constant 0 : i32
    %c0_i32_1 = arith.constant 0 : i32
    return %arg1, %c0_i32, %c0_i32_0 : i32, i32, i32
  }
  func.func @transform_7(%arg0: i32, %arg1: i32) -> (i32, i32) {
    %c0_i32 = arith.constant 0 : i32
    %c0_i32_0 = arith.constant 0 : i32
    %c0_i32_1 = arith.constant 0 : i32
    return %c0_i32, %c0_i32_0 : i32, i32
  }
  func.func @transform_8(%arg0: i32, %arg1: i32) -> (i32, i32) {
    %c0_i32 = arith.constant 0 : i32
    %c0_i32_0 = arith.constant 0 : i32
    %c0_i32_1 = arith.constant 0 : i32
    return %c0_i32, %c0_i32_0 : i32, i32
  }
  func.func @transform_9(%arg0: i32, %arg1: i32) -> (i32, i32) {
    %c0_i32 = arith.constant 0 : i32
    %c0_i32_0 = arith.constant 0 : i32
    return %arg0, %c0_i32 : i32, i32
  }
}

</mosaic_0001>

<bundles_post_ra>
// kernel: tpu_custom_call.1
= control target key start
LH: loop header
LB: loop body
LE: loop exit
PB: predicated region body
PF: predicated region fallthrough
CT: control target
= control target key end

     0   :  { %s22663_s0 = inlined_call_operand.hbm [shape: f32[256,128], index: 0, kind: input, shape index: {}]   ;;  %s22664_s1 = inlined_call_operand.hbm [shape: f32[128,128], index: 1, kind: input, shape index: {}]   ;;  %s22665_s2 = inlined_call_operand.hbm [shape: f32[2,8,512], index: 2, kind: input, shape index: {}]   ;;  %s22666_s3 = inlined_call_operand.hbm [shape: bf16[2,128,384], index: 3, kind: input, shape index: {}]   ;;  %s22667_s4 = inlined_call_operand.hbm [shape: bf16[2,128,128], index: 4, kind: input, shape index: {}]   ;;  %s22668_s5 = inlined_call_operand.hbm [shape: bf16[2,128,512], index: 5, kind: input, shape index: {}]   ;;  %s22669_s6 = inlined_call_operand.hbm [shape: bf16[2,512,128], index: 6, kind: input, shape index: {}]   ;;  %s22670_s7 = inlined_call_operand.vmem [shape: f32[8,128], index: 7, kind: input, shape index: {}]   ;;  %s22671_s8 = inlined_call_operand.hbm [shape: bf16[128,128], index: 8, kind: input, shape index: {}]   ;;  %s22672_s9 = inlined_call_operand.hbm [shape: f32[256,128], index: 9, kind: output, shape index: {}]  }
   0x1   :  { %22962 = sst [smem:[#allocation126_spill]] %s22663_s0 }
   0x2   :  { %22963 = sst [smem:[#allocation127_spill]] %s22664_s1 }
   0x3   :  { %22964 = sst [smem:[#allocation128_spill]] %s22665_s2 }
   0x4   :  { %22965 = sst [smem:[#allocation129_spill]] %s22666_s3 }
   0x5   :  { %22966 = sst [smem:[#allocation130_spill]] %s22667_s4 }
   0x6   :  { %22967 = sst [smem:[#allocation131_spill]] %s22668_s5 }
   0x7   :  { %22968 = sst [smem:[#allocation132_spill]] %s22670_s7 }
   0x8   :  { %22969 = sst [smem:[#allocation133_spill]] %s22671_s8 }
   0x9   :  { %22970 = sst [smem:[#allocation134_spill]] %s22672_s9 }
   0xa   :  { %14 = vsyncpa [#allocation4], 0 }
   0xb   :  { %16 = vsyncpa [#allocation4 + $0x1], 0 }
   0xc   :  { %17 = vsyncpa [#allocation7], 0 }
   0xd   :  { %18 = vsyncpa [#allocation5], 0 }
   0xe   :  { %20 = vsyncpa [#allocation5 + $0x1], 0  ;;  %s16802_s30 = smov 0   ;;  %s16804_s10 = smov 0  }
   0xf   :  { %s16806_s11 = smov 0   ;;  %s16808_s12 = smov 0  }
  0x10   :  { %s16810_s13 = smov 0   ;;  %s16812_s14 = smov 0  }
  0x11   :  { %s16814_s15 = smov 0   ;;  %s16816_s16 = smov 0  }
  0x12   :  { %s16818_s17 = smov 0   ;;  %s16820_s18 = smov 0  }
  0x13   :  { %s16822_s19 = smov 0  }
  0x14 LB: > { %22971 = sst [smem:[#allocation20_spill]] %s16693_s11  ;;  %p52_p0 = scmp.ne.s32.totalorder %s16705_s14, %s16701_s13  ;;  %s16725_s19 = sphi %s16822_s19, %s26_s19   ;;  %s16721_s18 = sphi %s16820_s18, %s23549_s18   ;;  %s16717_s17 = sphi %s16818_s17, %s23555_s17   ;;  %s16713_s16 = sphi %s16816_s16, %s23547_s16   ;;  %s16709_s15 = sphi %s16814_s15, %s23554_s15   ;;  %s16705_s14 = sphi %s16812_s14, %s23546_s14   ;;  %s16701_s13 = sphi %s16810_s13, %s23553_s13   ;;  %s16697_s12 = sphi %s16808_s12, %s23552_s12   ;;  %s16693_s11 = sphi %s16806_s11, %s23544_s11   ;;  %s16689_s10 = sphi %s16804_s10, %s23551_s10   ;;  %s16685_s30 = sphi %s16802_s30, %s23550_s30  }
  0x15   : > { %22972 = sst [smem:[#allocation21_spill]] %s16705_s14  ;;  %p53_p1 = scmp.eq.s32.totalorder %s16725_s19, 0 }
  0x16   : > { %22973 = sst [smem:[#allocation22_spill]] %s16709_s15  ;;  %p15645_p3 = scmp.lt.s32.totalorder %s16725_s19, 4 }
  0x17   : > { %22974 = sst [smem:[#allocation23_spill]] %s16713_s16  ;;  %p54_p2 = por %p53_p1, %p52_p0 }
  0x18   : > { %22975 = sst [smem:[#allocation24_spill]] %s16721_s18  ;;  %s330_s22 = sand.u32 1, %s16725_s19  }
  0x19   : > { %s332_s23 = sand.u32 1, %s16705_s14   ;;  %s14862_s25 = sshll.u32 %s16721_s18, 11 }
  0x1a   : > { %s14566_s24 = sshll.u32 %s332_s23, 7  ;;  %s22976_s0 = sld [smem:[#allocation126_spill]] }
  0x1b   : > { %s334_s29 = scalar_lea.vmem [#allocation3], %s14566_s24  ;;  %p16876_p4 = pnand %p15645_p3, %p54_p2 }
  0x1c   : > { %s341_s9 = sshll.u32 %s334_s29, 4  ;;  %s16880_s21 = scalar_lea.sflag [#allocation4], %s330_s22  ;;  %s342_s9 = int_to_ptr.vmem [resolvable:$true] %s341_s9 }
  0x1d   : > { %p16375_p5 = pneg %p16876_p4  ;;  %s16386_s16 = scalar_lea.vmem %s342_s9, 2048 }
  0x1e   : > { %p16387_p6 = scmp.ne.s32.totalorder %s342_s9, %s16386_s16  ;;  %s16727_s23 = smov [#allocation3]  }
  0x1f   : > { %s16391_s26 = sshll.u32 %s16727_s23, 4  ;;  %s16392_s26 = int_to_ptr.vmem [resolvable:$false] %s16391_s26 }
  0x20   : > { %s340_s28 = scalar_lea.hbm %s22976_s0, %s14862_s25  ;;  %p16389_p7 = pnand %p16387_p6, %p16375_p5 }
  0x21   : > { %s16393_s24 = scalar_lea.vmem %s16392_s26, 4096  ;;  %p16394_p9 = scmp.lt.s32.totalorder %s342_s9, %s16392_s26 }
  0x22   : > { %p16390_p8 = pneg %p16389_p7  ;;  %p16395_p10 = scmp.lt.s32.totalorder %s16393_s24, %s16386_s16 }
  0x24   : > { %p16396_p11 = por %p16395_p10, %p16394_p9 }
  0x26   : > { %p16397_p12 = pnand %p16396_p11, %p16390_p8 }
  0x28   : > { %16400 = shalt.err (!%p16397_p12)
}
  0x29   : > { %s22674_s25 = smov 128   ;;  %s22675_s22 = smov 8  }
  0x2a   : > { %15623 = dma.hbm_to_vmem [thread:$0]  (!%p16876_p4), %s340_s28, 2048, %s342_s9, %s16880_s21, %s22674_s25, %s22674_s25, %s22675_s22  }
  0x2b   : > { %s35_s16 = sadd.s32 1, %s16717_s17  ;;  %s92_s27 = sadd.s32 1, %s16693_s11 }
  0x2c   : > { %p36_p13 = scmp.ge.s32.totalorder %s35_s16, 2  ;;  %p99_p2 = scmp.ne.s32.totalorder %s16693_s11, %s16689_s10 }
  0x2d   : > { %s16895_s29 = sand.u32 1, %s16693_s11   ;;  %s14863_s23 = sshll.u32 %s16717_s17, 9 }
  0x2e   : > { %s23557_s16 = smov (%p36_p13, %s35_s16), 0  ;;  %s22979_s26 = sadd.s32 1, %s16721_s18 }
  0x2f   : > { %22978 = sst [smem:[#allocation25_spill]] %s23557_s16  ;;  %s23559_s26 = smov (!%p36_p13, %s22979_s26), %s16721_s18 }
  0x30   : > { %s89_s9 = ssub.s32 %s16717_s17, %s23557_s16  ;;  %p101_p4 = por %p99_p2, %p53_p1 }
  0x31   : > { %p40_p5 = scmp.ge.s32.totalorder %s23559_s26, 2  ;;  %p90_p6 = scmp.eq.s32.totalorder %s89_s9, 0 }
  0x32   : > { %s14569_s20 = sshll.u32 %s16895_s29, 5  ;;  %s22980_s2 = sld [smem:[#allocation128_spill]] }
  0x33   : > { %s23561_s26 = smov (%p40_p5, %s23559_s26), 0  ;;  %s355_s7 = scalar_lea.vmem [#allocation8], %s14569_s20 }
  0x34   : > { %22981 = sst [smem:[#allocation26_spill]] %s23561_s26  ;;  %s42_s0 = ssub.s32 %s16721_s18, %s23561_s26 }
  0x35   : > { %s16914_s22 = scalar_select %p90_p6, %s16693_s11, %s92_s27  }
  0x36   : > { %p43_p7 = scmp.eq.s32.totalorder %s42_s0, 0  ;;  %s363_s15 = sshll.u32 %s355_s7, 4  ;;  %s364_s15 = int_to_ptr.vmem [resolvable:$true] %s363_s15 }
  0x37   : > { %22982 = sst [smem:[#allocation27_spill]] %s16914_s22  ;;  %p16920_p8 = pnand %p15645_p3, %p101_p4 }
  0x38   : > { %s361_s25 = scalar_lea.hbm %s22980_s2, %s14863_s23  ;;  %s22984_s9 = sadd.s32 1, %s16705_s14 }
  0x39   : > { %s22983_s16 = scalar_select %p16920_p8, 1, 0 }
  0x3a   : > { %s16927_s8 = scalar_select %p43_p7, %s16705_s14, %s22984_s9  }
  0x3b   : > { %s15588_s23 = smul.u32 192, %s16895_s29  ;;  %p16932_p1 = pneg %p16920_p8 }
  0x3c   : > { %22985 = sst [smem:[#allocation28_spill]] %s16927_s8  ;;  %s16414_s0 = scalar_lea.vmem %s364_s15, 512 }
  0x3d   : > { %p16415_p9 = scmp.ne.s32.totalorder %s364_s15, %s16414_s0  ;;  %s16730_s7 = smov [#allocation8]  }
  0x3e   : > { %s16419_s27 = sshll.u32 %s16730_s7, 4  ;;  %s16420_s27 = int_to_ptr.vmem [resolvable:$false] %s16419_s27 }
  0x3f   : > { %p16417_p10 = pnand %p16415_p9, %p16932_p1  ;;  %s16421_s20 = scalar_lea.vmem %s16420_s27, 1024 }
  0x40   : > { %p16422_p3 = scmp.lt.s32.totalorder %s364_s15, %s16420_s27  ;;  %p16423_p12 = scmp.lt.s32.totalorder %s16421_s20, %s16414_s0 }
  0x41   : > { %p16418_p11 = pneg %p16417_p10 }
  0x42   : > { %p16424_p13 = por %p16423_p12, %p16422_p3 }
  0x44   : > { %p16425_p2 = pnand %p16424_p13, %p16418_p11 }
  0x46   : > { %16428 = shalt.err (!%p16425_p2)
}
  0x47   : > { %15626 = dma.hbm_to_vmem [thread:$0]  (!%p16920_p8), %s361_s25, 512, %s364_s15, %s16880_s21  }
  0x48   : > { %s15589_s24 = smul.u32 3072, %s16717_s17  ;;  %s374_s9 = scalar_lea.vmem [#allocation9], %s15588_s23 }
  0x49   : > { %s381_s2 = sshll.u32 %s374_s9, 4  ;;  %s22987_s3 = sld [smem:[#allocation129_spill]]  ;;  %s382_s2 = int_to_ptr.vmem [resolvable:$true] %s381_s2 }
  0x4a   : > { %s16442_s8 = scalar_lea.vmem %s382_s2, 3072  ;;  %s16731_s0 = smov [#allocation9]  }
  0x4b   : > { %p16443_p4 = scmp.ne.s32.totalorder %s382_s2, %s16442_s8  ;;  %s16447_s27 = sshll.u32 %s16731_s0, 4  ;;  %s16448_s27 = int_to_ptr.vmem [resolvable:$false] %s16447_s27 }
  0x4c   : > { %s16449_s20 = scalar_lea.vmem %s16448_s27, 6144  ;;  %p16450_p7 = scmp.lt.s32.totalorder %s382_s2, %s16448_s27 }
  0x4d   : > { %p16445_p5 = pnand %p16443_p4, %p16932_p1  ;;  %p16451_p9 = scmp.lt.s32.totalorder %s16449_s20, %s16442_s8 }
  0x4f   : > { %s380_s7 = scalar_lea.hbm %s22987_s3, %s15589_s24  ;;  %p16446_p6 = pneg %p16445_p5 }
  0x50   : > { %p16452_p10 = por %p16451_p9, %p16450_p7 }
  0x52   : > { %p16453_p11 = pnand %p16452_p10, %p16446_p6 }
  0x54   : > { %16456 = shalt.err (!%p16453_p11)
}
  0x55   : > { %s16732_s15 = smov 192   ;;  %s16733_s18 = smov 12  }
  0x56   : > { %15629 = dma.hbm_to_vmem [thread:$0]  (!%p16920_p8), %s380_s7, 3072, %s382_s2, %s16880_s21, %s16732_s15, %s16732_s15, %s16733_s18  }
  0x57   : > { %s14573_s25 = sshll.u32 %s16895_s29, 6  ;;  %s14864_s26 = sshll.u32 %s16717_s17, 10 }
  0x58   : > { %s22988_s4 = sld [smem:[#allocation130_spill]]  ;;  %s395_s0 = scalar_lea.vmem [#allocation10], %s14573_s25 }
  0x59   : > { %s402_s8 = sshll.u32 %s395_s0, 4  ;;  %s16734_s20 = smov [#allocation10]   ;;  %s403_s8 = int_to_ptr.vmem [resolvable:$true] %s402_s8 }
  0x5a   : > { %s16470_s27 = scalar_lea.vmem %s403_s8, 1024  ;;  %s16475_s3 = sshll.u32 %s16734_s20, 4  ;;  %s16476_s3 = int_to_ptr.vmem [resolvable:$false] %s16475_s3 }
  0x5b   : > { %p16471_p3 = scmp.ne.s32.totalorder %s403_s8, %s16470_s27  ;;  %s16477_s22 = scalar_lea.vmem %s16476_s3, 2048 }
  0x5c   : > { %p16478_p2 = scmp.lt.s32.totalorder %s403_s8, %s16476_s3  ;;  %p16479_p4 = scmp.lt.s32.totalorder %s16477_s22, %s16470_s27 }
  0x5d   : > { %p16473_p12 = pnand %p16471_p3, %p16932_p1 }
  0x5e   : > { %s401_s9 = scalar_lea.hbm %s22988_s4, %s14864_s26  ;;  %p16480_p5 = por %p16479_p4, %p16478_p2 }
  0x5f   : > { %p16474_p13 = pneg %p16473_p12 }
  0x61   : > { %p16481_p6 = pnand %p16480_p5, %p16474_p13 }
  0x63   : > { %16484 = shalt.err (!%p16481_p6)
}
  0x64   : > { %s22681_s2 = smov 64   ;;  %s22683_s7 = smov 4  }
  0x65   : > { %15632 = dma.hbm_to_vmem [thread:$0]  (!%p16920_p8), %s401_s9, 1024, %s403_s8, %s16880_s21, %s22681_s2, %s22681_s2, %s22683_s7  }
  0x66   : > { %s16964_s3 = sadd.s32 4294967295, %s16725_s19   ;;  %s14561_s22 = sadd.s32 4294967294, %s16725_s19  }
  0x67   : > { %p58_p7 = scmp.ne.s32.totalorder %s16701_s13, %s16697_s12  ;;  %p22685_p9 = scmp.eq.s32.totalorder %s16964_s3, 0 }
  0x68   : > { %p105_p10 = scmp.ne.s32.totalorder %s16689_s10, %s16685_s30  ;;  %p275_p11 = scmp.eq.s32.totalorder %s16964_s3, 3 }
  0x69   : > { %p281_p3 = scmp.eq.s32.totalorder %s14561_s22, 3  ;;  %p16975_p12 = por %p22685_p9, %p58_p7 }
  0x6a   : > { %p16981_p13 = por %p105_p10, %p22685_p9  ;;  %p16988_p2 = por %p275_p11, %p52_p0 }
  0x6b   : > { %p16992_p4 = por %p281_p3, %p58_p7  ;;  %p14562_p5 = scmp.ge.s32.totalorder %s16725_s19, 1 }
  0x6c   : > { %s22990_s18 = scalar_select %p16981_p13, 1, 0 }
  0x6d   : > { %s22991_s25 = scalar_select %p16988_p2, 1, 0 }
  0x6e   : > { %s22992_s30 = scalar_select %p16992_p4, 1, 0 }
  0x6f   : > { %p288_p6 = scmp.lt.s32.totalorder %s16725_s19, 5  ;;  %s16737_s23 = smov [#allocation6]  }
  0x70   : > { %s300_s24 = sshll.u32 %s16737_s23, 4  ;;  %s22686_s9 = sshll.u32 %s16895_s29, 8  ;;  %s301_s24 = int_to_ptr.vmem [resolvable:$true] %s300_s24 }
  0x71   : > { %p16998_p8 = pnand %p14562_p5, %p288_p6  ;;  %s22687_s0 = sshll.u32 %s16717_s17, 12 }
  0x72   : > { %s416_s8 = scalar_lea.vmem [#allocation11], %s22686_s9  ;;  %s22995_s5 = sld [smem:[#allocation131_spill]] }
  0x73   : > { %p15613_p0 = pneg %p16998_p8  ;;  %s423_s27 = sshll.u32 %s416_s8, 4  ;;  %s17021_s27 = int_to_ptr.vmem [resolvable:$true] %s423_s27 }
  0x74   : > { %s16496_s7 = scalar_lea.vmem %s301_s24, 2048  ;;  %p16504_p6 = scmp.lt.s32.totalorder %s301_s24, %s301_s24 }
  0x75   : > { %p17010_p7 = pnand %p15613_p0, %p22685_p9  ;;  %p16497_p11 = scmp.ne.s32.totalorder %s301_s24, %s16496_s7 }
  0x76   : > { %p16505_p0 = scmp.lt.s32.totalorder %s16496_s7, %s16496_s7 }
  0x77   : > { %p16487_p10 = pneg %p17010_p7 }
  0x78   : > { %s17019_s23 = scalar_lea.hbm %s22995_s5, %s22687_s0  ;;  %p16506_p9 = por %p16505_p0, %p16504_p6 }
  0x79   : > { %p16499_p3 = pnand %p16497_p11, %p16487_p10 }
  0x7b   : > { %p16500_p5 = pneg %p16499_p3 }
  0x7d   : > { %p16507_p4 = pnand %p16506_p9, %p16500_p5 }
  0x7f   : > { %16510 = shalt.err (!%p16507_p4)
}
  0x80   : > { %s22996_s2 = smov 8   ;;  %s22997_s8 = smov 128  }
  0x81   : > { %s22998_s1 = sld [smem:[#allocation127_spill]]  ;;  %s16524_s0 = scalar_lea.vmem %s17021_s27, 4096 }
  0x82   : > { %p16525_p11 = scmp.ne.s32.totalorder %s17021_s27, %s16524_s0  ;;  %s16738_s7 = smov [#allocation11]  }
  0x83   : > { %s16529_s4 = sshll.u32 %s16738_s7, 4  ;;  %s16530_s4 = int_to_ptr.vmem [resolvable:$false] %s16529_s4 }
  0x84   : > { %p16527_p3 = pnand %p16525_p11, %p16932_p1  ;;  %s16531_s5 = scalar_lea.vmem %s16530_s4, 8192 }
  0x85   : > { %p16532_p9 = scmp.lt.s32.totalorder %s17021_s27, %s16530_s4  ;;  %p16533_p4 = scmp.lt.s32.totalorder %s16531_s5, %s16524_s0 }
  0x86   : > { %p16528_p6 = pneg %p16527_p3 }
  0x87   : > { %15616 = dma.hbm_to_vmem [thread:$0]  (!%p17010_p7), %s22998_s1, 2048, %s301_s24, [#allocation7], %s22997_s8, %s22997_s8, %s22996_s2  }
  0x88   : > { %p16534_p5 = por %p16533_p4, %p16532_p9 }
  0x8a   : > { %p16535_p0 = pnand %p16534_p5, %p16528_p6 }
  0x8c   : > { %16538 = shalt.err (!%p16535_p0)
}
  0x8d   : > { %s16739_s9 = smov 256   ;;  %s16740_s24 = smov 16  }
  0x8e   : > { %p22999_p11 = scmp.ne.s32.totalorder %s22983_s16, 0  ;;  %s16741_s2 = smov [#allocation13]  }
  0x8f   : > { %s316_s8 = sshll.u32 %s16741_s2, 4  ;;  %s23000_s22 = sshll.u32 %s16717_s17, 12  ;;  %s317_s8 = int_to_ptr.vmem [resolvable:$true] %s316_s8 }
  0x90   : > { %15635 = dma.hbm_to_vmem [thread:$0]  (!%p22999_p11), %s17019_s23, 4096, %s17021_s27, %s16880_s21, %s16739_s9, %s16739_s9, %s16740_s24  }
  0x91   : > { %s17051_s5 = scalar_lea.hbm %s22669_s6, %s23000_s22  ;;  %s23001_s0 = sshll.u32 %s16895_s29, 8 }
  0x92   : > { %s437_s1 = scalar_lea.vmem [#allocation12], %s23001_s0  ;;  %s16550_s11 = scalar_lea.vmem %s317_s8, 1024 }
  0x93   : > { %s444_s14 = sshll.u32 %s437_s1, 4  ;;  %p16551_p3 = scmp.ne.s32.totalorder %s317_s8, %s16550_s11  ;;  %s445_s14 = int_to_ptr.vmem [resolvable:$true] %s444_s14 }
  0x94   : > { %p16558_p4 = scmp.lt.s32.totalorder %s317_s8, %s317_s8  ;;  %p16559_p5 = scmp.lt.s32.totalorder %s16550_s11, %s16550_s11 }
  0x95   : > { %p16553_p6 = pnand %p16551_p3, %p16487_p10 }
  0x96   : > { %p16560_p0 = por %p16559_p5, %p16558_p4 }
  0x97   : > { %p16554_p9 = pneg %p16553_p6 }
  0x99   : > { %p16561_p2 = pnand %p16560_p0, %p16554_p9 }
  0x9b   : > { %16564 = shalt.err (!%p16561_p2)
}
  0x9c   : > { %s23002_s27 = smov 4   ;;  %s23003_s23 = smov 64  }
  0x9d   : > { %s23004_s24 = sld [smem:[#allocation133_spill]]  ;;  %s16578_s1 = scalar_lea.vmem %s445_s14, 4096 }
  0x9e   : > { %p16579_p13 = scmp.ne.s32.totalorder %s445_s14, %s16578_s1  ;;  %s16742_s11 = smov [#allocation12]  }
  0x9f   : > { %s16583_s2 = sshll.u32 %s16742_s11, 4  ;;  %s16584_s2 = int_to_ptr.vmem [resolvable:$false] %s16583_s2 }
  0xa0   : > { %p16581_p10 = pnand %p16579_p13, %p16932_p1  ;;  %s16585_s22 = scalar_lea.vmem %s16584_s2, 8192 }
  0xa1   : > { %p16586_p2 = scmp.lt.s32.totalorder %s445_s14, %s16584_s2  ;;  %p16587_p6 = scmp.lt.s32.totalorder %s16585_s22, %s16578_s1 }
  0xa2   : > { %p16582_p3 = pneg %p16581_p10 }
  0xa3   : > { %15619 = dma.hbm_to_vmem [thread:$0]  (!%p17010_p7), %s23004_s24, 1024, %s317_s8, [#allocation7], %s23003_s23, %s23003_s23, %s23002_s27  }
  0xa4   : > { %p16588_p9 = por %p16587_p6, %p16586_p2 }
  0xa6   : > { %p16589_p4 = pnand %p16588_p9, %p16582_p3 }
  0xa8   : > { %16592 = shalt.err (!%p16589_p4)
}
  0xa9   : > { %15638 = dma.hbm_to_vmem [thread:$0]  (!%p22999_p11), %s17051_s5, 4096, %s445_s14, %s16880_s21, %s23003_s23, %s23003_s23, %s23002_s27  }
  0xaa   : > { %456 = sbr.rel (%p16998_p8) target bundleno = 3716 (0xe84), region = 56 }
  0xaf   : > { %s458_s28 = sand.u32 1, %s16964_s3   ;;  %s460_s20 = sand.u32 1, %s16701_s13  }
  0xb0   : > { %s14583_s8 = sshll.u32 %s460_s20, 7  ;;  %s459_s7 = scalar_lea.sflag [#allocation4], %s458_s28 }
  0xb1   : > { %s17081_s4 = scalar_lea.vmem [#allocation3], %s14583_s8 }
  0xb2   : > { %16664 = dma.done.wait (%p16975_p12), %s459_s7, 2048  }
  0xb3   : > { %16666 = vsyncadd (%p16975_p12), %s459_s7, 4294965248  ;;  %p23005_p1 = scmp.eq.s32.totalorder %s16964_s3, 0 }
  0xb5   : > { %16668 = dma.done.wait (%p23005_p1), [#allocation7], 2048   ;;  %p23006_p8 = pmov %p23005_p1 }
  0xb6   : > { %s473_s14 = sand.u32 1, %s16689_s10   ;;  %p23007_p13 = scmp.ne.s32.totalorder %s22990_s18, 0 }
  0xb7   : > { %16670 = vsyncadd (%p23006_p8), [#allocation7], 4294965248  ;;  %s14585_s21 = sshll.u32 %s473_s14, 5 }
  0xb8   : > { %s17092_s16 = scalar_lea.vmem [#allocation8], %s14585_s21 }
  0xb9   : > { %16672 = dma.done.wait (%p23007_p13), %s459_s7, 12800  }
  0xba   : > { %16674 = vsyncadd (%p23007_p13), %s459_s7, 4294954496  ;;  %s15590_s15 = smul.u32 192, %s473_s14  ;;  %s14586_s26 = sshll.u32 %s473_s14, 6 }
  0xbb   : > { %s14587_s5 = sshll.u32 %s473_s14, 8  ;;  %s17100_s27 = scalar_lea.vmem [#allocation10], %s14586_s26 }
  0xbc   : > { %s17098_s0 = scalar_lea.vmem [#allocation9], %s15590_s15  ;;  %s17102_s23 = scalar_lea.vmem [#allocation11], %s14587_s5 }
  0xbd   : > { %s17104_s9 = scalar_lea.vmem [#allocation12], %s14587_s5  ;;  %p23008_p12 = pmov %p23005_p1 }
  0xbe   : > { %p23009_p7 = pmov %p23005_p1 }
  0xbf   : > { %16676 = dma.done.wait (%p23008_p12), [#allocation7], 1024  }
  0xc0   : > { %16678 = vsyncadd (%p23009_p7), [#allocation7], 4294966272  ;;  %s17110_s29 = scalar_lea.vmem [#allocation14], %s14583_s8  ;;  %s23010_s18 = sld [smem:[#allocation22_spill]] }
  0xc6   : > { %p14591_p11 = scmp.ne.s32.totalorder %s23010_s18, 0 }
  0xc8   : > { %581 = sbr.rel (%p14591_p11) target bundleno = 214 (0xd6), region = 92 }
  0xcd   : > { %v582_v0 = vld [vmem:[%s17081_s4] sm:$0xff]  ;;  %v583_v1 = vld [vmem:[%s17081_s4 + $0x8] sm:$0xff]  ;;  %v584_v2 = vld [vmem:[%s17081_s4 + $0x10] sm:$0xff] }
  0xce   : > { %598 = vst [vmem:[#allocation2 + $0x30] sm:$0xff] %v582_v0  ;;  %599 = vst [vmem:[#allocation2] sm:$0xff] %v583_v1  ;;  %v585_v3 = vld [vmem:[%s17081_s4 + $0x18] sm:$0xff]  ;;  %v586_v4 = vld [vmem:[%s17081_s4 + $0x20] sm:$0xff] }
  0xcf   : > { %600 = vst [vmem:[#allocation2 + $0x58] sm:$0xff] %v584_v2  ;;  %v587_v5 = vld [vmem:[%s17081_s4 + $0x28] sm:$0xff]  ;;  %601 = vst [vmem:[#allocation2 + $0x18] sm:$0xff] %v585_v3  ;;  %v588_v6 = vld [vmem:[%s17081_s4 + $0x30] sm:$0xff] }
  0xd0   : > { %602 = vst [vmem:[#allocation2 + $0x50] sm:$0xff] %v586_v4  ;;  %603 = vst [vmem:[#allocation2 + $0x68] sm:$0xff] %v587_v5  ;;  %v589_v7 = vld [vmem:[%s17081_s4 + $0x38] sm:$0xff]  ;;  %v590_v8 = vld [vmem:[%s17081_s4 + $0x40] sm:$0xff] }
  0xd1   : > { %604 = vst [vmem:[#allocation2 + $0x8] sm:$0xff] %v588_v6  ;;  %605 = vst [vmem:[#allocation2 + $0x48] sm:$0xff] %v589_v7  ;;  %v591_v9 = vld [vmem:[%s17081_s4 + $0x48] sm:$0xff]  ;;  %v592_v10 = vld [vmem:[%s17081_s4 + $0x50] sm:$0xff] }
  0xd2   : > { %606 = vst [vmem:[#allocation2 + $0x40] sm:$0xff] %v590_v8  ;;  %v593_v11 = vld [vmem:[%s17081_s4 + $0x58] sm:$0xff]  ;;  %607 = vst [vmem:[#allocation2 + $0x20] sm:$0xff] %v591_v9  ;;  %v594_v12 = vld [vmem:[%s17081_s4 + $0x60] sm:$0xff] }
  0xd3   : > { %608 = vst [vmem:[#allocation2 + $0x10] sm:$0xff] %v592_v10  ;;  %609 = vst [vmem:[#allocation2 + $0x38] sm:$0xff] %v593_v11  ;;  %v595_v13 = vld [vmem:[%s17081_s4 + $0x68] sm:$0xff]  ;;  %v596_v14 = vld [vmem:[%s17081_s4 + $0x70] sm:$0xff] }
  0xd4   : > { %610 = vst [vmem:[#allocation2 + $0x60] sm:$0xff] %v594_v12  ;;  %611 = vst [vmem:[#allocation2 + $0x70] sm:$0xff] %v595_v13  ;;  %v597_v15 = vld [vmem:[%s17081_s4 + $0x78] sm:$0xff] }
  0xd5   : > { %612 = vst [vmem:[#allocation2 + $0x78] sm:$0xff] %v596_v14  ;;  %613 = vst [vmem:[#allocation2 + $0x28] sm:$0xff] %v597_v15 }
  0xd6 PF: > { %v614_v16 = vld [vmem:[#allocation2 + $0x30] sm:$0xff]  ;;  %v616_v17 = vld [vmem:[#allocation2 + $0x58] sm:$0xff]  ;;  %v615_v18 = vld [vmem:[#allocation2] sm:$0xff]  ;;  %s16744_s3 = smov 96   ;;  %s16745_s24 = smov 64   ;;  %vm8333_vm0 = vcmask 261120  }
  0xd7   : > { %634 = vadd.xlane.f32.xlu0 %v614_v16  ;;  %638 = vadd.xlane.f32.xlu1 %v616_v17  ;;  %v617_v19 = vld [vmem:[#allocation2 + $0x18] sm:$0xff]  ;;  %v618_v20 = vld [vmem:[#allocation2 + $0x50] sm:$0xff]  ;;  %v619_v21 = vld [vmem:[#allocation2 + $0x68] sm:$0xff]  ;;  %s16746_s1 = smov 32   ;;  %vm12438_vm1 = vcmask 523264   ;;  %vm12455_vm2 = vcmask 785408  }
  0xd8   : > { %v620_v22 = vld [vmem:[#allocation2 + $0x8] sm:$0xff]  ;;  %v15878_v5 = vld [vmem:[%s17098_s0 + $0x94] ss:$12 sps:$4 sm:$0xff]   ;;  %v15880_v6 = vld [vmem:[%s17098_s0 + $0xb0] ss:$12 sps:$4 sm:$0xff]   ;;  %s23534_s11 = sld [smem:[#allocation22_spill]] }
  0xd9   : > { %v621_v23 = vld [vmem:[#allocation2 + $0x48] sm:$0xff]  ;;  %v17129_v24 = vld [vmem:[#allocation2 + $0x40] sm:$0xff]  ;;  %v15881_v7 = vld [vmem:[%s17098_s0 + $0x90] ss:$12 sps:$4 sm:$0xff]   ;;  %15172 = vmatprep.subr.bf16.mxu1 %v15880_v6 }
  0xda   : > { %v17131_v25 = vld [vmem:[#allocation2 + $0x20] sm:$0xff]  ;;  %v17133_v26 = vld [vmem:[#allocation2 + $0x10] sm:$0xff]  ;;  %v17135_v27 = vld [vmem:[#allocation2 + $0x38] sm:$0xff]  ;;  %15173 = vmatpush3.bf16.msra.mxu1 %v15880_v6 }
  0xdb   : > { %636 = vadd.xlane.f32.xlu0 %v615_v18  ;;  %640 = vadd.xlane.f32.xlu1 %v617_v19  ;;  %v17139_v28 = vld [vmem:[#allocation2 + $0x60] sm:$0xff]  ;;  %v17141_v29 = vld [vmem:[#allocation2 + $0x70] sm:$0xff]  ;;  %v15875_v32 = vld [vmem:[%s17098_s0 + $0xac] ss:$12 sps:$4 sm:$0xff]  }
  0xdc   : > { %v17145_v30 = vld [vmem:[#allocation2 + $0x78] sm:$0xff]  ;;  %v17147_v31 = vld [vmem:[#allocation2 + $0x28] sm:$0xff]  ;;  %1019 = vmatprep.subr.bf16.mxu0 %v15875_v32 }
  0xdd   : > { %v15877_v33 = vld [vmem:[%s17098_s0 + $0xa8] ss:$12 sps:$4 sm:$0xff]  }
  0xde   : > { %1020 = vmatpush1.bf16.msra.mxu0 %v15877_v33  ;;  %v15886_v33 = vld [vmem:[%s17098_s0 + $0x64] ss:$12 sps:$4 sm:$0xff]   ;;  %p14848_p5 = scmp.ne.s32.totalorder %s23534_s11, 1 }
  0xdf   : > { %642 = vadd.xlane.f32.xlu0 %v618_v20  ;;  %644 = vadd.xlane.f32.xlu1 %v619_v21  ;;  %s23535_s28 = sld [smem:[#allocation132_spill]] (!%p14848_p5) }
  0xe0   : > { %1021 = vmatprep.subr.bf16.mxu0 %v15878_v5 }
  0xe2   : > { %1022 = vmatpush1.bf16.msra.mxu0 %v15881_v7 }
  0xe3   : > { %646 = vadd.xlane.f32.xlu0 %v620_v22  ;;  %648 = vadd.xlane.f32.xlu1 %v621_v23 }
  0xe7   : > { %650 = vadd.xlane.f32.xlu0 %v17129_v24  ;;  %652 = vadd.xlane.f32.xlu1 %v17131_v25 }
  0xeb   : > { %654 = vadd.xlane.f32.xlu0 %v17133_v26  ;;  %656 = vadd.xlane.f32.xlu1 %v17135_v27 }
  0xef   : > { %658 = vadd.xlane.f32.xlu0 %v17139_v28  ;;  %660 = vadd.xlane.f32.xlu1 %v17141_v29 }
  0xf3   : > { %662 = vadd.xlane.f32.xlu0 %v17145_v30  ;;  %664 = vadd.xlane.f32.xlu1 %v17147_v31 }
 0x160   : > { %v635_v34 = vpop.xlane.xlu0 %634  ;;  %v639_v35 = vpop.xlane.xlu1 %638 }
 0x161   : > { %v667_v36 = vmul.f32 0.0078125, %v635_v34  ;;  %v669_v37 = vmul.f32 0.0078125, %v639_v35  ;;  %v15888_v34 = vld [vmem:[%s17098_s0 + $0x80] ss:$12 sps:$4 sm:$0xff]  }
 0x163   : > { %v17155_v38 = vsub.f32 %v614_v16, %v667_v36  ;;  %v17157_v39 = vsub.f32 %v616_v17, %v669_v37  ;;  %v15882_v16 = vld [vmem:[%s17098_s0 + $0x7c] ss:$12 sps:$4 sm:$0xff]   ;;  %v15884_v17 = vld [vmem:[%s17098_s0 + $0x98] ss:$12 sps:$4 sm:$0xff]   ;;  %v15889_v36 = vld [vmem:[%s17098_s0 + $0x60] ss:$12 sps:$4 sm:$0xff]  }
 0x164   : > { %v637_v40 = vpop.xlane.xlu0 %636  ;;  %v641_v41 = vpop.xlane.xlu1 %640  ;;  %1023 = vmatprep.subr.bf16.mxu0 %v15882_v16  ;;  %15174 = vmatprep.subr.bf16.mxu1 %v15884_v17 }
 0x165   : > { %v668_v42 = vmul.f32 0.0078125, %v637_v40  ;;  %v699_v43 = vmul.f32 %v17155_v38, %v17155_v38  ;;  %v670_v44 = vmul.f32 0.0078125, %v641_v41  ;;  %v701_v45 = vmul.f32 %v17157_v39, %v17157_v39  ;;  %15175 = vmatpush3.bf16.msra.mxu1 %v15884_v17 }
 0x166   : > { %15176 = vmatprep.subr.bf16.mxu1 %v15888_v34 }
 0x167   : > { %715 = vadd.xlane.f32.xlu0 %v699_v43  ;;  %v17163_v46 = vsub.f32 %v615_v18, %v668_v42  ;;  %v17165_v47 = vsub.f32 %v617_v19, %v670_v44  ;;  %v15892_v44 = vld [vmem:[%s17098_s0 + $0x68] ss:$12 sps:$4 sm:$0xff]  }
 0x168   : > { %v643_v48 = vpop.xlane.xlu0 %642  ;;  %v645_v49 = vpop.xlane.xlu1 %644 }
 0x169   : > { %v671_v50 = vmul.f32 0.0078125, %v643_v48  ;;  %v700_v51 = vmul.f32 %v17163_v46, %v17163_v46  ;;  %v672_v52 = vmul.f32 0.0078125, %v645_v49  ;;  %v702_v53 = vmul.f32 %v17165_v47, %v17165_v47  ;;  %15177 = vmatpush3.bf16.msra.mxu1 %v15888_v34  ;;  %v15893_v49 = vld [vmem:[%s17098_s0 + $0x48] ss:$12 sps:$4 sm:$0xff]  }
 0x16a   : > { %15178 = vmatprep.subr.bf16.mxu1 %v15892_v44 }
 0x16b   : > { %719 = vadd.xlane.f32.xlu0 %v701_v45  ;;  %717 = vadd.xlane.f32.xlu1 %v700_v51  ;;  %v17171_v54 = vsub.f32 %v618_v20, %v671_v50  ;;  %v17173_v55 = vsub.f32 %v619_v21, %v672_v52  ;;  %v15885_v21 = vld [vmem:[%s17098_s0 + $0x78] ss:$12 sps:$4 sm:$0xff]   ;;  %v15894_v51 = vld [vmem:[%s17098_s0 + $0x34] ss:$12 sps:$4 sm:$0xff]   ;;  %v15896_v52 = vld [vmem:[%s17098_s0 + $0x50] ss:$12 sps:$4 sm:$0xff]  }
 0x16c   : > { %v647_v56 = vpop.xlane.xlu0 %646  ;;  %v649_v57 = vpop.xlane.xlu1 %648  ;;  %1024 = vmatpush1.bf16.msra.mxu0 %v15885_v21 }
 0x16d   : > { %v673_v58 = vmul.f32 0.0078125, %v647_v56  ;;  %v703_v59 = vmul.f32 %v17171_v54, %v17171_v54  ;;  %v674_v60 = vmul.f32 0.0078125, %v649_v57  ;;  %v704_v61 = vmul.f32 %v17173_v55, %v17173_v55  ;;  %1025 = vmatprep.subr.bf16.mxu0 %v15886_v33  ;;  %15179 = vmatpush3.bf16.msra.mxu1 %v15892_v44  ;;  %v15900_v56 = vld [vmem:[%s17098_s0 + $0x38] ss:$12 sps:$4 sm:$0xff]  }
 0x16e   : > { %15180 = vmatprep.subr.bf16.mxu1 %v15896_v52  ;;  %v15901_v57 = vld [vmem:[%s17098_s0 + $0x18] ss:$12 sps:$4 sm:$0xff]  }
 0x16f   : > { %721 = vadd.xlane.f32.xlu1 %v702_v53  ;;  %723 = vadd.xlane.f32.xlu0 %v703_v59  ;;  %v17179_v62 = vsub.f32 %v620_v22, %v673_v58  ;;  %v17181_v63 = vsub.f32 %v621_v23, %v674_v60  ;;  %v15898_v53 = vld [vmem:[%s17098_s0 + $0x1c] ss:$12 sps:$4 sm:$0xff]   ;;  %v15902_v58 = vld [vmem:[%s17098_s0 + $0x4] ss:$12 sps:$4 sm:$0xff]   ;;  %v15904_v59 = vld [vmem:[%s17098_s0 + $0x20] ss:$12 sps:$4 sm:$0xff]  }
 0x170   : > { %v651_v0 = vpop.xlane.xlu0 %650  ;;  %v653_v1 = vpop.xlane.xlu1 %652  ;;  %1026 = vmatpush1.bf16.msra.mxu0 %v15889_v36  ;;  %v15905_v60 = vld [vmem:[%s17098_s0] ss:$12 sps:$4 sm:$0xff]  }
 0x171   : > { %v675_v2 = vmul.f32 0.0078125, %v651_v0  ;;  %v705_v3 = vmul.f32 %v17179_v62, %v17179_v62  ;;  %v676_v4 = vmul.f32 0.0078125, %v653_v1  ;;  %v706_v8 = vmul.f32 %v17181_v63, %v17181_v63  ;;  %15181 = vmatpush3.bf16.msra.mxu1 %v15896_v52 }
 0x172   : > { %15182 = vmatprep.subr.bf16.mxu1 %v15900_v56  ;;  %v22694_v0 = vmov 0  }
 0x173   : > { %725 = vadd.xlane.f32.xlu1 %v704_v61  ;;  %727 = vadd.xlane.f32.xlu0 %v705_v3  ;;  %v17191_v9 = vsub.f32 %v17129_v24, %v675_v2  ;;  %v17194_v10 = vsub.f32 %v17131_v25, %v676_v4  ;;  %v15906_v61 = vld [vmem:[%s17098_s0 + $0x8] ss:$12 sps:$4 sm:$0xff]  }
 0x174   : > { %v655_v11 = vpop.xlane.xlu0 %654  ;;  %v657_v12 = vpop.xlane.xlu1 %656  ;;  %1051 = vmatprep.mubr.bf16.mxu0 %v22694_v0 }
 0x175   : > { %v677_v13 = vmul.f32 0.0078125, %v655_v11  ;;  %v707_v14 = vmul.f32 %v17191_v9, %v17191_v9  ;;  %v678_v15 = vmul.f32 0.0078125, %v657_v12  ;;  %v708_v18 = vmul.f32 %v17194_v10, %v17194_v10  ;;  %15183 = vmatpush3.bf16.msra.mxu1 %v15900_v56 }
 0x176   : > { %15184 = vmatprep.subr.bf16.mxu1 %v15904_v59 }
 0x177   : > { %729 = vadd.xlane.f32.xlu1 %v706_v8  ;;  %731 = vadd.xlane.f32.xlu0 %v707_v14  ;;  %v17203_v19 = vsub.f32 %v17133_v26, %v677_v13  ;;  %v17206_v20 = vsub.f32 %v17135_v27, %v678_v15  ;;  %v811_v8 = vlaneseq }
 0x178   : > { %v659_v22 = vpop.xlane.xlu0 %658  ;;  %v661_v23 = vpop.xlane.xlu1 %660 }
 0x179   : > { %v679_v24 = vmul.f32 0.0078125, %v659_v22  ;;  %v709_v25 = vmul.f32 %v17203_v19, %v17203_v19  ;;  %v680_v32 = vmul.f32 0.0078125, %v661_v23  ;;  %v710_v26 = vmul.f32 %v17206_v20, %v17206_v20  ;;  %15185 = vmatpush3.bf16.msra.mxu1 %v15904_v59 }
 0x17a   : > { %15186 = vmatprep.subr.bf16.mxu1 %v15906_v61  ;;  %v17250_v17 = vshrl.u32 %v811_v8, 7 }
 0x17b   : > { %733 = vadd.xlane.f32.xlu1 %v708_v18  ;;  %735 = vadd.xlane.f32.xlu0 %v709_v25  ;;  %v17216_v27 = vsub.f32 %v17139_v28, %v679_v24  ;;  %v17219_v35 = vsub.f32 %v17141_v29, %v680_v32  ;;  %v15890_v28 = vld [vmem:[%s17098_s0 + $0x4c] ss:$12 sps:$4 sm:$0xff]  }
 0x17c   : > { %v663_v37 = vpop.xlane.xlu0 %662  ;;  %v665_v40 = vpop.xlane.xlu1 %664  ;;  %1027 = vmatprep.subr.bf16.mxu0 %v15890_v28  ;;  %23011 = vst [vmem:[#allocation29_spill] sm:$0xff] %v17250_v17  ;;  %v22693_v32 = vsub.s32 0, %v17250_v17  ;;  %v22692_v28 = vsub.s32 1, %v17250_v17 }
 0x17d   : > { %v681_v41 = vmul.f32 0.0078125, %v663_v37  ;;  %v711_v42 = vmul.f32 %v17216_v27, %v17216_v27  ;;  %v682_v43 = vmul.f32 0.0078125, %v665_v40  ;;  %v712_v29 = vmul.f32 %v17219_v35, %v17219_v35  ;;  %1028 = vmatpush1.bf16.msra.mxu0 %v15893_v49  ;;  %15187 = vmatpush3.bf16.msra.mxu1 %v15906_v61 }
 0x17e   : > { %1029 = vmatprep.subr.bf16.mxu0 %v15894_v51 }
 0x17f   : > { %737 = vadd.xlane.f32.xlu1 %v710_v26  ;;  %739 = vadd.xlane.f32.xlu0 %v711_v42  ;;  %v17229_v45 = vsub.f32 %v17145_v30, %v681_v41  ;;  %v17232_v48 = vsub.f32 %v17147_v31, %v682_v43  ;;  %v15897_v31 = vld [vmem:[%s17098_s0 + $0x30] ss:$12 sps:$4 sm:$0xff]   ;;  %v630_v26 = vld [vmem:[%s17092_s16] sm:$0xff] }
 0x180   : > { %v17256_v43 = vrot.slane %v630_v26, %v22693_v32  ;;  %v17263_v56 = vrot.slane %v630_v26, %v22692_v28 }
 0x181   : > { %v713_v50 = vmul.f32 %v17229_v45, %v17229_v45  ;;  %v714_v30 = vmul.f32 %v17232_v48, %v17232_v48  ;;  %1030 = vmatpush1.bf16.msra.mxu0 %v15897_v31 }
 0x182   : > { %1031 = vmatprep.subr.bf16.mxu0 %v15898_v53 }
 0x183   : > { %741 = vadd.xlane.f32.xlu1 %v712_v29  ;;  %743 = vadd.xlane.f32.xlu0 %v713_v50 }
 0x185   : > { %1032 = vmatpush1.bf16.msra.mxu0 %v15901_v57 }
 0x186   : > { %1033 = vmatprep.subr.bf16.mxu0 %v15902_v58 }
 0x187   : > { %745 = vadd.xlane.f32.xlu1 %v714_v30 }
 0x189   : > { %1034 = vmatpush1.bf16.msra.mxu0 %v15905_v60 }
 0x1f0   : > { %v716_v1 = vpop.xlane.xlu0 %715 }
 0x1f1   : > { %v747_v2 = vmul.f32 0.0078125, %v716_v1 }
 0x1f3   : > { %v763_v3 = vadd.f32 1e-05, %v747_v2 }
 0x1f4   : > { %v718_v4 = vpop.xlane.xlu1 %717  ;;  %v720_v5 = vpop.xlane.xlu0 %719 }
 0x1f5   : > { %15995 = vrsqrt.f32 %v763_v3  ;;  %v748_v6 = vmul.f32 0.0078125, %v718_v4  ;;  %v749_v7 = vmul.f32 0.0078125, %v720_v5 }
 0x1f7   : > { %v764_v11 = vadd.f32 1e-05, %v748_v6  ;;  %v765_v12 = vadd.f32 1e-05, %v749_v7 }
 0x1f8   : > { %v722_v13 = vpop.xlane.xlu1 %721  ;;  %v724_v14 = vpop.xlane.xlu0 %723 }
 0x1f9   : > { %15997 = vrsqrt.f32 %v764_v11  ;;  %v750_v15 = vmul.f32 0.0078125, %v722_v13  ;;  %v751_v16 = vmul.f32 0.0078125, %v724_v14 }
 0x1fa   : > { %15999 = vrsqrt.f32 %v765_v12 }
 0x1fb   : > { %v766_v18 = vadd.f32 1e-05, %v750_v15  ;;  %v767_v21 = vadd.f32 1e-05, %v751_v16 }
 0x1fc   : > { %v726_v22 = vpop.xlane.xlu1 %725  ;;  %v728_v23 = vpop.xlane.xlu0 %727 }
 0x1fd   : > { %16001 = vrsqrt.f32 %v766_v18  ;;  %v752_v24 = vmul.f32 0.0078125, %v726_v22  ;;  %v753_v25 = vmul.f32 0.0078125, %v728_v23 }
 0x1fe   : > { %16003 = vrsqrt.f32 %v767_v21 }
 0x1ff   : > { %v768_v33 = vadd.f32 1e-05, %v752_v24  ;;  %v769_v34 = vadd.f32 1e-05, %v753_v25 }
 0x200   : > { %v730_v36 = vpop.xlane.xlu1 %729  ;;  %v732_v37 = vpop.xlane.xlu0 %731 }
 0x201   : > { %16005 = vrsqrt.f32 %v768_v33  ;;  %v754_v40 = vmul.f32 0.0078125, %v730_v36  ;;  %v755_v41 = vmul.f32 0.0078125, %v732_v37 }
 0x202   : > { %v15996_v42 = vpop.eup %15995  ;;  %16007 = vrsqrt.f32 %v769_v34 }
 0x203   : > { %v770_v44 = vadd.f32 1e-05, %v754_v40  ;;  %v771_v29 = vadd.f32 1e-05, %v755_v41  ;;  %v795_v49 = vmul.f32 %v15996_v42, %v17155_v38 }
 0x204   : > { %v734_v50 = vpop.xlane.xlu1 %733  ;;  %v736_v51 = vpop.xlane.xlu0 %735 }
 0x205   : > { %16009 = vrsqrt.f32 %v770_v44  ;;  %v756_v52 = vmul.f32 0.0078125, %v734_v50  ;;  %v757_v30 = vmul.f32 0.0078125, %v736_v51  ;;  %v815_v53 = vmul.f32 %v17256_v43, %v795_v49 }
 0x206   : > { %v15998_v31 = vpop.eup %15997  ;;  %16011 = vrsqrt.f32 %v771_v29 }
 0x207   : > { %v16000_v57 = vpop.eup %15999  ;;  %v772_v58 = vadd.f32 1e-05, %v756_v52  ;;  %v773_v59 = vadd.f32 1e-05, %v757_v30  ;;  %v796_v60 = vmul.f32 %v15998_v31, %v17163_v46  ;;  %v835_v6 = vadd.f32 %v17263_v56, %v815_v53 }
 0x208   : > { %v738_v61 = vpop.xlane.xlu1 %737  ;;  %v740_v38 = vpop.xlane.xlu0 %739  ;;  %v797_v1 = vmul.f32 %v16000_v57, %v17157_v39 }
 0x209   : > { %16013 = vrsqrt.f32 %v772_v58  ;;  %v758_v2 = vmul.f32 0.0078125, %v738_v61  ;;  %v759_v3 = vmul.f32 0.0078125, %v740_v38  ;;  %v816_v4 = vmul.f32 %v17256_v43, %v796_v60 }
 0x20a   : > { %v16002_v5 = vpop.eup %16001  ;;  %16015 = vrsqrt.f32 %v773_v59  ;;  %v817_v39 = vmul.f32 %v17256_v43, %v797_v1 }
 0x20b   : > { %v16004_v7 = vpop.eup %16003  ;;  %v774_v8 = vadd.f32 1e-05, %v758_v2  ;;  %v775_v11 = vadd.f32 1e-05, %v759_v3  ;;  %v836_v12 = vadd.f32 %v17263_v56, %v816_v4  ;;  %v798_v46 = vmul.f32 %v16002_v5, %v17165_v47 }
 0x20c   : > { %v742_v13 = vpop.xlane.xlu1 %741  ;;  %v744_v14 = vpop.xlane.xlu0 %743  ;;  %v799_v15 = vmul.f32 %v16004_v7, %v17171_v54  ;;  %v837_v54 = vadd.f32 %v17263_v56, %v817_v39 }
 0x20d   : > { %16017 = vrsqrt.f32 %v774_v8  ;;  %v760_v16 = vmul.f32 0.0078125, %v742_v13  ;;  %v761_v18 = vmul.f32 0.0078125, %v744_v14  ;;  %v851_v21 = vpack.c.bf16 %v836_v12, %v835_v6 }
 0x20e   : > { %v16006_v22 = vpop.eup %16005  ;;  %16019 = vrsqrt.f32 %v775_v11  ;;  %v818_v23 = vmul.f32 %v17256_v43, %v798_v46  ;;  %v819_v34 = vmul.f32 %v17256_v43, %v799_v15 }
 0x20f   : > { %v16008_v24 = vpop.eup %16007  ;;  %v776_v25 = vadd.f32 1e-05, %v760_v16  ;;  %v777_v33 = vadd.f32 1e-05, %v761_v18  ;;  %1052 = vmatmul.mubr.bf16.vlgmr.msra.gmra.mxu0 %v851_v21  ;;  %15188 = vmatprep.mubr.bf16.mxu1 %v851_v21  ;;  %v800_v47 = vmul.f32 %v16006_v22, %v17173_v55 }
 0x210   : > { %v746_v26 = vpop.xlane.xlu1 %745  ;;  %v838_v36 = vadd.f32 %v17263_v56, %v818_v23  ;;  %1061 = vmatprep.mubr.bf16.mxu0 %v22694_v0  ;;  %v801_v37 = vmul.f32 %v16008_v24, %v17179_v62  ;;  %v839_v50 = vadd.f32 %v17263_v56, %v819_v34 }
 0x211   : > { %16021 = vrsqrt.f32 %v776_v25  ;;  %v762_v40 = vmul.f32 0.0078125, %v746_v26  ;;  %v820_v41 = vmul.f32 %v17256_v43, %v800_v47 }
 0x212   : > { %v16010_v42 = vpop.eup %16009  ;;  %16023 = vrsqrt.f32 %v777_v33  ;;  %v852_v44 = vpack.c.bf16 %v838_v36, %v837_v54  ;;  %v821_v55 = vmul.f32 %v17256_v43, %v801_v37 }
 0x213   : > { %v16012_v29 = vpop.eup %16011  ;;  %v778_v49 = vadd.f32 1e-05, %v762_v40  ;;  %v840_v51 = vadd.f32 %v17263_v56, %v820_v41  ;;  %v802_v52 = vmul.f32 %v16010_v42, %v17181_v63 }
 0x214   : > { %15189 = vmatmul.mubr.bf16.vlgmr.msra.gmra.mxu1 %v852_v44  ;;  %v803_v62 = vmul.f32 %v16012_v29, %v17191_v9  ;;  %v841_v57 = vadd.f32 %v17263_v56, %v821_v55 }
 0x215   : > { %16025 = vrsqrt.f32 %v778_v49  ;;  %v853_v30 = vpack.c.bf16 %v840_v51, %v839_v50  ;;  %v822_v31 = vmul.f32 %v17256_v43, %v802_v52 }
 0x216   : > { %v16014_v53 = vpop.eup %16013  ;;  %v823_v61 = vmul.f32 %v17256_v43, %v803_v62 }
 0x217   : > { %v16016_v58 = vpop.eup %16015  ;;  %1062 = vmatmul.mubr.bf16.gmra.mxu0 %v852_v44  ;;  %15192 = vmatprep.mubr.bf16.mxu1 %v853_v30  ;;  %v842_v59 = vadd.f32 %v17263_v56, %v822_v31  ;;  %v804_v60 = vmul.f32 %v16014_v53, %v17194_v10 }
 0x218   : > { %1071 = vmatprep.mubr.bf16.mxu0 %v22694_v0  ;;  %v805_v63 = vmul.f32 %v16016_v58, %v17203_v19  ;;  %v843_v4 = vadd.f32 %v17263_v56, %v823_v61 }
 0x219   : > { %v854_v9 = vpack.c.bf16 %v842_v59, %v841_v57  ;;  %v824_v38 = vmul.f32 %v17256_v43, %v804_v60 }
 0x21a   : > { %v16018_v1 = vpop.eup %16017  ;;  %v825_v2 = vmul.f32 %v17256_v43, %v805_v63 }
 0x21b   : > { %v16020_v3 = vpop.eup %16019  ;;  %v844_v5 = vadd.f32 %v17263_v56, %v824_v38  ;;  %v806_v6 = vmul.f32 %v16018_v1, %v17206_v20  ;;  %v16747_v1 = vmov 1983009808  }
 0x21c   : > { %15193 = vmatmul.mubr.bf16.gmra.mxu1 %v854_v9  ;;  %v807_v10 = vmul.f32 %v16020_v3, %v17216_v27  ;;  %v845_v11 = vadd.f32 %v17263_v56, %v825_v2  ;;  %v1392_v2 = vunpack.c.l.s4 %v16747_v1 }
 0x21d   : > { %v855_v7 = vpack.c.bf16 %v844_v5, %v843_v4  ;;  %v826_v8 = vmul.f32 %v17256_v43, %v806_v6  ;;  %v16748_v4 = vmov 1934713408  }
 0x21e   : > { %v16022_v19 = vpop.eup %16021  ;;  %v827_v14 = vmul.f32 %v17256_v43, %v807_v10  ;;  %v1424_v5 = vunpack.c.l.s4 %v16748_v4  ;;  %v1393_v6 = vunpack.c.0.s8 %v1392_v2 }
 0x21f   : > { %v16024_v12 = vpop.eup %16023  ;;  %1072 = vmatmul.mubr.bf16.gmra.mxu0 %v853_v30  ;;  %15196 = vmatprep.mubr.bf16.mxu1 %v855_v7  ;;  %v846_v46 = vadd.f32 %v17263_v56, %v826_v8  ;;  %v808_v13 = vmul.f32 %v16022_v19, %v17219_v35 }
 0x220   : > { %1081 = vmatprep.mubr.bf16.mxu0 %v22694_v0  ;;  %v809_v20 = vmul.f32 %v16024_v12, %v17229_v45  ;;  %v847_v16 = vadd.f32 %v17263_v56, %v827_v14  ;;  %v1425_v8 = vunpack.c.0.s8 %v1424_v5  ;;  %v17505_v19 = vsub.s32 %v1393_v6, %v17250_v17 }
 0x221   : > { %v856_v27 = vpack.c.bf16 %v846_v46, %v845_v11  ;;  %v828_v39 = vmul.f32 %v17256_v43, %v808_v13 }
 0x222   : > { %v16026_v15 = vpop.eup %16025  ;;  %v829_v22 = vmul.f32 %v17256_v43, %v809_v20  ;;  %23025 = vst [vmem:[#allocation43_spill] sm:$0xff] %v17505_v19 }
 0x223   : > { %v848_v18 = vadd.f32 %v17263_v56, %v828_v39  ;;  %v810_v21 = vmul.f32 %v16026_v15, %v17232_v48 }
 0x224   : > { %15197 = vmatmul.mubr.bf16.gmra.mxu1 %v856_v27  ;;  %v849_v45 = vadd.f32 %v17263_v56, %v829_v22 }
 0x225   : > { %v857_v35 = vpack.c.bf16 %v848_v18, %v847_v16  ;;  %v830_v23 = vmul.f32 %v17256_v43, %v810_v21 }
 0x227   : > { %1082 = vmatmul.mubr.bf16.gmra.mxu0 %v854_v9  ;;  %15200 = vmatprep.mubr.bf16.mxu1 %v857_v35  ;;  %v850_v24 = vadd.f32 %v17263_v56, %v830_v23 }
 0x228   : > { %1091 = vmatprep.mubr.bf16.mxu0 %v22694_v0 }
 0x229   : > { %v858_v25 = vpack.c.bf16 %v850_v24, %v849_v45 }
 0x22c   : > { %15201 = vmatmul.mubr.bf16.gmra.mxu1 %v858_v25 }
 0x22f   : > { %1092 = vmatmul.mubr.bf16.gmra.mxu0 %v855_v7 }
 0x230   : > { %1101 = vmatprep.mubr.bf16.mxu0 %v22694_v0 }
 0x237   : > { %1102 = vmatmul.mubr.bf16.gmra.mxu0 %v856_v27  ;;  %v17510_v27 = vsub.s32 %v1425_v8, %v17250_v17 }
 0x238   : > { %1111 = vmatprep.mubr.bf16.mxu0 %v22694_v0 }
 0x239   : > { %23026 = vst [vmem:[#allocation44_spill] sm:$0xff] %v17510_v27 }
 0x23f   : > { %1112 = vmatmul.mubr.bf16.gmra.mxu0 %v857_v35 }
 0x240   : > { %1121 = vmatprep.mubr.bf16.mxu0 %v22694_v0 }
 0x247   : > { %1122 = vmatmul.mubr.bf16.gmra.mxu0 %v858_v25 }
 0x2cf   : > { %v17318_v48 = vpop.f32.mrf.mxu0 }
 0x2d1   : > { %v17320_v43 = vpop.f32.mrf.mxu0 }
 0x2d3   : > { %v17322_v33 = vpop.f32.mrf.mxu0 }
 0x2d5   : > { %v17324_v56 = vpop.f32.mrf.mxu0 }
 0x2d7   : > { %v17326_v47 = vpop.f32.mrf.mxu0 }
 0x2d9   : > { %v17328_v34 = vpop.f32.mrf.mxu0 }
 0x2db   : > { %v17330_v26 = vpop.f32.mrf.mxu0 }
 0x2dc   : > { %23012 = vst [vmem:[#allocation30_spill] sm:$0xff] %v17330_v26 }
 0x2dd   : > { %v17332_v54 = vpop.f32.mrf.mxu0 }
 0x2df   : > { %v17334_v36 = vpop.f32.mrf.mxu0 }
 0x2e0   : > { %23013 = vst [vmem:[#allocation31_spill] sm:$0xff] %v17334_v36 }
 0x2e1   : > { %v17336_v37 = vpop.f32.mrf.mxu0 }
 0x2e2   : > { %2501 = vrot.lane.b32.xlu0 %v17336_v37, %s16744_s3 }
 0x2e3   : > { %v17340_v40 = vpop.f32.mrf.mxu0 }
 0x2e4   : > { %23014 = vst [vmem:[#allocation32_spill] sm:$0xff] %v17340_v40 }
 0x2e5   : > { %v17342_v41 = vpop.f32.mrf.mxu0 }
 0x2e6   : > { %2549 = vrot.lane.b32.xlu0 %v17336_v37, %s16745_s24  ;;  %2503 = vrot.lane.b32.xlu1 %v17342_v41, %s16744_s3 }
 0x2e7   : > { %v17348_v42 = vpop.f32.mrf.mxu0 }
 0x2e8   : > { %23015 = vst [vmem:[#allocation33_spill] sm:$0xff] %v17348_v42 }
 0x2e9   : > { %v17350_v44 = vpop.f32.mrf.mxu0 }
 0x2ea   : > { %2597 = vrot.lane.b32.xlu0 %v17336_v37, %s16746_s1  ;;  %2551 = vrot.lane.b32.xlu1 %v17342_v41, %s16745_s24 }
 0x2eb   : > { %v17356_v55 = vpop.f32.mrf.mxu0 }
 0x2ec   : > { %23016 = vst [vmem:[#allocation34_spill] sm:$0xff] %v17356_v55 }
 0x2ed   : > { %v17358_v29 = vpop.f32.mrf.mxu0 }
 0x2ee   : > { %2599 = vrot.lane.b32.xlu1 %v17342_v41, %s16746_s1  ;;  %2505 = vrot.lane.b32.xlu0 %v17350_v44, %s16744_s3 }
 0x2ef   : > { %v17364_v49 = vpop.f32.mrf.mxu0 }
 0x2f0   : > { %23017 = vst [vmem:[#allocation35_spill] sm:$0xff] %v17364_v49 }
 0x2f1   : > { %v17366_v50 = vpop.f32.mrf.mxu0 }
 0x2f2   : > { %2553 = vrot.lane.b32.xlu0 %v17350_v44, %s16745_s24  ;;  %2507 = vrot.lane.b32.xlu1 %v17358_v29, %s16744_s3 }
 0x2f3   : > { %v17372_v51 = vpop.f32.mrf.mxu0 }
 0x2f4   : > { %23018 = vst [vmem:[#allocation36_spill] sm:$0xff] %v17372_v51 }
 0x2f5   : > { %v17374_v52 = vpop.f32.mrf.mxu0 }
 0x2f6   : > { %2601 = vrot.lane.b32.xlu0 %v17350_v44, %s16746_s1  ;;  %2555 = vrot.lane.b32.xlu1 %v17358_v29, %s16745_s24 }
 0x2f7   : > { %v17380_v62 = vpop.f32.mrf.mxu0 }
 0x2f8   : > { %23019 = vst [vmem:[#allocation37_spill] sm:$0xff] %v17380_v62 }
 0x2f9   : > { %v17386_v30 = vpop.f32.mrf.mxu0 }
 0x2fa   : > { %2603 = vrot.lane.b32.xlu1 %v17358_v29, %s16746_s1  ;;  %2509 = vrot.lane.b32.xlu0 %v17366_v50, %s16744_s3 }
 0x2fb   : > { %v17392_v31 = vpop.f32.mrf.mxu0 }
 0x2fc   : > { %23020 = vst [vmem:[#allocation38_spill] sm:$0xff] %v17392_v31 }
 0x2fd   : > { %v17398_v53 = vpop.f32.mrf.mxu0 }
 0x2fe   : > { %2557 = vrot.lane.b32.xlu0 %v17366_v50, %s16745_s24  ;;  %2511 = vrot.lane.b32.xlu1 %v17374_v52, %s16744_s3 }
 0x2ff   : > { %v17404_v57 = vpop.f32.mrf.mxu0 }
 0x300   : > { %23021 = vst [vmem:[#allocation39_spill] sm:$0xff] %v17404_v57 }
 0x301   : > { %v17410_v58 = vpop.f32.mrf.mxu0 }
 0x302   : > { %2605 = vrot.lane.b32.xlu0 %v17366_v50, %s16746_s1  ;;  %2559 = vrot.lane.b32.xlu1 %v17374_v52, %s16745_s24 }
 0x303   : > { %v17416_v59 = vpop.f32.mrf.mxu0 }
 0x304   : > { %23022 = vst [vmem:[#allocation40_spill] sm:$0xff] %v17416_v59 }
 0x305   : > { %v17422_v60 = vpop.f32.mrf.mxu0 }
 0x306   : > { %2607 = vrot.lane.b32.xlu1 %v17374_v52, %s16746_s1  ;;  %2513 = vrot.lane.b32.xlu0 %v17386_v30, %s16744_s3 }
 0x307   : > { %v17428_v61 = vpop.f32.mrf.mxu0 }
 0x308   : > { %23023 = vst [vmem:[#allocation41_spill] sm:$0xff] %v17428_v61 }
 0x309   : > { %v17434_v63 = vpop.f32.mrf.mxu0 }
 0x30a   : > { %2561 = vrot.lane.b32.xlu0 %v17386_v30, %s16745_s24  ;;  %2515 = vrot.lane.b32.xlu1 %v17398_v53, %s16744_s3 }
 0x30b   : > { %v17440_v9 = vpop.f32.mrf.mxu0 }
 0x30c   : > { %23024 = vst [vmem:[#allocation42_spill] sm:$0xff] %v17440_v9 }
 0x30d   : > { %v17446_v38 = vpop.f32.mrf.mxu0 }
 0x30e   : > { %2609 = vrot.lane.b32.xlu0 %v17386_v30, %s16746_s1  ;;  %2563 = vrot.lane.b32.xlu1 %v17398_v53, %s16745_s24 }
 0x312   : > { %2611 = vrot.lane.b32.xlu1 %v17398_v53, %s16746_s1  ;;  %2517 = vrot.lane.b32.xlu0 %v17410_v58, %s16744_s3 }
 0x316   : > { %2565 = vrot.lane.b32.xlu0 %v17410_v58, %s16745_s24  ;;  %2519 = vrot.lane.b32.xlu1 %v17422_v60, %s16744_s3 }
 0x31a   : > { %2613 = vrot.lane.b32.xlu0 %v17410_v58, %s16746_s1  ;;  %2567 = vrot.lane.b32.xlu1 %v17422_v60, %s16745_s24 }
 0x31e   : > { %2615 = vrot.lane.b32.xlu1 %v17422_v60, %s16746_s1  ;;  %2521 = vrot.lane.b32.xlu0 %v17434_v63, %s16744_s3 }
 0x322   : > { %2569 = vrot.lane.b32.xlu1 %v17434_v63, %s16745_s24  ;;  %2617 = vrot.lane.b32.xlu0 %v17434_v63, %s16746_s1 }
 0x326   : > { %2497 = vrot.lane.b32.xlu0 %v17328_v34, %s16744_s3  ;;  %2523 = vrot.lane.b32.xlu1 %v17446_v38, %s16744_s3 }
 0x32a   : > { %2545 = vrot.lane.b32.xlu0 %v17328_v34, %s16745_s24  ;;  %2571 = vrot.lane.b32.xlu1 %v17446_v38, %s16745_s24 }
 0x32e   : > { %2593 = vrot.lane.b32.xlu0 %v17328_v34, %s16746_s1  ;;  %2619 = vrot.lane.b32.xlu1 %v17446_v38, %s16746_s1 }
 0x332   : > { %2493 = vrot.lane.b32.xlu0 %v17320_v43, %s16744_s3  ;;  %2499 = vrot.lane.b32.xlu1 %v17332_v54, %s16744_s3 }
 0x336   : > { %2541 = vrot.lane.b32.xlu0 %v17320_v43, %s16745_s24  ;;  %2547 = vrot.lane.b32.xlu1 %v17332_v54, %s16745_s24 }
 0x33a   : > { %2589 = vrot.lane.b32.xlu0 %v17320_v43, %s16746_s1  ;;  %2595 = vrot.lane.b32.xlu1 %v17332_v54, %s16746_s1 }
 0x33e   : > { %1245 = vrot.lane.b32.xlu0 %v17318_v48, %s16744_s3  ;;  %2495 = vrot.lane.b32.xlu1 %v17324_v56, %s16744_s3 }
 0x342   : > { %1293 = vrot.lane.b32.xlu0 %v17318_v48, %s16745_s24  ;;  %2543 = vrot.lane.b32.xlu1 %v17324_v56, %s16745_s24 }
 0x346   : > { %1341 = vrot.lane.b32.xlu0 %v17318_v48, %s16746_s1  ;;  %2591 = vrot.lane.b32.xlu1 %v17324_v56, %s16746_s1 }
 0x34a   : > { %1249 = vrot.lane.b32.xlu0 %v17326_v47, %s16744_s3  ;;  %1247 = vrot.lane.b32.xlu1 %v17322_v33, %s16744_s3 }
 0x34e   : > { %1297 = vrot.lane.b32.xlu0 %v17326_v47, %s16745_s24  ;;  %1295 = vrot.lane.b32.xlu1 %v17322_v33, %s16745_s24 }
 0x352   : > { %1345 = vrot.lane.b32.xlu0 %v17326_v47, %s16746_s1  ;;  %1343 = vrot.lane.b32.xlu1 %v17322_v33, %s16746_s1 }
 0x354   : > { %v2502_v3 = vpop.permute.xlu0 %2501 }
 0x356   : > { %1253 = vrot.lane.b32.xlu0 %v17334_v36, %s16744_s3  ;;  %1251 = vrot.lane.b32.xlu1 %v17330_v26, %s16744_s3 }
 0x358   : > { %v2504_v10 = vpop.permute.xlu1 %2503  ;;  %v2550_v7 = vpop.permute.xlu0 %2549 }
 0x359   : > { %v2909_v11 = vcombine.low %v17336_v37, %v2550_v7  ;;  %v2910_v12 = vcombine.high %v17336_v37, %v2550_v7 }
 0x35a   : > { %1301 = vrot.lane.b32.xlu0 %v17334_v36, %s16745_s24  ;;  %1299 = vrot.lane.b32.xlu1 %v17330_v26, %s16745_s24 }
 0x35b   : > { %v2917_v39 = vrot.slane %v2909_v11, %v17505_v19  ;;  %v2924_v15 = vrot.slane %v2910_v12, %v17505_v19 }
 0x35c   : > { %v2552_v46 = vpop.permute.xlu1 %2551  ;;  %v2598_v13 = vpop.permute.xlu0 %2597 }
 0x35d   : > { %v2925_v14 = vcombine.low %v2502_v3, %v2598_v13  ;;  %v2926_v20 = vcombine.high %v2502_v3, %v2598_v13  ;;  %v2977_v21 = vcombine.low %v17342_v41, %v2552_v46  ;;  %v2978_v22 = vcombine.high %v17342_v41, %v2552_v46 }
 0x35e   : > { %1349 = vrot.lane.b32.xlu0 %v17334_v36, %s16746_s1  ;;  %1347 = vrot.lane.b32.xlu1 %v17330_v26, %s16746_s1 }
 0x35f   : > { %v2933_v16 = vrot.slane %v2925_v14, %v17505_v19  ;;  %v2940_v18 = vrot.slane %v2926_v20, %v17505_v19  ;;  %v2985_v6 = vrot.slane %v2977_v21, %v17505_v19  ;;  %v2992_v7 = vrot.slane %v2978_v22, %v17505_v19 }
 0x360   : > { %v2600_v35 = vpop.permute.xlu1 %2599  ;;  %v17522_v23 = vpop.permute.xlu0 %2505 }
 0x361   : > { %v2941_v45 = vcombine.low %v2917_v39, %v2933_v16  ;;  %v2942_v24 = vcombine.high %v2917_v39, %v2933_v16  ;;  %v2957_v25 = vcombine.low %v2924_v15, %v2940_v18  ;;  %v2958_v37 = vcombine.high %v2924_v15, %v2940_v18 }
 0x362   : > { %v2993_v1 = vcombine.low %v2504_v10, %v2600_v35  ;;  %v2994_v2 = vcombine.high %v2504_v10, %v2600_v35  ;;  %1257 = vrot.lane.b32.xlu0 %v17348_v42, %s16744_s3  ;;  %1255 = vrot.lane.b32.xlu1 %v17340_v40, %s16744_s3 }
 0x363   : > { %v2949_v3 = vrot.slane %v2941_v45, %v17510_v27  ;;  %v2956_v4 = vrot.slane %v2942_v24, %v17510_v27  ;;  %v2965_v41 = vrot.slane %v2957_v25, %v17510_v27  ;;  %v2972_v5 = vrot.slane %v2958_v37, %v17510_v27 }
 0x364   : > { %v3001_v10 = vrot.slane %v2993_v1, %v17505_v19  ;;  %v3008_v8 = vrot.slane %v2994_v2, %v17505_v19  ;;  %v2508_v11 = vpop.permute.xlu1 %2507  ;;  %v2554_v12 = vpop.permute.xlu0 %2553 }
 0x365   : > { %v6365_v46 = vcombine.low %v2949_v3, %v2956_v4  ;;  %v14656_v13 = vcombine.high %v2949_v3, %v2956_v4  ;;  %v6381_v14 = vcombine.low %v2965_v41, %v2972_v5  ;;  %v14657_v20 = vcombine.high %v2965_v41, %v2972_v5 }
 0x366   : > { %v3009_v39 = vcombine.low %v2985_v6, %v3001_v10  ;;  %v3010_v15 = vcombine.high %v2985_v6, %v3001_v10  ;;  %v3025_v16 = vcombine.low %v2992_v7, %v3008_v8  ;;  %v3026_v18 = vcombine.high %v2992_v7, %v3008_v8  ;;  %1305 = vrot.lane.b32.xlu0 %v17348_v42, %s16745_s24 }
 0x367   : > { %v17539_v21 = vrot.slane %v6365_v46, %v17505_v19  ;;  %v17542_v22 = vrot.slane %v14656_v13, %v17505_v19  ;;  %v17545_v35 = vrot.slane %v6381_v14, %v17505_v19  ;;  %v17548_v45 = vrot.slane %v14657_v20, %v17505_v19  ;;  %1303 = vrot.lane.b32.xlu1 %v17340_v40, %s16745_s24 }
 0x368   : > { %v3017_v24 = vrot.slane %v3009_v39, %v17510_v27  ;;  %v3024_v25 = vrot.slane %v3010_v15, %v17510_v27  ;;  %v3033_v37 = vrot.slane %v3025_v16, %v17510_v27  ;;  %v3040_v1 = vrot.slane %v3026_v18, %v17510_v27  ;;  %v2556_v2 = vpop.permute.xlu1 %2555  ;;  %v2602_v3 = vpop.permute.xlu0 %2601 }
 0x369   : > { %23027 = vst [vmem:[#allocation45_spill] sm:$0xff] %v17539_v21  ;;  %23028 = vst [vmem:[#allocation46_spill] sm:$0xff] %v17542_v22  ;;  %v3045_v4 = vcombine.low %v17350_v44, %v2554_v12  ;;  %v3046_v41 = vcombine.high %v17350_v44, %v2554_v12  ;;  %v3113_v5 = vcombine.low %v17358_v29, %v2556_v2  ;;  %v17581_v18 = vpop.f32.mrf.mxu1 }
 0x36a   : > { %23029 = vst [vmem:[#allocation47_spill] sm:$0xff] %v17545_v35  ;;  %23030 = vst [vmem:[#allocation48_spill] sm:$0xff] %v17548_v45  ;;  %v3114_v6 = vcombine.high %v17358_v29, %v2556_v2  ;;  %v6433_v7 = vcombine.low %v3017_v24, %v3024_v25  ;;  %v14658_v10 = vcombine.high %v3017_v24, %v3024_v25  ;;  %1353 = vrot.lane.b32.xlu0 %v17348_v42, %s16746_s1 }
 0x36b   : > { %v6449_v8 = vcombine.low %v3033_v37, %v3040_v1  ;;  %v14659_v46 = vcombine.high %v3033_v37, %v3040_v1  ;;  %v3053_v13 = vrot.slane %v3045_v4, %v17505_v19  ;;  %v3060_v14 = vrot.slane %v3046_v41, %v17505_v19  ;;  %1351 = vrot.lane.b32.xlu1 %v17340_v40, %s16746_s1 }
 0x36c   : > { %v3121_v20 = vrot.slane %v3113_v5, %v17505_v19  ;;  %v17568_v44 = vrot.slane %v6433_v7, %v17505_v19  ;;  %v17571_v29 = vrot.slane %v14658_v10, %v17505_v19  ;;  %v2604_v15 = vpop.permute.xlu1 %2603  ;;  %v17579_v16 = vpop.permute.xlu0 %2509  ;;  %23035 = vst [vmem:[#allocation53_spill] sm:$0xff] %v17581_v18  ;;  %v3061_v24 = vcombine.low %v17522_v23, %v2602_v3 }
 0x36d   : > { %v17574_v12 = vrot.slane %v6449_v8, %v17505_v19  ;;  %v17577_v39 = vrot.slane %v14659_v46, %v17505_v19  ;;  %v3062_v25 = vcombine.high %v17522_v23, %v2602_v3  ;;  %v3129_v37 = vcombine.low %v2508_v11, %v2604_v15 }
 0x36e   : > { %23031 = vst [vmem:[#allocation49_spill] sm:$0xff] %v17568_v44  ;;  %23032 = vst [vmem:[#allocation50_spill] sm:$0xff] %v17571_v29  ;;  %v3130_v1 = vcombine.high %v2508_v11, %v2604_v15  ;;  %v3128_v2 = vrot.slane %v3114_v6, %v17505_v19  ;;  %1261 = vrot.lane.b32.xlu0 %v17364_v49, %s16744_s3  ;;  %v6397_v4 = vcombine.low %v17539_v21, %v17542_v22 }
 0x36f   : > { %23033 = vst [vmem:[#allocation51_spill] sm:$0xff] %v17574_v12  ;;  %23034 = vst [vmem:[#allocation52_spill] sm:$0xff] %v17577_v39  ;;  %v6413_v41 = vcombine.low %v17545_v35, %v17548_v45  ;;  %v6465_v5 = vcombine.low %v17568_v44, %v17571_v29  ;;  %v3069_v7 = vrot.slane %v3061_v24, %v17505_v19  ;;  %1259 = vrot.lane.b32.xlu1 %v17356_v55, %s16744_s3 }
 0x370   : > { %v3076_v23 = vrot.slane %v3062_v25, %v17505_v19  ;;  %v3137_v11 = vrot.slane %v3129_v37, %v17505_v19  ;;  %v3144_v3 = vrot.slane %v3130_v1, %v17505_v19  ;;  %v17600_v6 = vpop.permute.xlu1 %2511  ;;  %v2558_v10 = vpop.permute.xlu0 %2557  ;;  %v17603_v8 = vrot.slane %v6397_v4, %v17510_v27 }
 0x371   : > { %v17606_v46 = vrot.slane %v6413_v41, %v17510_v27  ;;  %v17609_v15 = vrot.slane %v6465_v5, %v17510_v27  ;;  %v6481_v24 = vcombine.low %v17574_v12, %v17577_v39  ;;  %v17613_v25 = vpop.f32.mrf.mxu1  ;;  %v3077_v37 = vcombine.low %v3053_v13, %v3069_v7 }
 0x372   : > { %23036 = vst [vmem:[#allocation54_spill] sm:$0xff] %v17603_v8  ;;  %23039 = vst [vmem:[#allocation57_spill] sm:$0xff] %v17613_v25  ;;  %v3078_v1 = vcombine.high %v3053_v13, %v3069_v7  ;;  %v3093_v28 = vcombine.low %v3060_v14, %v3076_v23  ;;  %v3094_v32 = vcombine.high %v3060_v14, %v3076_v23  ;;  %1309 = vrot.lane.b32.xlu0 %v17364_v49, %s16745_s24 }
 0x373   : > { %23037 = vst [vmem:[#allocation55_spill] sm:$0xff] %v17606_v46  ;;  %23038 = vst [vmem:[#allocation56_spill] sm:$0xff] %v17609_v15  ;;  %v3145_v0 = vcombine.low %v3121_v20, %v3137_v11  ;;  %v3146_v17 = vcombine.high %v3121_v20, %v3137_v11  ;;  %v3161_v44 = vcombine.low %v3128_v2, %v3144_v3  ;;  %1307 = vrot.lane.b32.xlu1 %v17356_v55, %s16745_s24  ;;  %v17627_v11 = vpop.f32.mrf.mxu1 }
 0x374   : > { %v3162_v4 = vcombine.high %v3128_v2, %v3144_v3  ;;  %v3085_v41 = vrot.slane %v3077_v37, %v17510_v27  ;;  %v3092_v5 = vrot.slane %v3078_v1, %v17510_v27  ;;  %v3101_v29 = vrot.slane %v3093_v28, %v17510_v27  ;;  %v2560_v7 = vpop.permute.xlu1 %2559  ;;  %v2606_v23 = vpop.permute.xlu0 %2605  ;;  %23040 = vst [vmem:[#allocation58_spill] sm:$0xff] %v17627_v11 }
 0x375   : > { %v3108_v12 = vrot.slane %v3094_v32, %v17510_v27  ;;  %v3153_v13 = vrot.slane %v3145_v0, %v17510_v27  ;;  %v3160_v14 = vrot.slane %v3146_v17, %v17510_v27  ;;  %v3169_v20 = vrot.slane %v3161_v44, %v17510_v27 }
 0x376   : > { %v3176_v2 = vrot.slane %v3162_v4, %v17510_v27  ;;  %v6501_v3 = vcombine.low %v3085_v41, %v3092_v5  ;;  %v14660_v37 = vcombine.high %v3085_v41, %v3092_v5  ;;  %1357 = vrot.lane.b32.xlu0 %v17364_v49, %s16746_s1  ;;  %v17632_v0 = vrot.slane %v6481_v24, %v17510_v27 }
 0x377   : > { %v6517_v28 = vcombine.low %v3101_v29, %v3108_v12  ;;  %v14661_v1 = vcombine.high %v3101_v29, %v3108_v12  ;;  %v6569_v32 = vcombine.low %v3153_v13, %v3160_v14  ;;  %v14662_v39 = vcombine.high %v3153_v13, %v3160_v14  ;;  %1355 = vrot.lane.b32.xlu1 %v17356_v55, %s16746_s1 }
 0x378   : > { %v6585_v35 = vcombine.low %v3169_v20, %v3176_v2  ;;  %23041 = vst [vmem:[#allocation59_spill] sm:$0xff] %v17632_v0  ;;  %v17635_v17 = vrot.slane %v6501_v3, %v17505_v19  ;;  %v17638_v44 = vrot.slane %v14660_v37, %v17505_v19  ;;  %v14663_v41 = vcombine.high %v3169_v20, %v3176_v2  ;;  %v2608_v13 = vpop.permute.xlu1 %2607  ;;  %v17657_v14 = vpop.permute.xlu0 %2513 }
 0x379   : > { %v17641_v4 = vrot.slane %v6517_v28, %v17505_v19  ;;  %v17646_v29 = vrot.slane %v14661_v1, %v17505_v19  ;;  %v17649_v12 = vrot.slane %v6569_v32, %v17505_v19  ;;  %v17652_v24 = vrot.slane %v14662_v39, %v17505_v19  ;;  %v17659_v3 = vpop.f32.mrf.mxu1 }
 0x37a   : > { %23042 = vst [vmem:[#allocation60_spill] sm:$0xff] %v17635_v17  ;;  %23043 = vst [vmem:[#allocation61_spill] sm:$0xff] %v17638_v44  ;;  %v17655_v5 = vrot.slane %v6585_v35, %v17505_v19  ;;  %v3181_v20 = vcombine.low %v17366_v50, %v2558_v10  ;;  %v3182_v2 = vcombine.high %v17366_v50, %v2558_v10  ;;  %1265 = vrot.lane.b32.xlu0 %v17380_v62, %s16744_s3 }
 0x37b   : > { %23044 = vst [vmem:[#allocation62_spill] sm:$0xff] %v17641_v4  ;;  %23045 = vst [vmem:[#allocation63_spill] sm:$0xff] %v17646_v29  ;;  %v3249_v37 = vcombine.low %v17374_v52, %v2560_v7  ;;  %v3250_v28 = vcombine.high %v17374_v52, %v2560_v7  ;;  %v3197_v1 = vcombine.low %v17579_v16, %v2606_v23  ;;  %1263 = vrot.lane.b32.xlu1 %v17372_v51, %s16744_s3  ;;  %v17685_v21 = vpop.f32.mrf.mxu1 }
 0x37c   : > { %23046 = vst [vmem:[#allocation64_spill] sm:$0xff] %v17649_v12  ;;  %23047 = vst [vmem:[#allocation65_spill] sm:$0xff] %v17652_v24  ;;  %v3198_v39 = vcombine.high %v17579_v16, %v2606_v23  ;;  %v3265_v35 = vcombine.low %v17600_v6, %v2608_v13  ;;  %v3266_v32 = vcombine.high %v17600_v6, %v2608_v13  ;;  %v17683_v13 = vpop.permute.xlu1 %2515 }
 0x37d   : > { %23048 = vst [vmem:[#allocation66_spill] sm:$0xff] %v17655_v5  ;;  %23049 = vst [vmem:[#allocation67_spill] sm:$0xff] %v17659_v3  ;;  %v17672_v45 = vrot.slane %v14663_v41, %v17505_v19  ;;  %v3189_v50 = vrot.slane %v3181_v20, %v17505_v19  ;;  %v3196_v10 = vrot.slane %v3182_v2, %v17505_v19  ;;  %v2562_v41 = vpop.permute.xlu0 %2561 }
 0x37e   : > { %v3257_v52 = vrot.slane %v3249_v37, %v17505_v19  ;;  %v3205_v16 = vrot.slane %v3197_v1, %v17505_v19  ;;  %v3212_v7 = vrot.slane %v3198_v39, %v17505_v19  ;;  %v3273_v6 = vrot.slane %v3265_v35, %v17505_v19  ;;  %23051 = vst [vmem:[#allocation69_spill] sm:$0xff] %v17685_v21 }
 0x37f   : > { %23050 = vst [vmem:[#allocation68_spill] sm:$0xff] %v17672_v45  ;;  %v3280_v23 = vrot.slane %v3266_v32, %v17505_v19  ;;  %v3264_v20 = vrot.slane %v3250_v28, %v17505_v19  ;;  %v3317_v2 = vcombine.low %v17386_v30, %v2562_v41  ;;  %v3318_v37 = vcombine.high %v17386_v30, %v2562_v41 }
 0x380   : > { %v3213_v22 = vcombine.low %v3189_v50, %v3205_v16  ;;  %v3214_v39 = vcombine.high %v3189_v50, %v3205_v16  ;;  %v3229_v3 = vcombine.low %v3196_v10, %v3212_v7  ;;  %v3230_v35 = vcombine.high %v3196_v10, %v3212_v7  ;;  %1313 = vrot.lane.b32.xlu0 %v17380_v62, %s16745_s24  ;;  %v2564_v16 = vpop.permute.xlu1 %2563  ;;  %v17700_v7 = vpop.f32.mrf.mxu1 }
 0x381   : > { %v3281_v32 = vcombine.low %v3257_v52, %v3273_v6  ;;  %v3282_v49 = vcombine.high %v3257_v52, %v3273_v6  ;;  %v3297_v55 = vcombine.low %v3264_v20, %v3280_v23  ;;  %v3298_v11 = vcombine.high %v3264_v20, %v3280_v23  ;;  %1311 = vrot.lane.b32.xlu1 %v17372_v51, %s16745_s24  ;;  %v2610_v10 = vpop.permute.xlu0 %2609 }
 0x382   : > { %v3221_v28 = vrot.slane %v3213_v22, %v17510_v27  ;;  %v3228_v30 = vrot.slane %v3214_v39, %v17510_v27  ;;  %v3237_v41 = vrot.slane %v3229_v3, %v17510_v27  ;;  %v3244_v50 = vrot.slane %v3230_v35, %v17510_v27  ;;  %23052 = vst [vmem:[#allocation70_spill] sm:$0xff] %v17700_v7 }
 0x383   : > { %v3289_v1 = vrot.slane %v3281_v32, %v17510_v27  ;;  %v3296_v52 = vrot.slane %v3282_v49, %v17510_v27  ;;  %v3305_v6 = vrot.slane %v3297_v55, %v17510_v27  ;;  %v3312_v23 = vrot.slane %v3298_v11, %v17510_v27 }
 0x384   : > { %v6637_v20 = vcombine.low %v3221_v28, %v3228_v30  ;;  %v14664_v22 = vcombine.high %v3221_v28, %v3228_v30  ;;  %v6653_v42 = vcombine.low %v3237_v41, %v3244_v50  ;;  %v14665_v39 = vcombine.high %v3237_v41, %v3244_v50  ;;  %1361 = vrot.lane.b32.xlu0 %v17380_v62, %s16746_s1  ;;  %v2612_v32 = vpop.permute.xlu1 %2611  ;;  %v17723_v30 = vpop.f32.mrf.mxu1 }
 0x385   : > { %v6705_v3 = vcombine.low %v3289_v1, %v3296_v52  ;;  %v14666_v35 = vcombine.high %v3289_v1, %v3296_v52  ;;  %v6721_v40 = vcombine.low %v3305_v6, %v3312_v23  ;;  %v14667_v8 = vcombine.high %v3305_v6, %v3312_v23  ;;  %1359 = vrot.lane.b32.xlu1 %v17372_v51, %s16746_s1  ;;  %v17719_v28 = vpop.permute.xlu0 %2517 }
 0x386   : > { %v17711_v49 = vrot.slane %v6637_v20, %v17505_v19  ;;  %v17714_v55 = vrot.slane %v14664_v22, %v17505_v19  ;;  %v17717_v11 = vrot.slane %v6653_v42, %v17505_v19  ;;  %23056 = vst [vmem:[#allocation74_spill] sm:$0xff] %v17723_v30  ;;  %v17726_v41 = vrot.slane %v14665_v39, %v17505_v19 }
 0x387   : > { %v17729_v50 = vrot.slane %v6705_v3, %v17505_v19  ;;  %v17732_v52 = vrot.slane %v14666_v35, %v17505_v19  ;;  %v17735_v42 = vrot.slane %v6721_v40, %v17505_v19  ;;  %v17738_v6 = vrot.slane %v14667_v8, %v17505_v19 }
 0x388   : > { %23053 = vst [vmem:[#allocation71_spill] sm:$0xff] %v17711_v49  ;;  %23054 = vst [vmem:[#allocation72_spill] sm:$0xff] %v17714_v55  ;;  %v3325_v23 = vrot.slane %v3317_v2, %v17505_v19  ;;  %v3385_v20 = vcombine.low %v17398_v53, %v2564_v16  ;;  %v3386_v22 = vcombine.high %v17398_v53, %v2564_v16  ;;  %1269 = vrot.lane.b32.xlu0 %v17404_v57, %s16744_s3  ;;  %v17754_v16 = vpop.permute.xlu1 %2519 }
 0x389   : > { %23055 = vst [vmem:[#allocation73_spill] sm:$0xff] %v17717_v11  ;;  %23057 = vst [vmem:[#allocation75_spill] sm:$0xff] %v17726_v41  ;;  %v3333_v39 = vcombine.low %v17657_v14, %v2610_v10  ;;  %v3334_v3 = vcombine.high %v17657_v14, %v2610_v10  ;;  %v3401_v35 = vcombine.low %v17683_v13, %v2612_v32  ;;  %1267 = vrot.lane.b32.xlu1 %v17392_v31, %s16744_s3  ;;  %v17756_v1 = vpop.permute.xlu0 %2565  ;;  %v17760_v10 = vpop.f32.mrf.mxu1 }
 0x38a   : > { %23058 = vst [vmem:[#allocation76_spill] sm:$0xff] %v17729_v50  ;;  %23059 = vst [vmem:[#allocation77_spill] sm:$0xff] %v17732_v52  ;;  %v3402_v40 = vcombine.high %v17683_v13, %v2612_v32  ;;  %v3332_v8 = vrot.slane %v3318_v37, %v17505_v19  ;;  %v3393_v2 = vrot.slane %v3385_v20, %v17505_v19 }
 0x38b   : > { %23060 = vst [vmem:[#allocation78_spill] sm:$0xff] %v17735_v42  ;;  %23061 = vst [vmem:[#allocation79_spill] sm:$0xff] %v17738_v6  ;;  %v3400_v53 = vrot.slane %v3386_v22, %v17505_v19  ;;  %v6669_v14 = vcombine.low %v17711_v49, %v17714_v55  ;;  %v3341_v13 = vrot.slane %v3333_v39, %v17505_v19  ;;  %v17779_v0 = vpop.f32.mrf.mxu1 }
 0x38c   : > { %23062 = vst [vmem:[#allocation80_spill] sm:$0xff] %v17760_v10  ;;  %v3348_v32 = vrot.slane %v3334_v3, %v17505_v19  ;;  %v3409_v62 = vrot.slane %v3401_v35, %v17505_v19  ;;  %v3416_v37 = vrot.slane %v3402_v40, %v17505_v19  ;;  %v3453_v20 = vcombine.low %v17410_v58, %v17756_v1 }
 0x38d   : > { %v3454_v22 = vcombine.high %v17410_v58, %v17756_v1  ;;  %1317 = vrot.lane.b32.xlu0 %v17404_v57, %s16745_s24  ;;  %v17773_v49 = vrot.slane %v6669_v14, %v17510_v27  ;;  %v6685_v39 = vcombine.low %v17717_v11, %v17726_v41  ;;  %v3349_v3 = vcombine.low %v3325_v23, %v3341_v13  ;;  %v2568_v1 = vpop.permute.xlu1 %2567  ;;  %v2614_v15 = vpop.permute.xlu0 %2613 }
 0x38e   : > { %v3350_v55 = vcombine.high %v3325_v23, %v3341_v13  ;;  %v3365_v35 = vcombine.low %v3332_v8, %v3348_v32  ;;  %v3366_v51 = vcombine.high %v3332_v8, %v3348_v32  ;;  %1315 = vrot.lane.b32.xlu1 %v17392_v31, %s16745_s24  ;;  %v3417_v40 = vcombine.low %v3393_v2, %v3409_v62 }
 0x38f   : > { %v3418_v46 = vcombine.high %v3393_v2, %v3409_v62  ;;  %v3433_v10 = vcombine.low %v3400_v53, %v3416_v37  ;;  %v3434_v58 = vcombine.high %v3400_v53, %v3416_v37  ;;  %23063 = vst [vmem:[#allocation81_spill] sm:$0xff] %v17779_v0  ;;  %v3357_v14 = vrot.slane %v3349_v3, %v17510_v27 }
 0x390   : > { %v3364_v25 = vrot.slane %v3350_v55, %v17510_v27  ;;  %v3373_v11 = vrot.slane %v3365_v35, %v17510_v27  ;;  %v3380_v23 = vrot.slane %v3366_v51, %v17510_v27  ;;  %v3425_v8 = vrot.slane %v3417_v40, %v17510_v27 }
 0x391   : > { %v3432_v13 = vrot.slane %v3418_v46, %v17510_v27  ;;  %v3441_v62 = vrot.slane %v3433_v10, %v17510_v27  ;;  %v3448_v2 = vrot.slane %v3434_v58, %v17510_v27  ;;  %1365 = vrot.lane.b32.xlu0 %v17404_v57, %s16746_s1  ;;  %v2616_v41 = vpop.permute.xlu1 %2615  ;;  %v17793_v46 = vpop.permute.xlu0 %2521 }
 0x392   : > { %v6773_v53 = vcombine.low %v3357_v14, %v3364_v25  ;;  %v14668_v32 = vcombine.high %v3357_v14, %v3364_v25  ;;  %v6789_v37 = vcombine.low %v3373_v11, %v3380_v23  ;;  %v14669_v3 = vcombine.high %v3373_v11, %v3380_v23  ;;  %1363 = vrot.lane.b32.xlu1 %v17392_v31, %s16746_s1  ;;  %v17795_v10 = vpop.f32.mrf.mxu1 }
 0x393   : > { %v6841_v55 = vcombine.low %v3425_v8, %v3432_v13  ;;  %v14670_v51 = vcombine.high %v3425_v8, %v3432_v13  ;;  %v6857_v35 = vcombine.low %v3441_v62, %v3448_v2  ;;  %v14671_v40 = vcombine.high %v3441_v62, %v3448_v2  ;;  %23064 = vst [vmem:[#allocation82_spill] sm:$0xff] %v17795_v10 }
 0x394   : > { %v17798_v58 = vrot.slane %v6773_v53, %v17505_v19  ;;  %v17801_v57 = vrot.slane %v14668_v32, %v17505_v19  ;;  %v17804_v25 = vrot.slane %v6789_v37, %v17505_v19  ;;  %v17807_v11 = vrot.slane %v6685_v39, %v17510_v27 }
 0x395   : > { %v17810_v14 = vrot.slane %v14669_v3, %v17505_v19  ;;  %v17813_v23 = vrot.slane %v6841_v55, %v17505_v19  ;;  %v17816_v8 = vrot.slane %v14670_v51, %v17505_v19  ;;  %v17819_v13 = vrot.slane %v6857_v35, %v17505_v19  ;;  %1273 = vrot.lane.b32.xlu0 %v17428_v61, %s16744_s3  ;;  %v2570_v51 = vpop.permute.xlu1 %2569  ;;  %v2618_v35 = vpop.permute.xlu0 %2617 }
 0x396   : > { %23065 = vst [vmem:[#allocation83_spill] sm:$0xff] %v17798_v58  ;;  %23066 = vst [vmem:[#allocation84_spill] sm:$0xff] %v17801_v57  ;;  %v17824_v62 = vrot.slane %v14671_v40, %v17505_v19  ;;  %v3461_v39 = vrot.slane %v3453_v20, %v17505_v19  ;;  %v3521_v2 = vcombine.low %v17422_v60, %v2568_v1  ;;  %1271 = vrot.lane.b32.xlu1 %v17416_v59, %s16744_s3  ;;  %v17835_v40 = vpop.f32.mrf.mxu1 }
 0x397   : > { %23067 = vst [vmem:[#allocation85_spill] sm:$0xff] %v17804_v25  ;;  %23068 = vst [vmem:[#allocation86_spill] sm:$0xff] %v17810_v14  ;;  %v3522_v53 = vcombine.high %v17422_v60, %v2568_v1  ;;  %v3469_v32 = vcombine.low %v17719_v28, %v2614_v15  ;;  %v3470_v37 = vcombine.high %v17719_v28, %v2614_v15 }
 0x398   : > { %23069 = vst [vmem:[#allocation87_spill] sm:$0xff] %v17813_v23  ;;  %23070 = vst [vmem:[#allocation88_spill] sm:$0xff] %v17816_v8  ;;  %v3537_v3 = vcombine.low %v17754_v16, %v2616_v41  ;;  %v3538_v55 = vcombine.high %v17754_v16, %v2616_v41  ;;  %v3468_v20 = vrot.slane %v3454_v22, %v17505_v19  ;;  %v17859_v24 = vpop.f32.mrf.mxu1 }
 0x399   : > { %23071 = vst [vmem:[#allocation89_spill] sm:$0xff] %v17819_v13  ;;  %23072 = vst [vmem:[#allocation90_spill] sm:$0xff] %v17824_v62  ;;  %v3529_v31 = vrot.slane %v3521_v2, %v17505_v19  ;;  %v3536_v60 = vrot.slane %v3522_v53, %v17505_v19  ;;  %v3589_v1 = vcombine.low %v17434_v63, %v2570_v51  ;;  %1321 = vrot.lane.b32.xlu0 %v17428_v61, %s16745_s24  ;;  %v17857_v12 = vpop.permute.xlu0 %2497 }
 0x39a   : > { %23073 = vst [vmem:[#allocation91_spill] sm:$0xff] %v17835_v40  ;;  %v3477_v5 = vrot.slane %v3469_v32, %v17505_v19  ;;  %v3484_v15 = vrot.slane %v3470_v37, %v17505_v19  ;;  %v3545_v28 = vrot.slane %v3537_v3, %v17505_v19  ;;  %v3552_v41 = vrot.slane %v3538_v55, %v17505_v19  ;;  %v17855_v55 = vpop.permute.xlu1 %2523 }
 0x39b   : > { %v3590_v16 = vcombine.high %v17434_v63, %v2570_v51  ;;  %v17849_v22 = vrot.slane %v3589_v1, %v17505_v19  ;;  %v3605_v2 = vcombine.low %v17793_v46, %v2618_v35  ;;  %v3606_v53 = vcombine.high %v17793_v46, %v2618_v35  ;;  %1319 = vrot.lane.b32.xlu1 %v17416_v59, %s16745_s24 }
 0x39c   : > { %v3485_v32 = vcombine.low %v3461_v39, %v3477_v5  ;;  %v3486_v37 = vcombine.high %v3461_v39, %v3477_v5  ;;  %v3501_v3 = vcombine.low %v3468_v20, %v3484_v15  ;;  %v3502_v45 = vcombine.high %v3468_v20, %v3484_v15  ;;  %23074 = vst [vmem:[#allocation92_spill] sm:$0xff] %v17859_v24 }
 0x39d   : > { %v3553_v63 = vcombine.low %v3529_v31, %v3545_v28  ;;  %v3554_v51 = vcombine.high %v3529_v31, %v3545_v28  ;;  %v3569_v1 = vcombine.low %v3536_v60, %v3552_v41  ;;  %v3570_v29 = vcombine.high %v3536_v60, %v3552_v41  ;;  %1369 = vrot.lane.b32.xlu0 %v17428_v61, %s16746_s1 }
 0x39e   : > { %v3493_v4 = vrot.slane %v3485_v32, %v17510_v27  ;;  %v3500_v46 = vrot.slane %v3486_v37, %v17510_v27  ;;  %v3509_v35 = vrot.slane %v3501_v3, %v17510_v27  ;;  %v3516_v5 = vrot.slane %v3502_v45, %v17510_v27  ;;  %v2572_v37 = vpop.permute.xlu1 %2571  ;;  %v2546_v45 = vpop.permute.xlu0 %2545 }
 0x39f   : > { %v3561_v39 = vrot.slane %v3553_v63, %v17510_v27  ;;  %v3568_v20 = vrot.slane %v3554_v51, %v17510_v27  ;;  %v3577_v15 = vrot.slane %v3569_v1, %v17510_v27  ;;  %v3584_v31 = vrot.slane %v3570_v29, %v17510_v27  ;;  %1367 = vrot.lane.b32.xlu1 %v17416_v59, %s16746_s1  ;;  %v17873_v3 = vpop.f32.mrf.mxu1 }
 0x3a0   : > { %v6909_v60 = vcombine.low %v3493_v4, %v3500_v46  ;;  %v14672_v28 = vcombine.high %v3493_v4, %v3500_v46  ;;  %v6925_v41 = vcombine.low %v3509_v35, %v3516_v5  ;;  %v14673_v32 = vcombine.high %v3509_v35, %v3516_v5  ;;  %23075 = vst [vmem:[#allocation93_spill] sm:$0xff] %v17873_v3 }
 0x3a1   : > { %v6977_v61 = vcombine.low %v3561_v39, %v3568_v20  ;;  %v14674_v44 = vcombine.high %v3561_v39, %v3568_v20  ;;  %v6993_v63 = vcombine.low %v3577_v15, %v3584_v31  ;;  %v14675_v17 = vcombine.high %v3577_v15, %v3584_v31  ;;  %3769 = vrot.lane.b32.xlu0 %v17873_v3, %s16744_s3 }
 0x3a2   : > { %v17876_v51 = vrot.slane %v6909_v60, %v17505_v19  ;;  %v17879_v29 = vrot.slane %v14672_v28, %v17505_v19  ;;  %v17882_v1 = vrot.slane %v6925_v41, %v17505_v19  ;;  %v3604_v4 = vrot.slane %v3590_v16, %v17505_v19  ;;  %v2620_v60 = vpop.permute.xlu1 %2619 }
 0x3a3   : > { %v17888_v46 = vrot.slane %v14673_v32, %v17505_v19  ;;  %v17891_v35 = vrot.slane %v6977_v61, %v17505_v19  ;;  %v17894_v5 = vrot.slane %v14674_v44, %v17505_v19  ;;  %v17897_v39 = vrot.slane %v6993_v63, %v17505_v19  ;;  %1275 = vrot.lane.b32.xlu1 %v17440_v9, %s16744_s3  ;;  %v2594_v61 = vpop.permute.xlu0 %2593 }
 0x3a4   : > { %23076 = vst [vmem:[#allocation94_spill] sm:$0xff] %v17882_v1  ;;  %v3613_v16 = vrot.slane %v3605_v2, %v17505_v19  ;;  %v3620_v20 = vrot.slane %v3606_v53, %v17505_v19  ;;  %v3657_v15 = vcombine.low %v17446_v38, %v2572_v37  ;;  %v3658_v31 = vcombine.high %v17446_v38, %v2572_v37 }
 0x3a5   : > { %23077 = vst [vmem:[#allocation95_spill] sm:$0xff] %v17891_v35  ;;  %23078 = vst [vmem:[#allocation96_spill] sm:$0xff] %v17894_v5  ;;  %v17906_v28 = vrot.slane %v14675_v17, %v17505_v19  ;;  %v2773_v44 = vcombine.low %v17328_v34, %v2546_v45  ;;  %v3673_v41 = vcombine.low %v17855_v55, %v2620_v60  ;;  %3865 = vrot.lane.b32.xlu0 %v17873_v3, %s16746_s1 }
 0x3a6   : > { %23079 = vst [vmem:[#allocation97_spill] sm:$0xff] %v17897_v39  ;;  %v3674_v32 = vcombine.high %v17855_v55, %v2620_v60  ;;  %v3621_v63 = vcombine.low %v17849_v22, %v3613_v16  ;;  %v3622_v2 = vcombine.high %v17849_v22, %v3613_v16  ;;  %v3637_v53 = vcombine.low %v3604_v4, %v3620_v20 }
 0x3a7   : > { %23080 = vst [vmem:[#allocation98_spill] sm:$0xff] %v17906_v28  ;;  %v3638_v59 = vcombine.high %v3604_v4, %v3620_v20  ;;  %v3665_v38 = vrot.slane %v3657_v15, %v17505_v19  ;;  %v3672_v17 = vrot.slane %v3658_v31, %v17505_v19  ;;  %v2774_v37 = vcombine.high %v17328_v34, %v2546_v45  ;;  %v17925_v20 = vpop.permute.xlu1 %2499  ;;  %v17927_v15 = vpop.permute.xlu0 %2493 }
 0x3a8   : > { %v2781_v36 = vrot.slane %v2773_v44, %v17505_v19  ;;  %1323 = vrot.lane.b32.xlu1 %v17440_v9, %s16745_s24  ;;  %v3629_v55 = vrot.slane %v3621_v63, %v17510_v27  ;;  %v3636_v22 = vrot.slane %v3622_v2, %v17510_v27  ;;  %v3645_v4 = vrot.slane %v3637_v53, %v17510_v27  ;;  %v17929_v31 = vpop.f32.mrf.mxu1 }
 0x3a9   : > { %v3652_v16 = vrot.slane %v3638_v59, %v17510_v27  ;;  %23081 = vst [vmem:[#allocation99_spill] sm:$0xff] %v17929_v31  ;;  %v3681_v34 = vrot.slane %v3673_v41, %v17505_v19  ;;  %v3688_v45 = vrot.slane %v3674_v32, %v17505_v19  ;;  %v2789_v60 = vcombine.low %v17857_v12, %v2594_v61 }
 0x3aa   : > { %v2790_v44 = vcombine.high %v17857_v12, %v2594_v61  ;;  %v7045_v63 = vcombine.low %v3629_v55, %v3636_v22  ;;  %v14676_v2 = vcombine.high %v3629_v55, %v3636_v22  ;;  %3765 = vrot.lane.b32.xlu0 %v17929_v31, %s16744_s3  ;;  %v2788_v61 = vrot.slane %v2774_v37, %v17505_v19 }
 0x3ab   : > { %v7061_v18 = vcombine.low %v3645_v4, %v3652_v16  ;;  %v14677_v53 = vcombine.high %v3645_v4, %v3652_v16  ;;  %v3689_v59 = vcombine.low %v3665_v38, %v3681_v34  ;;  %v3690_v26 = vcombine.high %v3665_v38, %v3681_v34  ;;  %v2548_v55 = vpop.permute.xlu1 %2547  ;;  %v2542_v22 = vpop.permute.xlu0 %2541 }
 0x3ac   : > { %v3705_v30 = vcombine.low %v3672_v17, %v3688_v45  ;;  %v3706_v42 = vcombine.high %v3672_v17, %v3688_v45  ;;  %1371 = vrot.lane.b32.xlu1 %v17440_v9, %s16746_s1  ;;  %v17940_v41 = vrot.slane %v7045_v63, %v17505_v19  ;;  %v17943_v32 = vrot.slane %v14676_v2, %v17505_v19  ;;  %v17953_v34 = vpop.f32.mrf.mxu1 }
 0x3ad   : > { %v17946_v12 = vrot.slane %v7061_v18, %v17505_v19  ;;  %v3697_v38 = vrot.slane %v3689_v59, %v17510_v27  ;;  %v3704_v17 = vrot.slane %v3690_v26, %v17510_v27  ;;  %23085 = vst [vmem:[#allocation103_spill] sm:$0xff] %v17953_v34  ;;  %v17956_v45 = vrot.slane %v14677_v53, %v17505_v19 }
 0x3ae   : > { %23082 = vst [vmem:[#allocation100_spill] sm:$0xff] %v17940_v41  ;;  %23083 = vst [vmem:[#allocation101_spill] sm:$0xff] %v17943_v32  ;;  %v3713_v4 = vrot.slane %v3705_v30, %v17510_v27  ;;  %v3720_v16 = vrot.slane %v3706_v42, %v17510_v27  ;;  %v2797_v18 = vrot.slane %v2789_v60, %v17505_v19  ;;  %3813 = vrot.lane.b32.xlu0 %v17929_v31, %s16745_s24 }
 0x3af   : > { %23084 = vst [vmem:[#allocation102_spill] sm:$0xff] %v17946_v12  ;;  %23086 = vst [vmem:[#allocation104_spill] sm:$0xff] %v17956_v45  ;;  %v2804_v63 = vrot.slane %v2790_v44, %v17505_v19  ;;  %v2841_v37 = vcombine.low %v17332_v54, %v2548_v55  ;;  %v7113_v2 = vcombine.low %v3697_v38, %v3704_v17  ;;  %v2596_v50 = vpop.permute.xlu1 %2595 }
 0x3b0   : > { %v14678_v26 = vcombine.high %v3697_v38, %v3704_v17  ;;  %v7129_v59 = vcombine.low %v3713_v4, %v3720_v16  ;;  %v14679_v30 = vcombine.high %v3713_v4, %v3720_v16  ;;  %3771 = vrot.lane.b32.xlu1 %v17953_v34, %s16744_s3  ;;  %v2805_v42 = vcombine.low %v2781_v36, %v2797_v18  ;;  %v2590_v16 = vpop.permute.xlu0 %2589 }
 0x3b1   : > { %v2806_v9 = vcombine.high %v2781_v36, %v2797_v18  ;;  %v2821_v53 = vcombine.low %v2788_v61, %v2804_v63  ;;  %v2822_v6 = vcombine.high %v2788_v61, %v2804_v63  ;;  %v17966_v60 = vrot.slane %v7113_v2, %v17505_v19 }
 0x3b2   : > { %v17969_v44 = vrot.slane %v14678_v26, %v17505_v19  ;;  %v17972_v52 = vrot.slane %v7129_v59, %v17505_v19  ;;  %v2842_v38 = vcombine.high %v17332_v54, %v2548_v55  ;;  %v2813_v17 = vrot.slane %v2805_v42, %v17510_v27  ;;  %3861 = vrot.lane.b32.xlu0 %v17929_v31, %s16746_s1 }
 0x3b3   : > { %23087 = vst [vmem:[#allocation105_spill] sm:$0xff] %v17966_v60  ;;  %v2820_v4 = vrot.slane %v2806_v9, %v17510_v27  ;;  %v2829_v36 = vrot.slane %v2821_v53, %v17510_v27  ;;  %v2836_v61 = vrot.slane %v2822_v6, %v17510_v27  ;;  %v17982_v18 = vrot.slane %v14679_v30, %v17505_v19  ;;  %v17989_v59 = vpop.permute.xlu1 %2495 }
 0x3b4   : > { %23088 = vst [vmem:[#allocation106_spill] sm:$0xff] %v17969_v44  ;;  %v2849_v63 = vrot.slane %v2841_v37, %v17505_v19  ;;  %v2637_v2 = vcombine.low %v17320_v43, %v2542_v22  ;;  %v2638_v54 = vcombine.high %v17320_v43, %v2542_v22  ;;  %3817 = vrot.lane.b32.xlu1 %v17873_v3, %s16745_s24 }
 0x3b5   : > { %v6229_v9 = vcombine.low %v2813_v17, %v2820_v4  ;;  %v14652_v55 = vcombine.high %v2813_v17, %v2820_v4  ;;  %v6245_v26 = vcombine.low %v2829_v36, %v2836_v61  ;;  %v14653_v6 = vcombine.high %v2829_v36, %v2836_v61  ;;  %v18016_v61 = vpop.permute.xlu0 %1245 }
 0x3b6   : > { %v2856_v42 = vrot.slane %v2842_v38, %v17505_v19  ;;  %v2645_v30 = vrot.slane %v2637_v2, %v17505_v19  ;;  %v2857_v53 = vcombine.low %v17925_v20, %v2596_v50  ;;  %v2858_v37 = vcombine.high %v17925_v20, %v2596_v50  ;;  %3761 = vrot.lane.b32.xlu0 %v17779_v0, %s16744_s3 }
 0x3b7   : > { %v17996_v31 = vrot.slane %v6229_v9, %v17505_v19  ;;  %v17999_v43 = vrot.slane %v14652_v55, %v17505_v19  ;;  %v18002_v22 = vrot.slane %v6245_v26, %v17505_v19  ;;  %v2652_v17 = vrot.slane %v2638_v54, %v17505_v19  ;;  %v2544_v2 = vpop.permute.xlu1 %2543 }
 0x3b8   : > { %v2865_v38 = vrot.slane %v2857_v53, %v17505_v19  ;;  %v2872_v4 = vrot.slane %v2858_v37, %v17505_v19  ;;  %v2653_v50 = vcombine.low %v17927_v15, %v2590_v16  ;;  %v2654_v20 = vcombine.high %v17927_v15, %v2590_v16  ;;  %3819 = vrot.lane.b32.xlu1 %v17953_v34, %s16745_s24 }
 0x3b9   : > { %23089 = vst [vmem:[#allocation107_spill] sm:$0xff] %v18002_v22  ;;  %v18014_v36 = vrot.slane %v14653_v6, %v17505_v19  ;;  %v7077_v54 = vcombine.low %v17940_v41, %v17943_v32  ;;  %v7093_v9 = vcombine.low %v17946_v12, %v17956_v45  ;;  %v7145_v55 = vcombine.low %v17966_v60, %v17969_v44  ;;  %v18036_v41 = vpop.f32.mrf.mxu1  ;;  %v18042_v32 = vpop.permute.xlu0 %1293 }
 0x3ba   : > { %v2873_v26 = vcombine.low %v2849_v63, %v2865_v38  ;;  %v2874_v15 = vcombine.high %v2849_v63, %v2865_v38  ;;  %v2889_v16 = vcombine.low %v2856_v42, %v2872_v4  ;;  %v2890_v53 = vcombine.high %v2856_v42, %v2872_v4  ;;  %3809 = vrot.lane.b32.xlu0 %v17779_v0, %s16745_s24 }
 0x3bb   : > { %v2661_v37 = vrot.slane %v2653_v50, %v17505_v19  ;;  %v2668_v6 = vrot.slane %v2654_v20, %v17505_v19  ;;  %v2705_v3 = vcombine.low %v17324_v56, %v2544_v2  ;;  %v2706_v22 = vcombine.high %v17324_v56, %v2544_v2  ;;  %23090 = vst [vmem:[#allocation108_spill] sm:$0xff] %v18036_v41 }
 0x3bc   : > { %v2881_v12 = vrot.slane %v2873_v26, %v17510_v27  ;;  %v2888_v45 = vrot.slane %v2874_v15, %v17510_v27  ;;  %v2897_v60 = vrot.slane %v2889_v16, %v17510_v27  ;;  %v2904_v63 = vrot.slane %v2890_v53, %v17510_v27  ;;  %3867 = vrot.lane.b32.xlu1 %v17953_v34, %s16746_s1 }
 0x3bd   : > { %v2669_v42 = vcombine.low %v2645_v30, %v2661_v37  ;;  %v2670_v38 = vcombine.high %v2645_v30, %v2661_v37  ;;  %v2685_v4 = vcombine.low %v2652_v17, %v2668_v6  ;;  %v2686_v50 = vcombine.high %v2652_v17, %v2668_v6 }
 0x3be   : > { %v6297_v20 = vcombine.low %v2881_v12, %v2888_v45  ;;  %v14654_v56 = vcombine.high %v2881_v12, %v2888_v45  ;;  %v6313_v2 = vcombine.low %v2897_v60, %v2904_v63  ;;  %v14655_v44 = vcombine.high %v2897_v60, %v2904_v63  ;;  %3857 = vrot.lane.b32.xlu0 %v17779_v0, %s16746_s1  ;;  %v1342_v0 = vpop.permute.xlu0 %1341 }
 0x3bf   : > { %v2677_v26 = vrot.slane %v2669_v42, %v17510_v27  ;;  %v2684_v15 = vrot.slane %v2670_v38, %v17510_v27  ;;  %v2693_v16 = vrot.slane %v2685_v4, %v17510_v27  ;;  %v2700_v53 = vrot.slane %v2686_v50, %v17510_v27 }
 0x3c0   : > { %v18047_v30 = vrot.slane %v6297_v20, %v17505_v19  ;;  %v18050_v12 = vrot.slane %v14654_v56, %v17505_v19  ;;  %v18053_v45 = vrot.slane %v6313_v2, %v17505_v19  ;;  %v7161_v60 = vcombine.low %v17972_v52, %v17982_v18  ;;  %3767 = vrot.lane.b32.xlu1 %v18036_v41, %s16744_s3 }
 0x3c1   : > { %v6093_v17 = vcombine.low %v2677_v26, %v2684_v15  ;;  %v14648_v37 = vcombine.high %v2677_v26, %v2684_v15  ;;  %v6109_v6 = vcombine.low %v2693_v16, %v2700_v53  ;;  %v14649_v63 = vcombine.high %v2693_v16, %v2700_v53 }
 0x3c2   : > { %23091 = vst [vmem:[#allocation109_spill] sm:$0xff] %v18053_v45  ;;  %v18060_v42 = vrot.slane %v14655_v44, %v17505_v19  ;;  %v18063_v38 = vrot.slane %v2705_v3, %v17505_v19  ;;  %v18066_v4 = vrot.slane %v2706_v22, %v17505_v19  ;;  %v1389_v50 = vcombine.low %v17318_v48, %v18042_v32  ;;  %v2592_v44 = vpop.permute.xlu1 %2591 }
 0x3c3   : > { %v18071_v20 = vrot.slane %v6093_v17, %v17505_v19  ;;  %v18074_v56 = vrot.slane %v14648_v37, %v17505_v19  ;;  %v18077_v2 = vrot.slane %v6109_v6, %v17505_v19  ;;  %v1390_v3 = vcombine.high %v17318_v48, %v18042_v32  ;;  %3757 = vrot.lane.b32.xlu0 %v17795_v10, %s16744_s3 }
 0x3c4   : > { %v18084_v22 = vrot.slane %v14649_v63, %v17505_v19  ;;  %v18087_v26 = vrot.slane %v1389_v50, %v17505_v19  ;;  %v7085_v15 = vrot.slane %v7077_v54, %v17510_v27  ;;  %v7101_v16 = vrot.slane %v7093_v9, %v17510_v27  ;;  %3815 = vrot.lane.b32.xlu1 %v18036_v41, %s16745_s24 }
 0x3c5   : > { %23092 = vst [vmem:[#allocation110_spill] sm:$0xff] %v18071_v20  ;;  %23093 = vst [vmem:[#allocation111_spill] sm:$0xff] %v18074_v56  ;;  %v7153_v53 = vrot.slane %v7145_v55, %v17510_v27  ;;  %v7169_v48 = vrot.slane %v7161_v60, %v17510_v27  ;;  %v6941_v32 = vcombine.low %v17876_v51, %v17879_v29 }
 0x3c6   : > { %23094 = vst [vmem:[#allocation112_spill] sm:$0xff] %v18077_v2  ;;  %23095 = vst [vmem:[#allocation113_spill] sm:$0xff] %v18084_v22  ;;  %v6957_v17 = vcombine.low %v17882_v1, %v17888_v46  ;;  %v7109_v37 = vcombine.low %v7085_v15, %v7101_v16  ;;  %v7110_v6 = vcombine.high %v7085_v15, %v7101_v16 }
 0x3c7   : > { %v7009_v54 = vcombine.low %v17891_v35, %v17894_v5  ;;  %v7025_v9 = vcombine.low %v17897_v39, %v17906_v28  ;;  %v7177_v63 = vcombine.low %v7153_v53, %v7169_v48  ;;  %v7178_v50 = vcombine.high %v7153_v53, %v7169_v48  ;;  %3805 = vrot.lane.b32.xlu0 %v17795_v10, %s16745_s24 }
 0x3c8   : > { %v6949_v55 = vrot.slane %v6941_v32, %v17510_v27  ;;  %v6965_v60 = vrot.slane %v6957_v17, %v17510_v27  ;;  %v2721_v16 = vcombine.low %v17989_v59, %v2592_v44  ;;  %v2722_v35 = vcombine.high %v17989_v59, %v2592_v44  ;;  %3863 = vrot.lane.b32.xlu1 %v18036_v41, %s16746_s1  ;;  %v18113_v17 = vpop.permute.xlu1 %1247 }
 0x3c9   : > { %v7017_v34 = vrot.slane %v7009_v54, %v17510_v27  ;;  %v7033_v15 = vrot.slane %v7025_v9, %v17510_v27  ;;  %v7188_v53 = vpack.c.bf16 %v7177_v63, %v7109_v37  ;;  %v7196_v48 = vpack.c.bf16 %v7178_v50, %v7110_v6 }
 0x3ca   : > { %v6973_v32 = vcombine.low %v6949_v55, %v6965_v60  ;;  %v6974_v39 = vcombine.high %v6949_v55, %v6965_v60  ;;  %v2729_v1 = vrot.slane %v2721_v16, %v17505_v19  ;;  %v2736_v54 = vrot.slane %v2722_v35, %v17505_v19 }
 0x3cb   : > { %v7041_v28 = vcombine.low %v7017_v34, %v7033_v15  ;;  %v7042_v5 = vcombine.high %v7017_v34, %v7033_v15  ;;  %15556 = vmatprep.subr.msk.bf16.mxu0 %vm8333_vm0, %v7188_v53  ;;  %15564 = vmatprep.subr.msk.bf16.mxu1 %vm8333_vm0, %v7196_v48  ;;  %v8380_v59 = vsel %vm8333_vm0, %v7188_v53, 0  ;;  %v8525_v44 = vsel %vm8333_vm0, %v7196_v48, 0  ;;  %v18128_v15 = vpop.permute.xlu0 %1249 }
 0x3cc   : > { %v1405_v37 = vcombine.low %v18016_v61, %v1342_v0  ;;  %v1406_v6 = vcombine.high %v18016_v61, %v1342_v0  ;;  %15205 = vmatpush3.bf16.xpose.msra.mxu0 %v8380_v59  ;;  %15237 = vmatpush3.bf16.xpose.msra.mxu1 %v8525_v44  ;;  %v2737_v63 = vcombine.low %v18063_v38, %v2729_v1  ;;  %v1296_v16 = vpop.permute.xlu1 %1295 }
 0x3cd   : > { %v7187_v9 = vpack.c.bf16 %v7041_v28, %v6973_v32  ;;  %v7195_v34 = vpack.c.bf16 %v7042_v5, %v6974_v39  ;;  %v2738_v35 = vcombine.high %v18063_v38, %v2729_v1  ;;  %v2753_v50 = vcombine.low %v18066_v4, %v2736_v54  ;;  %3763 = vrot.lane.b32.xlu1 %v17835_v40, %s16744_s3 }
 0x3ce   : > { %v2754_v55 = vcombine.high %v18066_v4, %v2736_v54  ;;  %v1413_v60 = vrot.slane %v1405_v37, %v17505_v19  ;;  %v1404_v0 = vrot.slane %v1390_v3, %v17505_v19  ;;  %v2745_v5 = vrot.slane %v2737_v63, %v17510_v27  ;;  %3853 = vrot.lane.b32.xlu0 %v17795_v10, %s16746_s1 }
 0x3cf   : > { %15557 = vmatprep.subr.msk.bf16.mxu0 %vm8333_vm0, %v7187_v9  ;;  %15565 = vmatprep.subr.msk.bf16.mxu1 %vm8333_vm0, %v7195_v34  ;;  %v1420_v1 = vrot.slane %v1406_v6, %v17505_v19  ;;  %v8377_v39 = vsel %vm8333_vm0, %v7187_v9, 0  ;;  %v2752_v28 = vrot.slane %v2738_v35, %v17510_v27  ;;  %v2761_v61 = vrot.slane %v2753_v50, %v17510_v27 }
 0x3d0   : > { %v2768_v38 = vrot.slane %v2754_v55, %v17510_v27  ;;  %v1421_v4 = vcombine.low %v18087_v26, %v1413_v60  ;;  %v1422_v3 = vcombine.high %v18087_v26, %v1413_v60  ;;  %v6805_v32 = vcombine.low %v17798_v58, %v17801_v57  ;;  %v23127_v58 = vld [vmem:[#allocation68_spill] sm:$0xff]  ;;  %v23128_v57 = vld [vmem:[#allocation66_spill] sm:$0xff] }
 0x3d1   : > { %v1437_v53 = vcombine.low %v1404_v0, %v1420_v1  ;;  %v1438_v48 = vcombine.high %v1404_v0, %v1420_v1  ;;  %v6161_v54 = vcombine.low %v2745_v5, %v2752_v28  ;;  %v14650_v59 = vcombine.high %v2745_v5, %v2752_v28  ;;  %3811 = vrot.lane.b32.xlu1 %v17835_v40, %s16745_s24  ;;  %v1298_v0 = vpop.permute.xlu0 %1297 }
 0x3d2   : > { %v6177_v44 = vcombine.low %v2761_v61, %v2768_v38  ;;  %v14651_v37 = vcombine.high %v2761_v61, %v2768_v38  ;;  %v1429_v6 = vrot.slane %v1421_v4, %v17510_v27  ;;  %v1436_v9 = vrot.slane %v1422_v3, %v17510_v27  ;;  %3753 = vrot.lane.b32.xlu0 %v17685_v21, %s16744_s3 }
 0x3d3   : > { %v1445_v63 = vrot.slane %v1437_v53, %v17510_v27  ;;  %v1452_v26 = vrot.slane %v1438_v48, %v17510_v27  ;;  %v18154_v35 = vrot.slane %v6161_v54, %v17505_v19  ;;  %v18157_v50 = vrot.slane %v14650_v59, %v17505_v19  ;;  %v1344_v53 = vpop.permute.xlu1 %1343 }
 0x3d4   : > { %v18160_v55 = vrot.slane %v6177_v44, %v17505_v19  ;;  %v8522_v60 = vsel %vm8333_vm0, %v7195_v34, 0  ;;  %v18166_v5 = vrot.slane %v14651_v37, %v17505_v19  ;;  %v4973_v1 = vcombine.low %v1429_v6, %v1436_v9  ;;  %15207 = vmatpush3.bf16.xpose.msra.mxu0 %v8377_v39 }
 0x3d5   : > { %23096 = vst [vmem:[#allocation114_spill] sm:$0xff] %v18154_v35  ;;  %23097 = vst [vmem:[#allocation115_spill] sm:$0xff] %v18157_v50  ;;  %v14616_v28 = vcombine.high %v1429_v6, %v1436_v9  ;;  %v4989_v61 = vcombine.low %v1445_v63, %v1452_v26  ;;  %15239 = vmatpush3.bf16.xpose.msra.mxu1 %v8522_v60  ;;  %v6813_v38 = vrot.slane %v6805_v32, %v17510_v27 }
 0x3d6   : > { %23098 = vst [vmem:[#allocation116_spill] sm:$0xff] %v18160_v55  ;;  %23099 = vst [vmem:[#allocation117_spill] sm:$0xff] %v18166_v5  ;;  %v6821_v4 = vcombine.low %v17804_v25, %v17810_v14  ;;  %v6873_v34 = vcombine.low %v17813_v23, %v17816_v8  ;;  %v6889_v3 = vcombine.low %v17819_v13, %v17824_v62  ;;  %3859 = vrot.lane.b32.xlu1 %v17835_v40, %s16746_s1  ;;  %v23115_v62 = vld [vmem:[#allocation31_spill] sm:$0xff]  ;;  %v23125_v14 = vld [vmem:[#allocation65_spill] sm:$0xff] }
 0x3d7   : > { %v18176_v48 = vrot.slane %v4973_v1, %v17505_v19  ;;  %v18179_v54 = vrot.slane %v14616_v28, %v17505_v19  ;;  %v18182_v39 = vrot.slane %v4989_v61, %v17505_v19  ;;  %v14617_v32 = vcombine.high %v1445_v63, %v1452_v26  ;;  %3849 = vrot.lane.b32.xlu0 %v17685_v21, %s16746_s1 }
 0x3d8   : > { %v6829_v59 = vrot.slane %v6821_v4, %v17510_v27  ;;  %v6881_v44 = vrot.slane %v6873_v34, %v17510_v27  ;;  %v6897_v37 = vrot.slane %v6889_v3, %v17510_v27  ;;  %v1457_v6 = vcombine.low %v17322_v33, %v1296_v16  ;;  %v1346_v34 = vpop.permute.xlu0 %1345 }
 0x3d9   : > { %23100 = vst [vmem:[#allocation118_spill] sm:$0xff] %v18176_v48  ;;  %23101 = vst [vmem:[#allocation119_spill] sm:$0xff] %v18179_v54  ;;  %v1458_v9 = vcombine.high %v17322_v33, %v1296_v16  ;;  %v1525_v60 = vcombine.low %v17326_v47, %v1298_v0  ;;  %v1526_v63 = vcombine.high %v17326_v47, %v1298_v0 }
 0x3da   : > { %23102 = vst [vmem:[#allocation120_spill] sm:$0xff] %v18182_v39  ;;  %v1473_v26 = vcombine.low %v18113_v17, %v1344_v53  ;;  %v6837_v1 = vcombine.low %v6813_v38, %v6829_v59  ;;  %v6905_v28 = vcombine.low %v6881_v44, %v6897_v37  ;;  %v6838_v61 = vcombine.high %v6813_v38, %v6829_v59 }
 0x3db   : > { %v6906_v4 = vcombine.high %v6881_v44, %v6897_v37  ;;  %v18197_v3 = vrot.slane %v14617_v32, %v17505_v19  ;;  %v1465_v40 = vrot.slane %v1457_v6, %v17505_v19  ;;  %v1472_v10 = vrot.slane %v1458_v9, %v17505_v19  ;;  %3759 = vrot.lane.b32.xlu1 %v17859_v24, %s16744_s3 }
 0x3dc   : > { %v1533_v33 = vrot.slane %v1525_v60, %v17505_v19  ;;  %v7186_v47 = vpack.c.bf16 %v6905_v28, %v6837_v1  ;;  %v1474_v0 = vcombine.high %v18113_v17, %v1344_v53  ;;  %v1481_v38 = vrot.slane %v1473_v26, %v17505_v19  ;;  %3749 = vrot.lane.b32.xlu0 %v17700_v7, %s16744_s3  ;;  %v23104_v26 = vld [vmem:[#allocation77_spill] sm:$0xff]  ;;  %v23105_v1 = vld [vmem:[#allocation76_spill] sm:$0xff] }
 0x3dd   : > { %23103 = vst [vmem:[#allocation121_spill] sm:$0xff] %v18197_v3  ;;  %v7194_v16 = vpack.c.bf16 %v6906_v4, %v6838_v61  ;;  %v1540_v32 = vrot.slane %v1526_v63, %v17505_v19  ;;  %v1541_v59 = vcombine.low %v18128_v15, %v1346_v34  ;;  %v1542_v44 = vcombine.high %v18128_v15, %v1346_v34  ;;  %v18222_v61 = vpop.permute.xlu1 %1251 }
 0x3de   : > { %15558 = vmatprep.subr.msk.bf16.mxu0 %vm8333_vm0, %v7186_v47  ;;  %v1488_v17 = vrot.slane %v1474_v0, %v17505_v19  ;;  %v1489_v53 = vcombine.low %v1465_v40, %v1481_v38  ;;  %v1490_v6 = vcombine.high %v1465_v40, %v1481_v38  ;;  %v8374_v9 = vsel %vm8333_vm0, %v7186_v47, 0 }
 0x3df   : > { %15566 = vmatprep.subr.msk.bf16.mxu1 %vm8333_vm0, %v7194_v16  ;;  %v1549_v60 = vrot.slane %v1541_v59, %v17505_v19  ;;  %v1556_v63 = vrot.slane %v1542_v44, %v17505_v19  ;;  %15209 = vmatpush3.bf16.xpose.msra.mxu0 %v8374_v9  ;;  %v8519_v15 = vsel %vm8333_vm0, %v7194_v16, 0  ;;  %v6737_v28 = vcombine.low %v23105_v1, %v23104_v26  ;;  %v18228_v16 = vpop.permute.xlu0 %1253 }
 0x3e0   : > { %3807 = vrot.lane.b32.xlu1 %v17859_v24, %s16745_s24  ;;  %v1497_v4 = vrot.slane %v1489_v53, %v17510_v27  ;;  %v1504_v40 = vrot.slane %v1490_v6, %v17510_v27  ;;  %v1505_v34 = vcombine.low %v1472_v10, %v1488_v17  ;;  %v1506_v47 = vcombine.high %v1472_v10, %v1488_v17 }
 0x3e1   : > { %15241 = vmatpush3.bf16.xpose.msra.mxu1 %v8519_v15  ;;  %v1557_v0 = vcombine.low %v1533_v33, %v1549_v60  ;;  %v1558_v38 = vcombine.high %v1533_v33, %v1549_v60  ;;  %v1573_v59 = vcombine.low %v1540_v32, %v1556_v63  ;;  %v1574_v44 = vcombine.high %v1540_v32, %v1556_v63 }
 0x3e2   : > { %3797 = vrot.lane.b32.xlu0 %v17700_v7, %s16745_s24  ;;  %v1513_v9 = vrot.slane %v1505_v34, %v17510_v27  ;;  %v1520_v37 = vrot.slane %v1506_v47, %v17510_v27  ;;  %v5041_v41 = vcombine.low %v1497_v4, %v1504_v40  ;;  %v14618_v53 = vcombine.high %v1497_v4, %v1504_v40 }
 0x3e3   : > { %v1565_v6 = vrot.slane %v1557_v0, %v17510_v27  ;;  %v1572_v10 = vrot.slane %v1558_v38, %v17510_v27  ;;  %v1581_v17 = vrot.slane %v1573_v59, %v17510_v27  ;;  %v1588_v33 = vrot.slane %v1574_v44, %v17510_v27  ;;  %v1300_v0 = vpop.permute.xlu1 %1299  ;;  %v23111_v44 = vld [vmem:[#allocation78_spill] sm:$0xff] }
 0x3e4   : > { %3855 = vrot.lane.b32.xlu1 %v17859_v24, %s16746_s1  ;;  %v18241_v32 = vrot.slane %v5041_v41, %v17505_v19  ;;  %v5057_v60 = vcombine.low %v1513_v9, %v1520_v37  ;;  %v14619_v63 = vcombine.high %v1513_v9, %v1520_v37  ;;  %v6745_v15 = vrot.slane %v6737_v28, %v17510_v27  ;;  %v23110_v37 = vld [vmem:[#allocation79_spill] sm:$0xff] }
 0x3e5   : > { %v5109_v34 = vcombine.low %v1565_v6, %v1572_v10  ;;  %v14620_v4 = vcombine.high %v1565_v6, %v1572_v10  ;;  %v5125_v40 = vcombine.low %v1581_v17, %v1588_v33  ;;  %v14621_v47 = vcombine.high %v1581_v17, %v1588_v33  ;;  %v1302_v33 = vpop.permute.xlu0 %1301 }
 0x3e6   : > { %23106 = vst [vmem:[#allocation122_spill] sm:$0xff] %v18241_v32  ;;  %3845 = vrot.lane.b32.xlu0 %v17700_v7, %s16746_s1  ;;  %v18247_v38 = vrot.slane %v14618_v53, %v17505_v19  ;;  %v18250_v59 = vrot.slane %v5057_v60, %v17505_v19  ;;  %v18253_v41 = vrot.slane %v14619_v63, %v17505_v19  ;;  %v23112_v53 = vld [vmem:[#allocation74_spill] sm:$0xff] }
 0x3e7   : > { %v6753_v28 = vcombine.low %v23111_v44, %v23110_v37  ;;  %v5116_v9 = vrot.slane %v5109_v34, %v17505_v19  ;;  %v5124_v6 = vrot.slane %v14620_v4, %v17505_v19  ;;  %v5132_v10 = vrot.slane %v5125_v40, %v17505_v19  ;;  %v23113_v7 = vld [vmem:[#allocation30_spill] sm:$0xff]  ;;  %v23114_v40 = vld [vmem:[#allocation53_spill] sm:$0xff] }
 0x3e8   : > { %23107 = vst [vmem:[#allocation123_spill] sm:$0xff] %v18247_v38  ;;  %23108 = vst [vmem:[#allocation124_spill] sm:$0xff] %v18250_v59  ;;  %v5140_v17 = vrot.slane %v14621_v47, %v17505_v19  ;;  %3755 = vrot.lane.b32.xlu1 %v23112_v53, %s16744_s3  ;;  %v6702_v63 = vcombine.high %v17773_v49, %v17807_v11  ;;  %v1593_v24 = vcombine.low %v23113_v7, %v1300_v0 }
 0x3e9   : > { %23109 = vst [vmem:[#allocation125_spill] sm:$0xff] %v18253_v41  ;;  %v6761_v60 = vrot.slane %v6753_v28, %v17510_v27  ;;  %v1594_v44 = vcombine.high %v23113_v7, %v1300_v0  ;;  %v5141_v34 = vcombine.low %v5116_v9, %v5124_v6  ;;  %v5142_v37 = vcombine.high %v5116_v9, %v5124_v6  ;;  %v1348_v9 = vpop.permute.xlu1 %1347 }
 0x3ea   : > { %v5157_v4 = vcombine.low %v5132_v10, %v5140_v17  ;;  %v5158_v1 = vcombine.high %v5132_v10, %v5140_v17  ;;  %3745 = vrot.lane.b32.xlu0 %v23114_v40, %s16744_s3  ;;  %v1601_v13 = vrot.slane %v1593_v24, %v17505_v19  ;;  %v1661_v28 = vcombine.low %v23115_v62, %v1302_v33  ;;  %v23119_v17 = vld [vmem:[#allocation60_spill] sm:$0xff] }
 0x3eb   : > { %v6769_v47 = vcombine.low %v6745_v15, %v6761_v60  ;;  %v6770_v26 = vcombine.high %v6745_v15, %v6761_v60  ;;  %v18273_v23 = vrot.slane %v5141_v34, %v17510_v27  ;;  %v18276_v8 = vrot.slane %v5142_v37, %v17510_v27  ;;  %v23120_v60 = vld [vmem:[#allocation61_spill] sm:$0xff] }
 0x3ec   : > { %v18279_v7 = vrot.slane %v5157_v4, %v17510_v27  ;;  %v1608_v0 = vrot.slane %v1594_v44, %v17505_v19  ;;  %3801 = vrot.lane.b32.xlu1 %v17685_v21, %s16745_s24  ;;  %v18285_v15 = vrot.slane %v5158_v1, %v17510_v27  ;;  %v23118_v24 = vcombine.low %v17773_v49, %v17807_v11  ;;  %v23122_v44 = vld [vmem:[#allocation62_spill] sm:$0xff]  ;;  %v23126_v1 = vld [vmem:[#allocation64_spill] sm:$0xff]  ;;  %v1350_v11 = vpop.permute.xlu0 %1349 }
 0x3ed   : > { %23116 = vst [vmem:[#allocation30_spill] sm:$0xff] %v18276_v8  ;;  %v7193_v10 = vpack.c.bf16 %v6770_v26, %v6702_v63  ;;  %v1662_v37 = vcombine.high %v23115_v62, %v1302_v33  ;;  %v23121_v34 = vcombine.low %v23119_v17, %v23120_v60  ;;  %v23123_v8 = vld [vmem:[#allocation63_spill] sm:$0xff]  ;;  %v6617_v49 = vcombine.low %v23128_v57, %v23127_v58 }
 0x3ee   : > { %23117 = vst [vmem:[#allocation31_spill] sm:$0xff] %v18285_v15  ;;  %v7185_v6 = vpack.c.bf16 %v6769_v47, %v23118_v24  ;;  %v23124_v25 = vcombine.low %v23122_v44, %v23123_v8  ;;  %v6601_v15 = vcombine.low %v23126_v1, %v23125_v14  ;;  %3841 = vrot.lane.b32.xlu0 %v23114_v40, %s16746_s1  ;;  %v18325_v44 = vpop.permute.xlu1 %1255  ;;  %v23130_v8 = vld [vmem:[#allocation59_spill] sm:$0xff] }
 0x3ef   : > { %v6541_v4 = vrot.slane %v23121_v34, %v17510_v27  ;;  %15567 = vmatprep.subr.msk.bf16.mxu1 %vm8333_vm0, %v7193_v10  ;;  %v1669_v62 = vrot.slane %v1661_v28, %v17505_v19  ;;  %v1609_v33 = vcombine.low %v18222_v61, %v1348_v9  ;;  %v1676_v63 = vrot.slane %v1662_v37, %v17505_v19 }
 0x3f0   : > { %v6557_v21 = vrot.slane %v23124_v25, %v17510_v27  ;;  %15559 = vmatprep.subr.msk.bf16.mxu0 %vm8333_vm0, %v7185_v6  ;;  %v8371_v26 = vsel %vm8333_vm0, %v7185_v6, 0  ;;  %v8516_v25 = vsel %vm8333_vm0, %v7193_v10, 0  ;;  %v6609_v47 = vrot.slane %v6601_v15, %v17510_v27  ;;  %3803 = vrot.lane.b32.xlu1 %v23112_v53, %s16745_s24 }
 0x3f1   : > { %15211 = vmatpush3.bf16.xpose.msra.mxu0 %v8371_v26  ;;  %15243 = vmatpush3.bf16.xpose.msra.mxu1 %v8516_v25  ;;  %v6625_v24 = vrot.slane %v6617_v49, %v17510_v27  ;;  %v1610_v57 = vcombine.high %v18222_v61, %v1348_v9  ;;  %v1617_v58 = vrot.slane %v1609_v33, %v17505_v19  ;;  %v23129_v26 = vld [vmem:[#allocation57_spill] sm:$0xff] }
 0x3f2   : > { %v6565_v34 = vcombine.low %v6541_v4, %v6557_v21  ;;  %v1677_v28 = vcombine.low %v18228_v16, %v1350_v11  ;;  %v6566_v10 = vcombine.high %v6541_v4, %v6557_v21  ;;  %v1678_v37 = vcombine.high %v18228_v16, %v1350_v11  ;;  %3741 = vrot.lane.b32.xlu0 %v23129_v26, %s16744_s3  ;;  %v23131_v21 = vld [vmem:[#allocation56_spill] sm:$0xff] }
 0x3f3   : > { %v6633_v6 = vcombine.low %v6609_v47, %v6625_v24  ;;  %v6634_v1 = vcombine.high %v6609_v47, %v6625_v24  ;;  %v1624_v15 = vrot.slane %v1610_v57, %v17505_v19  ;;  %v1625_v49 = vcombine.low %v1601_v13, %v1617_v58  ;;  %v18331_v57 = vpop.permute.xlu0 %1257 }
 0x3f4   : > { %v1626_v25 = vcombine.high %v1601_v13, %v1617_v58  ;;  %v1685_v61 = vrot.slane %v1677_v28, %v17505_v19  ;;  %v1692_v14 = vrot.slane %v1678_v37, %v17505_v19  ;;  %v6497_v4 = vcombine.low %v23131_v21, %v23130_v8  ;;  %3851 = vrot.lane.b32.xlu1 %v23112_v53, %s16746_s1 }
 0x3f5   : > { %v7184_v9 = vpack.c.bf16 %v6633_v6, %v6565_v34  ;;  %v7192_v33 = vpack.c.bf16 %v6634_v1, %v6566_v10  ;;  %v1633_v16 = vrot.slane %v1625_v49, %v17510_v27  ;;  %v1641_v47 = vcombine.low %v1608_v0, %v1624_v15 }
 0x3f6   : > { %v1640_v11 = vrot.slane %v1626_v25, %v17510_v27  ;;  %v1642_v24 = vcombine.high %v1608_v0, %v1624_v15  ;;  %v1693_v58 = vcombine.low %v1669_v62, %v1685_v61  ;;  %v1694_v13 = vcombine.high %v1669_v62, %v1685_v61  ;;  %3789 = vrot.lane.b32.xlu0 %v23129_v26, %s16745_s24 }
 0x3f7   : > { %15560 = vmatprep.subr.msk.bf16.mxu0 %vm8333_vm0, %v7184_v9  ;;  %15568 = vmatprep.subr.msk.bf16.mxu1 %vm8333_vm0, %v7192_v33  ;;  %v1709_v1 = vcombine.low %v1676_v63, %v1692_v14  ;;  %v8368_v34 = vsel %vm8333_vm0, %v7184_v9, 0  ;;  %v1649_v28 = vrot.slane %v1641_v47, %v17510_v27  ;;  %v1710_v49 = vcombine.high %v1676_v63, %v1692_v14 }
 0x3f8   : > { %v1656_v6 = vrot.slane %v1642_v24, %v17510_v27  ;;  %v5177_v10 = vcombine.low %v1633_v16, %v1640_v11  ;;  %v14622_v0 = vcombine.high %v1633_v16, %v1640_v11  ;;  %v1701_v37 = vrot.slane %v1693_v58, %v17510_v27  ;;  %v23132_v24 = vld [vmem:[#allocation80_spill] sm:$0xff] }
 0x3f9   : > { %v1708_v15 = vrot.slane %v1694_v13, %v17510_v27  ;;  %v1717_v25 = vrot.slane %v1709_v1, %v17510_v27  ;;  %15213 = vmatpush3.bf16.xpose.msra.mxu0 %v8368_v34  ;;  %3751 = vrot.lane.b32.xlu1 %v23132_v24, %s16744_s3  ;;  %v1724_v16 = vrot.slane %v1710_v49, %v17510_v27  ;;  %v8513_v58 = vsel %vm8333_vm0, %v7192_v33, 0  ;;  %v1304_v13 = vpop.permute.xlu1 %1303  ;;  %v23133_v49 = vld [vmem:[#allocation55_spill] sm:$0xff] }
 0x3fa   : > { %v5184_v62 = vrot.slane %v5177_v10, %v17505_v19  ;;  %v5192_v61 = vrot.slane %v14622_v0, %v17505_v19  ;;  %v5193_v9 = vcombine.low %v1649_v28, %v1656_v6  ;;  %v14623_v47 = vcombine.high %v1649_v28, %v1656_v6  ;;  %15245 = vmatpush3.bf16.xpose.msra.mxu1 %v8513_v58  ;;  %v1306_v28 = vpop.permute.xlu0 %1305 }
 0x3fb   : > { %v5245_v11 = vcombine.low %v1701_v37, %v1708_v15  ;;  %v14624_v53 = vcombine.high %v1701_v37, %v1708_v15  ;;  %v5261_v10 = vcombine.low %v1717_v25, %v1724_v16  ;;  %v14625_v0 = vcombine.high %v1717_v25, %v1724_v16  ;;  %v23134_v37 = vld [vmem:[#allocation54_spill] sm:$0xff]  ;;  %3837 = vrot.lane.b32.xlu0 %v23129_v26, %s16746_s1 }
 0x3fc   : > { %v18352_v14 = vrot.slane %v5193_v9, %v17505_v19  ;;  %v18355_v63 = vrot.slane %v14623_v47, %v17505_v19  ;;  %v5209_v1 = vcombine.low %v5184_v62, %v5192_v61  ;;  %v5210_v34 = vcombine.high %v5184_v62, %v5192_v61  ;;  %v23136_v62 = vld [vmem:[#allocation32_spill] sm:$0xff] }
 0x3fd   : > { %v18358_v6 = vrot.slane %v5245_v11, %v17505_v19  ;;  %v6429_v15 = vcombine.low %v23134_v37, %v23133_v49  ;;  %v18372_v61 = vrot.slane %v14624_v53, %v17505_v19  ;;  %3799 = vrot.lane.b32.xlu1 %v23132_v24, %s16745_s24  ;;  %v18380_v47 = vrot.slane %v5261_v10, %v17505_v19  ;;  %v23137_v10 = vld [vmem:[#allocation33_spill] sm:$0xff] }
 0x3fe   : > { %v18365_v33 = vrot.slane %v5209_v1, %v17510_v27  ;;  %v5225_v9 = vcombine.low %v18352_v14, %v18355_v63  ;;  %v18377_v25 = vrot.slane %v5210_v34, %v17510_v27  ;;  %v18383_v16 = vrot.slane %v14625_v0, %v17505_v19 }
 0x3ff   : > { %v7183_v11 = vpack.c.bf16 %v6497_v4, %v6429_v15  ;;  %v6430_v53 = vcombine.high %v23134_v37, %v23133_v49  ;;  %v6498_v1 = vcombine.high %v23131_v21, %v23130_v8  ;;  %v1729_v26 = vcombine.low %v23136_v62, %v1304_v13  ;;  %v1352_v15 = vpop.permute.xlu1 %1351  ;;  %v1354_v37 = vpop.permute.xlu0 %1353 }
 0x400   : > { %23135 = vst [vmem:[#allocation60_spill] sm:$0xff] %v18377_v25  ;;  %v18386_v58 = vrot.slane %v5225_v9, %v17510_v27  ;;  %v1730_v34 = vcombine.high %v23136_v62, %v1304_v13  ;;  %v1797_v25 = vcombine.low %v23137_v10, %v1306_v28  ;;  %v1798_v0 = vcombine.high %v23137_v10, %v1306_v28 }
 0x401   : > { %15561 = vmatprep.subr.msk.bf16.mxu0 %vm8333_vm0, %v7183_v11  ;;  %v5005_v4 = vcombine.low %v18176_v48, %v18179_v54  ;;  %v7191_v9 = vpack.c.bf16 %v6498_v1, %v6430_v53  ;;  %v1737_v49 = vrot.slane %v1729_v26, %v17505_v19  ;;  %v5021_v8 = vcombine.low %v18182_v39, %v18197_v3 }
 0x402   : > { %v5073_v21 = vcombine.low %v18241_v32, %v18247_v38  ;;  %3847 = vrot.lane.b32.xlu1 %v23132_v24, %s16746_s1  ;;  %v1744_v13 = vrot.slane %v1730_v34, %v17505_v19  ;;  %v1805_v28 = vrot.slane %v1797_v25, %v17505_v19  ;;  %v1812_v62 = vrot.slane %v1798_v0, %v17505_v19 }
 0x403   : > { %v5013_v53 = vrot.slane %v5005_v4, %v17510_v27  ;;  %15569 = vmatprep.subr.msk.bf16.mxu1 %vm8333_vm0, %v7191_v9  ;;  %v5029_v26 = vrot.slane %v5021_v8, %v17510_v27  ;;  %v5089_v10 = vcombine.low %v18250_v59, %v18253_v41  ;;  %v1745_v32 = vcombine.low %v18325_v44, %v1352_v15 }
 0x404   : > { %v5081_v1 = vrot.slane %v5073_v21, %v17510_v27  ;;  %v1746_v24 = vcombine.high %v18325_v44, %v1352_v15  ;;  %v1813_v34 = vcombine.low %v18331_v57, %v1354_v37  ;;  %v1814_v25 = vcombine.high %v18331_v57, %v1354_v37  ;;  %v23138_v15 = vld [vmem:[#allocation58_spill] sm:$0xff] }
 0x405   : > { %v8365_v0 = vsel %vm8333_vm0, %v7183_v11, 0  ;;  %v5037_v4 = vcombine.low %v5013_v53, %v5029_v26  ;;  %v5097_v38 = vrot.slane %v5089_v10, %v17510_v27  ;;  %v5038_v39 = vcombine.high %v5013_v53, %v5029_v26  ;;  %v18428_v53 = vpop.permute.xlu1 %1259 }
 0x406   : > { %v1753_v8 = vrot.slane %v1745_v32, %v17505_v19  ;;  %15215 = vmatpush3.bf16.xpose.msra.mxu0 %v8365_v0  ;;  %v1760_v21 = vrot.slane %v1746_v24, %v17505_v19  ;;  %v1821_v59 = vrot.slane %v1813_v34, %v17505_v19  ;;  %v1828_v41 = vrot.slane %v1814_v25, %v17505_v19  ;;  %v18430_v0 = vpop.permute.xlu0 %1261 }
 0x407   : > { %v8510_v44 = vsel %vm8333_vm0, %v7191_v9, 0  ;;  %3747 = vrot.lane.b32.xlu1 %v23138_v15, %s16744_s3  ;;  %v5105_v57 = vcombine.low %v5081_v1, %v5097_v38  ;;  %v5106_v11 = vcombine.high %v5081_v1, %v5097_v38 }
 0x408   : > { %v1761_v37 = vcombine.low %v1737_v49, %v1753_v8  ;;  %v1762_v3 = vcombine.high %v1737_v49, %v1753_v8  ;;  %15247 = vmatpush3.bf16.xpose.msra.mxu1 %v8510_v44  ;;  %v1777_v32 = vcombine.low %v1744_v13, %v1760_v21  ;;  %v1778_v26 = vcombine.high %v1744_v13, %v1760_v21 }
 0x409   : > { %v1829_v10 = vcombine.low %v1805_v28, %v1821_v59  ;;  %v1830_v24 = vcombine.high %v1805_v28, %v1821_v59  ;;  %v6061_v34 = vpack.c.bf16 %v5105_v57, %v5037_v4  ;;  %v6069_v25 = vpack.c.bf16 %v5106_v11, %v5038_v39 }
 0x40a   : > { %v1769_v9 = vrot.slane %v1761_v37, %v17510_v27  ;;  %v1776_v48 = vrot.slane %v1762_v3, %v17510_v27  ;;  %v1785_v54 = vrot.slane %v1777_v32, %v17510_v27  ;;  %v1792_v38 = vrot.slane %v1778_v26, %v17510_v27  ;;  %v1308_v32 = vpop.permute.xlu1 %1307 }
 0x40b   : > { %v1837_v49 = vrot.slane %v1829_v10, %v17510_v27  ;;  %v1844_v1 = vrot.slane %v1830_v24, %v17510_v27  ;;  %3793 = vrot.lane.b32.xlu1 %v23114_v40, %s16745_s24  ;;  %15220 = vmatprep.mubr.msk.bf16.mxu0 %vm8333_vm0, %v6061_v34  ;;  %v1845_v13 = vcombine.low %v1812_v62, %v1828_v41  ;;  %v23145_v10 = vld [vmem:[#allocation107_spill] sm:$0xff] }
 0x40c   : > { %15252 = vmatprep.mubr.msk.bf16.mxu1 %vm8333_vm0, %v6069_v25  ;;  %v5313_v39 = vcombine.low %v1769_v9, %v1776_v48  ;;  %v14626_v59 = vcombine.high %v1769_v9, %v1776_v48  ;;  %v5329_v28 = vcombine.low %v1785_v54, %v1792_v38  ;;  %v14627_v3 = vcombine.high %v1785_v54, %v1792_v38 }
 0x40d   : > { %v1846_v4 = vcombine.high %v1812_v62, %v1828_v41  ;;  %v5381_v8 = vcombine.low %v1837_v49, %v1844_v1  ;;  %v23139_v21 = vcombine.high %v18352_v14, %v18355_v63  ;;  %v18452_v11 = vrot.slane %v1845_v13, %v17510_v27  ;;  %v1310_v63 = vpop.permute.xlu0 %1309 }
 0x40e   : > { %v18449_v57 = vrot.slane %v5313_v39, %v17505_v19  ;;  %v14628_v37 = vcombine.high %v1837_v49, %v1844_v1  ;;  %v18455_v48 = vrot.slane %v14626_v59, %v17505_v19  ;;  %v18458_v54 = vrot.slane %v5329_v28, %v17505_v19  ;;  %v23146_v49 = vld [vmem:[#allocation34_spill] sm:$0xff] }
 0x40f   : > { %v18446_v44 = vrot.slane %v23139_v21, %v17510_v27  ;;  %v18461_v41 = vrot.slane %v14627_v3, %v17505_v19  ;;  %v18464_v14 = vrot.slane %v1846_v4, %v17510_v27  ;;  %3795 = vrot.lane.b32.xlu1 %v23138_v15, %s16745_s24  ;;  %v18469_v62 = vrot.slane %v5381_v8, %v17505_v19 }
 0x410   : > { %23141 = vst [vmem:[#allocation59_spill] sm:$0xff] %v18449_v57  ;;  %23142 = vst [vmem:[#allocation56_spill] sm:$0xff] %v18455_v48  ;;  %v6261_v26 = vcombine.low %v17996_v31, %v17999_v43  ;;  %v6277_v24 = vcombine.low %v23145_v10, %v18014_v36  ;;  %v6329_v34 = vcombine.low %v18047_v30, %v18050_v12 }
 0x411   : > { %23140 = vst [vmem:[#allocation61_spill] sm:$0xff] %v18446_v44  ;;  %23143 = vst [vmem:[#allocation55_spill] sm:$0xff] %v18458_v54  ;;  %v18478_v25 = vrot.slane %v14628_v37, %v17505_v19  ;;  %v5397_v9 = vcombine.low %v18452_v11, %v18464_v14  ;;  %v6345_v38 = vcombine.low %v18053_v45, %v18060_v42 }
 0x412   : > { %23144 = vst [vmem:[#allocation54_spill] sm:$0xff] %v18461_v41  ;;  %v1865_v1 = vcombine.low %v23146_v49, %v1308_v32  ;;  %v6269_v39 = vrot.slane %v6261_v26, %v17510_v27  ;;  %v6285_v59 = vrot.slane %v6277_v24, %v17510_v27  ;;  %v6337_v13 = vrot.slane %v6329_v34, %v17510_v27  ;;  %v23147_v34 = vld [vmem:[#allocation35_spill] sm:$0xff] }
 0x413   : > { %v1866_v28 = vcombine.high %v23146_v49, %v1308_v32  ;;  %v18490_v3 = vrot.slane %v5397_v9, %v17505_v19  ;;  %v6353_v8 = vrot.slane %v6345_v38, %v17510_v27  ;;  %3843 = vrot.lane.b32.xlu1 %v23138_v15, %s16746_s1  ;;  %v1933_v40 = vcombine.low %v23147_v34, %v1310_v63  ;;  %v1356_v32 = vpop.permute.xlu1 %1355  ;;  %v1358_v38 = vpop.permute.xlu0 %1357 }
 0x414   : > { %v1873_v21 = vrot.slane %v1865_v1, %v17505_v19  ;;  %v6293_v37 = vcombine.low %v6269_v39, %v6285_v59  ;;  %v6294_v26 = vcombine.high %v6269_v39, %v6285_v59  ;;  %v1934_v44 = vcombine.high %v23147_v34, %v1310_v63 }
 0x415   : > { %v1880_v24 = vrot.slane %v1866_v28, %v17505_v19  ;;  %v6361_v49 = vcombine.low %v6337_v13, %v6353_v8  ;;  %v6362_v9 = vcombine.high %v6337_v13, %v6353_v8  ;;  %v6125_v4 = vcombine.low %v18071_v20, %v18074_v56  ;;  %v23148_v8 = vld [vmem:[#allocation67_spill] sm:$0xff] }
 0x416   : > { %v1941_v1 = vrot.slane %v1933_v40, %v17505_v19  ;;  %v6141_v15 = vcombine.low %v18077_v2, %v18084_v22  ;;  %v6193_v39 = vcombine.low %v18154_v35, %v18157_v50  ;;  %v6209_v59 = vcombine.low %v18160_v55, %v18166_v5 }
 0x417   : > { %v7182_v28 = vpack.c.bf16 %v6361_v49, %v6293_v37  ;;  %v7190_v45 = vpack.c.bf16 %v6362_v9, %v6294_v26  ;;  %v1948_v13 = vrot.slane %v1934_v44, %v17505_v19  ;;  %v6133_v63 = vrot.slane %v6125_v4, %v17510_v27  ;;  %3743 = vrot.lane.b32.xlu1 %v23148_v8, %s16744_s3  ;;  %v18529_v50 = vpop.permute.xlu0 %1265 }
 0x418   : > { %v6149_v40 = vrot.slane %v6141_v15, %v17510_v27  ;;  %v6201_v34 = vrot.slane %v6193_v39, %v17510_v27  ;;  %v6217_v2 = vrot.slane %v6209_v59, %v17510_v27  ;;  %v1881_v35 = vcombine.low %v18428_v53, %v1356_v32  ;;  %v18524_v39 = vpop.permute.xlu1 %1263 }
 0x419   : > { %15562 = vmatprep.subr.msk.bf16.mxu0 %vm8333_vm0, %v7182_v28  ;;  %15570 = vmatprep.subr.msk.bf16.mxu1 %vm8333_vm0, %v7190_v45  ;;  %v8362_v37 = vsel %vm8333_vm0, %v7182_v28, 0  ;;  %v8507_v44 = vsel %vm8333_vm0, %v7190_v45, 0  ;;  %v1882_v4 = vcombine.high %v18428_v53, %v1356_v32  ;;  %v1949_v26 = vcombine.low %v18430_v0, %v1358_v38  ;;  %v23149_v32 = vld [vmem:[#allocation101_spill] sm:$0xff] }
 0x41a   : > { %15217 = vmatpush3.bf16.xpose.msra.mxu0 %v8362_v37  ;;  %15249 = vmatpush3.bf16.xpose.msra.mxu1 %v8507_v44  ;;  %v6157_v15 = vcombine.low %v6133_v63, %v6149_v40  ;;  %v6225_v49 = vcombine.low %v6201_v34, %v6217_v2  ;;  %v6158_v9 = vcombine.high %v6133_v63, %v6149_v40  ;;  %v23150_v37 = vld [vmem:[#allocation100_spill] sm:$0xff]  ;;  %v23152_v44 = vld [vmem:[#allocation102_spill] sm:$0xff] }
 0x41b   : > { %v6226_v59 = vcombine.high %v6201_v34, %v6217_v2  ;;  %v1889_v55 = vrot.slane %v1881_v35, %v17505_v19  ;;  %v1896_v5 = vrot.slane %v1882_v4, %v17505_v19  ;;  %v1950_v28 = vcombine.high %v18430_v0, %v1358_v38  ;;  %3791 = vrot.lane.b32.xlu1 %v23148_v8, %s16745_s24  ;;  %v23151_v40 = vld [vmem:[#allocation104_spill] sm:$0xff] }
 0x41c   : > { %v7181_v45 = vpack.c.bf16 %v6225_v49, %v6157_v15  ;;  %v1957_v53 = vrot.slane %v1949_v26, %v17505_v19  ;;  %v7078_v63 = vcombine.high %v23150_v37, %v23149_v32  ;;  %v7094_v2 = vcombine.high %v23152_v44, %v23151_v40  ;;  %v1314_v32 = vpop.permute.xlu0 %1313 }
 0x41d   : > { %v7189_v34 = vpack.c.bf16 %v6226_v59, %v6158_v9  ;;  %v1897_v35 = vcombine.low %v1873_v21, %v1889_v55  ;;  %v1898_v22 = vcombine.high %v1873_v21, %v1889_v55  ;;  %v1913_v4 = vcombine.low %v1880_v24, %v1896_v5 }
 0x41e   : > { %15563 = vmatprep.subr.msk.bf16.mxu0 %vm8333_vm0, %v7181_v45  ;;  %v1914_v0 = vcombine.high %v1880_v24, %v1896_v5  ;;  %v1964_v38 = vrot.slane %v1950_v28, %v17505_v19  ;;  %v1965_v20 = vcombine.low %v1941_v1, %v1957_v53  ;;  %v1966_v56 = vcombine.high %v1941_v1, %v1957_v53  ;;  %v1312_v1 = vpop.permute.xlu1 %1311 }
 0x41f   : > { %15571 = vmatprep.subr.msk.bf16.mxu1 %vm8333_vm0, %v7189_v34  ;;  %v1905_v26 = vrot.slane %v1897_v35, %v17510_v27  ;;  %v1912_v15 = vrot.slane %v1898_v22, %v17510_v27  ;;  %v1921_v49 = vrot.slane %v1913_v4, %v17510_v27  ;;  %v8359_v9 = vsel %vm8333_vm0, %v7181_v45, 0  ;;  %3839 = vrot.lane.b32.xlu1 %v23148_v8, %s16746_s1 }
 0x420   : > { %v1928_v55 = vrot.slane %v1914_v0, %v17510_v27  ;;  %v1973_v5 = vrot.slane %v1965_v20, %v17510_v27  ;;  %v1980_v21 = vrot.slane %v1966_v56, %v17510_v27  ;;  %v1981_v24 = vcombine.low %v1948_v13, %v1964_v38 }
 0x421   : > { %v5449_v59 = vcombine.low %v1905_v26, %v1912_v15  ;;  %v14630_v28 = vcombine.high %v1905_v26, %v1912_v15  ;;  %v1982_v53 = vcombine.high %v1948_v13, %v1964_v38  ;;  %v8504_v22 = vsel %vm8333_vm0, %v7189_v34, 0 }
 0x422   : > { %v5465_v37 = vcombine.low %v1921_v49, %v1928_v55  ;;  %v14631_v40 = vcombine.high %v1921_v49, %v1928_v55  ;;  %v18552_v45 = vrot.slane %v1981_v24, %v17510_v27  ;;  %v5517_v44 = vcombine.low %v1973_v5, %v1980_v21  ;;  %15219 = vmatpush3.bf16.xpose.msra.mxu0 %v8359_v9  ;;  %v23157_v9 = vld [vmem:[#allocation106_spill] sm:$0xff]  ;;  %v23158_v55 = vld [vmem:[#allocation105_spill] sm:$0xff]  ;;  %v23159_v24 = vld [vmem:[#allocation36_spill] sm:$0xff] }
 0x423   : > { %v23153_v20 = vcombine.high %v18452_v11, %v18464_v14  ;;  %v18561_v35 = vrot.slane %v5449_v59, %v17505_v19  ;;  %v18564_v13 = vrot.slane %v1982_v53, %v17510_v27  ;;  %v14632_v34 = vcombine.high %v1973_v5, %v1980_v21  ;;  %15251 = vmatpush3.bf16.xpose.msra.mxu1 %v8504_v22 }
 0x424   : > { %v18567_v4 = vrot.slane %v14630_v28, %v17505_v19  ;;  %v18570_v0 = vrot.slane %v5465_v37, %v17505_v19  ;;  %v18573_v38 = vrot.slane %v14631_v40, %v17505_v19  ;;  %v7092_v11 = vrot.slane %v7078_v63, %v17510_v27  ;;  %v1360_v28 = vpop.permute.xlu1 %1359 }
 0x425   : > { %v18558_v56 = vrot.slane %v23153_v20, %v17505_v19  ;;  %23154 = vst [vmem:[#allocation32_spill] sm:$0xff] %v18561_v35  ;;  %v18577_v14 = vrot.slane %v5517_v44, %v17505_v19  ;;  %v18580_v26 = vrot.slane %v14632_v34, %v17505_v19  ;;  %v5533_v15 = vcombine.low %v18552_v45, %v18564_v13  ;;  %v23161_v34 = vld [vmem:[#allocation37_spill] sm:$0xff] }
 0x426   : > { %23155 = vst [vmem:[#allocation33_spill] sm:$0xff] %v18570_v0  ;;  %23156 = vst [vmem:[#allocation107_spill] sm:$0xff] %v18573_v38  ;;  %v7108_v49 = vrot.slane %v7094_v2, %v17510_v27  ;;  %v7146_v5 = vcombine.high %v23158_v55, %v23157_v9  ;;  %v7162_v21 = vcombine.high %v17972_v52, %v17982_v18  ;;  %v1362_v2 = vpop.permute.xlu0 %1361 }
 0x427   : > { %v2001_v59 = vcombine.low %v23159_v24, %v1312_v1  ;;  %v2002_v63 = vcombine.high %v23159_v24, %v1312_v1  ;;  %v18592_v53 = vrot.slane %v5533_v15, %v17505_v19  ;;  %v14633_v22 = vcombine.high %v18552_v45, %v18564_v13 }
 0x428   : > { %v7111_v37 = vcombine.low %v7092_v11, %v7108_v49  ;;  %v7112_v40 = vcombine.high %v7092_v11, %v7108_v49  ;;  %v7160_v44 = vrot.slane %v7146_v5, %v17510_v27  ;;  %v7176_v20 = vrot.slane %v7162_v21, %v17510_v27 }
 0x429   : > { %23160 = vst [vmem:[#allocation34_spill] sm:$0xff] %v18592_v53  ;;  %v2009_v52 = vrot.slane %v2001_v59, %v17505_v19  ;;  %v2016_v18 = vrot.slane %v2002_v63, %v17505_v19  ;;  %v2069_v1 = vcombine.low %v23161_v34, %v1314_v32  ;;  %v2070_v9 = vcombine.high %v23161_v34, %v1314_v32 }
 0x42a   : > { %v2017_v15 = vcombine.low %v18524_v39, %v1360_v28  ;;  %v2018_v55 = vcombine.high %v18524_v39, %v1360_v28  ;;  %v7179_v45 = vcombine.low %v7160_v44, %v7176_v20  ;;  %v7180_v13 = vcombine.high %v7160_v44, %v7176_v20 }
 0x42b   : > { %v2085_v11 = vcombine.low %v18529_v50, %v1362_v2  ;;  %v2086_v49 = vcombine.high %v18529_v50, %v1362_v2  ;;  %v2077_v5 = vrot.slane %v2069_v1, %v17505_v19  ;;  %v2084_v21 = vrot.slane %v2070_v9, %v17505_v19 }
 0x42c   : > { %v2025_v24 = vrot.slane %v2017_v15, %v17505_v19  ;;  %v2032_v59 = vrot.slane %v2018_v55, %v17505_v19  ;;  %v7204_v63 = vpack.c.bf16 %v7179_v45, %v7111_v37  ;;  %v7212_v32 = vpack.c.bf16 %v7180_v13, %v7112_v40 }
 0x42d   : > { %v2093_v34 = vrot.slane %v2085_v11, %v17505_v19  ;;  %v2100_v39 = vrot.slane %v2086_v49, %v17505_v19 }
 0x42e   : > { %v2033_v28 = vcombine.low %v2009_v52, %v2025_v24  ;;  %v2034_v44 = vcombine.high %v2009_v52, %v2025_v24  ;;  %v2049_v20 = vcombine.low %v2016_v18, %v2032_v59  ;;  %v2050_v8 = vcombine.high %v2016_v18, %v2032_v59  ;;  %15572 = vmatprep.subr.msk.bf16.mxu0 %vm8333_vm0, %v7204_v63 }
 0x42f   : > { %15580 = vmatprep.subr.msk.bf16.mxu1 %vm8333_vm0, %v7212_v32  ;;  %v2101_v50 = vcombine.low %v2077_v5, %v2093_v34  ;;  %v2102_v2 = vcombine.high %v2077_v5, %v2093_v34  ;;  %v2117_v1 = vcombine.low %v2084_v21, %v2100_v39  ;;  %v2118_v18 = vcombine.high %v2084_v21, %v2100_v39 }
 0x430   : > { %v2041_v9 = vrot.slane %v2033_v28, %v17510_v27  ;;  %v2048_v37 = vrot.slane %v2034_v44, %v17510_v27  ;;  %v2057_v40 = vrot.slane %v2049_v20, %v17510_v27  ;;  %v2064_v15 = vrot.slane %v2050_v8, %v17510_v27  ;;  %v18638_v20 = vpop.permute.xlu1 %1267 }
 0x431   : > { %v2109_v55 = vrot.slane %v2101_v50, %v17510_v27  ;;  %v2116_v52 = vrot.slane %v2102_v2, %v17510_v27  ;;  %v18621_v45 = vrot.slane %v2117_v1, %v17510_v27  ;;  %v18624_v24 = vrot.slane %v14633_v22, %v17505_v19  ;;  %v18640_v22 = vpop.permute.xlu0 %1269 }
 0x432   : > { %v5585_v13 = vcombine.low %v2041_v9, %v2048_v37  ;;  %v14634_v11 = vcombine.high %v2041_v9, %v2048_v37  ;;  %v5601_v49 = vcombine.low %v2057_v40, %v2064_v15  ;;  %v14635_v5 = vcombine.high %v2057_v40, %v2064_v15 }
 0x433   : > { %23162 = vst [vmem:[#allocation35_spill] sm:$0xff] %v18624_v24  ;;  %v18627_v59 = vrot.slane %v2118_v18, %v17510_v27  ;;  %v5653_v34 = vcombine.low %v2109_v55, %v2116_v52  ;;  %v14636_v8 = vcombine.high %v2109_v55, %v2116_v52  ;;  %v5173_v39 = vcombine.low %v18273_v23, %v18279_v7 }
 0x434   : > { %v18630_v28 = vrot.slane %v5585_v13, %v17505_v19  ;;  %v18633_v21 = vrot.slane %v14634_v11, %v17505_v19  ;;  %v8670_v44 = vsel %vm8333_vm0, %v7204_v63, 0  ;;  %v18643_v50 = vrot.slane %v5601_v49, %v17505_v19 }
 0x435   : > { %v18646_v2 = vrot.slane %v14635_v5, %v17505_v19  ;;  %v18649_v1 = vrot.slane %v5653_v34, %v17505_v19  ;;  %v5669_v9 = vcombine.low %v18621_v45, %v18627_v59  ;;  %v5241_v37 = vcombine.low %v18365_v33, %v18386_v58  ;;  %v1318_v52 = vpop.permute.xlu0 %1317 }
 0x436   : > { %23163 = vst [vmem:[#allocation101_spill] sm:$0xff] %v18630_v28  ;;  %23164 = vst [vmem:[#allocation100_spill] sm:$0xff] %v18633_v21  ;;  %v5174_v63 = vcombine.high %v18273_v23, %v18279_v7  ;;  %v5242_v40 = vcombine.high %v18365_v33, %v18386_v58  ;;  %v5277_v15 = vcombine.low %v18358_v6, %v18372_v61 }
 0x437   : > { %23165 = vst [vmem:[#allocation104_spill] sm:$0xff] %v18643_v50  ;;  %23166 = vst [vmem:[#allocation102_spill] sm:$0xff] %v18646_v2  ;;  %v18662_v55 = vrot.slane %v14636_v8, %v17505_v19  ;;  %v5293_v18 = vcombine.low %v18380_v47, %v18383_v16  ;;  %v5345_v13 = vcombine.low %v18449_v57, %v18455_v48 }
 0x438   : > { %v6062_v11 = vpack.c.bf16 %v5241_v37, %v5173_v39  ;;  %v6070_v23 = vpack.c.bf16 %v5242_v40, %v5174_v63  ;;  %v5285_v7 = vrot.slane %v5277_v15, %v17510_v27  ;;  %v5361_v33 = vcombine.low %v18458_v54, %v18461_v41  ;;  %v23168_v37 = vld [vmem:[#allocation94_spill] sm:$0xff]  ;;  %v23170_v40 = vld [vmem:[#allocation95_spill] sm:$0xff]  ;;  %v23172_v41 = vld [vmem:[#allocation97_spill] sm:$0xff] }
 0x439   : > { %v18674_v58 = vrot.slane %v5669_v9, %v17505_v19  ;;  %v5301_v49 = vrot.slane %v5293_v18, %v17510_v27  ;;  %v5353_v5 = vrot.slane %v5345_v13, %v17510_v27  ;;  %v6942_v34 = vcombine.high %v17876_v51, %v17879_v29  ;;  %v23169_v9 = vld [vmem:[#allocation96_spill] sm:$0xff]  ;;  %v1316_v18 = vpop.permute.xlu1 %1315 }
 0x43a   : > { %15221 = vmatmul.mubr.msk.bf16.vlgmr.msra.gmra.mxu0 %vm8333_vm0, %v6062_v11  ;;  %15253 = vmatmul.mubr.msk.bf16.vlgmr.msra.gmra.mxu1 %vm8333_vm0, %v6070_v23  ;;  %v5369_v8 = vrot.slane %v5361_v33, %v17510_v27  ;;  %v8815_v39 = vsel %vm8333_vm0, %v7212_v32, 0  ;;  %v6958_v63 = vcombine.high %v23168_v37, %v17888_v46  ;;  %v7010_v15 = vcombine.high %v23170_v40, %v23169_v9  ;;  %v23171_v33 = vld [vmem:[#allocation98_spill] sm:$0xff]  ;;  %v23174_v40 = vld [vmem:[#allocation39_spill] sm:$0xff] }
 0x43b   : > { %23167 = vst [vmem:[#allocation106_spill] sm:$0xff] %v18674_v58  ;;  %v5309_v13 = vcombine.low %v5285_v7, %v5301_v49  ;;  %v5310_v54 = vcombine.high %v5285_v7, %v5301_v49  ;;  %15269 = vmatpush3.bf16.xpose.msra.mxu0 %v8670_v44  ;;  %15301 = vmatpush3.bf16.xpose.msra.mxu1 %v8815_v39  ;;  %v23173_v37 = vld [vmem:[#allocation38_spill] sm:$0xff] }
 0x43c   : > { %v6956_v51 = vrot.slane %v6942_v34, %v17510_v27  ;;  %v5377_v29 = vcombine.low %v5353_v5, %v5369_v8  ;;  %v5378_v11 = vcombine.high %v5353_v5, %v5369_v8  ;;  %v6972_v23 = vrot.slane %v6958_v63, %v17510_v27 }
 0x43d   : > { %v7024_v32 = vrot.slane %v7010_v15, %v17510_v27  ;;  %v7026_v46 = vcombine.high %v23172_v41, %v23171_v33  ;;  %v2137_v57 = vcombine.low %v23173_v37, %v1316_v18  ;;  %v2138_v9 = vcombine.high %v23173_v37, %v1316_v18 }
 0x43e   : > { %v2205_v48 = vcombine.low %v23174_v40, %v1318_v52  ;;  %v6063_v7 = vpack.c.bf16 %v5377_v29, %v5309_v13  ;;  %v6071_v44 = vpack.c.bf16 %v5378_v11, %v5310_v54  ;;  %v6975_v49 = vcombine.low %v6956_v51, %v6972_v23  ;;  %v23175_v11 = vld [vmem:[#allocation84_spill] sm:$0xff] }
 0x43f   : > { %v6976_v39 = vcombine.high %v6956_v51, %v6972_v23  ;;  %v7040_v34 = vrot.slane %v7026_v46, %v17510_v27  ;;  %v18698_v5 = vrot.slane %v2137_v57, %v17505_v19  ;;  %v18701_v8 = vrot.slane %v2138_v9, %v17505_v19  ;;  %v23176_v23 = vld [vmem:[#allocation83_spill] sm:$0xff]  ;;  %v23177_v9 = vld [vmem:[#allocation86_spill] sm:$0xff] }
 0x440   : > { %v2206_v41 = vcombine.high %v23174_v40, %v1318_v52  ;;  %15224 = vmatprep.mubr.msk.bf16.mxu0 %vm8333_vm0, %v6063_v7  ;;  %15256 = vmatprep.mubr.msk.bf16.mxu1 %vm8333_vm0, %v6071_v44  ;;  %v18707_v63 = vrot.slane %v2205_v48, %v17505_v19  ;;  %v5413_v54 = vcombine.low %v18469_v62, %v18478_v25  ;;  %v23178_v40 = vld [vmem:[#allocation85_spill] sm:$0xff] }
 0x441   : > { %v5429_v15 = vcombine.low %v18490_v3, %v18558_v56  ;;  %v7043_v57 = vcombine.low %v7024_v32, %v7040_v34  ;;  %v7044_v18 = vcombine.high %v7024_v32, %v7040_v34  ;;  %v5481_v52 = vcombine.low %v18561_v35, %v18567_v4 }
 0x442   : > { %v18714_v13 = vrot.slane %v2206_v41, %v17505_v19  ;;  %v5421_v51 = vrot.slane %v5413_v54, %v17510_v27  ;;  %v5497_v48 = vcombine.low %v18570_v0, %v18573_v38  ;;  %v6806_v33 = vcombine.high %v23176_v23, %v23175_v11 }
 0x443   : > { %v5437_v29 = vrot.slane %v5429_v15, %v17510_v27  ;;  %v7203_v46 = vpack.c.bf16 %v7043_v57, %v6975_v49  ;;  %v7211_v37 = vpack.c.bf16 %v7044_v18, %v6976_v39  ;;  %v5489_v32 = vrot.slane %v5481_v52, %v17510_v27  ;;  %v1364_v15 = vpop.permute.xlu1 %1363  ;;  %v23179_v57 = vld [vmem:[#allocation88_spill] sm:$0xff]  ;;  %v23180_v18 = vld [vmem:[#allocation87_spill] sm:$0xff] }
 0x444   : > { %v6822_v7 = vcombine.high %v23178_v40, %v23177_v9  ;;  %v5505_v34 = vrot.slane %v5497_v48, %v17510_v27  ;;  %v6820_v54 = vrot.slane %v6806_v33, %v17510_v27  ;;  %v6874_v52 = vcombine.high %v23180_v18, %v23179_v57  ;;  %v1366_v33 = vpop.permute.xlu0 %1365  ;;  %v23184_v18 = vld [vmem:[#allocation71_spill] sm:$0xff] }
 0x445   : > { %v5445_v44 = vcombine.low %v5421_v51, %v5437_v29  ;;  %v5446_v41 = vcombine.high %v5421_v51, %v5437_v29  ;;  %15573 = vmatprep.subr.msk.bf16.mxu0 %vm8333_vm0, %v7203_v46  ;;  %15581 = vmatprep.subr.msk.bf16.mxu1 %vm8333_vm0, %v7211_v37  ;;  %v8667_v11 = vsel %vm8333_vm0, %v7203_v46, 0  ;;  %v8812_v49 = vsel %vm8333_vm0, %v7211_v37, 0  ;;  %v23181_v51 = vld [vmem:[#allocation90_spill] sm:$0xff]  ;;  %v23182_v29 = vld [vmem:[#allocation89_spill] sm:$0xff] }
 0x446   : > { %v6836_v39 = vrot.slane %v6822_v7, %v17510_v27  ;;  %v5513_v23 = vcombine.low %v5489_v32, %v5505_v34  ;;  %v5514_v9 = vcombine.high %v5489_v32, %v5505_v34  ;;  %15271 = vmatpush3.bf16.xpose.msra.mxu0 %v8667_v11  ;;  %15303 = vmatpush3.bf16.xpose.msra.mxu1 %v8812_v49  ;;  %v23183_v49 = vld [vmem:[#allocation72_spill] sm:$0xff] }
 0x447   : > { %v6890_v48 = vcombine.high %v23182_v29, %v23181_v51  ;;  %v6888_v0 = vrot.slane %v6874_v52, %v17510_v27  ;;  %v2153_v46 = vcombine.low %v18638_v20, %v1364_v15  ;;  %v2154_v57 = vcombine.high %v18638_v20, %v1364_v15 }
 0x448   : > { %v6839_v40 = vcombine.low %v6820_v54, %v6836_v39  ;;  %v6840_v38 = vcombine.high %v6820_v54, %v6836_v39  ;;  %v6064_v37 = vpack.c.bf16 %v5513_v23, %v5445_v44  ;;  %v6072_v35 = vpack.c.bf16 %v5514_v9, %v5446_v41 }
 0x449   : > { %v6904_v7 = vrot.slane %v6890_v48, %v17510_v27  ;;  %v2161_v32 = vrot.slane %v2153_v46, %v17505_v19  ;;  %v2221_v34 = vcombine.low %v18640_v22, %v1366_v33  ;;  %v2222_v11 = vcombine.high %v18640_v22, %v1366_v33  ;;  %v18754_v22 = vpop.permute.xlu1 %1271  ;;  %v18758_v48 = vpop.permute.xlu0 %1273 }
 0x44a   : > { %v6670_v51 = vcombine.high %v23184_v18, %v23183_v49  ;;  %15225 = vmatmul.mubr.msk.bf16.gmra.mxu0 %vm8333_vm0, %v6064_v37  ;;  %15257 = vmatmul.mubr.msk.bf16.gmra.mxu1 %vm8333_vm0, %v6072_v35  ;;  %v2168_v41 = vrot.slane %v2154_v57, %v17505_v19 }
 0x44b   : > { %v6907_v54 = vcombine.low %v6888_v0, %v6904_v7  ;;  %v6908_v44 = vcombine.high %v6888_v0, %v6904_v7  ;;  %v2169_v39 = vcombine.low %v18698_v5, %v2161_v32  ;;  %v2170_v20 = vcombine.high %v18698_v5, %v2161_v32 }
 0x44c   : > { %v2229_v15 = vrot.slane %v2221_v34, %v17505_v19  ;;  %v2236_v52 = vrot.slane %v2222_v11, %v17505_v19  ;;  %v2185_v29 = vcombine.low %v18701_v8, %v2168_v41  ;;  %v2186_v35 = vcombine.high %v18701_v8, %v2168_v41 }
 0x44d   : > { %v7202_v23 = vpack.c.bf16 %v6907_v54, %v6839_v40  ;;  %v7210_v9 = vpack.c.bf16 %v6908_v44, %v6840_v38  ;;  %v2177_v0 = vrot.slane %v2169_v39, %v17510_v27  ;;  %v2184_v33 = vrot.slane %v2170_v20, %v17510_v27 }
 0x44e   : > { %v2237_v5 = vcombine.low %v18707_v63, %v2229_v15  ;;  %v2238_v46 = vcombine.high %v18707_v63, %v2229_v15  ;;  %v2193_v38 = vrot.slane %v2185_v29, %v17510_v27  ;;  %v2200_v40 = vrot.slane %v2186_v35, %v17510_v27  ;;  %v1320_v15 = vpop.permute.xlu1 %1319 }
 0x44f   : > { %15574 = vmatprep.subr.msk.bf16.mxu0 %vm8333_vm0, %v7202_v23  ;;  %15582 = vmatprep.subr.msk.bf16.mxu1 %vm8333_vm0, %v7210_v9  ;;  %v2253_v8 = vcombine.low %v18714_v13, %v2236_v52  ;;  %v8664_v37 = vsel %vm8333_vm0, %v7202_v23, 0  ;;  %v5721_v7 = vcombine.low %v2177_v0, %v2184_v33  ;;  %v14638_v57 = vcombine.high %v2177_v0, %v2184_v33  ;;  %v23191_v33 = vld [vmem:[#allocation75_spill] sm:$0xff] }
 0x450   : > { %v2245_v32 = vrot.slane %v2237_v5, %v17510_v27  ;;  %v2252_v34 = vrot.slane %v2238_v46, %v17510_v27  ;;  %15273 = vmatpush3.bf16.xpose.msra.mxu0 %v8664_v37  ;;  %v5737_v63 = vcombine.low %v2193_v38, %v2200_v40  ;;  %v14639_v11 = vcombine.high %v2193_v38, %v2200_v40  ;;  %v23192_v5 = vld [vmem:[#allocation73_spill] sm:$0xff] }
 0x451   : > { %v2254_v49 = vcombine.high %v18714_v13, %v2236_v52  ;;  %v18774_v18 = vrot.slane %v2253_v8, %v17510_v27  ;;  %v23185_v54 = vcombine.high %v18621_v45, %v18627_v59  ;;  %v18783_v41 = vrot.slane %v5721_v7, %v17505_v19  ;;  %v1322_v45 = vpop.permute.xlu0 %1321  ;;  %v23194_v8 = vld [vmem:[#allocation76_spill] sm:$0xff]  ;;  %v23195_v7 = vld [vmem:[#allocation79_spill] sm:$0xff] }
 0x452   : > { %v5789_v39 = vcombine.low %v2245_v32, %v2252_v34  ;;  %v14640_v20 = vcombine.high %v2245_v32, %v2252_v34  ;;  %v18786_v23 = vrot.slane %v14638_v57, %v17505_v19  ;;  %v18789_v13 = vrot.slane %v5737_v63, %v17505_v19  ;;  %v23196_v57 = vld [vmem:[#allocation78_spill] sm:$0xff]  ;;  %v23197_v63 = vld [vmem:[#allocation40_spill] sm:$0xff] }
 0x453   : > { %v18780_v44 = vrot.slane %v23185_v54, %v17505_v19  ;;  %23187 = vst [vmem:[#allocation36_spill] sm:$0xff] %v18783_v41  ;;  %v18792_v52 = vrot.slane %v2254_v49, %v17510_v27  ;;  %v8809_v29 = vsel %vm8333_vm0, %v7210_v9, 0  ;;  %v18796_v59 = vrot.slane %v14639_v11, %v17505_v19  ;;  %v23193_v9 = vld [vmem:[#allocation77_spill] sm:$0xff] }
 0x454   : > { %23188 = vst [vmem:[#allocation37_spill] sm:$0xff] %v18786_v23  ;;  %23189 = vst [vmem:[#allocation94_spill] sm:$0xff] %v18789_v13  ;;  %v18799_v35 = vrot.slane %v5789_v39, %v17505_v19  ;;  %15305 = vmatpush3.bf16.xpose.msra.mxu1 %v8809_v29  ;;  %v6684_v0 = vrot.slane %v6670_v51, %v17510_v27  ;;  %v6686_v46 = vcombine.high %v23192_v5, %v23191_v33  ;;  %v23198_v49 = vld [vmem:[#allocation41_spill] sm:$0xff] }
 0x455   : > { %23186 = vst [vmem:[#allocation105_spill] sm:$0xff] %v18780_v44  ;;  %23190 = vst [vmem:[#allocation96_spill] sm:$0xff] %v18796_v59  ;;  %v18805_v38 = vrot.slane %v14640_v20, %v17505_v19  ;;  %v5805_v40 = vcombine.low %v18774_v18, %v18792_v52  ;;  %v6738_v37 = vcombine.high %v23194_v8, %v23193_v9 }
 0x456   : > { %v6754_v32 = vcombine.high %v23196_v57, %v23195_v7  ;;  %v6700_v34 = vrot.slane %v6686_v46, %v17510_v27  ;;  %v2273_v11 = vcombine.low %v23197_v63, %v1320_v15  ;;  %v2274_v51 = vcombine.high %v23197_v63, %v1320_v15  ;;  %v1368_v7 = vpop.permute.xlu1 %1367 }
 0x457   : > { %v2341_v54 = vcombine.low %v23198_v49, %v1322_v45  ;;  %v18818_v39 = vrot.slane %v5805_v40, %v17505_v19  ;;  %v6752_v29 = vrot.slane %v6738_v37, %v17510_v27  ;;  %v2342_v63 = vcombine.high %v23198_v49, %v1322_v45 }
 0x458   : > { %v6768_v33 = vrot.slane %v6754_v32, %v17510_v27  ;;  %v6703_v5 = vcombine.low %v6684_v0, %v6700_v34  ;;  %v6704_v9 = vcombine.high %v6684_v0, %v6700_v34  ;;  %v2281_v46 = vrot.slane %v2273_v11, %v17505_v19  ;;  %v1370_v34 = vpop.permute.xlu0 %1369 }
 0x459   : > { %v2288_v8 = vrot.slane %v2274_v51, %v17505_v19  ;;  %v2349_v40 = vrot.slane %v2341_v54, %v17505_v19  ;;  %v5549_v20 = vcombine.low %v18577_v14, %v18580_v26  ;;  %v5565_v37 = vcombine.low %v18592_v53, %v18624_v24 }
 0x45a   : > { %v6771_v15 = vcombine.low %v6752_v29, %v6768_v33  ;;  %v6772_v57 = vcombine.high %v6752_v29, %v6768_v33  ;;  %v5617_v0 = vcombine.low %v18630_v28, %v18633_v21  ;;  %v5633_v32 = vcombine.low %v18643_v50, %v18646_v2 }
 0x45b   : > { %v2356_v29 = vrot.slane %v2342_v63, %v17505_v19  ;;  %v2289_v45 = vcombine.low %v18754_v22, %v1368_v7  ;;  %v5557_v49 = vrot.slane %v5549_v20, %v17510_v27  ;;  %v5573_v54 = vrot.slane %v5565_v37, %v17510_v27 }
 0x45c   : > { %v7201_v11 = vpack.c.bf16 %v6771_v15, %v6703_v5  ;;  %v7209_v51 = vpack.c.bf16 %v6772_v57, %v6704_v9  ;;  %v5625_v33 = vrot.slane %v5617_v0, %v17510_v27  ;;  %v5641_v53 = vrot.slane %v5633_v32, %v17510_v27 }
 0x45d   : > { %v2290_v50 = vcombine.high %v18754_v22, %v1368_v7  ;;  %v2297_v5 = vrot.slane %v2289_v45, %v17505_v19  ;;  %v2357_v9 = vcombine.low %v18758_v48, %v1370_v34  ;;  %v5581_v57 = vcombine.low %v5557_v49, %v5573_v54  ;;  %v18852_v45 = vpop.permute.xlu0 %3769 }
 0x45e   : > { %15575 = vmatprep.subr.msk.bf16.mxu0 %vm8333_vm0, %v7201_v11  ;;  %15583 = vmatprep.subr.msk.bf16.mxu1 %vm8333_vm0, %v7209_v51  ;;  %v8661_v15 = vsel %vm8333_vm0, %v7201_v11, 0  ;;  %v5649_v20 = vcombine.low %v5625_v33, %v5641_v53  ;;  %v5582_v63 = vcombine.high %v5557_v49, %v5573_v54  ;;  %v5650_v37 = vcombine.high %v5625_v33, %v5641_v53 }
 0x45f   : > { %15275 = vmatpush3.bf16.xpose.msra.mxu0 %v8661_v15  ;;  %v2304_v0 = vrot.slane %v2290_v50, %v17505_v19  ;;  %v2305_v32 = vcombine.low %v2281_v46, %v2297_v5  ;;  %v2306_v2 = vcombine.high %v2281_v46, %v2297_v5  ;;  %v2358_v28 = vcombine.high %v18758_v48, %v1370_v34  ;;  %v18856_v50 = vpop.permute.xlu1 %1275 }
 0x460   : > { %v6065_v21 = vpack.c.bf16 %v5649_v20, %v5581_v57  ;;  %v6073_v24 = vpack.c.bf16 %v5650_v37, %v5582_v63  ;;  %v2365_v22 = vrot.slane %v2357_v9, %v17505_v19  ;;  %v8806_v7 = vsel %vm8333_vm0, %v7209_v51, 0 }
 0x461   : > { %v2313_v11 = vrot.slane %v2305_v32, %v17510_v27  ;;  %v2320_v49 = vrot.slane %v2306_v2, %v17510_v27  ;;  %v2321_v53 = vcombine.low %v2288_v8, %v2304_v0  ;;  %v2322_v54 = vcombine.high %v2288_v8, %v2304_v0  ;;  %15307 = vmatpush3.bf16.xpose.msra.mxu1 %v8806_v7 }
 0x462   : > { %15228 = vmatprep.mubr.msk.bf16.mxu0 %vm8333_vm0, %v6065_v21  ;;  %15260 = vmatprep.mubr.msk.bf16.mxu1 %vm8333_vm0, %v6073_v24  ;;  %v2372_v48 = vrot.slane %v2358_v28, %v17505_v19  ;;  %v2373_v46 = vcombine.low %v2349_v40, %v2365_v22  ;;  %v2374_v34 = vcombine.high %v2349_v40, %v2365_v22  ;;  %v3866_v22 = vpop.permute.xlu0 %3865 }
 0x463   : > { %v2329_v51 = vrot.slane %v2321_v53, %v17510_v27  ;;  %v2336_v33 = vrot.slane %v2322_v54, %v17510_v27  ;;  %v5857_v5 = vcombine.low %v2313_v11, %v2320_v49  ;;  %v14642_v9 = vcombine.high %v2313_v11, %v2320_v49  ;;  %v23202_v11 = vld [vmem:[#allocation62_spill] sm:$0xff]  ;;  %v1324_v53 = vpop.permute.xlu1 %1323 }
 0x464   : > { %v2381_v2 = vrot.slane %v2373_v46, %v17510_v27  ;;  %v2388_v8 = vrot.slane %v2374_v34, %v17510_v27  ;;  %v2389_v15 = vcombine.low %v2356_v29, %v2372_v48  ;;  %v2390_v57 = vcombine.high %v2356_v29, %v2372_v48 }
 0x465   : > { %v23199_v24 = vcombine.high %v18774_v18, %v18792_v52  ;;  %v18872_v28 = vrot.slane %v5857_v5, %v17505_v19  ;;  %v5873_v40 = vcombine.low %v2329_v51, %v2336_v33  ;;  %v14643_v20 = vcombine.high %v2329_v51, %v2336_v33  ;;  %v23201_v52 = vld [vmem:[#allocation63_spill] sm:$0xff]  ;;  %v23204_v5 = vld [vmem:[#allocation65_spill] sm:$0xff] }
 0x466   : > { %v2397_v63 = vrot.slane %v2389_v15, %v17510_v27  ;;  %v2404_v37 = vrot.slane %v2390_v57, %v17510_v27  ;;  %v5925_v0 = vcombine.low %v2381_v2, %v2388_v8  ;;  %v14644_v32 = vcombine.high %v2381_v2, %v2388_v8 }
 0x467   : > { %v18869_v21 = vrot.slane %v23199_v24, %v17505_v19  ;;  %v18877_v29 = vrot.slane %v14642_v9, %v17505_v19  ;;  %v18880_v7 = vrot.slane %v5873_v40, %v17505_v19  ;;  %v6534_v18 = vcombine.high %v23119_v17, %v23120_v60  ;;  %v23205_v9 = vld [vmem:[#allocation64_spill] sm:$0xff]  ;;  %v23207_v60 = vld [vmem:[#allocation66_spill] sm:$0xff] }
 0x468   : > { %v6550_v49 = vcombine.high %v23202_v11, %v23201_v52  ;;  %v18887_v54 = vrot.slane %v14643_v20, %v17505_v19  ;;  %v18890_v48 = vrot.slane %v5925_v0, %v17505_v19  ;;  %v5941_v46 = vcombine.low %v2397_v63, %v2404_v37  ;;  %v23206_v17 = vld [vmem:[#allocation68_spill] sm:$0xff]  ;;  %v23209_v24 = vld [vmem:[#allocation42_spill] sm:$0xff] }
 0x469   : > { %23200 = vst [vmem:[#allocation95_spill] sm:$0xff] %v18880_v7  ;;  %v14645_v34 = vcombine.high %v2397_v63, %v2404_v37  ;;  %v6548_v51 = vrot.slane %v6534_v18, %v17510_v27  ;;  %v6602_v2 = vcombine.high %v23205_v9, %v23204_v5  ;;  %v6618_v8 = vcombine.high %v23207_v60, %v23206_v17  ;;  %v1372_v60 = vpop.permute.xlu1 %1371 }
 0x46a   : > { %23203 = vst [vmem:[#allocation98_spill] sm:$0xff] %v18887_v54  ;;  %v6564_v33 = vrot.slane %v6550_v49, %v17510_v27  ;;  %v18899_v15 = vrot.slane %v14644_v32, %v17505_v19  ;;  %v18902_v57 = vrot.slane %v5941_v46, %v17505_v19  ;;  %v2409_v40 = vcombine.low %v23209_v24, %v1324_v53  ;;  %v18918_v46 = vpop.permute.xlu0 %3765 }
 0x46b   : > { %v2410_v20 = vcombine.high %v23209_v24, %v1324_v53  ;;  %v18907_v63 = vrot.slane %v14645_v34, %v17505_v19  ;;  %v6616_v0 = vrot.slane %v6602_v2, %v17510_v27  ;;  %v6632_v18 = vrot.slane %v6618_v8, %v17510_v27 }
 0x46c   : > { %23208 = vst [vmem:[#allocation97_spill] sm:$0xff] %v18902_v57  ;;  %v6567_v37 = vcombine.low %v6548_v51, %v6564_v33  ;;  %v6568_v52 = vcombine.high %v6548_v51, %v6564_v33  ;;  %v18912_v11 = vrot.slane %v2409_v40, %v17505_v19  ;;  %v4853_v49 = vcombine.low %v18852_v45, %v3866_v22 }
 0x46d   : > { %v18915_v32 = vrot.slane %v2410_v20, %v17505_v19  ;;  %v6635_v53 = vcombine.low %v6616_v0, %v6632_v18  ;;  %v6636_v5 = vcombine.high %v6616_v0, %v6632_v18  ;;  %v5685_v34 = vcombine.low %v18649_v1, %v18662_v55  ;;  %v23211_v18 = vld [vmem:[#allocation45_spill] sm:$0xff] }
 0x46e   : > { %v5701_v9 = vcombine.low %v18674_v58, %v18780_v44  ;;  %v4854_v51 = vcombine.high %v18852_v45, %v3866_v22  ;;  %v18926_v33 = vrot.slane %v4853_v49, %v17505_v19  ;;  %v5753_v2 = vcombine.low %v18783_v41, %v18786_v23  ;;  %v23210_v22 = vld [vmem:[#allocation46_spill] sm:$0xff]  ;;  %v23212_v58 = vld [vmem:[#allocation48_spill] sm:$0xff]  ;;  %v23213_v44 = vld [vmem:[#allocation47_spill] sm:$0xff] }
 0x46f   : > { %v5769_v17 = vcombine.low %v18789_v13, %v18796_v59  ;;  %v7200_v8 = vpack.c.bf16 %v6635_v53, %v6567_v37  ;;  %v7208_v24 = vpack.c.bf16 %v6636_v5, %v6568_v52  ;;  %v5693_v40 = vrot.slane %v5685_v34, %v17510_v27  ;;  %v23216_v13 = vld [vmem:[#allocation52_spill] sm:$0xff]  ;;  %v23217_v59 = vld [vmem:[#allocation51_spill] sm:$0xff] }
 0x470   : > { %v5709_v20 = vrot.slane %v5701_v9, %v17510_v27  ;;  %v5761_v0 = vrot.slane %v5753_v2, %v17510_v27  ;;  %v6398_v49 = vcombine.high %v23211_v18, %v23210_v22  ;;  %v6414_v41 = vcombine.high %v23213_v44, %v23212_v58  ;;  %v23214_v58 = vld [vmem:[#allocation50_spill] sm:$0xff]  ;;  %v23215_v44 = vld [vmem:[#allocation49_spill] sm:$0xff] }
 0x471   : > { %v5777_v45 = vrot.slane %v5769_v17, %v17510_v27  ;;  %15576 = vmatprep.subr.msk.bf16.mxu0 %vm8333_vm0, %v7200_v8  ;;  %15584 = vmatprep.subr.msk.bf16.mxu1 %vm8333_vm0, %v7208_v24  ;;  %v8658_v53 = vsel %vm8333_vm0, %v7200_v8, 0  ;;  %v8803_v5 = vsel %vm8333_vm0, %v7208_v24, 0  ;;  %v3814_v17 = vpop.permute.xlu0 %3813  ;;  %v6466_v18 = vcombine.high %v23215_v44, %v23214_v58 }
 0x472   : > { %v5717_v37 = vcombine.low %v5693_v40, %v5709_v20  ;;  %v5718_v52 = vcombine.high %v5693_v40, %v5709_v20  ;;  %15277 = vmatpush3.bf16.xpose.msra.mxu0 %v8658_v53  ;;  %15309 = vmatpush3.bf16.xpose.msra.mxu1 %v8803_v5  ;;  %v6412_v2 = vrot.slane %v6398_v49, %v17510_v27  ;;  %v23218_v5 = vld [vmem:[#allocation99_spill] sm:$0xff] }
 0x473   : > { %v5785_v34 = vcombine.low %v5761_v0, %v5777_v45  ;;  %v5786_v9 = vcombine.high %v5761_v0, %v5777_v45  ;;  %v6428_v22 = vrot.slane %v6414_v41, %v17510_v27  ;;  %v6482_v23 = vcombine.high %v23217_v59, %v23216_v13  ;;  %v18955_v45 = vpop.permute.xlu1 %3771 }
 0x474   : > { %v2425_v40 = vcombine.low %v18856_v50, %v1372_v60  ;;  %v18952_v8 = vrot.slane %v4854_v51, %v17505_v19  ;;  %v2426_v0 = vcombine.high %v18856_v50, %v1372_v60  ;;  %v6480_v41 = vrot.slane %v6466_v18, %v17510_v27 }
 0x475   : > { %v6066_v24 = vpack.c.bf16 %v5785_v34, %v5717_v37  ;;  %v6074_v20 = vpack.c.bf16 %v5786_v9, %v5718_v52  ;;  %v6431_v49 = vcombine.low %v6412_v2, %v6428_v22  ;;  %v6496_v53 = vrot.slane %v6482_v23, %v17510_v27 }
 0x476   : > { %v4701_v58 = vcombine.low %v23218_v5, %v3814_v17  ;;  %v2433_v13 = vrot.slane %v2425_v40, %v17505_v19  ;;  %v2440_v59 = vrot.slane %v2426_v0, %v17505_v19  ;;  %v4702_v51 = vcombine.high %v23218_v5, %v3814_v17 }
 0x477   : > { %15229 = vmatmul.mubr.msk.bf16.gmra.mxu0 %vm8333_vm0, %v6066_v24  ;;  %15261 = vmatmul.mubr.msk.bf16.gmra.mxu1 %vm8333_vm0, %v6074_v20  ;;  %v6499_v50 = vcombine.low %v6480_v41, %v6496_v53  ;;  %v6432_v60 = vcombine.high %v6412_v2, %v6428_v22  ;;  %v6500_v37 = vcombine.high %v6480_v41, %v6496_v53  ;;  %v3818_v22 = vpop.permute.xlu1 %3817 }
 0x478   : > { %v6262_v52 = vcombine.high %v17996_v31, %v17999_v43  ;;  %v2441_v23 = vcombine.low %v18912_v11, %v2433_v13  ;;  %v2442_v34 = vcombine.high %v18912_v11, %v2433_v13  ;;  %v2457_v9 = vcombine.low %v18915_v32, %v2440_v59 }
 0x479   : > { %v2458_v44 = vcombine.high %v18915_v32, %v2440_v59  ;;  %v7199_v18 = vpack.c.bf16 %v6499_v50, %v6431_v49  ;;  %v7207_v40 = vpack.c.bf16 %v6500_v37, %v6432_v60  ;;  %v18972_v24 = vrot.slane %v4701_v58, %v17505_v19  ;;  %v23220_v60 = vld [vmem:[#allocation93_spill] sm:$0xff] }
 0x47a   : > { %v18975_v17 = vrot.slane %v4702_v51, %v17505_v19  ;;  %v2449_v2 = vrot.slane %v2441_v23, %v17510_v27  ;;  %v2456_v31 = vrot.slane %v2442_v34, %v17510_v27  ;;  %v2465_v43 = vrot.slane %v2457_v9, %v17510_v27  ;;  %v23219_v51 = vld [vmem:[#allocation109_spill] sm:$0xff] }
 0x47b   : > { %v2472_v11 = vrot.slane %v2458_v44, %v17510_v27  ;;  %15577 = vmatprep.subr.msk.bf16.mxu0 %vm8333_vm0, %v7199_v18  ;;  %15585 = vmatprep.subr.msk.bf16.mxu1 %vm8333_vm0, %v7207_v40  ;;  %v8655_v32 = vsel %vm8333_vm0, %v7199_v18, 0  ;;  %v6276_v20 = vrot.slane %v6262_v52, %v17510_v27  ;;  %v6278_v0 = vcombine.high %v23145_v10, %v18014_v36  ;;  %v3862_v36 = vpop.permute.xlu0 %3861 }
 0x47c   : > { %v6330_v49 = vcombine.high %v18047_v30, %v18050_v12  ;;  %v5993_v41 = vcombine.low %v2449_v2, %v2456_v31  ;;  %v14646_v53 = vcombine.high %v2449_v2, %v2456_v31  ;;  %15279 = vmatpush3.bf16.xpose.msra.mxu0 %v8655_v32  ;;  %v8800_v58 = vsel %vm8333_vm0, %v7207_v40, 0  ;;  %v3820_v31 = vpop.permute.xlu1 %3819 }
 0x47d   : > { %v6009_v5 = vcombine.low %v2465_v43, %v2472_v11  ;;  %15311 = vmatpush3.bf16.xpose.msra.mxu1 %v8800_v58  ;;  %v6292_v13 = vrot.slane %v6278_v0, %v17510_v27  ;;  %v6346_v50 = vcombine.high %v23219_v51, %v18060_v42  ;;  %v4837_v37 = vcombine.low %v23220_v60, %v3818_v22 }
 0x47e   : > { %v6344_v59 = vrot.slane %v6330_v49, %v17510_v27  ;;  %v18996_v10 = vrot.slane %v5993_v41, %v17505_v19  ;;  %v18999_v30 = vrot.slane %v14646_v53, %v17505_v19  ;;  %v14647_v52 = vcombine.high %v2465_v43, %v2472_v11 }
 0x47f   : > { %v19002_v12 = vrot.slane %v6009_v5, %v17505_v19  ;;  %v6295_v23 = vcombine.low %v6276_v20, %v6292_v13  ;;  %v6360_v34 = vrot.slane %v6346_v50, %v17510_v27  ;;  %v6296_v9 = vcombine.high %v6276_v20, %v6292_v13 }
 0x480   : > { %23221 = vst [vmem:[#allocation38_spill] sm:$0xff] %v18996_v10  ;;  %23222 = vst [vmem:[#allocation39_spill] sm:$0xff] %v18999_v30  ;;  %v4838_v44 = vcombine.high %v23220_v60, %v3818_v22  ;;  %v4845_v42 = vrot.slane %v4837_v37, %v17505_v19  ;;  %v4717_v18 = vcombine.low %v18918_v46, %v3862_v36 }
 0x481   : > { %23223 = vst [vmem:[#allocation84_spill] sm:$0xff] %v19002_v12  ;;  %v4718_v40 = vcombine.high %v18918_v46, %v3862_v36  ;;  %v5821_v2 = vcombine.low %v18799_v35, %v18805_v38  ;;  %v6363_v32 = vcombine.low %v6344_v59, %v6360_v34  ;;  %v6364_v0 = vcombine.high %v6344_v59, %v6360_v34 }
 0x482   : > { %v4852_v43 = vrot.slane %v4838_v44, %v17505_v19  ;;  %v5837_v11 = vcombine.low %v18818_v39, %v18869_v21  ;;  %v4869_v20 = vcombine.low %v4845_v42, %v18926_v33  ;;  %v4870_v22 = vcombine.high %v4845_v42, %v18926_v33  ;;  %v3868_v44 = vpop.permute.xlu1 %3867  ;;  %v23230_v42 = vld [vmem:[#allocation113_spill] sm:$0xff] }
 0x483   : > { %v4725_v49 = vrot.slane %v4717_v18, %v17505_v19  ;;  %v4732_v41 = vrot.slane %v4718_v40, %v17505_v19  ;;  %v7198_v46 = vpack.c.bf16 %v6363_v32, %v6295_v23  ;;  %v7206_v53 = vpack.c.bf16 %v6364_v0, %v6296_v9  ;;  %v19049_v9 = vpop.permute.xlu0 %3761  ;;  %v23228_v32 = vld [vmem:[#allocation111_spill] sm:$0xff] }
 0x484   : > { %v4885_v5 = vcombine.low %v4852_v43, %v18952_v8  ;;  %v4886_v58 = vcombine.high %v4852_v43, %v18952_v8  ;;  %v19021_v13 = vrot.slane %v4869_v20, %v17510_v27  ;;  %v19024_v59 = vrot.slane %v4870_v22, %v17510_v27 }
 0x485   : > { %v4733_v51 = vcombine.low %v18972_v24, %v4725_v49  ;;  %v4734_v33 = vcombine.high %v18972_v24, %v4725_v49  ;;  %15578 = vmatprep.subr.msk.bf16.mxu0 %vm8333_vm0, %v7198_v46  ;;  %15586 = vmatprep.subr.msk.bf16.mxu1 %vm8333_vm0, %v7206_v53  ;;  %v4749_v8 = vcombine.low %v18975_v17, %v4732_v41  ;;  %v8652_v37 = vsel %vm8333_vm0, %v7198_v46, 0 }
 0x486   : > { %v19031_v50 = vrot.slane %v4885_v5, %v17510_v27  ;;  %v19034_v60 = vrot.slane %v4886_v58, %v17510_v27  ;;  %v19039_v36 = vrot.slane %v14647_v52, %v17505_v19  ;;  %15281 = vmatpush3.bf16.xpose.msra.mxu0 %v8652_v37  ;;  %v4750_v18 = vcombine.high %v18975_v17, %v4732_v41  ;;  %v23227_v41 = vld [vmem:[#allocation103_spill] sm:$0xff]  ;;  %v23229_v5 = vld [vmem:[#allocation110_spill] sm:$0xff]  ;;  %v19087_v24 = vpop.permute.xlu1 %3767 }
 0x487   : > { %v19044_v23 = vrot.slane %v4733_v51, %v17510_v27  ;;  %v19047_v34 = vrot.slane %v4734_v33, %v17510_v27  ;;  %v19057_v40 = vrot.slane %v4749_v8, %v17510_v27  ;;  %v5829_v43 = vrot.slane %v5821_v2, %v17510_v27 }
 0x488   : > { %23224 = vst [vmem:[#allocation83_spill] sm:$0xff] %v19039_v36  ;;  %v5845_v20 = vrot.slane %v5837_v11, %v17510_v27  ;;  %v19066_v22 = vrot.slane %v4750_v18, %v17510_v27  ;;  %v5889_v49 = vcombine.low %v18872_v28, %v18877_v29  ;;  %v5905_v17 = vcombine.low %v18880_v7, %v18887_v54 }
 0x489   : > { %23225 = vst [vmem:[#allocation86_spill] sm:$0xff] %v19044_v23  ;;  %23226 = vst [vmem:[#allocation85_spill] sm:$0xff] %v19047_v34  ;;  %v4905_v46 = vcombine.low %v23227_v41, %v3820_v31  ;;  %v4906_v51 = vcombine.high %v23227_v41, %v3820_v31  ;;  %v8797_v2 = vsel %vm8333_vm0, %v7206_v53, 0  ;;  %v6126_v52 = vcombine.high %v23229_v5, %v23228_v32  ;;  %v23231_v31 = vld [vmem:[#allocation112_spill] sm:$0xff]  ;;  %v3810_v53 = vpop.permute.xlu0 %3809  ;;  %v23233_v23 = vld [vmem:[#allocation114_spill] sm:$0xff] }
 0x48a   : > { %v5853_v58 = vcombine.low %v5829_v43, %v5845_v20  ;;  %v5897_v33 = vrot.slane %v5889_v49, %v17510_v27  ;;  %v5913_v8 = vrot.slane %v5905_v17, %v17510_v27  ;;  %v5854_v37 = vcombine.high %v5829_v43, %v5845_v20  ;;  %15313 = vmatpush3.bf16.xpose.msra.mxu1 %v8797_v2  ;;  %v23232_v49 = vld [vmem:[#allocation115_spill] sm:$0xff]  ;;  %v23234_v43 = vld [vmem:[#allocation117_spill] sm:$0xff]  ;;  %v23235_v20 = vld [vmem:[#allocation116_spill] sm:$0xff] }
 0x48b   : > { %v4913_v18 = vrot.slane %v4905_v46, %v17505_v19  ;;  %v4920_v0 = vrot.slane %v4906_v51, %v17505_v19  ;;  %v6142_v41 = vcombine.high %v23231_v31, %v23230_v42  ;;  %v6194_v17 = vcombine.high %v23233_v23, %v23232_v49 }
 0x48c   : > { %v5921_v11 = vcombine.low %v5897_v33, %v5913_v8  ;;  %v5922_v34 = vcombine.high %v5897_v33, %v5913_v8  ;;  %v6210_v2 = vcombine.high %v23235_v20, %v23234_v43  ;;  %v6140_v46 = vrot.slane %v6126_v52, %v17510_v27  ;;  %v23236_v43 = vld [vmem:[#allocation81_spill] sm:$0xff] }
 0x48d   : > { %v6156_v51 = vrot.slane %v6142_v41, %v17510_v27  ;;  %v4921_v32 = vcombine.low %v18955_v45, %v3868_v44  ;;  %v4922_v5 = vcombine.high %v18955_v45, %v3868_v44  ;;  %v6208_v7 = vrot.slane %v6194_v17, %v17510_v27  ;;  %v19104_v17 = vpop.permute.xlu1 %3815 }
 0x48e   : > { %v6067_v42 = vpack.c.bf16 %v5921_v11, %v5853_v58  ;;  %v6075_v31 = vpack.c.bf16 %v5922_v34, %v5854_v37  ;;  %v6224_v33 = vrot.slane %v6210_v2, %v17510_v27  ;;  %v4565_v45 = vcombine.low %v23236_v43, %v3810_v53  ;;  %v3858_v37 = vpop.permute.xlu0 %3857 }
 0x48f   : > { %v6159_v8 = vcombine.low %v6140_v46, %v6156_v51  ;;  %v6160_v54 = vcombine.high %v6140_v46, %v6156_v51  ;;  %v4929_v23 = vrot.slane %v4921_v32, %v17505_v19  ;;  %v4936_v49 = vrot.slane %v4922_v5, %v17505_v19 }
 0x490   : > { %15232 = vmatprep.mubr.msk.bf16.mxu0 %vm8333_vm0, %v6067_v42  ;;  %15264 = vmatprep.mubr.msk.bf16.mxu1 %vm8333_vm0, %v6075_v31  ;;  %v6227_v52 = vcombine.low %v6208_v7, %v6224_v33  ;;  %v6228_v41 = vcombine.high %v6208_v7, %v6224_v33  ;;  %v4566_v51 = vcombine.high %v23236_v43, %v3810_v53 }
 0x491   : > { %v4937_v44 = vcombine.low %v4913_v18, %v4929_v23  ;;  %v4938_v34 = vcombine.high %v4913_v18, %v4929_v23  ;;  %v4953_v58 = vcombine.low %v4920_v0, %v4936_v49  ;;  %v4954_v11 = vcombine.high %v4920_v0, %v4936_v49 }
 0x492   : > { %v7197_v2 = vpack.c.bf16 %v6227_v52, %v6159_v8  ;;  %v7205_v46 = vpack.c.bf16 %v6228_v41, %v6160_v54  ;;  %v4573_v54 = vrot.slane %v4565_v45, %v17505_v19  ;;  %v4581_v53 = vcombine.low %v19049_v9, %v3858_v37  ;;  %v19148_v8 = vpop.permute.xlu0 %3757 }
 0x493   : > { %v19110_v32 = vrot.slane %v4937_v44, %v17510_v27  ;;  %v19113_v7 = vrot.slane %v4938_v34, %v17510_v27  ;;  %v19116_v18 = vrot.slane %v4953_v58, %v17510_v27  ;;  %v19119_v0 = vrot.slane %v4954_v11, %v17510_v27  ;;  %v23237_v44 = vld [vmem:[#allocation119_spill] sm:$0xff]  ;;  %v23238_v34 = vld [vmem:[#allocation118_spill] sm:$0xff]  ;;  %v23239_v11 = vld [vmem:[#allocation121_spill] sm:$0xff] }
 0x494   : > { %15579 = vmatprep.subr.msk.bf16.mxu0 %vm8333_vm0, %v7197_v2  ;;  %15587 = vmatprep.subr.msk.bf16.mxu1 %vm8333_vm0, %v7205_v46  ;;  %v4582_v5 = vcombine.high %v19049_v9, %v3858_v37  ;;  %v8649_v42 = vsel %vm8333_vm0, %v7197_v2, 0  ;;  %v4580_v23 = vrot.slane %v4566_v51, %v17505_v19  ;;  %v4589_v49 = vrot.slane %v4581_v53, %v17505_v19  ;;  %v23240_v37 = vld [vmem:[#allocation120_spill] sm:$0xff]  ;;  %v3864_v51 = vpop.permute.xlu1 %3863 }
 0x495   : > { %15283 = vmatpush3.bf16.xpose.msra.mxu0 %v8649_v42  ;;  %v5957_v9 = vcombine.low %v18890_v48, %v18899_v15  ;;  %v5973_v41 = vcombine.low %v18902_v57, %v18907_v63  ;;  %v6025_v43 = vcombine.low %v18996_v10, %v18999_v30  ;;  %v6041_v45 = vcombine.low %v19002_v12, %v19039_v36  ;;  %v23248_v36 = vld [vmem:[#allocation124_spill] sm:$0xff] }
 0x496   : > { %v4596_v52 = vrot.slane %v4582_v5, %v17505_v19  ;;  %v5006_v58 = vcombine.high %v23238_v34, %v23237_v44  ;;  %v5022_v2 = vcombine.high %v23240_v37, %v23239_v11  ;;  %v4597_v53 = vcombine.low %v4573_v54, %v4589_v49 }
 0x497   : > { %v4598_v5 = vcombine.high %v4573_v54, %v4589_v49  ;;  %v5965_v33 = vrot.slane %v5957_v9, %v17510_v27  ;;  %v5981_v31 = vrot.slane %v5973_v41, %v17510_v27  ;;  %v6033_v10 = vrot.slane %v6025_v43, %v17510_v27  ;;  %v23247_v43 = vld [vmem:[#allocation125_spill] sm:$0xff] }
 0x498   : > { %v4613_v42 = vcombine.low %v4580_v23, %v4596_v52  ;;  %v4614_v20 = vcombine.high %v4580_v23, %v4596_v52  ;;  %v6049_v12 = vrot.slane %v6041_v45, %v17510_v27  ;;  %v19155_v44 = vrot.slane %v4597_v53, %v17510_v27 }
 0x499   : > { %v19158_v34 = vrot.slane %v4598_v5, %v17510_v27  ;;  %v5989_v49 = vcombine.low %v5965_v33, %v5981_v31  ;;  %v5990_v9 = vcombine.high %v5965_v33, %v5981_v31  ;;  %v19176_v31 = vpop.permute.xlu1 %3763  ;;  %v23246_v33 = vld [vmem:[#allocation122_spill] sm:$0xff]  ;;  %v5090_v11 = vcombine.high %v23248_v36, %v23247_v43 }
 0x49a   : > { %23241 = vst [vmem:[#allocation88_spill] sm:$0xff] %v19155_v44  ;;  %v19161_v54 = vrot.slane %v4613_v42, %v17510_v27  ;;  %v19164_v23 = vrot.slane %v4614_v20, %v17510_v27  ;;  %v6057_v52 = vcombine.low %v6033_v10, %v6049_v12  ;;  %v6058_v41 = vcombine.high %v6033_v10, %v6049_v12  ;;  %v23245_v12 = vld [vmem:[#allocation123_spill] sm:$0xff] }
 0x49b   : > { %23242 = vst [vmem:[#allocation87_spill] sm:$0xff] %v19158_v34  ;;  %v5020_v20 = vrot.slane %v5006_v58, %v17510_v27  ;;  %v5036_v42 = vrot.slane %v5022_v2, %v17510_v27  ;;  %v5074_v45 = vcombine.high %v23246_v33, %v23245_v12  ;;  %v23249_v34 = vld [vmem:[#allocation108_spill] sm:$0xff]  ;;  %v8794_v2 = vsel %vm8333_vm0, %v7205_v46, 0  ;;  %v23250_v33 = vld [vmem:[#allocation82_spill] sm:$0xff] }
 0x49c   : > { %23243 = vst [vmem:[#allocation90_spill] sm:$0xff] %v19161_v54  ;;  %23244 = vst [vmem:[#allocation89_spill] sm:$0xff] %v19164_v23  ;;  %v6068_v53 = vpack.c.bf16 %v6057_v52, %v5989_v49  ;;  %v6076_v5 = vpack.c.bf16 %v6058_v41, %v5990_v9  ;;  %v4769_v37 = vcombine.low %v23249_v34, %v19104_v17  ;;  %v3806_v49 = vpop.permute.xlu0 %3805  ;;  %15315 = vmatpush3.bf16.xpose.msra.mxu1 %v8794_v2 }
 0x49d   : > { %v5039_v58 = vcombine.low %v5020_v20, %v5036_v42  ;;  %v5040_v52 = vcombine.high %v5020_v20, %v5036_v42  ;;  %v4770_v9 = vcombine.high %v23249_v34, %v19104_v17  ;;  %v5088_v41 = vrot.slane %v5074_v45, %v17510_v27  ;;  %v23251_v34 = vld [vmem:[#allocation31_spill] sm:$0xff]  ;;  %v23252_v45 = vld [vmem:[#allocation30_spill] sm:$0xff]  ;;  %v3812_v54 = vpop.permute.xlu1 %3811 }
 0x49e   : > { %15233 = vmatmul.mubr.msk.bf16.gmra.mxu0 %vm8333_vm0, %v6068_v53  ;;  %15265 = vmatmul.mubr.msk.bf16.gmra.mxu1 %vm8333_vm0, %v6076_v5  ;;  %v5104_v12 = vrot.slane %v5090_v11, %v17510_v27  ;;  %v4777_v36 = vrot.slane %v4769_v37, %v17505_v19  ;;  %v4785_v43 = vcombine.low %v19087_v24, %v3864_v51 }
 0x49f   : > { %v4784_v53 = vrot.slane %v4770_v9, %v17505_v19  ;;  %v4786_v5 = vcombine.high %v19087_v24, %v3864_v51  ;;  %v4429_v10 = vcombine.low %v23250_v33, %v3806_v49  ;;  %v4430_v46 = vcombine.high %v23250_v33, %v3806_v49  ;;  %v23253_v9 = vld [vmem:[#allocation61_spill] sm:$0xff]  ;;  %v23254_v24 = vld [vmem:[#allocation60_spill] sm:$0xff] }
 0x4a0   : > { %v5107_v20 = vcombine.low %v5088_v41, %v5104_v12  ;;  %v5108_v42 = vcombine.high %v5088_v41, %v5104_v12  ;;  %v4793_v17 = vrot.slane %v4785_v43, %v17505_v19  ;;  %v5175_v11 = vcombine.low %v23252_v45, %v23251_v34 }
 0x4a1   : > { %v4800_v2 = vrot.slane %v4786_v5, %v17505_v19  ;;  %v4437_v37 = vrot.slane %v4429_v10, %v17505_v19  ;;  %v19205_v23 = vrot.slane %v4430_v46, %v17505_v19  ;;  %v5243_v51 = vcombine.low %v23254_v24, %v23253_v9  ;;  %v3854_v46 = vpop.permute.xlu0 %3853 }
 0x4a2   : > { %v6077_v44 = vpack.c.bf16 %v5107_v20, %v5039_v58  ;;  %v6085_v49 = vpack.c.bf16 %v5108_v42, %v5040_v52  ;;  %v4801_v33 = vcombine.low %v4777_v36, %v4793_v17  ;;  %v4802_v41 = vcombine.high %v4777_v36, %v4793_v17 }
 0x4a3   : > { %v4817_v12 = vcombine.low %v4784_v53, %v4800_v2  ;;  %v4818_v43 = vcombine.high %v4784_v53, %v4800_v2  ;;  %v6078_v30 = vpack.c.bf16 %v5243_v51, %v5175_v11  ;;  %v5176_v57 = vcombine.high %v23252_v45, %v23251_v34  ;;  %v23255_v34 = vld [vmem:[#allocation56_spill] sm:$0xff]  ;;  %v23256_v45 = vld [vmem:[#allocation59_spill] sm:$0xff] }
 0x4a4   : > { %15284 = vmatprep.mubr.msk.bf16.mxu0 %vm8333_vm0, %v6077_v44  ;;  %15316 = vmatprep.mubr.msk.bf16.mxu1 %vm8333_vm0, %v6085_v49  ;;  %v19214_v10 = vrot.slane %v4801_v33, %v17510_v27  ;;  %v19217_v5 = vrot.slane %v4802_v41, %v17510_v27  ;;  %v5244_v58 = vcombine.high %v23254_v24, %v23253_v9  ;;  %v23258_v9 = vld [vmem:[#allocation55_spill] sm:$0xff] }
 0x4a5   : > { %v19222_v52 = vrot.slane %v4817_v12, %v17510_v27  ;;  %v19225_v36 = vrot.slane %v4818_v43, %v17510_v27  ;;  %v5278_v44 = vcombine.high %v18358_v6, %v18372_v61  ;;  %v5294_v53 = vcombine.high %v18380_v47, %v18383_v16  ;;  %v19244_v16 = vpop.permute.xlu1 %3859  ;;  %v23259_v12 = vld [vmem:[#allocation91_spill] sm:$0xff] }
 0x4a6   : > { %15285 = vmatmul.mubr.msk.bf16.vlgmr.msra.gmra.mxu0 %vm8333_vm0, %v6078_v30  ;;  %v8097_v20 = vcombine.low %v19214_v10, %v19217_v5  ;;  %v14706_v42 = vcombine.high %v19214_v10, %v19217_v5  ;;  %v6086_v17 = vpack.c.bf16 %v5244_v58, %v5176_v57  ;;  %v5346_v11 = vcombine.high %v23256_v45, %v23255_v34  ;;  %v23257_v57 = vld [vmem:[#allocation54_spill] sm:$0xff] }
 0x4a7   : > { %v8113_v30 = vcombine.low %v19222_v52, %v19225_v36  ;;  %v5292_v61 = vrot.slane %v5278_v44, %v17510_v27  ;;  %v5308_v47 = vrot.slane %v5294_v53, %v17510_v27  ;;  %v5362_v24 = vcombine.high %v23258_v9, %v23257_v57 }
 0x4a8   : > { %15317 = vmatmul.mubr.msk.bf16.vlgmr.msra.gmra.mxu1 %vm8333_vm0, %v6086_v17  ;;  %v5360_v2 = vrot.slane %v5346_v11, %v17510_v27  ;;  %v4445_v51 = vcombine.low %v19148_v8, %v3854_v46  ;;  %v4446_v49 = vcombine.high %v19148_v8, %v3854_v46  ;;  %v4633_v43 = vcombine.low %v23259_v12, %v3812_v54 }
 0x4a9   : > { %v5311_v33 = vcombine.low %v5292_v61, %v5308_v47  ;;  %v5312_v41 = vcombine.high %v5292_v61, %v5308_v47  ;;  %v4634_v58 = vcombine.high %v23259_v12, %v3812_v54  ;;  %v5376_v44 = vrot.slane %v5362_v24, %v17510_v27  ;;  %v23260_v54 = vld [vmem:[#allocation32_spill] sm:$0xff] }
 0x4aa   : > { %v4453_v53 = vrot.slane %v4445_v51, %v17505_v19  ;;  %v4460_v17 = vrot.slane %v4446_v49, %v17505_v19  ;;  %v5414_v34 = vcombine.high %v18469_v62, %v18478_v25  ;;  %v19260_v45 = vrot.slane %v4633_v43, %v17505_v19  ;;  %v19273_v49 = vpop.permute.xlu1 %3759 }
 0x4ab   : > { %v19263_v8 = vrot.slane %v4634_v58, %v17505_v19  ;;  %v5430_v46 = vcombine.high %v18490_v3, %v18558_v56  ;;  %v5482_v11 = vcombine.high %v23260_v54, %v18567_v4  ;;  %v5379_v61 = vcombine.low %v5360_v2, %v5376_v44  ;;  %v23261_v58 = vld [vmem:[#allocation107_spill] sm:$0xff] }
 0x4ac   : > { %v5380_v47 = vcombine.high %v5360_v2, %v5376_v44  ;;  %v4461_v57 = vcombine.low %v4437_v37, %v4453_v53  ;;  %v4462_v9 = vcombine.high %v4437_v37, %v4453_v53  ;;  %v4477_v24 = vcombine.low %v19205_v23, %v4460_v17  ;;  %v23262_v44 = vld [vmem:[#allocation33_spill] sm:$0xff] }
 0x4ad   : > { %v4478_v62 = vcombine.high %v19205_v23, %v4460_v17  ;;  %v5428_v25 = vrot.slane %v5414_v34, %v17510_v27  ;;  %v5444_v51 = vrot.slane %v5430_v46, %v17510_v27  ;;  %v6079_v12 = vpack.c.bf16 %v5379_v61, %v5311_v33  ;;  %v19306_v61 = vpop.permute.xlu0 %3753 }
 0x4ae   : > { %v6087_v43 = vpack.c.bf16 %v5380_v47, %v5312_v41  ;;  %v19276_v3 = vrot.slane %v4461_v57, %v17510_v27  ;;  %v19279_v56 = vrot.slane %v4462_v9, %v17510_v27  ;;  %v19282_v4 = vrot.slane %v4477_v24, %v17510_v27 }
 0x4af   : > { %v19285_v37 = vrot.slane %v4478_v62, %v17510_v27  ;;  %v5447_v23 = vcombine.low %v5428_v25, %v5444_v51  ;;  %v5496_v2 = vrot.slane %v5482_v11, %v17510_v27  ;;  %15288 = vmatprep.mubr.msk.bf16.mxu0 %vm8333_vm0, %v6079_v12  ;;  %v5498_v53 = vcombine.high %v23262_v44, %v23261_v58 }
 0x4b0   : > { %15320 = vmatprep.mubr.msk.bf16.mxu1 %vm8333_vm0, %v6087_v43  ;;  %v5448_v46 = vcombine.high %v5428_v25, %v5444_v51  ;;  %v23263_v54 = vcombine.low %v19021_v13, %v19024_v59  ;;  %v23264_v57 = vcombine.high %v19021_v13, %v19024_v59  ;;  %v23265_v24 = vcombine.low %v19031_v50, %v19034_v60 }
 0x4b1   : > { %v5512_v47 = vrot.slane %v5498_v53, %v17510_v27  ;;  %v23266_v25 = vcombine.high %v19031_v50, %v19034_v60  ;;  %v23267_v12 = vcombine.low %v19110_v32, %v19113_v7  ;;  %v23268_v13 = vcombine.high %v19110_v32, %v19113_v7  ;;  %v19351_v53 = vpop.permute.xlu1 %3807 }
 0x4b2   : > { %v19304_v11 = vrot.slane %v23263_v54, %v17505_v19  ;;  %v19313_v9 = vrot.slane %v23264_v57, %v17505_v19  ;;  %v19319_v62 = vrot.slane %v23265_v24, %v17505_v19  ;;  %v23269_v58 = vcombine.low %v19116_v18, %v19119_v0 }
 0x4b3   : > { %v19325_v51 = vrot.slane %v23266_v25, %v17505_v19  ;;  %v19331_v43 = vrot.slane %v23267_v12, %v17505_v19  ;;  %v19337_v59 = vrot.slane %v23268_v13, %v17505_v19  ;;  %v23270_v50 = vcombine.high %v19116_v18, %v19119_v0  ;;  %v23271_v0 = vld [vmem:[#allocation35_spill] sm:$0xff]  ;;  %v23272_v12 = vld [vmem:[#allocation34_spill] sm:$0xff] }
 0x4b4   : > { %v19343_v44 = vrot.slane %v23269_v58, %v17505_v19  ;;  %v5515_v54 = vcombine.low %v5496_v2, %v5512_v47  ;;  %v5516_v57 = vcombine.high %v5496_v2, %v5512_v47  ;;  %v8197_v32 = vcombine.low %v19304_v11, %v19313_v9 }
 0x4b5   : > { %v19349_v60 = vrot.slane %v23270_v50, %v17505_v19  ;;  %v8213_v7 = vcombine.low %v19319_v62, %v19325_v51  ;;  %v8265_v24 = vcombine.low %v19331_v43, %v19337_v59  ;;  %v5550_v18 = vcombine.high %v18577_v14, %v18580_v26  ;;  %v19377_v6 = vpop.permute.xlu1 %3855 }
 0x4b6   : > { %v5566_v13 = vcombine.high %v23272_v12, %v23271_v0  ;;  %v6080_v58 = vpack.c.bf16 %v5515_v54, %v5447_v23  ;;  %v6088_v2 = vpack.c.bf16 %v5516_v57, %v5448_v46  ;;  %v8205_v47 = vrot.slane %v8197_v32, %v17510_v27  ;;  %v23273_v23 = vld [vmem:[#allocation100_spill] sm:$0xff]  ;;  %v23274_v46 = vld [vmem:[#allocation101_spill] sm:$0xff]  ;;  %v3850_v57 = vpop.permute.xlu0 %3849 }
 0x4b7   : > { %v8281_v25 = vcombine.low %v19343_v44, %v19349_v60  ;;  %v8221_v50 = vrot.slane %v8213_v7, %v17510_v27  ;;  %v8273_v34 = vrot.slane %v8265_v24, %v17510_v27  ;;  %v5564_v41 = vrot.slane %v5550_v18, %v17510_v27  ;;  %v23275_v24 = vld [vmem:[#allocation102_spill] sm:$0xff]  ;;  %v23276_v12 = vld [vmem:[#allocation104_spill] sm:$0xff] }
 0x4b8   : > { %v5580_v33 = vrot.slane %v5566_v13, %v17510_v27  ;;  %15289 = vmatmul.mubr.msk.bf16.gmra.mxu0 %vm8333_vm0, %v6080_v58  ;;  %15321 = vmatmul.mubr.msk.bf16.gmra.mxu1 %vm8333_vm0, %v6088_v2  ;;  %v5618_v54 = vcombine.high %v23274_v46, %v23273_v23  ;;  %v4649_v58 = vcombine.low %v19176_v31, %v19244_v16 }
 0x4b9   : > { %v8289_v17 = vrot.slane %v8281_v25, %v17510_v27  ;;  %v8229_v14 = vcombine.low %v8205_v47, %v8221_v50  ;;  %v8230_v26 = vcombine.high %v8205_v47, %v8221_v50  ;;  %v5634_v25 = vcombine.high %v23276_v12, %v23275_v24 }
 0x4ba   : > { %v5583_v0 = vcombine.low %v5564_v41, %v5580_v33  ;;  %v5632_v18 = vrot.slane %v5618_v54, %v17510_v27  ;;  %v5584_v13 = vcombine.high %v5564_v41, %v5580_v33  ;;  %v4650_v2 = vcombine.high %v19176_v31, %v19244_v16 }
 0x4bb   : > { %v8297_v32 = vcombine.low %v8273_v34, %v8289_v17  ;;  %v8298_v7 = vcombine.high %v8273_v34, %v8289_v17  ;;  %v5648_v23 = vrot.slane %v5634_v25, %v17510_v27  ;;  %v4309_v17 = vcombine.low %v19306_v61, %v3850_v57 }
 0x4bc   : > { %v4657_v34 = vrot.slane %v4649_v58, %v17505_v19  ;;  %v4664_v46 = vrot.slane %v4650_v2, %v17505_v19  ;;  %v4310_v24 = vcombine.high %v19306_v61, %v3850_v57  ;;  %v5686_v33 = vcombine.high %v18649_v1, %v18662_v55  ;;  %v23279_v2 = vld [vmem:[#allocation37_spill] sm:$0xff] }
 0x4bd   : > { %v8308_v47 = vpack.c.bf16 %v8297_v32, %v8229_v14  ;;  %v8316_v50 = vpack.c.bf16 %v8298_v7, %v8230_v26  ;;  %v5651_v41 = vcombine.low %v5632_v18, %v5648_v23  ;;  %v5652_v54 = vcombine.high %v5632_v18, %v5648_v23  ;;  %v19397_v32 = vpop.permute.xlu0 %3749  ;;  %v19403_v7 = vpop.permute.xlu1 %3755 }
 0x4be   : > { %v19392_v31 = vrot.slane %v4309_v17, %v17505_v19  ;;  %v4665_v16 = vcombine.low %v19260_v45, %v4657_v34  ;;  %v4666_v14 = vcombine.high %v19260_v45, %v4657_v34  ;;  %v4681_v26 = vcombine.low %v19263_v8, %v4664_v46  ;;  %v23281_v34 = vld [vmem:[#allocation96_spill] sm:$0xff] }
 0x4bf   : > { %15332 = vmatprep.subr.bf16.mxu0 %v8308_v47  ;;  %15364 = vmatprep.subr.bf16.mxu1 %v8316_v50  ;;  %v6081_v61 = vpack.c.bf16 %v5651_v41, %v5583_v0  ;;  %v6089_v57 = vpack.c.bf16 %v5652_v54, %v5584_v13  ;;  %v4682_v1 = vcombine.high %v19263_v8, %v4664_v46  ;;  %v23277_v0 = vld [vmem:[#allocation105_spill] sm:$0xff]  ;;  %v23278_v13 = vld [vmem:[#allocation106_spill] sm:$0xff] }
 0x4c0   : > { %15333 = vmatpush3.bf16.msra.mxu0 %v8308_v47  ;;  %15365 = vmatpush3.bf16.msra.mxu1 %v8316_v50  ;;  %v19401_v55 = vrot.slane %v4310_v24, %v17505_v19  ;;  %v19406_v12 = vrot.slane %v4665_v16, %v17510_v27  ;;  %v19409_v25 = vrot.slane %v4666_v14, %v17510_v27  ;;  %v23280_v47 = vld [vmem:[#allocation36_spill] sm:$0xff]  ;;  %v23282_v46 = vld [vmem:[#allocation94_spill] sm:$0xff] }
 0x4c1   : > { %v19412_v45 = vrot.slane %v4681_v26, %v17510_v27  ;;  %v5700_v18 = vrot.slane %v5686_v33, %v17510_v27  ;;  %15292 = vmatprep.mubr.msk.bf16.mxu0 %vm8333_vm0, %v6081_v61  ;;  %15324 = vmatprep.mubr.msk.bf16.mxu1 %vm8333_vm0, %v6089_v57  ;;  %v19418_v8 = vrot.slane %v4682_v1, %v17510_v27 }
 0x4c2   : > { %v5702_v58 = vcombine.high %v23278_v13, %v23277_v0  ;;  %v5754_v50 = vcombine.high %v23280_v47, %v23279_v2  ;;  %v5770_v24 = vcombine.high %v23282_v46, %v23281_v34  ;;  %v5822_v33 = vcombine.high %v18799_v35, %v18805_v38  ;;  %v3798_v38 = vpop.permute.xlu0 %3797  ;;  %v23283_v13 = vld [vmem:[#allocation98_spill] sm:$0xff]  ;;  %v23284_v2 = vld [vmem:[#allocation95_spill] sm:$0xff] }
 0x4c3   : > { %v5838_v57 = vcombine.high %v18818_v39, %v18869_v21  ;;  %v5890_v35 = vcombine.high %v18872_v28, %v18877_v29  ;;  %v5906_v47 = vcombine.high %v23284_v2, %v23283_v13  ;;  %v4513_v10 = vcombine.low %v19273_v49, %v19377_v6 }
 0x4c4   : > { %v5716_v16 = vrot.slane %v5702_v58, %v17510_v27  ;;  %v5768_v14 = vrot.slane %v5754_v50, %v17510_v27  ;;  %v5784_v26 = vrot.slane %v5770_v24, %v17510_v27  ;;  %v5836_v61 = vrot.slane %v5822_v33, %v17510_v27  ;;  %v23285_v58 = vld [vmem:[#allocation92_spill] sm:$0xff]  ;;  %v19448_v50 = vpop.permute.xlu1 %3801 }
 0x4c5   : > { %v4497_v34 = vcombine.low %v23285_v58, %v19351_v53  ;;  %v5852_v33 = vrot.slane %v5838_v57, %v17510_v27  ;;  %v5904_v39 = vrot.slane %v5890_v35, %v17510_v27  ;;  %v5920_v21 = vrot.slane %v5906_v47, %v17510_v27  ;;  %v23287_v57 = vld [vmem:[#allocation86_spill] sm:$0xff]  ;;  %v23288_v35 = vld [vmem:[#allocation85_spill] sm:$0xff] }
 0x4c6   : > { %v5719_v1 = vcombine.low %v5700_v18, %v5716_v16  ;;  %v5720_v0 = vcombine.high %v5700_v18, %v5716_v16  ;;  %v5787_v46 = vcombine.low %v5768_v14, %v5784_v26  ;;  %v5788_v24 = vcombine.high %v5768_v14, %v5784_v26  ;;  %v23286_v18 = vld [vmem:[#allocation70_spill] sm:$0xff] }
 0x4c7   : > { %v4498_v28 = vcombine.high %v23285_v58, %v19351_v53  ;;  %v4505_v29 = vrot.slane %v4497_v34, %v17505_v19  ;;  %v4157_v16 = vcombine.low %v23286_v18, %v3798_v38  ;;  %v5855_v54 = vcombine.low %v5836_v61, %v5852_v33 }
 0x4c8   : > { %v6082_v13 = vpack.c.bf16 %v5787_v46, %v5719_v1  ;;  %v6090_v2 = vpack.c.bf16 %v5788_v24, %v5720_v0  ;;  %v5856_v41 = vcombine.high %v5836_v61, %v5852_v33  ;;  %v5923_v17 = vcombine.low %v5904_v39, %v5920_v21 }
 0x4c9   : > { %v5924_v23 = vcombine.high %v5904_v39, %v5920_v21  ;;  %v4512_v14 = vrot.slane %v4498_v28, %v17505_v19  ;;  %v4158_v26 = vcombine.high %v23286_v18, %v3798_v38  ;;  %v19462_v53 = vrot.slane %v4157_v16, %v17505_v19  ;;  %v3846_v38 = vpop.permute.xlu0 %3845  ;;  %v19485_v39 = vpop.permute.xlu1 %3803 }
 0x4ca   : > { %15293 = vmatmul.mubr.msk.bf16.gmra.mxu0 %vm8333_vm0, %v6082_v13  ;;  %15325 = vmatmul.mubr.msk.bf16.gmra.mxu1 %vm8333_vm0, %v6090_v2  ;;  %v23289_v1 = vcombine.low %v23287_v57, %v23288_v35  ;;  %v23291_v61 = vcombine.high %v23287_v57, %v23288_v35  ;;  %v6083_v58 = vpack.c.bf16 %v5923_v17, %v5855_v54 }
 0x4cb   : > { %v6091_v34 = vpack.c.bf16 %v5924_v23, %v5856_v41  ;;  %v19477_v46 = vrot.slane %v4158_v26, %v17505_v19  ;;  %v23293_v24 = vcombine.low %v19057_v40, %v19066_v22  ;;  %v23295_v21 = vcombine.high %v19057_v40, %v19066_v22 }
 0x4cc   : > { %v19468_v0 = vrot.slane %v23289_v1, %v17505_v19  ;;  %v19474_v47 = vrot.slane %v23291_v61, %v17505_v19  ;;  %v19499_v17 = vrot.slane %v8097_v20, %v17505_v19  ;;  %v19505_v41 = vrot.slane %v14706_v42, %v17505_v19  ;;  %15296 = vmatprep.mubr.msk.bf16.mxu0 %vm8333_vm0, %v6083_v58 }
 0x4cd   : > { %v19483_v33 = vrot.slane %v23293_v24, %v17505_v19  ;;  %v19491_v28 = vrot.slane %v23295_v21, %v17505_v19  ;;  %15328 = vmatprep.mubr.msk.bf16.mxu1 %vm8333_vm0, %v6091_v34  ;;  %v19513_v40 = vrot.slane %v8113_v30, %v17505_v19  ;;  %v23300_v22 = vcombine.high %v19222_v52, %v19225_v36  ;;  %v19540_v35 = vpop.permute.xlu0 %3745  ;;  %v19544_v58 = vpop.permute.xlu1 %3851 }
 0x4ce   : > { %23290 = vst [vmem:[#allocation72_spill] sm:$0xff] %v19468_v0  ;;  %23292 = vst [vmem:[#allocation71_spill] sm:$0xff] %v19474_v47  ;;  %v8061_v23 = vcombine.low %v19468_v0, %v19474_v47  ;;  %v8129_v54 = vcombine.low %v19499_v17, %v19505_v41  ;;  %v4514_v30 = vcombine.high %v19273_v49, %v19377_v6 }
 0x4cf   : > { %23294 = vst [vmem:[#allocation75_spill] sm:$0xff] %v19483_v33  ;;  %23296 = vst [vmem:[#allocation73_spill] sm:$0xff] %v19491_v28  ;;  %v19519_v20 = vrot.slane %v23300_v22, %v17505_v19  ;;  %v8077_v42 = vcombine.low %v19483_v33, %v19491_v28  ;;  %v4521_v52 = vrot.slane %v4513_v10, %v17505_v19 }
 0x4d0   : > { %23297 = vst [vmem:[#allocation77_spill] sm:$0xff] %v19499_v17  ;;  %23298 = vst [vmem:[#allocation76_spill] sm:$0xff] %v19505_v41  ;;  %v8069_v5 = vrot.slane %v8061_v23, %v17510_v27  ;;  %v4173_v36 = vcombine.low %v19397_v32, %v3846_v38  ;;  %v4174_v16 = vcombine.high %v19397_v32, %v3846_v38 }
 0x4d1   : > { %23299 = vst [vmem:[#allocation79_spill] sm:$0xff] %v19513_v40  ;;  %23301 = vst [vmem:[#allocation78_spill] sm:$0xff] %v19519_v20  ;;  %v8145_v18 = vcombine.low %v19513_v40, %v19519_v20  ;;  %v8085_v13 = vrot.slane %v8077_v42, %v17510_v27  ;;  %v8137_v2 = vrot.slane %v8129_v54, %v17510_v27 }
 0x4d2   : > { %v4528_v26 = vrot.slane %v4514_v30, %v17505_v19  ;;  %v5958_v57 = vcombine.high %v18890_v48, %v18899_v15  ;;  %v4529_v49 = vcombine.low %v4505_v29, %v4521_v52  ;;  %v4530_v1 = vcombine.high %v4505_v29, %v4521_v52 }
 0x4d3   : > { %v8153_v6 = vrot.slane %v8145_v18, %v17510_v27  ;;  %v4181_v61 = vrot.slane %v4173_v36, %v17505_v19  ;;  %v8093_v32 = vcombine.low %v8069_v5, %v8085_v13  ;;  %v8094_v38 = vcombine.high %v8069_v5, %v8085_v13  ;;  %v3842_v13 = vpop.permute.xlu0 %3841 }
 0x4d4   : > { %v4545_v34 = vcombine.low %v4512_v14, %v4528_v26  ;;  %v4546_v24 = vcombine.high %v4512_v14, %v4528_v26  ;;  %v19547_v22 = vrot.slane %v4529_v49, %v17510_v27  ;;  %v19550_v48 = vrot.slane %v4530_v1, %v17510_v27  ;;  %v19575_v49 = vpop.permute.xlu1 %3751 }
 0x4d5   : > { %v8161_v21 = vcombine.low %v8137_v2, %v8153_v6  ;;  %v8162_v23 = vcombine.high %v8137_v2, %v8153_v6  ;;  %v4188_v10 = vrot.slane %v4174_v16, %v17505_v19  ;;  %v4189_v5 = vcombine.low %v19462_v53, %v4181_v61 }
 0x4d6   : > { %v19553_v15 = vrot.slane %v4545_v34, %v17510_v27  ;;  %v19556_v29 = vrot.slane %v4546_v24, %v17510_v27  ;;  %v4190_v36 = vcombine.high %v19462_v53, %v4181_v61  ;;  %v5972_v6 = vrot.slane %v5958_v57, %v17510_v27  ;;  %v23302_v53 = vld [vmem:[#allocation97_spill] sm:$0xff]  ;;  %v23305_v57 = vld [vmem:[#allocation83_spill] sm:$0xff] }
 0x4d7   : > { %v8307_v42 = vpack.c.bf16 %v8161_v21, %v8093_v32  ;;  %v8315_v14 = vpack.c.bf16 %v8162_v23, %v8094_v38  ;;  %v19570_v16 = vrot.slane %v4189_v5, %v17510_v27  ;;  %v4205_v2 = vcombine.low %v19477_v46, %v4188_v10  ;;  %v23303_v32 = vld [vmem:[#allocation39_spill] sm:$0xff]  ;;  %v23304_v38 = vld [vmem:[#allocation38_spill] sm:$0xff]  ;;  %v23306_v21 = vld [vmem:[#allocation84_spill] sm:$0xff] }
 0x4d8   : > { %v4206_v26 = vcombine.high %v19477_v46, %v4188_v10  ;;  %v19578_v1 = vrot.slane %v4190_v36, %v17510_v27  ;;  %v5974_v61 = vcombine.high %v23302_v53, %v18907_v63  ;;  %v6026_v34 = vcombine.high %v23304_v38, %v23303_v32  ;;  %v23307_v10 = vld [vmem:[#allocation69_spill] sm:$0xff] }
 0x4d9   : > { %15334 = vmatprep.subr.bf16.mxu0 %v8307_v42  ;;  %15366 = vmatprep.subr.bf16.mxu1 %v8315_v14  ;;  %v19585_v24 = vrot.slane %v4205_v2, %v17510_v27  ;;  %v6042_v23 = vcombine.high %v23306_v21, %v23305_v57  ;;  %v4293_v5 = vcombine.low %v23307_v10, %v19448_v50 }
 0x4da   : > { %15335 = vmatpush3.bf16.msra.mxu0 %v8307_v42  ;;  %15367 = vmatpush3.bf16.msra.mxu1 %v8315_v14  ;;  %v19588_v46 = vrot.slane %v4206_v26, %v17510_v27  ;;  %v5988_v14 = vrot.slane %v5974_v61, %v17510_v27  ;;  %v6040_v36 = vrot.slane %v6026_v34, %v17510_v27  ;;  %v19609_v61 = vpop.permute.xlu0 %3741  ;;  %v19613_v26 = vpop.permute.xlu1 %3799 }
 0x4db   : > { %v6056_v53 = vrot.slane %v6042_v23, %v17510_v27  ;;  %v4294_v32 = vcombine.high %v23307_v10, %v19448_v50  ;;  %v4301_v21 = vrot.slane %v4293_v5, %v17505_v19  ;;  %v4037_v63 = vcombine.low %v19540_v35, %v3842_v13  ;;  %v23308_v10 = vld [vmem:[#allocation88_spill] sm:$0xff]  ;;  %v23309_v5 = vld [vmem:[#allocation87_spill] sm:$0xff] }
 0x4dc   : > { %v5991_v38 = vcombine.low %v5972_v6, %v5988_v14  ;;  %v5992_v57 = vcombine.high %v5972_v6, %v5988_v14  ;;  %v4038_v52 = vcombine.high %v19540_v35, %v3842_v13  ;;  %v23310_v14 = vcombine.low %v23308_v10, %v23309_v5 }
 0x4dd   : > { %v6059_v34 = vcombine.low %v6040_v36, %v6056_v53  ;;  %v6060_v42 = vcombine.high %v6040_v36, %v6056_v53  ;;  %v4308_v2 = vrot.slane %v4294_v32, %v17505_v19  ;;  %v4325_v23 = vcombine.low %v4301_v21, %v19392_v31 }
 0x4de   : > { %v4326_v50 = vcombine.high %v4301_v21, %v19392_v31  ;;  %v19618_v6 = vrot.slane %v4037_v63, %v17505_v19  ;;  %v19624_v18 = vrot.slane %v23310_v14, %v17505_v19  ;;  %v19635_v63 = vrot.slane %v4038_v52, %v17505_v19  ;;  %v23315_v52 = vld [vmem:[#allocation89_spill] sm:$0xff] }
 0x4df   : > { %v6084_v36 = vpack.c.bf16 %v6059_v34, %v5991_v38  ;;  %v6092_v53 = vpack.c.bf16 %v6060_v42, %v5992_v57  ;;  %v4341_v32 = vcombine.low %v4308_v2, %v19401_v55  ;;  %v4342_v35 = vcombine.high %v4308_v2, %v19401_v55  ;;  %v23314_v2 = vld [vmem:[#allocation90_spill] sm:$0xff] }
 0x4e0   : > { %23311 = vst [vmem:[#allocation40_spill] sm:$0xff] %v19624_v18  ;;  %v19629_v13 = vrot.slane %v4325_v23, %v17510_v27  ;;  %v19632_v31 = vrot.slane %v4326_v50, %v17510_v27  ;;  %v23312_v21 = vcombine.high %v23308_v10, %v23309_v5  ;;  %v23316_v38 = vcombine.low %v23314_v2, %v23315_v52 }
 0x4e1   : > { %15297 = vmatmul.mubr.msk.bf16.gmra.mxu0 %vm8333_vm0, %v6084_v36  ;;  %15329 = vmatmul.mubr.msk.bf16.gmra.mxu1 %vm8333_vm0, %v6092_v53  ;;  %v19646_v55 = vrot.slane %v4341_v32, %v17510_v27  ;;  %v19649_v42 = vrot.slane %v4342_v35, %v17510_v27  ;;  %v23318_v50 = vcombine.high %v23314_v2, %v23315_v52  ;;  %v3790_v36 = vpop.permute.xlu0 %3789 }
 0x4e2   : > { %v19641_v14 = vrot.slane %v23312_v21, %v17505_v19  ;;  %v19655_v57 = vrot.slane %v23316_v38, %v17505_v19  ;;  %v23320_v35 = vcombine.low %v19406_v12, %v19409_v25  ;;  %v23322_v2 = vcombine.high %v19406_v12, %v19409_v25  ;;  %v19685_v38 = vpop.permute.xlu1 %3847 }
 0x4e3   : > { %v19665_v10 = vrot.slane %v23318_v50, %v17505_v19  ;;  %v23324_v32 = vcombine.low %v19412_v45, %v19418_v8  ;;  %v4377_v30 = vcombine.low %v19403_v7, %v19544_v58 }
 0x4e4   : > { %23313 = vst [vmem:[#allocation41_spill] sm:$0xff] %v19641_v14  ;;  %23317 = vst [vmem:[#allocation63_spill] sm:$0xff] %v19655_v57  ;;  %v7925_v5 = vcombine.low %v19624_v18, %v19641_v14  ;;  %v19677_v21 = vrot.slane %v23320_v35, %v17505_v19  ;;  %v19683_v52 = vrot.slane %v23322_v2, %v17505_v19 }
 0x4e5   : > { %23319 = vst [vmem:[#allocation62_spill] sm:$0xff] %v19665_v10  ;;  %v7941_v53 = vcombine.low %v19655_v57, %v19665_v10  ;;  %v19694_v23 = vrot.slane %v23324_v32, %v17505_v19  ;;  %v23326_v35 = vcombine.high %v19412_v45, %v19418_v8  ;;  %v4378_v45 = vcombine.high %v19403_v7, %v19544_v58  ;;  %v23329_v8 = vld [vmem:[#allocation57_spill] sm:$0xff] }
 0x4e6   : > { %23321 = vst [vmem:[#allocation65_spill] sm:$0xff] %v19677_v21  ;;  %23323 = vst [vmem:[#allocation64_spill] sm:$0xff] %v19683_v52  ;;  %v7933_v50 = vrot.slane %v7925_v5, %v17510_v27  ;;  %v7993_v25 = vcombine.low %v19677_v21, %v19683_v52  ;;  %v23328_v5 = vld [vmem:[#allocation74_spill] sm:$0xff]  ;;  %v3886_v7 = vcombine.high %v23329_v8, %v3790_v36 }
 0x4e7   : > { %23325 = vst [vmem:[#allocation68_spill] sm:$0xff] %v19694_v23  ;;  %v19700_v12 = vrot.slane %v23326_v35, %v17505_v19  ;;  %v4361_v2 = vcombine.low %v23328_v5, %v19485_v39  ;;  %v4362_v34 = vcombine.high %v23328_v5, %v19485_v39  ;;  %v7949_v32 = vrot.slane %v7941_v53, %v17510_v27 }
 0x4e8   : > { %v3885_v35 = vcombine.low %v23329_v8, %v3790_v36  ;;  %v8001_v57 = vrot.slane %v7993_v25, %v17510_v27  ;;  %v4385_v39 = vrot.slane %v4377_v30, %v17505_v19  ;;  %v4392_v21 = vrot.slane %v4378_v45, %v17505_v19  ;;  %v19724_v25 = vpop.permute.xlu1 %3747 }
 0x4e9   : > { %23327 = vst [vmem:[#allocation66_spill] sm:$0xff] %v19700_v12  ;;  %v8009_v54 = vcombine.low %v19694_v23, %v19700_v12  ;;  %v4369_v10 = vrot.slane %v4361_v2, %v17505_v19  ;;  %v4376_v18 = vrot.slane %v4362_v34, %v17505_v19  ;;  %v7957_v5 = vcombine.low %v7933_v50, %v7949_v32  ;;  %v3838_v23 = vpop.permute.xlu0 %3837 }
 0x4ea   : > { %v7958_v53 = vcombine.high %v7933_v50, %v7949_v32  ;;  %v3893_v58 = vrot.slane %v3885_v35, %v17505_v19  ;;  %v3900_v50 = vrot.slane %v3886_v7, %v17505_v19  ;;  %v23332_v7 = vcombine.low %v19282_v4, %v19285_v37 }
 0x4eb   : > { %v8017_v14 = vrot.slane %v8009_v54, %v17510_v27  ;;  %v4393_v12 = vcombine.low %v4369_v10, %v4385_v39  ;;  %v4394_v52 = vcombine.high %v4369_v10, %v4385_v39  ;;  %v4409_v34 = vcombine.low %v4376_v18, %v4392_v21 }
 0x4ec   : > { %v4410_v28 = vcombine.high %v4376_v18, %v4392_v21  ;;  %v3901_v10 = vcombine.low %v19609_v61, %v3838_v23  ;;  %v3794_v39 = vpop.permute.xlu1 %3793 }
 0x4ed   : > { %v8025_v2 = vcombine.low %v8001_v57, %v8017_v14  ;;  %v8026_v33 = vcombine.high %v8001_v57, %v8017_v14  ;;  %v19727_v30 = vrot.slane %v4393_v12, %v17510_v27  ;;  %v19730_v54 = vrot.slane %v4394_v52, %v17510_v27 }
 0x4ee   : > { %v19735_v45 = vrot.slane %v4409_v34, %v17510_v27  ;;  %v19738_v8 = vrot.slane %v4410_v28, %v17510_v27  ;;  %v3902_v57 = vcombine.high %v19609_v61, %v3838_v23  ;;  %v3909_v21 = vrot.slane %v3901_v10, %v17505_v19 }
 0x4ef   : > { %v8306_v32 = vpack.c.bf16 %v8025_v2, %v7957_v5  ;;  %v8314_v36 = vpack.c.bf16 %v8026_v33, %v7958_v53  ;;  %v23330_v28 = vcombine.low %v19276_v3, %v19279_v56  ;;  %v23331_v5 = vcombine.high %v19276_v3, %v19279_v56 }
 0x4f0   : > { %v3916_v61 = vrot.slane %v3902_v57, %v17505_v19  ;;  %v3917_v23 = vcombine.low %v3893_v58, %v3909_v21  ;;  %v3918_v35 = vcombine.high %v3893_v58, %v3909_v21  ;;  %v19767_v2 = vrot.slane %v23332_v7, %v17505_v19 }
 0x4f1   : > { %15336 = vmatprep.subr.bf16.mxu0 %v8306_v32  ;;  %15368 = vmatprep.subr.bf16.mxu1 %v8314_v36  ;;  %v19754_v12 = vrot.slane %v23330_v28, %v17505_v19  ;;  %v19761_v53 = vrot.slane %v23331_v5, %v17505_v19  ;;  %v23333_v34 = vcombine.high %v19282_v4, %v19285_v37 }
 0x4f2   : > { %15337 = vmatpush3.bf16.msra.mxu0 %v8306_v32  ;;  %15369 = vmatpush3.bf16.msra.mxu1 %v8314_v36  ;;  %v23334_v58 = vcombine.low %v19547_v22, %v19550_v48  ;;  %v19782_v3 = vrot.slane %v3917_v23, %v17510_v27  ;;  %v19785_v56 = vrot.slane %v3918_v35, %v17510_v27 }
 0x4f3   : > { %v19773_v10 = vrot.slane %v23333_v34, %v17505_v19  ;;  %v3933_v36 = vcombine.low %v3900_v50, %v3916_v61  ;;  %v3934_v57 = vcombine.high %v3900_v50, %v3916_v61  ;;  %v7789_v21 = vcombine.low %v19754_v12, %v19761_v53 }
 0x4f4   : > { %v19779_v32 = vrot.slane %v23334_v58, %v17505_v19  ;;  %v23335_v37 = vcombine.high %v19547_v22, %v19550_v48  ;;  %v23336_v23 = vcombine.low %v19553_v15, %v19556_v29  ;;  %v23337_v34 = vcombine.high %v19553_v15, %v19556_v29  ;;  %v19831_v22 = vpop.permute.xlu1 %3795 }
 0x4f5   : > { %v7805_v4 = vcombine.low %v19767_v2, %v19773_v10  ;;  %v19804_v50 = vrot.slane %v3933_v36, %v17510_v27  ;;  %v19807_v61 = vrot.slane %v3934_v57, %v17510_v27  ;;  %v7797_v48 = vrot.slane %v7789_v21, %v17510_v27 }
 0x4f6   : > { %v19795_v28 = vrot.slane %v23335_v37, %v17505_v19  ;;  %v19801_v35 = vrot.slane %v23336_v23, %v17505_v19  ;;  %v19819_v58 = vrot.slane %v23337_v34, %v17505_v19  ;;  %v23338_v23 = vld [vmem:[#allocation80_spill] sm:$0xff]  ;;  %v4241_v37 = vcombine.low %v19575_v49, %v19685_v38 }
 0x4f7   : > { %v7813_v7 = vrot.slane %v7805_v4, %v17510_v27  ;;  %v4225_v21 = vcombine.low %v23338_v23, %v19613_v26  ;;  %v4226_v4 = vcombine.high %v23338_v23, %v19613_v26  ;;  %v4242_v33 = vcombine.high %v19575_v49, %v19685_v38  ;;  %v23339_v23 = vld [vmem:[#allocation53_spill] sm:$0xff] }
 0x4f8   : > { %v7857_v36 = vcombine.low %v19779_v32, %v19795_v28  ;;  %v7873_v34 = vcombine.low %v19801_v35, %v19819_v58  ;;  %v4021_v14 = vcombine.low %v23339_v23, %v3794_v39  ;;  %v23341_v49 = vcombine.high %v19629_v13, %v19632_v31  ;;  %v3844_v20 = vpop.permute.xlu1 %3843 }
 0x4f9   : > { %v7821_v15 = vcombine.low %v7797_v48, %v7813_v7  ;;  %v7822_v5 = vcombine.high %v7797_v48, %v7813_v7  ;;  %v4233_v57 = vrot.slane %v4225_v21, %v17505_v19  ;;  %v4240_v52 = vrot.slane %v4226_v4, %v17505_v19 }
 0x4fa   : > { %v7865_v29 = vrot.slane %v7857_v36, %v17510_v27  ;;  %v7881_v26 = vrot.slane %v7873_v34, %v17510_v27  ;;  %v4022_v36 = vcombine.high %v23339_v23, %v3794_v39  ;;  %v23340_v48 = vcombine.low %v19629_v13, %v19632_v31 }
 0x4fb   : > { %v4249_v21 = vrot.slane %v4241_v37, %v17505_v19  ;;  %v4256_v4 = vrot.slane %v4242_v33, %v17505_v19  ;;  %v19857_v38 = vrot.slane %v23341_v49, %v17505_v19  ;;  %v23342_v39 = vcombine.low %v19646_v55, %v19649_v42 }
 0x4fc   : > { %v19849_v7 = vrot.slane %v23340_v48, %v17505_v19  ;;  %v7889_v23 = vcombine.low %v7865_v29, %v7881_v26  ;;  %v7890_v18 = vcombine.high %v7865_v29, %v7881_v26  ;;  %v4029_v48 = vrot.slane %v4021_v14, %v17505_v19 }
 0x4fd   : > { %v19863_v34 = vrot.slane %v23342_v39, %v17505_v19  ;;  %v4036_v37 = vrot.slane %v4022_v36, %v17505_v19  ;;  %v4257_v0 = vcombine.low %v4233_v57, %v4249_v21  ;;  %v4258_v33 = vcombine.high %v4233_v57, %v4249_v21 }
 0x4fe   : > { %v4273_v47 = vcombine.low %v4240_v52, %v4256_v4  ;;  %v4274_v40 = vcombine.high %v4240_v52, %v4256_v4  ;;  %v8305_v13 = vpack.c.bf16 %v7889_v23, %v7821_v15  ;;  %v8313_v31 = vpack.c.bf16 %v7890_v18, %v7822_v5 }
 0x4ff   : > { %v4053_v49 = vcombine.low %v4029_v48, %v19618_v6  ;;  %v4054_v17 = vcombine.high %v4029_v48, %v19618_v6  ;;  %v19870_v39 = vrot.slane %v4257_v0, %v17510_v27  ;;  %v19873_v29 = vrot.slane %v4258_v33, %v17510_v27 }
 0x500   : > { %v19876_v14 = vrot.slane %v4273_v47, %v17510_v27  ;;  %v19879_v57 = vrot.slane %v4274_v40, %v17510_v27  ;;  %15338 = vmatprep.subr.bf16.mxu0 %v8305_v13  ;;  %15370 = vmatprep.subr.bf16.mxu1 %v8313_v31  ;;  %v4069_v0 = vcombine.low %v4036_v37, %v19635_v63 }
 0x501   : > { %v19882_v18 = vrot.slane %v4053_v49, %v17510_v27  ;;  %v19885_v52 = vrot.slane %v4054_v17, %v17510_v27  ;;  %15339 = vmatpush3.bf16.msra.mxu0 %v8305_v13  ;;  %15371 = vmatpush3.bf16.msra.mxu1 %v8313_v31  ;;  %v7553_v6 = vcombine.low %v19870_v39, %v19873_v29 }
 0x502   : > { %v4070_v15 = vcombine.high %v4036_v37, %v19635_v63  ;;  %v19898_v17 = vrot.slane %v4069_v0, %v17510_v27  ;;  %v23343_v21 = vcombine.high %v19646_v55, %v19649_v42  ;;  %v7653_v23 = vcombine.low %v19849_v7, %v19857_v38  ;;  %v19918_v37 = vpop.permute.xlu1 %3743 }
 0x503   : > { %v23344_v63 = vcombine.low %v19727_v30, %v19730_v54  ;;  %v23345_v55 = vcombine.high %v19727_v30, %v19730_v54  ;;  %v23346_v13 = vcombine.low %v19735_v45, %v19738_v8  ;;  %v23348_v49 = vcombine.high %v19735_v45, %v19738_v8  ;;  %v23349_v30 = vld [vmem:[#allocation58_spill] sm:$0xff] }
 0x504   : > { %v19908_v4 = vrot.slane %v23343_v21, %v17505_v19  ;;  %v19921_v33 = vrot.slane %v4070_v15, %v17510_v27  ;;  %v7661_v15 = vrot.slane %v7653_v23, %v17510_v27  ;;  %v4089_v54 = vcombine.low %v23349_v30, %v19831_v22 }
 0x505   : > { %v19916_v48 = vrot.slane %v23344_v63, %v17505_v19  ;;  %v19927_v42 = vrot.slane %v23345_v55, %v17505_v19  ;;  %v19933_v31 = vrot.slane %v23346_v13, %v17505_v19  ;;  %v19939_v0 = vrot.slane %v23348_v49, %v17505_v19 }
 0x506   : > { %v7669_v21 = vcombine.low %v19863_v34, %v19908_v4  ;;  %v4090_v63 = vcombine.high %v23349_v30, %v19831_v22  ;;  %v4097_v49 = vrot.slane %v4089_v54, %v17505_v19  ;;  %v4105_v22 = vcombine.low %v19724_v25, %v3844_v20 }
 0x507   : > { %23347 = vst [vmem:[#allocation42_spill] sm:$0xff] %v19933_v31  ;;  %v7721_v45 = vcombine.low %v19916_v48, %v19927_v42  ;;  %v7737_v8 = vcombine.low %v19933_v31, %v19939_v0  ;;  %v4106_v13 = vcombine.high %v19724_v25, %v3844_v20  ;;  %v23350_v26 = vcombine.low %v19570_v16, %v19578_v1 }
 0x508   : > { %v7677_v23 = vrot.slane %v7669_v21, %v17510_v27  ;;  %v4104_v36 = vrot.slane %v4090_v63, %v17505_v19  ;;  %v4113_v54 = vrot.slane %v4105_v22, %v17505_v19  ;;  %v23351_v63 = vcombine.high %v19570_v16, %v19578_v1 }
 0x509   : > { %v7729_v30 = vrot.slane %v7721_v45, %v17510_v27  ;;  %v7745_v55 = vrot.slane %v7737_v8, %v17510_v27  ;;  %v19967_v5 = vrot.slane %v23350_v26, %v17505_v19  ;;  %v3792_v45 = vpop.permute.xlu1 %3791  ;;  %v4120_v20 = vrot.slane %v4106_v13, %v17505_v19 }
 0x50a   : > { %v7685_v40 = vcombine.low %v7661_v15, %v7677_v23  ;;  %v7686_v21 = vcombine.high %v7661_v15, %v7677_v23  ;;  %v19974_v47 = vrot.slane %v23351_v63, %v17505_v19  ;;  %v23352_v25 = vcombine.low %v19585_v24, %v19588_v46 }
 0x50b   : > { %v7753_v8 = vcombine.low %v7729_v30, %v7745_v55  ;;  %v7754_v41 = vcombine.high %v7729_v30, %v7745_v55  ;;  %v4121_v15 = vcombine.low %v4097_v49, %v4113_v54  ;;  %v4122_v23 = vcombine.high %v4097_v49, %v4113_v54 }
 0x50c   : > { %v19981_v26 = vrot.slane %v23352_v25, %v17505_v19  ;;  %v23353_v22 = vcombine.high %v19585_v24, %v19588_v46  ;;  %v7517_v1 = vcombine.low %v19967_v5, %v19974_v47  ;;  %v4137_v13 = vcombine.low %v4104_v36, %v4120_v20 }
 0x50d   : > { %v8304_v55 = vpack.c.bf16 %v7753_v8, %v7685_v40  ;;  %v8312_v30 = vpack.c.bf16 %v7754_v41, %v7686_v21  ;;  %v4138_v63 = vcombine.high %v4104_v36, %v4120_v20  ;;  %v19992_v31 = vrot.slane %v4121_v15, %v17510_v27  ;;  %v3840_v8 = vpop.permute.xlu1 %3839 }
 0x50e   : > { %v19987_v16 = vrot.slane %v23353_v22, %v17505_v19  ;;  %v19995_v25 = vrot.slane %v4122_v23, %v17510_v27  ;;  %v7525_v49 = vrot.slane %v7517_v1, %v17510_v27  ;;  %v20001_v46 = vrot.slane %v4137_v13, %v17510_v27 }
 0x50f   : > { %15340 = vmatprep.subr.bf16.mxu0 %v8304_v55  ;;  %15372 = vmatprep.subr.bf16.mxu1 %v8312_v30  ;;  %v20004_v41 = vrot.slane %v4138_v63, %v17510_v27  ;;  %v20007_v40 = vrot.slane %v7553_v6, %v17505_v19  ;;  %v23355_v6 = vcombine.high %v19870_v39, %v19873_v29  ;;  %v23360_v63 = vld [vmem:[#allocation67_spill] sm:$0xff] }
 0x510   : > { %v7533_v24 = vcombine.low %v19981_v26, %v19987_v16  ;;  %15341 = vmatpush3.bf16.msra.mxu0 %v8304_v55  ;;  %15373 = vmatpush3.bf16.msra.mxu1 %v8312_v30  ;;  %v7417_v36 = vcombine.low %v19992_v31, %v19995_v25  ;;  %v14686_v21 = vcombine.high %v19992_v31, %v19995_v25 }
 0x511   : > { %23354 = vst [vmem:[#allocation46_spill] sm:$0xff] %v20007_v40  ;;  %v7433_v20 = vcombine.low %v20001_v46, %v20004_v41  ;;  %v14687_v15 = vcombine.high %v20001_v46, %v20004_v41  ;;  %v20022_v23 = vrot.slane %v23355_v6, %v17505_v19  ;;  %v23356_v22 = vcombine.low %v19876_v14, %v19879_v57 }
 0x512   : > { %v7541_v54 = vrot.slane %v7533_v24, %v17510_v27  ;;  %v23358_v55 = vcombine.high %v19876_v14, %v19879_v57  ;;  %v3953_v25 = vcombine.low %v23360_v63, %v3792_v45  ;;  %v3954_v29 = vcombine.high %v23360_v63, %v3792_v45 }
 0x513   : > { %v20028_v31 = vrot.slane %v23356_v22, %v17505_v19  ;;  %v7585_v39 = vcombine.low %v20007_v40, %v20022_v23  ;;  %v3969_v24 = vcombine.low %v19918_v37, %v3840_v8  ;;  %v3970_v46 = vcombine.high %v19918_v37, %v3840_v8  ;;  %v20079_v40 = vpop.f32.mrf.mxu1 }
 0x514   : > { %v7549_v1 = vcombine.low %v7525_v49, %v7541_v54  ;;  %v20034_v30 = vrot.slane %v23358_v55, %v17505_v19  ;;  %v7550_v13 = vcombine.high %v7525_v49, %v7541_v54  ;;  %v3961_v6 = vrot.slane %v3953_v25, %v17505_v19 }
 0x515   : > { %23357 = vst [vmem:[#allocation45_spill] sm:$0xff] %v20028_v31  ;;  %v23361_v14 = vcombine.low %v19882_v18, %v19885_v52  ;;  %v23363_v49 = vcombine.high %v19882_v18, %v19885_v52  ;;  %v7593_v54 = vrot.slane %v7585_v39, %v17510_v27  ;;  %v3968_v37 = vrot.slane %v3954_v29, %v17505_v19  ;;  %v15222_v29 = vpop.f32.mrf.mxu0 }
 0x516   : > { %23359 = vst [vmem:[#allocation48_spill] sm:$0xff] %v20034_v30  ;;  %v7601_v41 = vcombine.low %v20028_v31, %v20034_v30  ;;  %v3977_v8 = vrot.slane %v3969_v24, %v17505_v19  ;;  %v3984_v22 = vrot.slane %v3970_v46, %v17505_v19  ;;  %v23364_v63 = vcombine.low %v19898_v17, %v19921_v33 }
 0x517   : > { %v20049_v57 = vrot.slane %v23361_v14, %v17505_v19  ;;  %v20055_v45 = vrot.slane %v23363_v49, %v17505_v19  ;;  %v23366_v18 = vcombine.high %v19898_v17, %v19921_v33 }
 0x518   : > { %v7609_v55 = vrot.slane %v7601_v41, %v17510_v27  ;;  %v20066_v25 = vrot.slane %v23364_v63, %v17505_v19  ;;  %v3985_v24 = vcombine.low %v3961_v6, %v3977_v8  ;;  %v3986_v46 = vcombine.high %v3961_v6, %v3977_v8 }
 0x519   : > { %23362 = vst [vmem:[#allocation47_spill] sm:$0xff] %v20049_v57  ;;  %v20072_v52 = vrot.slane %v23366_v18, %v17505_v19  ;;  %v7381_v39 = vcombine.low %v20049_v57, %v20055_v45  ;;  %v4001_v14 = vcombine.low %v3968_v37, %v3984_v22  ;;  %v4002_v41 = vcombine.high %v3968_v37, %v3984_v22  ;;  %v20089_v22 = vpop.f32.mrf.mxu0 }
 0x51a   : > { %23365 = vst [vmem:[#allocation50_spill] sm:$0xff] %v20066_v25  ;;  %v7617_v49 = vcombine.low %v7593_v54, %v7609_v55  ;;  %v7618_v31 = vcombine.high %v7593_v54, %v7609_v55  ;;  %v3993_v17 = vrot.slane %v3985_v24, %v17510_v27  ;;  %v4000_v33 = vrot.slane %v3986_v46, %v17510_v27 }
 0x51b   : > { %v7389_v30 = vrot.slane %v7381_v39, %v17510_v27  ;;  %v7397_v63 = vcombine.low %v20066_v25, %v20072_v52  ;;  %v4009_v18 = vrot.slane %v4001_v14, %v17510_v27  ;;  %v4016_v57 = vrot.slane %v4002_v41, %v17510_v27 }
 0x51c   : > { %v8303_v6 = vpack.c.bf16 %v7617_v49, %v7549_v1  ;;  %v8311_v8 = vpack.c.bf16 %v7618_v31, %v7550_v13  ;;  %v20087_v54 = vrot.slane %v7417_v36, %v17505_v19  ;;  %v7281_v55 = vcombine.low %v3993_v17, %v4000_v33  ;;  %v20097_v31 = vpop.f32.mrf.mxu1 }
 0x51d   : > { %v7405_v37 = vrot.slane %v7397_v63, %v17510_v27  ;;  %v14682_v39 = vcombine.high %v3993_v17, %v4000_v33  ;;  %v7297_v25 = vcombine.low %v4009_v18, %v4016_v57  ;;  %v14683_v24 = vcombine.high %v4009_v18, %v4016_v57  ;;  %v15223_v33 = vpop.f32.mrf.mxu0 }
 0x51e   : > { %15342 = vmatprep.subr.bf16.mxu0 %v8303_v6  ;;  %15374 = vmatprep.subr.bf16.mxu1 %v8311_v8  ;;  %v20092_v46 = vrot.slane %v14686_v21, %v17505_v19  ;;  %v20095_v14 = vrot.slane %v7433_v20, %v17505_v19  ;;  %v20100_v1 = vrot.slane %v14687_v15, %v17505_v19  ;;  %v8916_v57 = vmul.f32 0.17677669, %v15222_v29 }
 0x51f   : > { %15343 = vmatpush3.bf16.msra.mxu0 %v8303_v6  ;;  %15375 = vmatpush3.bf16.msra.mxu1 %v8311_v8  ;;  %v7413_v36 = vcombine.low %v7389_v30, %v7405_v37  ;;  %v23367_v13 = vcombine.low %v19782_v3, %v19785_v56  ;;  %v23368_v20 = vcombine.high %v19782_v3, %v19785_v56 }
 0x520   : > { %v7449_v21 = vcombine.low %v20087_v54, %v20092_v46  ;;  %v23369_v15 = vcombine.low %v19804_v50, %v19807_v61  ;;  %v23371_v17 = vcombine.high %v19804_v50, %v19807_v61  ;;  %v7465_v18 = vcombine.low %v20095_v14, %v20100_v1 }
 0x521   : > { %v20106_v41 = vrot.slane %v23367_v13, %v17505_v19  ;;  %v20114_v49 = vrot.slane %v23368_v20, %v17505_v19  ;;  %v20131_v3 = vrot.slane %v7281_v55, %v17505_v19  ;;  %v20134_v56 = vrot.slane %v14682_v39, %v17505_v19  ;;  %v15255_v20 = vpop.f32.mrf.mxu1 }
 0x522   : > { %v20120_v63 = vrot.slane %v23369_v15, %v17505_v19  ;;  %v20126_v29 = vrot.slane %v23371_v17, %v17505_v19  ;;  %v20137_v6 = vrot.slane %v7297_v25, %v17505_v19  ;;  %v7457_v8 = vrot.slane %v7449_v21, %v17510_v27 }
 0x523   : > { %23373 = vst [vmem:[#allocation51_spill] sm:$0xff] %v20131_v3  ;;  %23374 = vst [vmem:[#allocation99_spill] sm:$0xff] %v20134_v56  ;;  %v7245_v50 = vcombine.low %v20106_v41, %v20114_v49  ;;  %v20145_v13 = vrot.slane %v14683_v24, %v17505_v19  ;;  %v7473_v55 = vrot.slane %v7465_v18, %v17510_v27  ;;  %v8419_v18 = vpop.f32.mrf.mxu0 }
 0x524   : > { %23370 = vst [vmem:[#allocation49_spill] sm:$0xff] %v20120_v63  ;;  %23372 = vst [vmem:[#allocation52_spill] sm:$0xff] %v20126_v29  ;;  %v7261_v61 = vcombine.low %v20120_v63, %v20126_v29  ;;  %v7313_v39 = vcombine.low %v20131_v3, %v20134_v56  ;;  %v8198_v25 = vcombine.high %v19304_v11, %v19313_v9 }
 0x525   : > { %23375 = vst [vmem:[#allocation109_spill] sm:$0xff] %v20137_v6  ;;  %23376 = vst [vmem:[#allocation93_spill] sm:$0xff] %v20145_v13  ;;  %v8214_v21 = vcombine.high %v19319_v62, %v19325_v51  ;;  %v7253_v15 = vrot.slane %v7245_v50, %v17510_v27  ;;  %v7329_v24 = vcombine.low %v20137_v6, %v20145_v13  ;;  %v20164_v51 = vld [vmem:[#allocation6 + $0x10] sm:$0xff]  ;;  %v8917_v50 = vmul.f32 0.17677669, %v15223_v33 }
 0x526   : > { %v7269_v17 = vrot.slane %v7261_v61, %v17510_v27  ;;  %v8266_v19 = vcombine.high %v19331_v43, %v19337_v59  ;;  %v7481_v63 = vcombine.low %v7457_v8, %v7473_v55  ;;  %v7414_v29 = vcombine.high %v7389_v30, %v7405_v37  ;;  %v8564_v61 = vpop.f32.mrf.mxu1 }
 0x527   : > { %v7482_v3 = vcombine.high %v7457_v8, %v7473_v55  ;;  %v7321_v56 = vrot.slane %v7313_v39, %v17510_v27  ;;  %v7337_v11 = vrot.slane %v7329_v24, %v17510_v27  ;;  %v8212_v9 = vrot.slane %v8198_v25, %v17510_v27  ;;  %v20169_v39 = vld [vmem:[#allocation6 + $0x18] sm:$0xff]  ;;  %v15226_v25 = vpop.f32.mrf.mxu0 }
 0x528   : > { %v8228_v62 = vrot.slane %v8214_v21, %v17510_v27  ;;  %v8302_v6 = vpack.c.bf16 %v7481_v63, %v7413_v36  ;;  %v8280_v43 = vrot.slane %v8266_v19, %v17510_v27  ;;  %v8282_v59 = vcombine.high %v19343_v44, %v19349_v60 }
 0x529   : > { %v8310_v13 = vpack.c.bf16 %v7482_v3, %v7414_v29  ;;  %v7277_v30 = vcombine.low %v7253_v15, %v7269_v17  ;;  %v7345_v37 = vcombine.low %v7321_v56, %v7337_v11  ;;  %v7278_v8 = vcombine.high %v7253_v15, %v7269_v17  ;;  %v15258_v29 = vpop.f32.mrf.mxu1 }
 0x52a   : > { %v7346_v55 = vcombine.high %v7321_v56, %v7337_v11  ;;  %15344 = vmatprep.subr.bf16.mxu0 %v8302_v6  ;;  %v8296_v21 = vrot.slane %v8282_v59, %v17510_v27  ;;  %v20173_v33 = vadd.f32 %v20164_v51, %v8916_v57  ;;  %v8932_v36 = vmul.f32 0.17677669, %v20079_v40  ;;  %v8432_v57 = vpop.f32.mrf.mxu0  ;;  %v20191_v11 = vld [vmem:[#allocation6] sm:$0xff] }
 0x52b   : > { %15376 = vmatprep.subr.bf16.mxu1 %v8310_v13  ;;  %15345 = vmatpush3.bf16.msra.mxu0 %v8302_v6  ;;  %v8301_v19 = vpack.c.bf16 %v7345_v37, %v7277_v30  ;;  %v8231_v60 = vcombine.low %v8212_v9, %v8228_v62  ;;  %v8933_v63 = vmul.f32 0.17677669, %v15255_v20  ;;  %v8232_v56 = vcombine.high %v8212_v9, %v8228_v62  ;;  %v8577_v20 = vpop.f32.mrf.mxu1 }
 0x52c   : > { %15377 = vmatpush3.bf16.msra.mxu1 %v8310_v13  ;;  %v8309_v44 = vpack.c.bf16 %v7346_v55, %v7278_v8  ;;  %v8299_v3 = vcombine.low %v8280_v43, %v8296_v21  ;;  %v8300_v15 = vcombine.high %v8280_v43, %v8296_v21  ;;  %v20177_v17 = vadd.f32 %v20169_v39, %v8917_v50  ;;  %v20196_v50 = vld [vmem:[#allocation6 + $0x8] sm:$0xff]  ;;  %v15227_v43 = vpop.f32.mrf.mxu0  ;;  %v20207_v55 = vld [vmem:[#allocation6 + $0x38] sm:$0xff] }
 0x52d   : > { %9062 = vmax.xlane.f32.xlu0 %v20173_v33  ;;  %15346 = vmatprep.subr.bf16.mxu0 %v8301_v19  ;;  %v20186_v6 = vadd.f32 %v20164_v51, %v8932_v36  ;;  %v8914_v13 = vmul.f32 0.17677669, %v20089_v22  ;;  %v20194_v9 = vadd.f32 %v20169_v39, %v8933_v63  ;;  %v8915_v62 = vmul.f32 0.17677669, %v8419_v18  ;;  %v15259_v30 = vpop.f32.mrf.mxu1  ;;  %v20216_v63 = vld [vmem:[#allocation6 + $0x30] sm:$0xff] }
 0x52e   : > { %15378 = vmatprep.subr.bf16.mxu1 %v8309_v44  ;;  %v20180_v24 = vpack.c.bf16 %v8299_v3, %v8231_v60  ;;  %v20182_v40 = vpack.c.bf16 %v8300_v15, %v8232_v56  ;;  %9064 = vmax.xlane.f32.xlu1 %v20177_v17  ;;  %v8930_v59 = vmul.f32 0.17677669, %v20097_v31  ;;  %v8921_v8 = vmul.f32 0.17677669, %v15227_v43 }
 0x52f   : > { %15347 = vmatpush3.bf16.msra.mxu0 %v8301_v19  ;;  %v20201_v22 = vadd.f32 %v20191_v11, %v8914_v13  ;;  %v20205_v37 = vadd.f32 %v20196_v50, %v8915_v62  ;;  %v7790_v18 = vcombine.high %v19754_v12, %v19761_v53  ;;  %v8931_v21 = vmul.f32 0.17677669, %v8564_v61  ;;  %v8580_v60 = vpop.f32.mrf.mxu1 }
 0x530   : > { %23377 = vst [vmem:[#allocation103_spill] sm:$0xff] %v20180_v24  ;;  %23378 = vst [vmem:[#allocation111_spill] sm:$0xff] %v20182_v40  ;;  %15379 = vmatpush3.bf16.msra.mxu1 %v8309_v44  ;;  %15396 = vmatprep.subr.bf16.mxu0 %v20180_v24  ;;  %v20214_v36 = vadd.f32 %v20191_v11, %v8930_v59  ;;  %v8920_v19 = vmul.f32 0.17677669, %v15226_v25  ;;  %v8937_v31 = vmul.f32 0.17677669, %v15259_v30  ;;  %v8435_v44 = vpop.f32.mrf.mxu0 }
 0x531   : > { %15428 = vmatprep.subr.bf16.mxu1 %v20182_v40  ;;  %9094 = vmax.xlane.f32.xlu0 %v20186_v6  ;;  %v20219_v3 = vadd.f32 %v20207_v55, %v8921_v8  ;;  %v7806_v56 = vcombine.high %v19767_v2, %v19773_v10  ;;  %v7858_v12 = vcombine.high %v19779_v32, %v19795_v28  ;;  %v8936_v62 = vmul.f32 0.17677669, %v15258_v29  ;;  %v20239_v32 = vld [vmem:[#allocation6 + $0x20] sm:$0xff] }
 0x532   : > { %9096 = vmax.xlane.f32.xlu1 %v20194_v9  ;;  %v7874_v53 = vcombine.high %v19801_v35, %v19819_v58  ;;  %v7804_v15 = vrot.slane %v7790_v18, %v17510_v27  ;;  %v20232_v13 = vadd.f32 %v20196_v50, %v8931_v21  ;;  %v8918_v43 = vmul.f32 0.17677669, %v8432_v57  ;;  %v20252_v21 = vld [vmem:[#allocation6 + $0x28] sm:$0xff] }
 0x533   : > { %v7820_v2 = vrot.slane %v7806_v56, %v17510_v27  ;;  %v20237_v10 = vadd.f32 %v20216_v63, %v8920_v19  ;;  %v7872_v58 = vrot.slane %v7858_v12, %v17510_v27  ;;  %v7654_v29 = vcombine.high %v19849_v7, %v19857_v38 }
 0x534   : > { %23379 = vst [vmem:[#allocation110_spill] sm:$0xff] %v20232_v13  ;;  %v7888_v59 = vrot.slane %v7874_v53, %v17510_v27  ;;  %v8934_v57 = vmul.f32 0.17677669, %v8577_v20  ;;  %v20250_v30 = vadd.f32 %v20207_v55, %v8937_v31  ;;  %v8919_v8 = vmul.f32 0.17677669, %v8435_v44  ;;  %v20265_v44 = vld [vmem:[#allocation6 + $0x58] sm:$0xff] }
 0x535   : > { %9058 = vmax.xlane.f32.xlu0 %v20201_v22  ;;  %v8935_v18 = vmul.f32 0.17677669, %v8580_v60  ;;  %v7823_v40 = vcombine.low %v7804_v15, %v7820_v2  ;;  %v7668_v12 = vrot.slane %v7654_v29, %v17510_v27  ;;  %v7670_v53 = vcombine.high %v19863_v34, %v19908_v4  ;;  %v23381_v34 = vld [vmem:[#allocation42_spill] sm:$0xff] }
 0x536   : > { %9060 = vmax.xlane.f32.xlu1 %v20205_v37  ;;  %v7891_v24 = vcombine.low %v7872_v58, %v7888_v59  ;;  %v20259_v7 = vadd.f32 %v20216_v63, %v8936_v62  ;;  %v20262_v38 = vadd.f32 %v20239_v32, %v8918_v43  ;;  %v7722_v29 = vcombine.high %v19916_v48, %v19927_v42 }
 0x537   : > { %v15230_v61 = vpop.f32.mrf.mxu0  ;;  %v20228_v25 = vpop.f32.mrf.mxu1  ;;  %v7738_v4 = vcombine.high %v23381_v34, %v19939_v0  ;;  %v20275_v62 = vadd.f32 %v20239_v32, %v8934_v57  ;;  %v20278_v43 = vadd.f32 %v20252_v21, %v8919_v8  ;;  %v7824_v42 = vcombine.high %v7804_v15, %v7820_v2  ;;  %v23384_v15 = vld [vmem:[#allocation48_spill] sm:$0xff]  ;;  %v23385_v2 = vld [vmem:[#allocation45_spill] sm:$0xff] }
 0x538   : > { %v20267_v60 = vpack.c.bf16 %v7891_v24, %v7823_v40  ;;  %v7736_v40 = vrot.slane %v7722_v29, %v17510_v27  ;;  %v7892_v8 = vcombine.high %v7872_v58, %v7888_v59  ;;  %v23383_v29 = vld [vmem:[#allocation46_spill] sm:$0xff] }
 0x539   : > { %9090 = vmax.xlane.f32.xlu0 %v20214_v36  ;;  %v20241_v28 = vpop.f32.mrf.mxu0  ;;  %v20243_v35 = vpop.f32.mrf.mxu1  ;;  %23382 = vst [vmem:[#allocation112_spill] sm:$0xff] %v20278_v43  ;;  %v7752_v48 = vrot.slane %v7738_v4, %v17510_v27  ;;  %v7586_v34 = vcombine.high %v23383_v29, %v20022_v23  ;;  %v7602_v4 = vcombine.high %v23385_v2, %v23384_v15  ;;  %v23389_v23 = vld [vmem:[#allocation47_spill] sm:$0xff]  ;;  %v23392_v29 = vld [vmem:[#allocation52_spill] sm:$0xff] }
 0x53a   : > { %9072 = vmax.xlane.f32.xlu1 %v20219_v3  ;;  %23380 = vst [vmem:[#allocation113_spill] sm:$0xff] %v20267_v60  ;;  %v20303_v60 = vpack.c.bf16 %v7892_v8, %v7824_v42  ;;  %v7382_v59 = vcombine.high %v23389_v23, %v20055_v45  ;;  %v7466_v42 = vcombine.high %v20095_v14, %v20100_v1  ;;  %v23393_v14 = vld [vmem:[#allocation49_spill] sm:$0xff]  ;;  %v23395_v2 = vld [vmem:[#allocation99_spill] sm:$0xff] }
 0x53b   : > { %v15231_v19 = vpop.f32.mrf.mxu0  ;;  %v15263_v56 = vpop.f32.mrf.mxu1  ;;  %v7262_v1 = vcombine.high %v23393_v14, %v23392_v29 }
 0x53c   : > { %v8925_v20 = vmul.f32 0.17677669, %v15231_v19  ;;  %v8941_v31 = vmul.f32 0.17677669, %v15263_v56  ;;  %v20281_v19 = vadd.f32 %v20252_v21, %v8935_v18  ;;  %v20283_v56 = vmul.f32 0.17677669, %v15230_v61 }
 0x53d   : > { %9092 = vmax.xlane.f32.xlu0 %v20232_v13  ;;  %v7684_v13 = vrot.slane %v7670_v53, %v17510_v27  ;;  %v7518_v61 = vcombine.high %v19967_v5, %v19974_v47  ;;  %v7755_v18 = vcombine.low %v7736_v40, %v7752_v48  ;;  %v7534_v53 = vcombine.high %v19981_v26, %v19987_v16  ;;  %v8451_v45 = vpop.f32.mrf.mxu0 }
 0x53e   : > { %9104 = vmax.xlane.f32.xlu1 %v20250_v30  ;;  %v20290_v0 = vadd.f32 %v20265_v44, %v8925_v20  ;;  %v20293_v57 = vadd.f32 %v20265_v44, %v8941_v31  ;;  %23386 = vst [vmem:[#allocation115_spill] sm:$0xff] %v20303_v60  ;;  %v7600_v5 = vrot.slane %v7586_v34, %v17510_v27 }
 0x53f   : > { %v7687_v24 = vcombine.low %v7668_v12, %v7684_v13  ;;  %v7532_v20 = vrot.slane %v7518_v61, %v17510_v27  ;;  %v7688_v31 = vcombine.high %v7668_v12, %v7684_v13  ;;  %v7548_v47 = vrot.slane %v7534_v53, %v17510_v27  ;;  %v23390_v13 = vld [vmem:[#allocation50_spill] sm:$0xff] }
 0x540   : > { %v7616_v26 = vrot.slane %v7602_v4, %v17510_v27  ;;  %v7398_v12 = vcombine.high %v23390_v13, %v20072_v52  ;;  %v7396_v61 = vrot.slane %v7382_v59, %v17510_v27  ;;  %v23396_v4 = vld [vmem:[#allocation51_spill] sm:$0xff]  ;;  %v7276_v59 = vrot.slane %v7262_v1, %v17510_v27 }
 0x541   : > { %9070 = vmax.xlane.f32.xlu0 %v20237_v10  ;;  %v20307_v58 = vpack.c.bf16 %v7755_v18, %v7687_v24  ;;  %v7450_v24 = vcombine.high %v20087_v54, %v20092_v46  ;;  %v7552_v8 = vcombine.high %v7532_v20, %v7548_v47  ;;  %v7480_v54 = vrot.slane %v7466_v42, %v17510_v27  ;;  %v8596_v42 = vpop.f32.mrf.mxu1 }
 0x542   : > { %9068 = vmax.xlane.f32.xlu1 %v20278_v43  ;;  %v7756_v43 = vcombine.high %v7736_v40, %v7752_v48  ;;  %v7551_v40 = vcombine.low %v7532_v20, %v7548_v47  ;;  %v7619_v48 = vcombine.low %v7600_v5, %v7616_v26  ;;  %v7620_v53 = vcombine.high %v7600_v5, %v7616_v26  ;;  %v23398_v47 = vld [vmem:[#allocation109_spill] sm:$0xff] }
 0x543   : > { %23387 = vst [vmem:[#allocation114_spill] sm:$0xff] %v20307_v58  ;;  %v7464_v18 = vrot.slane %v7450_v24, %v17510_v27  ;;  %v7246_v46 = vcombine.high %v20106_v41, %v20114_v49  ;;  %v7314_v20 = vcombine.high %v23396_v4, %v23395_v2  ;;  %v20343_v49 = vld [vmem:[#allocation6 + $0x50] sm:$0xff]  ;;  %v8923_v13 = vmul.f32 0.17677669, %v8451_v45  ;;  %v20373_v4 = vld [vmem:[#allocation6 + $0x40] sm:$0xff] }
 0x544   : > { %v20313_v16 = vpack.c.bf16 %v7756_v43, %v7688_v31  ;;  %v7412_v43 = vrot.slane %v7398_v12, %v17510_v27  ;;  %v20327_v52 = vpack.c.bf16 %v7619_v48, %v7551_v40  ;;  %v20335_v15 = vpack.c.bf16 %v7620_v53, %v7552_v8  ;;  %v23397_v31 = vld [vmem:[#allocation93_spill] sm:$0xff]  ;;  %v20348_v48 = vld [vmem:[#allocation6 + $0x48] sm:$0xff] }
 0x545   : > { %9102 = vmax.xlane.f32.xlu0 %v20259_v7  ;;  %v7330_v5 = vcombine.high %v23398_v47, %v23397_v31  ;;  %v7483_v26 = vcombine.low %v7464_v18, %v7480_v54  ;;  %v7260_v23 = vrot.slane %v7246_v46, %v17510_v27  ;;  %v7328_v12 = vrot.slane %v7314_v20, %v17510_v27 }
 0x546   : > { %9100 = vmax.xlane.f32.xlu1 %v20281_v19  ;;  %23388 = vst [vmem:[#allocation117_spill] sm:$0xff] %v20313_v16  ;;  %23391 = vst [vmem:[#allocation116_spill] sm:$0xff] %v20327_v52  ;;  %v7415_v34 = vcombine.low %v7396_v61, %v7412_v43  ;;  %v7416_v41 = vcombine.high %v7396_v61, %v7412_v43  ;;  %v7484_v40 = vcombine.high %v7464_v18, %v7480_v54 }
 0x547   : > { %23394 = vst [vmem:[#allocation81_spill] sm:$0xff] %v20335_v15  ;;  %v7344_v24 = vrot.slane %v7330_v5, %v17510_v27  ;;  %v7279_v53 = vcombine.low %v7260_v23, %v7276_v59  ;;  %v7280_v46 = vcombine.high %v7260_v23, %v7276_v59  ;;  %v20357_v29 = vadd.f32 %v20343_v49, %v20283_v56  ;;  %v20389_v5 = vld [vmem:[#allocation6 + $0x70] sm:$0xff] }
 0x548   : > { %v20350_v8 = vpack.c.bf16 %v7483_v26, %v7415_v34  ;;  %v20353_v43 = vpack.c.bf16 %v7484_v40, %v7416_v41  ;;  %v8940_v18 = vmul.f32 0.17677669, %v20228_v25  ;;  %v20361_v54 = vadd.f32 %v20348_v48, %v8923_v13 }
 0x549   : > { %9066 = vmax.xlane.f32.xlu0 %v20262_v38  ;;  %v7347_v61 = vcombine.low %v7328_v12, %v7344_v24  ;;  %v7348_v45 = vcombine.high %v7328_v12, %v7344_v24  ;;  %v8939_v14 = vmul.f32 0.17677669, %v8596_v42  ;;  %v8922_v56 = vmul.f32 0.17677669, %v20241_v28 }
 0x54a   : > { %9080 = vmax.xlane.f32.xlu1 %v20290_v0  ;;  %23399 = vst [vmem:[#allocation119_spill] sm:$0xff] %v20350_v8  ;;  %23400 = vst [vmem:[#allocation118_spill] sm:$0xff] %v20353_v43  ;;  %v20370_v2 = vadd.f32 %v20343_v49, %v8940_v18  ;;  %v8938_v31 = vmul.f32 0.17677669, %v20243_v35  ;;  %v20394_v35 = vld [vmem:[#allocation6 + $0x78] sm:$0xff] }
 0x54b   : > { %v20363_v1 = vpack.c.bf16 %v7347_v61, %v7279_v53  ;;  %v20365_v34 = vpack.c.bf16 %v7348_v45, %v7280_v46  ;;  %v20376_v25 = vadd.f32 %v20348_v48, %v8939_v14  ;;  %v20381_v20 = vadd.f32 %v20373_v4, %v8922_v56  ;;  %v20403_v14 = vld [vmem:[#allocation6 + $0x60] sm:$0xff] }
 0x54c   : > { %v20386_v47 = vadd.f32 %v20373_v4, %v8938_v31 }
 0x54d   : > { %9098 = vmax.xlane.f32.xlu0 %v20275_v62  ;;  %23401 = vst [vmem:[#allocation121_spill] sm:$0xff] %v20363_v1  ;;  %23402 = vst [vmem:[#allocation120_spill] sm:$0xff] %v20365_v34 }
 0x54e   : > { %9112 = vmax.xlane.f32.xlu1 %v20293_v57 }
 0x551   : > { %9078 = vmax.xlane.f32.xlu0 %v20357_v29 }
 0x552   : > { %9076 = vmax.xlane.f32.xlu1 %v20361_v54 }
 0x555   : > { %9110 = vmax.xlane.f32.xlu0 %v20370_v2 }
 0x556   : > { %9108 = vmax.xlane.f32.xlu1 %v20376_v25 }
 0x559   : > { %9074 = vmax.xlane.f32.xlu0 %v20381_v20 }
 0x55d   : > { %9106 = vmax.xlane.f32.xlu0 %v20386_v47 }
 0x55e   : > { %v15234_v28 = vpop.f32.mrf.mxu0  ;;  %v15266_v26 = vpop.f32.mrf.mxu1 }
 0x55f   : > { %v8928_v23 = vmul.f32 0.17677669, %v15234_v28  ;;  %v8944_v12 = vmul.f32 0.17677669, %v15266_v26 }
 0x560   : > { %v8464_v59 = vpop.f32.mrf.mxu0  ;;  %v8609_v41 = vpop.f32.mrf.mxu1 }
 0x561   : > { %v20392_v13 = vadd.f32 %v20389_v5, %v8928_v23  ;;  %v20398_v46 = vadd.f32 %v20389_v5, %v8944_v12  ;;  %v8926_v61 = vmul.f32 0.17677669, %v8464_v59  ;;  %v8942_v26 = vmul.f32 0.17677669, %v8609_v41  ;;  %v20413_v12 = vld [vmem:[#allocation6 + $0x68] sm:$0xff] }
 0x562   : > { %v15235_v24 = vpop.f32.mrf.mxu0  ;;  %v15267_v40 = vpop.f32.mrf.mxu1 }
 0x563   : > { %v8929_v42 = vmul.f32 0.17677669, %v15235_v24  ;;  %9086 = vmax.xlane.f32.xlu0 %v20392_v13  ;;  %v8945_v18 = vmul.f32 0.17677669, %v15267_v40  ;;  %v20408_v28 = vadd.f32 %v20403_v14, %v8926_v61 }
 0x564   : > { %v8467_v53 = vpop.f32.mrf.mxu0  ;;  %v8612_v56 = vpop.f32.mrf.mxu1 }
 0x565   : > { %v20401_v45 = vadd.f32 %v20394_v35, %v8929_v42  ;;  %v20411_v23 = vadd.f32 %v20394_v35, %v8945_v18  ;;  %v8927_v59 = vmul.f32 0.17677669, %v8467_v53  ;;  %v20418_v42 = vadd.f32 %v20403_v14, %v8942_v26 }
 0x566   : > { %v15286_v31 = vpop.f32.mrf.mxu0  ;;  %v8943_v61 = vmul.f32 0.17677669, %v8612_v56 }
 0x567   : > { %9118 = vmax.xlane.f32.xlu0 %v20398_v46  ;;  %9088 = vmax.xlane.f32.xlu1 %v20401_v45  ;;  %v20421_v34 = vadd.f32 %v20413_v12, %v8927_v59  ;;  %v8948_v41 = vmul.f32 0.17677669, %v15286_v31 }
 0x568   : > { %v15318_v24 = vpop.f32.mrf.mxu1  ;;  %v8706_v40 = vpop.f32.mrf.mxu0  ;;  %v20426_v53 = vadd.f32 %v20413_v12, %v8943_v61 }
 0x569   : > { %v20429_v1 = vadd.f32 %v20164_v51, %v8948_v41  ;;  %v8964_v15 = vmul.f32 0.17677669, %v15318_v24  ;;  %v8946_v31 = vmul.f32 0.17677669, %v8706_v40 }
 0x56a   : > { %v8851_v43 = vpop.f32.mrf.mxu1  ;;  %v15287_v18 = vpop.f32.mrf.mxu0 }
 0x56b   : > { %9082 = vmax.xlane.f32.xlu0 %v20408_v28  ;;  %9120 = vmax.xlane.f32.xlu1 %v20411_v23  ;;  %v8949_v26 = vmul.f32 0.17677669, %v15287_v18  ;;  %v20434_v56 = vadd.f32 %v20164_v51, %v8964_v15  ;;  %v20442_v24 = vadd.f32 %v20191_v11, %v8946_v31  ;;  %v8962_v41 = vmul.f32 0.17677669, %v8851_v43 }
 0x56c   : > { %v15319_v8 = vpop.f32.mrf.mxu1  ;;  %v8709_v61 = vpop.f32.mrf.mxu0 }
 0x56d   : > { %v20437_v59 = vadd.f32 %v20169_v39, %v8949_v26  ;;  %v8965_v16 = vmul.f32 0.17677669, %v15319_v8  ;;  %v8947_v51 = vmul.f32 0.17677669, %v8709_v61  ;;  %v20450_v8 = vadd.f32 %v20191_v11, %v8962_v41 }
 0x56e   : > { %v8854_v52 = vpop.f32.mrf.mxu1 }
 0x56f   : > { %9114 = vmax.xlane.f32.xlu0 %v20418_v42  ;;  %9084 = vmax.xlane.f32.xlu1 %v20421_v34  ;;  %v20445_v18 = vadd.f32 %v20169_v39, %v8965_v16  ;;  %v20453_v26 = vadd.f32 %v20196_v50, %v8947_v51  ;;  %v8963_v31 = vmul.f32 0.17677669, %v8854_v52 }
 0x571   : > { %23403 = vst [vmem:[#allocation123_spill] sm:$0xff] %v20445_v18  ;;  %v20458_v39 = vadd.f32 %v20196_v50, %v8963_v31 }
 0x573   : > { %9116 = vmax.xlane.f32.xlu1 %v20426_v53  ;;  %9126 = vmax.xlane.f32.xlu0 %v20429_v1 }
 0x577   : > { %9158 = vmax.xlane.f32.xlu0 %v20434_v56  ;;  %9128 = vmax.xlane.f32.xlu1 %v20437_v59 }
 0x578   : > { %v15290_v15 = vpop.f32.mrf.mxu0  ;;  %v15322_v40 = vpop.f32.mrf.mxu1 }
 0x579   : > { %v8952_v58 = vmul.f32 0.17677669, %v15290_v15  ;;  %v8968_v61 = vmul.f32 0.17677669, %v15322_v40 }
 0x57a   : > { %v8722_v60 = vpop.f32.mrf.mxu0  ;;  %v8867_v43 = vpop.f32.mrf.mxu1 }
 0x57b   : > { %9122 = vmax.xlane.f32.xlu0 %v20442_v24  ;;  %9160 = vmax.xlane.f32.xlu1 %v20445_v18  ;;  %v20461_v16 = vadd.f32 %v20216_v63, %v8952_v58  ;;  %v20466_v52 = vadd.f32 %v20216_v63, %v8968_v61  ;;  %v8950_v51 = vmul.f32 0.17677669, %v8722_v60  ;;  %v8966_v58 = vmul.f32 0.17677669, %v8867_v43 }
 0x57c   : > { %v15291_v27 = vpop.f32.mrf.mxu0  ;;  %v15323_v41 = vpop.f32.mrf.mxu1 }
 0x57d   : > { %23404 = vst [vmem:[#allocation122_spill] sm:$0xff] %v20461_v16  ;;  %v8953_v11 = vmul.f32 0.17677669, %v15291_v27  ;;  %23405 = vst [vmem:[#allocation125_spill] sm:$0xff] %v20466_v52  ;;  %v8969_v18 = vmul.f32 0.17677669, %v15323_v41  ;;  %v20474_v27 = vadd.f32 %v20239_v32, %v8950_v51 }
 0x57e   : > { %v8725_v50 = vpop.f32.mrf.mxu0  ;;  %v8870_v31 = vpop.f32.mrf.mxu1 }
 0x57f   : > { %9154 = vmax.xlane.f32.xlu0 %v20450_v8  ;;  %9124 = vmax.xlane.f32.xlu1 %v20453_v26  ;;  %v20469_v15 = vadd.f32 %v20207_v55, %v8953_v11  ;;  %v20477_v40 = vadd.f32 %v20207_v55, %v8969_v18  ;;  %v8951_v63 = vmul.f32 0.17677669, %v8725_v50  ;;  %v20482_v11 = vadd.f32 %v20239_v32, %v8966_v58 }
 0x581   : > { %23406 = vst [vmem:[#allocation124_spill] sm:$0xff] %v20469_v15  ;;  %23407 = vst [vmem:[#allocation108_spill] sm:$0xff] %v20477_v40  ;;  %v20485_v41 = vadd.f32 %v20252_v21, %v8951_v63 }
 0x583   : > { %9156 = vmax.xlane.f32.xlu1 %v20458_v39  ;;  %9134 = vmax.xlane.f32.xlu0 %v20461_v16 }
 0x587   : > { %9166 = vmax.xlane.f32.xlu0 %v20466_v52  ;;  %9136 = vmax.xlane.f32.xlu1 %v20469_v15  ;;  %v8967_v52 = vmul.f32 0.17677669, %v8870_v31 }
 0x589   : > { %v20490_v55 = vadd.f32 %v20252_v21, %v8967_v52 }
 0x58a   : > { %v15294_v61 = vpop.f32.mrf.mxu0  ;;  %v15326_v60 = vpop.f32.mrf.mxu1 }
 0x58b   : > { %9130 = vmax.xlane.f32.xlu0 %v20474_v27  ;;  %9168 = vmax.xlane.f32.xlu1 %v20477_v40  ;;  %v8956_v51 = vmul.f32 0.17677669, %v15294_v61  ;;  %v8972_v32 = vmul.f32 0.17677669, %v15326_v60 }
 0x58c   : > { %v8738_v15 = vpop.f32.mrf.mxu0  ;;  %v8883_v43 = vpop.f32.mrf.mxu1 }
 0x58d   : > { %v20493_v18 = vadd.f32 %v20343_v49, %v8956_v51  ;;  %v20498_v31 = vadd.f32 %v20343_v49, %v8972_v32  ;;  %v8954_v63 = vmul.f32 0.17677669, %v8738_v15  ;;  %v8970_v52 = vmul.f32 0.17677669, %v8883_v43 }
 0x58e   : > { %v15295_v16 = vpop.f32.mrf.mxu0  ;;  %v15327_v58 = vpop.f32.mrf.mxu1 }
 0x58f   : > { %9162 = vmax.xlane.f32.xlu0 %v20482_v11  ;;  %9132 = vmax.xlane.f32.xlu1 %v20485_v41  ;;  %v8957_v50 = vmul.f32 0.17677669, %v15295_v16  ;;  %23408 = vst [vmem:[#allocation82_spill] sm:$0xff] %v20498_v31  ;;  %v8973_v40 = vmul.f32 0.17677669, %v15327_v58  ;;  %v20506_v16 = vadd.f32 %v20373_v4, %v8954_v63  ;;  %v20514_v15 = vadd.f32 %v20373_v4, %v8970_v52 }
 0x590   : > { %v8741_v21 = vpop.f32.mrf.mxu0  ;;  %v8886_v49 = vpop.f32.mrf.mxu1 }
 0x591   : > { %v20501_v61 = vadd.f32 %v20265_v44, %v8957_v50  ;;  %v20509_v60 = vadd.f32 %v20265_v44, %v8973_v40  ;;  %v8955_v51 = vmul.f32 0.17677669, %v8741_v21  ;;  %v8971_v50 = vmul.f32 0.17677669, %v8886_v49 }
 0x593   : > { %9164 = vmax.xlane.f32.xlu1 %v20490_v55  ;;  %9142 = vmax.xlane.f32.xlu0 %v20493_v18  ;;  %23409 = vst [vmem:[#allocation31_spill] sm:$0xff] %v20509_v60  ;;  %v20517_v32 = vadd.f32 %v20348_v48, %v8955_v51  ;;  %v20522_v44 = vadd.f32 %v20348_v48, %v8971_v50 }
 0x595   : > { %23410 = vst [vmem:[#allocation30_spill] sm:$0xff] %v20522_v44 }
 0x597   : > { %9174 = vmax.xlane.f32.xlu0 %v20498_v31  ;;  %9144 = vmax.xlane.f32.xlu1 %v20501_v61 }
 0x59b   : > { %9138 = vmax.xlane.f32.xlu0 %v20506_v16  ;;  %9176 = vmax.xlane.f32.xlu1 %v20509_v60 }
 0x59f   : > { %9140 = vmax.xlane.f32.xlu1 %v20517_v32  ;;  %9170 = vmax.xlane.f32.xlu0 %v20514_v15 }
 0x5a1   : > { %v15298_v40 = vpop.f32.mrf.mxu0  ;;  %v15330_v43 = vpop.f32.mrf.mxu1 }
 0x5a2   : > { %v8960_v58 = vmul.f32 0.17677669, %v15298_v40  ;;  %v8976_v52 = vmul.f32 0.17677669, %v15330_v43 }
 0x5a3   : > { %9172 = vmax.xlane.f32.xlu1 %v20522_v44  ;;  %v8754_v63 = vpop.f32.mrf.mxu0  ;;  %v8899_v21 = vpop.f32.mrf.mxu1 }
 0x5a4   : > { %v20526_v4 = vadd.f32 %v20389_v5, %v8960_v58  ;;  %v20530_v31 = vadd.f32 %v20389_v5, %v8976_v52  ;;  %v8958_v48 = vmul.f32 0.17677669, %v8754_v63  ;;  %v8974_v58 = vmul.f32 0.17677669, %v8899_v21 }
 0x5a5   : > { %v15299_v51 = vpop.f32.mrf.mxu0  ;;  %v15331_v49 = vpop.f32.mrf.mxu1 }
 0x5a6   : > { %23411 = vst [vmem:[#allocation61_spill] sm:$0xff] %v20526_v4  ;;  %v8961_v60 = vmul.f32 0.17677669, %v15299_v51  ;;  %9150 = vmax.xlane.f32.xlu0 %v20526_v4  ;;  %23412 = vst [vmem:[#allocation60_spill] sm:$0xff] %v20530_v31  ;;  %v8977_v40 = vmul.f32 0.17677669, %v15331_v49  ;;  %v20538_v43 = vadd.f32 %v20403_v14, %v8958_v48  ;;  %v20546_v63 = vadd.f32 %v20403_v14, %v8974_v58 }
 0x5a7   : > { %v8757_v44 = vpop.f32.mrf.mxu0  ;;  %v8902_v5 = vpop.f32.mrf.mxu1 }
 0x5a8   : > { %v20533_v50 = vadd.f32 %v20394_v35, %v8961_v60  ;;  %v20541_v51 = vadd.f32 %v20394_v35, %v8977_v40  ;;  %v8959_v4 = vmul.f32 0.17677669, %v8757_v44  ;;  %v8975_v49 = vmul.f32 0.17677669, %v8902_v5 }
 0x5aa   : > { %9152 = vmax.xlane.f32.xlu1 %v20533_v50  ;;  %9182 = vmax.xlane.f32.xlu0 %v20530_v31  ;;  %23413 = vst [vmem:[#allocation56_spill] sm:$0xff] %v20541_v51  ;;  %v20549_v52 = vadd.f32 %v20413_v12, %v8959_v4  ;;  %v20556_v40 = vadd.f32 %v20413_v12, %v8975_v49 }
 0x5ae   : > { %9184 = vmax.xlane.f32.xlu1 %v20541_v51  ;;  %9146 = vmax.xlane.f32.xlu0 %v20538_v43 }
 0x5b2   : > { %9148 = vmax.xlane.f32.xlu1 %v20549_v52  ;;  %9178 = vmax.xlane.f32.xlu0 %v20546_v63 }
 0x5b6   : > { %v9063_v60 = vpop.xlane.xlu0 %9062  ;;  %9180 = vmax.xlane.f32.xlu0 %v20556_v40 }
 0x5b7   : > { %v9188_v48 = vsub.f32 %v20173_v33, %v9063_v60  ;;  %v9065_v21 = vpop.xlane.xlu1 %9064 }
 0x5b8   : > { %v9189_v44 = vsub.f32 %v20177_v17, %v9065_v21 }
 0x5b9   : > { %v9254_v35 = vmul.f32 1.442695, %v9188_v48 }
 0x5ba   : > { %v9256_v14 = vmul.f32 1.442695, %v9189_v44  ;;  %v9095_v58 = vpop.xlane.xlu0 %9094 }
 0x5bb   : > { %16027 = vpow2.f32 %v9254_v35  ;;  %v9204_v4 = vsub.f32 %v20186_v6, %v9095_v58  ;;  %v9097_v51 = vpop.xlane.xlu1 %9096 }
 0x5bc   : > { %16029 = vpow2.f32 %v9256_v14  ;;  %v9205_v33 = vsub.f32 %v20194_v9, %v9097_v51 }
 0x5bd   : > { %v9286_v5 = vmul.f32 1.442695, %v9204_v4 }
 0x5be   : > { %v9288_v60 = vmul.f32 1.442695, %v9205_v33  ;;  %v9059_v31 = vpop.xlane.xlu0 %9058 }
 0x5bf   : > { %16031 = vpow2.f32 %v9286_v5  ;;  %v9186_v17 = vsub.f32 %v20201_v22, %v9059_v31  ;;  %v9061_v48 = vpop.xlane.xlu1 %9060  ;;  %v23414_v22 = vld [vmem:[#allocation110_spill] sm:$0xff] }
 0x5c0   : > { %16033 = vpow2.f32 %v9288_v60  ;;  %v9187_v12 = vsub.f32 %v20205_v37, %v9061_v48 }
 0x5c1   : > { %v9250_v49 = vmul.f32 1.442695, %v9186_v17 }
 0x5c2   : > { %v9252_v21 = vmul.f32 1.442695, %v9187_v12  ;;  %v9091_v35 = vpop.xlane.xlu0 %9090 }
 0x5c3   : > { %16035 = vpow2.f32 %v9250_v49  ;;  %v9202_v6 = vsub.f32 %v20214_v36, %v9091_v35  ;;  %v9073_v44 = vpop.xlane.xlu1 %9072  ;;  %v23415_v49 = vld [vmem:[#allocation112_spill] sm:$0xff] }
 0x5c4   : > { %16037 = vpow2.f32 %v9252_v21  ;;  %v9193_v9 = vsub.f32 %v20219_v3, %v9073_v44 }
 0x5c5   : > { %v9282_v51 = vmul.f32 1.442695, %v9202_v6 }
 0x5c6   : > { %v9264_v14 = vmul.f32 1.442695, %v9193_v9  ;;  %v9093_v58 = vpop.xlane.xlu0 %9092 }
 0x5c7   : > { %16039 = vpow2.f32 %v9282_v51  ;;  %v9203_v31 = vsub.f32 %v23414_v22, %v9093_v58  ;;  %v9105_v33 = vpop.xlane.xlu1 %9104 }
 0x5c8   : > { %v20565_v4 = vpop.eup %16027  ;;  %16041 = vpow2.f32 %v9264_v14  ;;  %v9209_v37 = vsub.f32 %v20250_v30, %v9105_v33 }
 0x5c9   : > { %9382 = vadd.xlane.f32.xlu0 %v20565_v4  ;;  %v20570_v5 = vpop.eup %16029  ;;  %v9284_v36 = vmul.f32 1.442695, %v9203_v31 }
 0x5ca   : > { %v9296_v60 = vmul.f32 1.442695, %v9209_v37  ;;  %v9071_v17 = vpop.xlane.xlu0 %9070  ;;  %9384 = vadd.xlane.f32.xlu1 %v20570_v5 }
 0x5cb   : > { %16043 = vpow2.f32 %v9284_v36  ;;  %v9192_v3 = vsub.f32 %v20237_v10, %v9071_v17  ;;  %v9069_v48 = vpop.xlane.xlu1 %9068 }
 0x5cc   : > { %v20574_v12 = vpop.eup %16031  ;;  %16045 = vpow2.f32 %v9296_v60  ;;  %v9191_v21 = vsub.f32 %v23415_v49, %v9069_v48 }
 0x5cd   : > { %v20577_v35 = vpop.eup %16033  ;;  %v9262_v6 = vmul.f32 1.442695, %v9192_v3  ;;  %9414 = vadd.xlane.f32.xlu0 %v20574_v12 }
 0x5ce   : > { %v9260_v30 = vmul.f32 1.442695, %v9191_v21  ;;  %v9103_v44 = vpop.xlane.xlu0 %9102  ;;  %9416 = vadd.xlane.f32.xlu1 %v20577_v35 }
 0x5cf   : > { %16047 = vpow2.f32 %v9262_v6  ;;  %v9208_v9 = vsub.f32 %v20259_v7, %v9103_v44  ;;  %v9101_v51 = vpop.xlane.xlu1 %9100 }
 0x5d0   : > { %v20582_v10 = vpop.eup %16035  ;;  %16049 = vpow2.f32 %v9260_v30  ;;  %v9207_v48 = vsub.f32 %v20281_v19, %v9101_v51 }
 0x5d1   : > { %v20584_v14 = vpop.eup %16037  ;;  %v9294_v58 = vmul.f32 1.442695, %v9208_v9  ;;  %9378 = vadd.xlane.f32.xlu0 %v20582_v10 }
 0x5d2   : > { %v9067_v22 = vpop.xlane.xlu0 %9066  ;;  %9380 = vadd.xlane.f32.xlu1 %v20584_v14 }
 0x5d3   : > { %16051 = vpow2.f32 %v9294_v58  ;;  %v9190_v31 = vsub.f32 %v20262_v38, %v9067_v22  ;;  %v9081_v33 = vpop.xlane.xlu1 %9080  ;;  %v9292_v58 = vmul.f32 1.442695, %v9207_v48 }
 0x5d4   : > { %v20589_v37 = vpop.eup %16039  ;;  %v9197_v7 = vsub.f32 %v20290_v0, %v9081_v33 }
 0x5d5   : > { %v20592_v36 = vpop.eup %16041  ;;  %v9258_v60 = vmul.f32 1.442695, %v9190_v31  ;;  %9410 = vadd.xlane.f32.xlu0 %v20589_v37 }
 0x5d6   : > { %v9099_v17 = vpop.xlane.xlu0 %9098  ;;  %9392 = vadd.xlane.f32.xlu1 %v20592_v36  ;;  %v9272_v3 = vmul.f32 1.442695, %v9197_v7 }
 0x5d7   : > { %16053 = vpow2.f32 %v9258_v60  ;;  %v9206_v49 = vsub.f32 %v20275_v62, %v9099_v17  ;;  %v9113_v38 = vpop.xlane.xlu1 %9112 }
 0x5d8   : > { %v20598_v21 = vpop.eup %16043  ;;  %16055 = vpow2.f32 %v9272_v3  ;;  %v9213_v0 = vsub.f32 %v20293_v57, %v9113_v38 }
 0x5d9   : > { %v20601_v6 = vpop.eup %16045  ;;  %v9290_v30 = vmul.f32 1.442695, %v9206_v49  ;;  %9412 = vadd.xlane.f32.xlu0 %v20598_v21 }
 0x5da   : > { %v9079_v44 = vpop.xlane.xlu0 %9078  ;;  %9424 = vadd.xlane.f32.xlu1 %v20601_v6  ;;  %v9304_v9 = vmul.f32 1.442695, %v9213_v0 }
 0x5db   : > { %16057 = vpow2.f32 %v9290_v30  ;;  %v9196_v19 = vsub.f32 %v20357_v29, %v9079_v44  ;;  %v9077_v62 = vpop.xlane.xlu1 %9076 }
 0x5dc   : > { %v20606_v51 = vpop.eup %16047  ;;  %16059 = vpow2.f32 %v9304_v9  ;;  %v9195_v22 = vsub.f32 %v20361_v54, %v9077_v62 }
 0x5dd   : > { %v20609_v57 = vpop.eup %16049  ;;  %9390 = vadd.xlane.f32.xlu0 %v20606_v51  ;;  %16061 = vpow2.f32 %v9292_v58  ;;  %v9270_v7 = vmul.f32 1.442695, %v9196_v19 }
 0x5de   : > { %v9111_v31 = vpop.xlane.xlu0 %9110  ;;  %9388 = vadd.xlane.f32.xlu1 %v20609_v57  ;;  %v9268_v33 = vmul.f32 1.442695, %v9195_v22 }
 0x5df   : > { %v9212_v60 = vsub.f32 %v20370_v2, %v9111_v31  ;;  %v9109_v17 = vpop.xlane.xlu1 %9108 }
 0x5e0   : > { %v20614_v29 = vpop.eup %16051  ;;  %16063 = vpow2.f32 %v9268_v33  ;;  %v9211_v3 = vsub.f32 %v20376_v25, %v9109_v17 }
 0x5e1   : > { %9422 = vadd.xlane.f32.xlu0 %v20614_v29  ;;  %16065 = vpow2.f32 %v9270_v7  ;;  %v9302_v49 = vmul.f32 1.442695, %v9212_v60 }
 0x5e2   : > { %v9075_v54 = vpop.xlane.xlu0 %9074  ;;  %v9300_v48 = vmul.f32 1.442695, %v9211_v3 }
 0x5e3   : > { %v9194_v38 = vsub.f32 %v20381_v20, %v9075_v54 }
 0x5e4   : > { %v20619_v0 = vpop.eup %16053  ;;  %16067 = vpow2.f32 %v9300_v48 }
 0x5e5   : > { %v20621_v30 = vpop.eup %16055  ;;  %9386 = vadd.xlane.f32.xlu0 %v20619_v0  ;;  %16069 = vpow2.f32 %v9302_v49  ;;  %v9266_v25 = vmul.f32 1.442695, %v9194_v38 }
 0x5e6   : > { %v9107_v2 = vpop.xlane.xlu0 %9106  ;;  %9400 = vadd.xlane.f32.xlu1 %v20621_v30 }
 0x5e7   : > { %v9210_v44 = vsub.f32 %v20386_v47, %v9107_v2  ;;  %16071 = vpow2.f32 %v9266_v25 }
 0x5e8   : > { %v20626_v9 = vpop.eup %16057 }
 0x5e9   : > { %v20628_v58 = vpop.eup %16059  ;;  %9418 = vadd.xlane.f32.xlu0 %v20626_v9  ;;  %v9298_v20 = vmul.f32 1.442695, %v9210_v44 }
 0x5ea   : > { %9432 = vadd.xlane.f32.xlu1 %v20628_v58  ;;  %v20632_v19 = vpop.eup %16061 }
 0x5eb   : > { %16073 = vpow2.f32 %v9298_v20 }
 0x5ec   : > { %v9087_v31 = vpop.xlane.xlu0 %9086 }
 0x5ed   : > { %v20634_v62 = vpop.eup %16063  ;;  %9420 = vadd.xlane.f32.xlu0 %v20632_v19  ;;  %v9200_v33 = vsub.f32 %v20392_v13, %v9087_v31 }
 0x5ee   : > { %9396 = vadd.xlane.f32.xlu1 %v20634_v62  ;;  %v20638_v47 = vpop.eup %16065 }
 0x5ef   : > { %v9278_v60 = vmul.f32 1.442695, %v9200_v33 }
 0x5f0   : > { %v9089_v17 = vpop.xlane.xlu1 %9088  ;;  %v9119_v3 = vpop.xlane.xlu0 %9118 }
 0x5f1   : > { %v20640_v22 = vpop.eup %16067  ;;  %9398 = vadd.xlane.f32.xlu0 %v20638_v47  ;;  %16075 = vpow2.f32 %v9278_v60  ;;  %v9201_v54 = vsub.f32 %v20401_v45, %v9089_v17  ;;  %v9216_v48 = vsub.f32 %v20398_v46, %v9119_v3 }
 0x5f2   : > { %9428 = vadd.xlane.f32.xlu1 %v20640_v22  ;;  %v20645_v7 = vpop.eup %16069 }
 0x5f3   : > { %v9280_v38 = vmul.f32 1.442695, %v9201_v54  ;;  %v9310_v2 = vmul.f32 1.442695, %v9216_v48 }
 0x5f4   : > { %v20650_v49 = vpop.eup %16071  ;;  %v9121_v25 = vpop.xlane.xlu1 %9120 }
 0x5f5   : > { %9430 = vadd.xlane.f32.xlu0 %v20645_v7  ;;  %v9083_v13 = vpop.xlane.xlu0 %9082  ;;  %16077 = vpow2.f32 %v9280_v38  ;;  %v9217_v44 = vsub.f32 %v20411_v23, %v9121_v25 }
 0x5f6   : > { %v9198_v20 = vsub.f32 %v20408_v28, %v9083_v13  ;;  %16079 = vpow2.f32 %v9310_v2 }
 0x5f7   : > { %v9312_v33 = vmul.f32 1.442695, %v9217_v44 }
 0x5f8   : > { %v20655_v31 = vpop.eup %16073  ;;  %v9274_v45 = vmul.f32 1.442695, %v9198_v20  ;;  %v9085_v60 = vpop.xlane.xlu1 %9084 }
 0x5f9   : > { %9394 = vadd.xlane.f32.xlu0 %v20650_v49  ;;  %v9115_v46 = vpop.xlane.xlu0 %9114  ;;  %16081 = vpow2.f32 %v9312_v33  ;;  %v9199_v17 = vsub.f32 %v20421_v34, %v9085_v60 }
 0x5fa   : > { %v9214_v3 = vsub.f32 %v20418_v42, %v9115_v46  ;;  %16083 = vpow2.f32 %v9274_v45 }
 0x5fb   : > { %v9276_v54 = vmul.f32 1.442695, %v9199_v17 }
 0x5fc   : > { %v9306_v48 = vmul.f32 1.442695, %v9214_v3  ;;  %v9117_v23 = vpop.xlane.xlu1 %9116 }
 0x5fd   : > { %9426 = vadd.xlane.f32.xlu0 %v20655_v31  ;;  %v9127_v38 = vpop.xlane.xlu0 %9126  ;;  %16085 = vpow2.f32 %v9276_v54  ;;  %v9215_v28 = vsub.f32 %v20426_v53, %v9117_v23 }
 0x5fe   : > { %v9220_v2 = vsub.f32 %v20429_v1, %v9127_v38  ;;  %v20662_v25 = vpop.eup %16075  ;;  %16087 = vpow2.f32 %v9306_v48 }
 0x5ff   : > { %v9308_v13 = vmul.f32 1.442695, %v9215_v28 }
 0x600   : > { %v9318_v44 = vmul.f32 1.442695, %v9220_v2  ;;  %v9129_v34 = vpop.xlane.xlu1 %9128 }
 0x601   : > { %9406 = vadd.xlane.f32.xlu0 %v20662_v25  ;;  %v9159_v20 = vpop.xlane.xlu0 %9158  ;;  %16089 = vpow2.f32 %v9308_v13  ;;  %v9221_v42 = vsub.f32 %v20437_v59, %v9129_v34 }
 0x602   : > { %v20666_v33 = vpop.eup %16077  ;;  %16091 = vpow2.f32 %v9318_v44  ;;  %v9236_v2 = vsub.f32 %v20434_v56, %v9159_v20  ;;  %v23417_v56 = vld [vmem:[#allocation122_spill] sm:$0xff] }
 0x603   : > { %v20668_v45 = vpop.eup %16079  ;;  %v9320_v53 = vmul.f32 1.442695, %v9221_v42  ;;  %9408 = vadd.xlane.f32.xlu1 %v20666_v33 }
 0x604   : > { %v9161_v1 = vpop.xlane.xlu1 %9160 }
 0x605   : > { %9438 = vadd.xlane.f32.xlu0 %v20668_v45  ;;  %v9123_v60 = vpop.xlane.xlu0 %9122  ;;  %16093 = vpow2.f32 %v9320_v53  ;;  %v23416_v53 = vld [vmem:[#allocation123_spill] sm:$0xff] }
 0x606   : > { %v9218_v46 = vsub.f32 %v20442_v24, %v9123_v60  ;;  %v20673_v17 = vpop.eup %16081  ;;  %v9237_v60 = vsub.f32 %v23416_v53, %v9161_v1  ;;  %v23419_v1 = vld [vmem:[#allocation124_spill] sm:$0xff] }
 0x607   : > { %v20675_v3 = vpop.eup %16083  ;;  %9440 = vadd.xlane.f32.xlu1 %v20673_v17 }
 0x608   : > { %v9314_v59 = vmul.f32 1.442695, %v9218_v46  ;;  %v9125_v54 = vpop.xlane.xlu1 %9124  ;;  %v9350_v46 = vmul.f32 1.442695, %v9236_v2 }
 0x609   : > { %9402 = vadd.xlane.f32.xlu0 %v20675_v3  ;;  %v9155_v48 = vpop.xlane.xlu0 %9154  ;;  %v9219_v23 = vsub.f32 %v20453_v26, %v9125_v54 }
 0x60a   : > { %v9234_v38 = vsub.f32 %v20450_v8, %v9155_v48  ;;  %v20681_v28 = vpop.eup %16085  ;;  %16095 = vpow2.f32 %v9314_v59 }
 0x60b   : > { %v20684_v24 = vpop.eup %16087  ;;  %v9316_v13 = vmul.f32 1.442695, %v9219_v23  ;;  %9404 = vadd.xlane.f32.xlu1 %v20681_v28 }
 0x60c   : > { %v9346_v44 = vmul.f32 1.442695, %v9234_v38  ;;  %v9157_v34 = vpop.xlane.xlu1 %9156  ;;  %v9352_v38 = vmul.f32 1.442695, %v9237_v60 }
 0x60d   : > { %9434 = vadd.xlane.f32.xlu0 %v20684_v24  ;;  %v9135_v42 = vpop.xlane.xlu0 %9134  ;;  %16097 = vpow2.f32 %v9316_v13  ;;  %v9235_v8 = vsub.f32 %v20458_v39, %v9157_v34 }
 0x60e   : > { %v20690_v26 = vpop.eup %16089  ;;  %16099 = vpow2.f32 %v9346_v44  ;;  %v9224_v20 = vsub.f32 %v23417_v56, %v9135_v42 }
 0x60f   : > { %v20693_v59 = vpop.eup %16091  ;;  %v9348_v54 = vmul.f32 1.442695, %v9235_v8  ;;  %9436 = vadd.xlane.f32.xlu1 %v20690_v26 }
 0x610   : > { %23418 = vst [vmem:[#allocation59_spill] sm:$0xff] %v20693_v59  ;;  %v9137_v48 = vpop.xlane.xlu1 %9136  ;;  %v9326_v2 = vmul.f32 1.442695, %v9224_v20 }
 0x611   : > { %9446 = vadd.xlane.f32.xlu0 %v20693_v59  ;;  %v9167_v23 = vpop.xlane.xlu0 %9166  ;;  %16101 = vpow2.f32 %v9348_v54  ;;  %v9225_v13 = vsub.f32 %v23419_v1, %v9137_v48  ;;  %v23420_v1 = vld [vmem:[#allocation125_spill] sm:$0xff] }
 0x612   : > { %v20698_v39 = vpop.eup %16093  ;;  %16103 = vpow2.f32 %v9350_v46 }
 0x613   : > { %9448 = vadd.xlane.f32.xlu1 %v20698_v39  ;;  %16105 = vpow2.f32 %v9352_v38  ;;  %v9328_v42 = vmul.f32 1.442695, %v9225_v13  ;;  %v9240_v38 = vsub.f32 %v23420_v1, %v9167_v23 }
 0x614   : > { %v9169_v44 = vpop.xlane.xlu1 %9168  ;;  %16107 = vpow2.f32 %v9326_v2 }
 0x615   : > { %v9131_v34 = vpop.xlane.xlu0 %9130  ;;  %16109 = vpow2.f32 %v9328_v42  ;;  %v23422_v42 = vld [vmem:[#allocation108_spill] sm:$0xff] }
 0x616   : > { %v9222_v53 = vsub.f32 %v20474_v27, %v9131_v34  ;;  %v9241_v59 = vsub.f32 %v23422_v42, %v9169_v44 }
 0x617   : > { %v20702_v8 = vpop.eup %16095 }
 0x618   : > { %v9322_v56 = vmul.f32 1.442695, %v9222_v53  ;;  %9442 = vadd.xlane.f32.xlu0 %v20702_v8  ;;  %v9133_v60 = vpop.xlane.xlu1 %9132  ;;  %v9360_v1 = vmul.f32 1.442695, %v9241_v59 }
 0x619   : > { %v9163_v54 = vpop.xlane.xlu0 %9162  ;;  %v9223_v46 = vsub.f32 %v20485_v41, %v9133_v60  ;;  %v9358_v60 = vmul.f32 1.442695, %v9240_v38 }
 0x61a   : > { %v9238_v20 = vsub.f32 %v20482_v11, %v9163_v54  ;;  %v20707_v48 = vpop.eup %16097  ;;  %16111 = vpow2.f32 %v9322_v56 }
 0x61b   : > { %v20710_v13 = vpop.eup %16099  ;;  %v9324_v27 = vmul.f32 1.442695, %v9223_v46  ;;  %9444 = vadd.xlane.f32.xlu1 %v20707_v48 }
 0x61c   : > { %23421 = vst [vmem:[#allocation54_spill] sm:$0xff] %v20710_v13  ;;  %v9354_v2 = vmul.f32 1.442695, %v9238_v20  ;;  %9474 = vadd.xlane.f32.xlu0 %v20710_v13  ;;  %v9165_v34 = vpop.xlane.xlu1 %9164 }
 0x61d   : > { %v9143_v53 = vpop.xlane.xlu0 %9142  ;;  %16113 = vpow2.f32 %v9324_v27  ;;  %v9239_v11 = vsub.f32 %v20490_v55, %v9165_v34 }
 0x61e   : > { %v20716_v41 = vpop.eup %16101  ;;  %16115 = vpow2.f32 %v9354_v2  ;;  %v9228_v23 = vsub.f32 %v20493_v18, %v9143_v53 }
 0x61f   : > { %23423 = vst [vmem:[#allocation55_spill] sm:$0xff] %v20716_v41  ;;  %v20719_v56 = vpop.eup %16103  ;;  %v9356_v54 = vmul.f32 1.442695, %v9239_v11  ;;  %9476 = vadd.xlane.f32.xlu1 %v20716_v41 }
 0x620   : > { %23424 = vst [vmem:[#allocation91_spill] sm:$0xff] %v20719_v56  ;;  %9478 = vadd.xlane.f32.xlu0 %v20719_v56  ;;  %v9145_v46 = vpop.xlane.xlu1 %9144  ;;  %v20724_v55 = vpop.eup %16105  ;;  %v9334_v38 = vmul.f32 1.442695, %v9228_v23  ;;  %v23472_v56 = vld [vmem:[#allocation63_spill] sm:$0xff] }
 0x621   : > { %v9175_v20 = vpop.xlane.xlu0 %9174  ;;  %16117 = vpow2.f32 %v9356_v54  ;;  %v9229_v44 = vsub.f32 %v20501_v61, %v9145_v46  ;;  %23425 = vst [vmem:[#allocation32_spill] sm:$0xff] %v20724_v55  ;;  %v20726_v27 = vpop.eup %16107 }
 0x622   : > { %16119 = vpow2.f32 %v9358_v60  ;;  %23426 = vst [vmem:[#allocation107_spill] sm:$0xff] %v20726_v27  ;;  %v20731_v59 = vpop.eup %16109 }
 0x623   : > { %9480 = vadd.xlane.f32.xlu1 %v20724_v55  ;;  %16121 = vpow2.f32 %v9360_v1  ;;  %v9336_v34 = vmul.f32 1.442695, %v9229_v44  ;;  %23427 = vst [vmem:[#allocation33_spill] sm:$0xff] %v20731_v59 }
 0x624   : > { %9454 = vadd.xlane.f32.xlu0 %v20726_v27  ;;  %v9177_v18 = vpop.xlane.xlu1 %9176  ;;  %16123 = vpow2.f32 %v9334_v38  ;;  %v23432_v27 = vld [vmem:[#allocation31_spill] sm:$0xff] }
 0x625   : > { %v9139_v2 = vpop.xlane.xlu0 %9138  ;;  %16125 = vpow2.f32 %v9336_v34  ;;  %v9245_v34 = vsub.f32 %v23432_v27, %v9177_v18 }
 0x626   : > { %v9226_v53 = vsub.f32 %v20506_v16, %v9139_v2  ;;  %v23430_v16 = vld [vmem:[#allocation82_spill] sm:$0xff] }
 0x627   : > { %v20733_v61 = vpop.eup %16111  ;;  %9456 = vadd.xlane.f32.xlu1 %v20731_v59  ;;  %v9244_v1 = vsub.f32 %v23430_v16, %v9175_v20  ;;  %v23436_v16 = vld [vmem:[#allocation61_spill] sm:$0xff]  ;;  %v23470_v59 = vld [vmem:[#allocation40_spill] sm:$0xff] }
 0x628   : > { %23428 = vst [vmem:[#allocation35_spill] sm:$0xff] %v20733_v61  ;;  %v9330_v42 = vmul.f32 1.442695, %v9226_v53  ;;  %9450 = vadd.xlane.f32.xlu0 %v20733_v61  ;;  %v9141_v11 = vpop.xlane.xlu1 %9140  ;;  %v23469_v61 = vld [vmem:[#allocation41_spill] sm:$0xff] }
 0x629   : > { %v9171_v60 = vpop.xlane.xlu0 %9170  ;;  %v9227_v23 = vsub.f32 %v20517_v32, %v9141_v11  ;;  %v23433_v32 = vld [vmem:[#allocation30_spill] sm:$0xff] }
 0x62a   : > { %v9242_v54 = vsub.f32 %v20514_v15, %v9171_v60  ;;  %v20739_v46 = vpop.eup %16113  ;;  %16127 = vpow2.f32 %v9330_v42  ;;  %v9366_v60 = vmul.f32 1.442695, %v9244_v1 }
 0x62b   : > { %23429 = vst [vmem:[#allocation34_spill] sm:$0xff] %v20739_v46  ;;  %v20742_v44 = vpop.eup %16115  ;;  %v9332_v38 = vmul.f32 1.442695, %v9227_v23  ;;  %9452 = vadd.xlane.f32.xlu1 %v20739_v46  ;;  %v23468_v46 = vld [vmem:[#allocation68_spill] sm:$0xff] }
 0x62c   : > { %23431 = vst [vmem:[#allocation100_spill] sm:$0xff] %v20742_v44  ;;  %v9362_v2 = vmul.f32 1.442695, %v9242_v54  ;;  %9482 = vadd.xlane.f32.xlu0 %v20742_v44  ;;  %v9173_v53 = vpop.xlane.xlu1 %9172  ;;  %v9368_v54 = vmul.f32 1.442695, %v9245_v34 }
 0x62d   : > { %16129 = vpow2.f32 %v9332_v38  ;;  %v9243_v11 = vsub.f32 %v23433_v32, %v9173_v53 }
 0x62e   : > { %v20748_v15 = vpop.eup %16117  ;;  %16131 = vpow2.f32 %v9362_v2 }
 0x62f   : > { %23434 = vst [vmem:[#allocation101_spill] sm:$0xff] %v20748_v15  ;;  %v20750_v20 = vpop.eup %16119  ;;  %v9364_v42 = vmul.f32 1.442695, %v9243_v11  ;;  %9484 = vadd.xlane.f32.xlu1 %v20748_v15  ;;  %v9151_v23 = vpop.xlane.xlu0 %9150  ;;  %v23466_v15 = vld [vmem:[#allocation65_spill] sm:$0xff] }
 0x630   : > { %23435 = vst [vmem:[#allocation102_spill] sm:$0xff] %v20750_v20  ;;  %9486 = vadd.xlane.f32.xlu0 %v20750_v20  ;;  %v9232_v44 = vsub.f32 %v23436_v16, %v9151_v23  ;;  %v20755_v27 = vpop.eup %16121  ;;  %v23465_v20 = vld [vmem:[#allocation64_spill] sm:$0xff] }
 0x631   : > { %16133 = vpow2.f32 %v9364_v42  ;;  %23437 = vst [vmem:[#allocation104_spill] sm:$0xff] %v20755_v27  ;;  %v20757_v18 = vpop.eup %16123 }
 0x632   : > { %16135 = vpow2.f32 %v9366_v60  ;;  %23438 = vst [vmem:[#allocation105_spill] sm:$0xff] %v20757_v18  ;;  %v9342_v38 = vmul.f32 1.442695, %v9232_v44  ;;  %v20762_v32 = vpop.eup %16125 }
 0x633   : > { %9488 = vadd.xlane.f32.xlu1 %v20755_v27  ;;  %v9153_v1 = vpop.xlane.xlu1 %9152  ;;  %v9183_v2 = vpop.xlane.xlu0 %9182  ;;  %16137 = vpow2.f32 %v9368_v54  ;;  %23439 = vst [vmem:[#allocation106_spill] sm:$0xff] %v20762_v32 }
 0x634   : > { %9462 = vadd.xlane.f32.xlu0 %v20757_v18  ;;  %v9233_v53 = vsub.f32 %v20533_v50, %v9153_v1  ;;  %16139 = vpow2.f32 %v9342_v38 }
 0x636   : > { %v9344_v11 = vmul.f32 1.442695, %v9233_v53 }
 0x637   : > { %v20764_v34 = vpop.eup %16127  ;;  %9464 = vadd.xlane.f32.xlu1 %v20762_v32  ;;  %v9185_v60 = vpop.xlane.xlu1 %9184 }
 0x638   : > { %23440 = vst [vmem:[#allocation37_spill] sm:$0xff] %v20764_v34  ;;  %v9147_v42 = vpop.xlane.xlu0 %9146  ;;  %9458 = vadd.xlane.f32.xlu0 %v20764_v34  ;;  %16141 = vpow2.f32 %v9344_v11  ;;  %v23444_v11 = vld [vmem:[#allocation60_spill] sm:$0xff] }
 0x639   : > { %v9230_v44 = vsub.f32 %v20538_v43, %v9147_v42  ;;  %v9248_v34 = vsub.f32 %v23444_v11, %v9183_v2 }
 0x63a   : > { %v20769_v23 = vpop.eup %16129 }
 0x63b   : > { %23441 = vst [vmem:[#allocation36_spill] sm:$0xff] %v20769_v23  ;;  %v20771_v54 = vpop.eup %16131  ;;  %v9338_v50 = vmul.f32 1.442695, %v9230_v44  ;;  %9460 = vadd.xlane.f32.xlu1 %v20769_v23  ;;  %v9149_v16 = vpop.xlane.xlu1 %9148  ;;  %v23446_v23 = vld [vmem:[#allocation56_spill] sm:$0xff] }
 0x63c   : > { %23442 = vst [vmem:[#allocation96_spill] sm:$0xff] %v20771_v54  ;;  %v9179_v38 = vpop.xlane.xlu0 %9178  ;;  %9490 = vadd.xlane.f32.xlu0 %v20771_v54  ;;  %v9231_v1 = vsub.f32 %v20549_v52, %v9149_v16  ;;  %v9249_v54 = vsub.f32 %v23446_v23, %v9185_v60  ;;  %v9374_v16 = vmul.f32 1.442695, %v9248_v34 }
 0x63d   : > { %v9246_v53 = vsub.f32 %v20546_v63, %v9179_v38  ;;  %16143 = vpow2.f32 %v9338_v50 }
 0x63e   : > { %v20777_v18 = vpop.eup %16133  ;;  %v9340_v42 = vmul.f32 1.442695, %v9231_v1  ;;  %v9376_v38 = vmul.f32 1.442695, %v9249_v54 }
 0x63f   : > { %23443 = vst [vmem:[#allocation94_spill] sm:$0xff] %v20777_v18  ;;  %v20780_v43 = vpop.eup %16135  ;;  %v9370_v32 = vmul.f32 1.442695, %v9246_v53  ;;  %9492 = vadd.xlane.f32.xlu1 %v20777_v18 }
 0x640   : > { %23445 = vst [vmem:[#allocation98_spill] sm:$0xff] %v20780_v43  ;;  %v9181_v44 = vpop.xlane.xlu0 %9180  ;;  %9494 = vadd.xlane.f32.xlu0 %v20780_v43  ;;  %16145 = vpow2.f32 %v9340_v42  ;;  %v20786_v63 = vpop.eup %16137  ;;  %v23462_v43 = vld [vmem:[#allocation73_spill] sm:$0xff] }
 0x641   : > { %v9247_v52 = vsub.f32 %v20556_v40, %v9181_v44  ;;  %23447 = vst [vmem:[#allocation95_spill] sm:$0xff] %v20786_v63  ;;  %16147 = vpow2.f32 %v9370_v32  ;;  %v20788_v2 = vpop.eup %16139 }
 0x642   : > { %23448 = vst [vmem:[#allocation92_spill] sm:$0xff] %v20788_v2 }
 0x643   : > { %v9372_v50 = vmul.f32 1.442695, %v9247_v52  ;;  %9496 = vadd.xlane.f32.xlu1 %v20786_v63 }
 0x644   : > { %9470 = vadd.xlane.f32.xlu0 %v20788_v2  ;;  %v23457_v2 = vld [vmem:[#allocation77_spill] sm:$0xff] }
 0x645   : > { %16149 = vpow2.f32 %v9372_v50  ;;  %v20792_v1 = vpop.eup %16141 }
 0x646   : > { %23449 = vst [vmem:[#allocation70_spill] sm:$0xff] %v20792_v1  ;;  %16151 = vpow2.f32 %v9374_v16 }
 0x647   : > { %9472 = vadd.xlane.f32.xlu1 %v20792_v1  ;;  %16153 = vpow2.f32 %v9376_v38  ;;  %v23460_v1 = vld [vmem:[#allocation71_spill] sm:$0xff] }
 0x64a   : > { %v20795_v40 = vpop.eup %16143 }
 0x64b   : > { %23450 = vst [vmem:[#allocation86_spill] sm:$0xff] %v20795_v40  ;;  %9466 = vadd.xlane.f32.xlu0 %v20795_v40 }
 0x64d   : > { %v20798_v34 = vpop.eup %16145 }
 0x64e   : > { %23451 = vst [vmem:[#allocation85_spill] sm:$0xff] %v20798_v34  ;;  %v20800_v23 = vpop.eup %16147  ;;  %9468 = vadd.xlane.f32.xlu1 %v20798_v34 }
 0x64f   : > { %23452 = vst [vmem:[#allocation97_spill] sm:$0xff] %v20800_v23  ;;  %9498 = vadd.xlane.f32.xlu0 %v20800_v23 }
 0x652   : > { %v9383_v32 = vpop.xlane.xlu0 %9382  ;;  %v20804_v53 = vpop.eup %16149 }
 0x653   : > { %v9385_v60 = vpop.xlane.xlu1 %9384  ;;  %23453 = vst [vmem:[#allocation39_spill] sm:$0xff] %v20804_v53  ;;  %v20806_v42 = vpop.eup %16151  ;;  %9500 = vadd.xlane.f32.xlu1 %v20804_v53  ;;  %v23456_v53 = vld [vmem:[#allocation76_spill] sm:$0xff] }
 0x654   : > { %23454 = vst [vmem:[#allocation38_spill] sm:$0xff] %v20806_v42  ;;  %9502 = vadd.xlane.f32.xlu0 %v20806_v42  ;;  %16155 = vrcp.f32 %v9385_v60  ;;  %v20810_v52 = vpop.eup %16153  ;;  %v8130_v42 = vcombine.high %v23457_v2, %v23456_v53  ;;  %v23458_v60 = vld [vmem:[#allocation78_spill] sm:$0xff]  ;;  %v7994_v2 = vcombine.high %v23466_v15, %v23465_v20 }
 0x655   : > { %16157 = vrcp.f32 %v9383_v32  ;;  %23455 = vst [vmem:[#allocation83_spill] sm:$0xff] %v20810_v52  ;;  %v23459_v32 = vld [vmem:[#allocation79_spill] sm:$0xff]  ;;  %v23467_v53 = vld [vmem:[#allocation66_spill] sm:$0xff] }
 0x656   : > { %v9415_v54 = vpop.xlane.xlu0 %9414  ;;  %v8146_v34 = vcombine.high %v23459_v32, %v23458_v60  ;;  %v8010_v60 = vcombine.high %v23468_v46, %v23467_v53 }
 0x657   : > { %v9417_v11 = vpop.xlane.xlu1 %9416  ;;  %9504 = vadd.xlane.f32.xlu1 %v20810_v52  ;;  %v23463_v52 = vld [vmem:[#allocation75_spill] sm:$0xff] }
 0x65a   : > { %v9379_v44 = vpop.xlane.xlu0 %9378 }
 0x65b   : > { %16159 = vrcp.f32 %v9379_v44  ;;  %v9381_v16 = vpop.xlane.xlu1 %9380  ;;  %v23461_v44 = vld [vmem:[#allocation72_spill] sm:$0xff] }
 0x65c   : > { %16161 = vrcp.f32 %v9381_v16  ;;  %v8062_v63 = vcombine.high %v23461_v44, %v23460_v1  ;;  %v8078_v16 = vcombine.high %v23463_v52, %v23462_v43  ;;  %v7926_v1 = vcombine.high %v23470_v59, %v23469_v61 }
 0x65d   : > { %16163 = vrcp.f32 %v9417_v11 }
 0x65e   : > { %v9411_v50 = vpop.xlane.xlu0 %9410 }
 0x65f   : > { %v9393_v38 = vpop.xlane.xlu1 %9392  ;;  %16165 = vrcp.f32 %v9411_v50  ;;  %v23464_v50 = vld [vmem:[#allocation44_spill] sm:$0xff] }
 0x660   : > { %16167 = vrcp.f32 %v9415_v54  ;;  %v8144_v54 = vrot.slane %v8130_v42, %v23464_v50  ;;  %v8076_v52 = vrot.slane %v8062_v63, %v23464_v50  ;;  %v8092_v55 = vrot.slane %v8078_v16, %v23464_v50  ;;  %v23471_v42 = vld [vmem:[#allocation62_spill] sm:$0xff] }
 0x661   : > { %v16156_v18 = vpop.eup %16155  ;;  %v8008_v59 = vrot.slane %v7994_v2, %v23464_v50 }
 0x662   : > { %v9413_v23 = vpop.xlane.xlu0 %9412  ;;  %v16158_v11 = vpop.eup %16157  ;;  %v9573_v43 = vmul.f32 %v16156_v18, %v20570_v5  ;;  %v8024_v5 = vrot.slane %v8010_v60, %v23464_v50  ;;  %v7940_v18 = vrot.slane %v7926_v1, %v23464_v50  ;;  %v8095_v16 = vcombine.low %v8076_v52, %v8092_v55 }
 0x663   : > { %16169 = vrcp.f32 %v9413_v23  ;;  %v9425_v40 = vpop.xlane.xlu1 %9424  ;;  %v8160_v23 = vrot.slane %v8146_v34, %v23464_v50  ;;  %v7942_v34 = vcombine.high %v23472_v56, %v23471_v42  ;;  %v9572_v20 = vmul.f32 %v16158_v11, %v20565_v4 }
 0x664   : > { %v8027_v2 = vcombine.low %v8008_v59, %v8024_v5 }
 0x665   : > { %v8163_v53 = vcombine.low %v8144_v54, %v8160_v23  ;;  %v9635_v56 = vpack.c.bf16 %v9573_v43, %v9572_v20  ;;  %v7956_v42 = vrot.slane %v7942_v34, %v23464_v50 }
 0x666   : > { %v9391_v27 = vpop.xlane.xlu0 %9390 }
 0x667   : > { %v9389_v41 = vpop.xlane.xlu1 %9388  ;;  %16171 = vrcp.f32 %v9391_v27  ;;  %v8323_v11 = vpack.c.bf16 %v8163_v53, %v8095_v16  ;;  %v23473_v27 = vld [vmem:[#allocation103_spill] sm:$0xff]  ;;  %v7959_v43 = vcombine.low %v7940_v18, %v7956_v42 }
 0x668   : > { %v16160_v32 = vpop.eup %16159  ;;  %16173 = vrcp.f32 %v9389_v41 }
 0x669   : > { %v16162_v44 = vpop.eup %16161  ;;  %v9570_v15 = vmul.f32 %v16160_v32, %v20582_v10  ;;  %16175 = vrcp.f32 %v9393_v38  ;;  %v8322_v20 = vpack.c.bf16 %v8027_v2, %v7959_v43  ;;  %v23477_v2 = vld [vmem:[#allocation115_spill] sm:$0xff] }
 0x66a   : > { %v9423_v13 = vpop.xlane.xlu0 %9422  ;;  %v9571_v46 = vmul.f32 %v16162_v44, %v20584_v14  ;;  %v16164_v63 = vpop.eup %16163 }
 0x66b   : > { %v9589_v1 = vmul.f32 %v16164_v63, %v20577_v35 }
 0x66c   : > { %v9634_v61 = vpack.c.bf16 %v9571_v46, %v9570_v15  ;;  %v16166_v10 = vpop.eup %16165  ;;  %v8164_v15 = vcombine.high %v8144_v54, %v8160_v23 }
 0x66d   : > { %v16168_v4 = vpop.eup %16167  ;;  %v9586_v41 = vmul.f32 %v16166_v10, %v20589_v37 }
 0x66e   : > { %v9387_v14 = vpop.xlane.xlu0 %9386  ;;  %15348 = vmatprep.mubr.bf16.mxu0 %v9634_v61  ;;  %v9588_v34 = vmul.f32 %v16168_v4, %v20574_v12  ;;  %v8096_v61 = vcombine.high %v8076_v52, %v8092_v55  ;;  %v7960_v12 = vcombine.high %v7940_v18, %v7956_v42 }
 0x66f   : > { %16177 = vrcp.f32 %v9387_v14  ;;  %15349 = vmatmul.mubr.bf16.vlgmr.msra.gmra.mxu0 %v9635_v56  ;;  %v9401_v32 = vpop.xlane.xlu1 %9400  ;;  %v23474_v56 = vld [vmem:[#allocation111_spill] sm:$0xff] }
 0x670   : > { %v16170_v60 = vpop.eup %16169  ;;  %15397 = vmatpush3.bf16.msra.mxu0 %v23473_v27  ;;  %16179 = vrcp.f32 %v9423_v13  ;;  %v9643_v53 = vpack.c.bf16 %v9589_v1, %v9588_v34  ;;  %v8331_v37 = vpack.c.bf16 %v8164_v15, %v8096_v61  ;;  %v23475_v13 = vld [vmem:[#allocation113_spill] sm:$0xff] }
 0x671   : > { %15398 = vmatprep.subr.bf16.mxu0 %v8323_v11  ;;  %v9587_v44 = vmul.f32 %v16170_v60, %v20598_v21  ;;  %v8028_v21 = vcombine.high %v8008_v59, %v8024_v5  ;;  %v23476_v5 = vld [vmem:[#allocation114_spill] sm:$0xff] }
 0x672   : > { %v9419_v38 = vpop.xlane.xlu0 %9418 }
 0x673   : > { %v9642_v46 = vpack.c.bf16 %v9587_v44, %v9586_v41  ;;  %16181 = vrcp.f32 %v9419_v38  ;;  %v9433_v63 = vpop.xlane.xlu1 %9432  ;;  %v8330_v52 = vpack.c.bf16 %v8028_v21, %v7960_v12  ;;  %v23479_v44 = vld [vmem:[#allocation117_spill] sm:$0xff]  ;;  %v23480_v38 = vld [vmem:[#allocation119_spill] sm:$0xff]  ;;  %v23484_v21 = vld [vmem:[#allocation120_spill] sm:$0xff] }
 0x674   : > { %15399 = vmatpush3.bf16.msra.mxu0 %v8323_v11  ;;  %16183 = vrcp.f32 %v9425_v40  ;;  %v16172_v54 = vpop.eup %16171 }
 0x675   : > { %15380 = vmatprep.mubr.bf16.mxu1 %v9642_v46  ;;  %15400 = vmatprep.subr.bf16.mxu0 %v8322_v20  ;;  %v16174_v23 = vpop.eup %16173  ;;  %v9576_v59 = vmul.f32 %v16172_v54, %v20606_v51  ;;  %v23478_v51 = vld [vmem:[#allocation116_spill] sm:$0xff] }
 0x676   : > { %15381 = vmatmul.mubr.bf16.vlgmr.msra.gmra.mxu1 %v9643_v53  ;;  %v9421_v35 = vpop.xlane.xlu0 %9420  ;;  %v16176_v16 = vpop.eup %16175  ;;  %v9575_v18 = vmul.f32 %v16174_v23, %v20609_v57  ;;  %v23481_v53 = vld [vmem:[#allocation81_spill] sm:$0xff] }
 0x677   : > { %15429 = vmatpush3.bf16.msra.mxu1 %v23474_v56  ;;  %16185 = vrcp.f32 %v9421_v35  ;;  %v9397_v10 = vpop.xlane.xlu1 %9396  ;;  %v9577_v4 = vmul.f32 %v16176_v16, %v20592_v36 }
 0x678   : > { %15430 = vmatprep.subr.bf16.mxu1 %v8331_v37  ;;  %15401 = vmatpush3.bf16.msra.mxu0 %v8322_v20 }
 0x679   : > { %15402 = vmatprep.subr.bf16.mxu0 %v23475_v13  ;;  %v9637_v60 = vpack.c.bf16 %v9577_v4, %v9576_v59 }
 0x67a   : > { %v9399_v55 = vpop.xlane.xlu0 %9398 }
 0x67b   : > { %15431 = vmatpush3.bf16.msra.mxu1 %v8331_v37  ;;  %16187 = vrcp.f32 %v9399_v55 }
 0x67c   : > { %v16178_v40 = vpop.eup %16177  ;;  %15432 = vmatprep.subr.bf16.mxu1 %v8330_v52  ;;  %15403 = vmatpush3.bf16.msra.mxu0 %v23475_v13  ;;  %16189 = vrcp.f32 %v9397_v10 }
 0x67d   : > { %15404 = vmatprep.subr.bf16.mxu0 %v23476_v5  ;;  %v9574_v14 = vmul.f32 %v16178_v40, %v20619_v0  ;;  %v16180_v27 = vpop.eup %16179  ;;  %16191 = vrcp.f32 %v9401_v32  ;;  %v9429_v0 = vpop.xlane.xlu1 %9428 }
 0x67e   : > { %v9431_v42 = vpop.xlane.xlu0 %9430  ;;  %v9592_v43 = vmul.f32 %v16180_v27, %v20614_v29  ;;  %v23482_v29 = vld [vmem:[#allocation121_spill] sm:$0xff] }
 0x67f   : > { %15433 = vmatpush3.bf16.msra.mxu1 %v8330_v52  ;;  %v9636_v11 = vpack.c.bf16 %v9575_v18, %v9574_v14 }
 0x680   : > { %15434 = vmatprep.subr.bf16.mxu1 %v23477_v2  ;;  %15405 = vmatpush3.bf16.msra.mxu0 %v23476_v5  ;;  %v16182_v1 = vpop.eup %16181 }
 0x681   : > { %15352 = vmatprep.mubr.bf16.mxu0 %v9636_v11  ;;  %15406 = vmatprep.subr.bf16.mxu0 %v23478_v51  ;;  %v16184_v41 = vpop.eup %16183  ;;  %v9590_v32 = vmul.f32 %v16182_v1, %v20626_v9  ;;  %v23483_v9 = vld [vmem:[#allocation118_spill] sm:$0xff] }
 0x682   : > { %15353 = vmatmul.mubr.bf16.gmra.mxu0 %v9637_v60  ;;  %v9395_v57 = vpop.xlane.xlu0 %9394  ;;  %v9593_v46 = vmul.f32 %v16184_v41, %v20601_v6 }
 0x683   : > { %15435 = vmatpush3.bf16.msra.mxu1 %v23477_v2  ;;  %16193 = vrcp.f32 %v9395_v57 }
 0x684   : > { %v16186_v36 = vpop.eup %16185  ;;  %16195 = vrcp.f32 %v9431_v42  ;;  %15436 = vmatprep.subr.bf16.mxu1 %v23479_v44  ;;  %15407 = vmatpush3.bf16.msra.mxu0 %v23478_v51  ;;  %v9645_v61 = vpack.c.bf16 %v9593_v46, %v9592_v43 }
 0x685   : > { %16197 = vrcp.f32 %v9429_v0  ;;  %15408 = vmatprep.subr.bf16.mxu0 %v23480_v38  ;;  %v9591_v34 = vmul.f32 %v16186_v36, %v20632_v19 }
 0x686   : > { %16199 = vrcp.f32 %v9433_v63  ;;  %v9427_v15 = vpop.xlane.xlu0 %9426 }
 0x687   : > { %15437 = vmatpush3.bf16.msra.mxu1 %v23479_v44  ;;  %16201 = vrcp.f32 %v9427_v15  ;;  %v9644_v20 = vpack.c.bf16 %v9591_v34, %v9590_v32 }
 0x688   : > { %15438 = vmatprep.subr.bf16.mxu1 %v23481_v53  ;;  %15409 = vmatpush3.bf16.msra.mxu0 %v23480_v38  ;;  %v16188_v6 = vpop.eup %16187 }
 0x689   : > { %15384 = vmatprep.mubr.bf16.mxu1 %v9644_v20  ;;  %15410 = vmatprep.subr.bf16.mxu0 %v23482_v29  ;;  %v16190_v35 = vpop.eup %16189  ;;  %v9580_v56 = vmul.f32 %v16188_v6, %v20638_v47 }
 0x68a   : > { %15385 = vmatmul.mubr.bf16.gmra.mxu1 %v9645_v61  ;;  %v9407_v19 = vpop.xlane.xlu0 %9406  ;;  %v16192_v37 = vpop.eup %16191  ;;  %v9579_v23 = vmul.f32 %v16190_v35, %v20634_v62 }
 0x68b   : > { %15439 = vmatpush3.bf16.msra.mxu1 %v23481_v53  ;;  %v9581_v16 = vmul.f32 %v16192_v37, %v20621_v30 }
 0x68c   : > { %15440 = vmatprep.subr.bf16.mxu1 %v23483_v9  ;;  %15411 = vmatpush3.bf16.msra.mxu0 %v23482_v29  ;;  %v9409_v54 = vpop.xlane.xlu1 %9408 }
 0x68d   : > { %v9639_v5 = vpack.c.bf16 %v9581_v16, %v9580_v56  ;;  %16203 = vrcp.f32 %v9409_v54 }
 0x68e   : > { %v9439_v52 = vpop.xlane.xlu0 %9438 }
 0x68f   : > { %15441 = vmatpush3.bf16.msra.mxu1 %v23483_v9 }
 0x690   : > { %v16194_v63 = vpop.eup %16193  ;;  %15442 = vmatprep.subr.bf16.mxu1 %v23484_v21  ;;  %v9441_v18 = vpop.xlane.xlu1 %9440 }
 0x691   : > { %v16196_v12 = vpop.eup %16195  ;;  %v9578_v13 = vmul.f32 %v16194_v63, %v20650_v49 }
 0x692   : > { %v16198_v55 = vpop.eup %16197  ;;  %v9596_v14 = vmul.f32 %v16196_v12, %v20645_v7  ;;  %v9403_v42 = vpop.xlane.xlu0 %9402 }
 0x693   : > { %v16200_v40 = vpop.eup %16199  ;;  %15443 = vmatpush3.bf16.msra.mxu1 %v23484_v21  ;;  %v9638_v10 = vpack.c.bf16 %v9579_v23, %v9578_v13  ;;  %v9595_v49 = vmul.f32 %v16198_v55, %v20640_v22  ;;  %16205 = vrcp.f32 %v9403_v42  ;;  %v23485_v13 = vld [vmem:[#allocation59_spill] sm:$0xff] }
 0x694   : > { %v16202_v59 = vpop.eup %16201  ;;  %v9597_v62 = vmul.f32 %v16200_v40, %v20628_v58  ;;  %16207 = vrcp.f32 %v9407_v19  ;;  %v9405_v11 = vpop.xlane.xlu1 %9404 }
 0x695   : > { %15356 = vmatprep.mubr.bf16.mxu0 %v9638_v10  ;;  %v9594_v47 = vmul.f32 %v16202_v59, %v20655_v31  ;;  %16209 = vrcp.f32 %v9405_v11  ;;  %v23486_v10 = vld [vmem:[#allocation54_spill] sm:$0xff] }
 0x696   : > { %15357 = vmatmul.mubr.bf16.gmra.mxu0 %v9639_v5  ;;  %v9647_v4 = vpack.c.bf16 %v9597_v62, %v9596_v14  ;;  %v9435_v2 = vpop.xlane.xlu0 %9434  ;;  %16211 = vrcp.f32 %v9441_v18  ;;  %v23489_v62 = vld [vmem:[#allocation32_spill] sm:$0xff] }
 0x697   : > { %v9646_v30 = vpack.c.bf16 %v9595_v49, %v9594_v47  ;;  %16213 = vrcp.f32 %v9435_v2  ;;  %v23488_v49 = vld [vmem:[#allocation91_spill] sm:$0xff] }
 0x698   : > { %16215 = vrcp.f32 %v9439_v52  ;;  %v9437_v7 = vpop.xlane.xlu1 %9436 }
 0x699   : > { %15388 = vmatprep.mubr.bf16.mxu1 %v9646_v30  ;;  %16217 = vrcp.f32 %v9437_v7 }
 0x69a   : > { %15389 = vmatmul.mubr.bf16.gmra.mxu1 %v9647_v4  ;;  %v9447_v22 = vpop.xlane.xlu0 %9446  ;;  %v16204_v31 = vpop.eup %16203 }
 0x69b   : > { %v9585_v0 = vmul.f32 %v16204_v31, %v20666_v33 }
 0x69c   : > { %v9449_v60 = vpop.xlane.xlu1 %9448 }
 0x69d   : > { %16219 = vrcp.f32 %v9449_v60 }
 0x6a0   : > { %v16206_v27 = vpop.eup %16205 }
 0x6a1   : > { %v16208_v58 = vpop.eup %16207  ;;  %v9443_v51 = vpop.xlane.xlu0 %9442  ;;  %v9582_v41 = vmul.f32 %v16206_v27, %v20675_v3 }
 0x6a2   : > { %v16210_v1 = vpop.eup %16209  ;;  %16221 = vrcp.f32 %v9443_v51  ;;  %v9584_v38 = vmul.f32 %v16208_v58, %v20662_v25  ;;  %v23490_v51 = vld [vmem:[#allocation33_spill] sm:$0xff] }
 0x6a3   : > { %v16212_v57 = vpop.eup %16211  ;;  %v9583_v36 = vmul.f32 %v16210_v1, %v20681_v28  ;;  %16223 = vrcp.f32 %v9447_v22 }
 0x6a4   : > { %v16214_v44 = vpop.eup %16213  ;;  %v9445_v43 = vpop.xlane.xlu1 %9444  ;;  %v9641_v20 = vpack.c.bf16 %v9585_v0, %v9584_v38  ;;  %v9601_v53 = vmul.f32 %v16212_v57, %v20673_v17  ;;  %v23491_v0 = vld [vmem:[#allocation35_spill] sm:$0xff] }
 0x6a5   : > { %v16216_v32 = vpop.eup %16215  ;;  %16225 = vrcp.f32 %v9445_v43  ;;  %v9475_v34 = vpop.xlane.xlu0 %9474  ;;  %v9640_v15 = vpack.c.bf16 %v9583_v36, %v9582_v41  ;;  %v9598_v33 = vmul.f32 %v16214_v44, %v20684_v24  ;;  %v23492_v41 = vld [vmem:[#allocation34_spill] sm:$0xff]  ;;  %v23493_v38 = vld [vmem:[#allocation107_spill] sm:$0xff] }
 0x6a6   : > { %v16218_v46 = vpop.eup %16217  ;;  %16227 = vrcp.f32 %v9475_v34  ;;  %v9600_v61 = vmul.f32 %v16216_v32, %v20668_v45 }
 0x6a7   : > { %15360 = vmatprep.mubr.bf16.mxu0 %v9640_v15  ;;  %v9599_v3 = vmul.f32 %v16218_v46, %v20690_v26 }
 0x6a8   : > { %v9477_v28 = vpop.xlane.xlu1 %9476  ;;  %15361 = vmatmul.mubr.bf16.gmra.mxu0 %v9641_v20  ;;  %v9649_v9 = vpack.c.bf16 %v9601_v53, %v9600_v61  ;;  %v23494_v53 = vld [vmem:[#allocation100_spill] sm:$0xff] }
 0x6a9   : > { %16229 = vrcp.f32 %v9477_v28  ;;  %v9479_v25 = vpop.xlane.xlu0 %9478  ;;  %v9648_v29 = vpack.c.bf16 %v9599_v3, %v9598_v33  ;;  %v23495_v3 = vld [vmem:[#allocation101_spill] sm:$0xff] }
 0x6aa   : > { %16231 = vrcp.f32 %v9479_v25  ;;  %v16220_v19 = vpop.eup %16219 }
 0x6ab   : > { %15392 = vmatprep.mubr.bf16.mxu1 %v9648_v29  ;;  %v9605_v21 = vmul.f32 %v16220_v19, %v20698_v39  ;;  %v23487_v39 = vld [vmem:[#allocation55_spill] sm:$0xff] }
 0x6ac   : > { %v9481_v6 = vpop.xlane.xlu1 %9480  ;;  %15393 = vmatmul.mubr.bf16.gmra.mxu1 %v9649_v9 }
 0x6ad   : > { %16233 = vrcp.f32 %v9481_v6  ;;  %v9455_v17 = vpop.xlane.xlu0 %9454 }
 0x6af   : > { %v16222_v35 = vpop.eup %16221 }
 0x6b0   : > { %v9457_v37 = vpop.xlane.xlu1 %9456  ;;  %v16224_v24 = vpop.eup %16223  ;;  %v9602_v45 = vmul.f32 %v16222_v35, %v20702_v8  ;;  %v23497_v35 = vld [vmem:[#allocation104_spill] sm:$0xff] }
 0x6b1   : > { %v9451_v63 = vpop.xlane.xlu0 %9450  ;;  %16235 = vrcp.f32 %v9457_v37  ;;  %v9604_v23 = vmul.f32 %v16224_v24, %v23485_v13  ;;  %v23498_v13 = vld [vmem:[#allocation106_spill] sm:$0xff] }
 0x6b2   : > { %v16226_v26 = vpop.eup %16225  ;;  %16237 = vrcp.f32 %v9451_v63 }
 0x6b3   : > { %v9603_v56 = vmul.f32 %v16226_v26, %v20707_v48  ;;  %v16228_v12 = vpop.eup %16227  ;;  %16239 = vrcp.f32 %v9455_v17  ;;  %v9651_v40 = vpack.c.bf16 %v9605_v21, %v9604_v23  ;;  %v23496_v17 = vld [vmem:[#allocation102_spill] sm:$0xff] }
 0x6b4   : > { %v9453_v54 = vpop.xlane.xlu1 %9452  ;;  %v9618_v59 = vmul.f32 %v16228_v12, %v23486_v10 }
 0x6b5   : > { %16241 = vrcp.f32 %v9453_v54  ;;  %v9483_v55 = vpop.xlane.xlu0 %9482  ;;  %v9650_v52 = vpack.c.bf16 %v9603_v56, %v9602_v45 }
 0x6b6   : > { %v16230_v16 = vpop.eup %16229  ;;  %16243 = vrcp.f32 %v9483_v55  ;;  %v23499_v55 = vld [vmem:[#allocation37_spill] sm:$0xff] }
 0x6b7   : > { %15412 = vmatprep.mubr.bf16.mxu0 %v9650_v52  ;;  %v9619_v5 = vmul.f32 %v16230_v16, %v23487_v39  ;;  %v16232_v14 = vpop.eup %16231  ;;  %v23500_v16 = vld [vmem:[#allocation36_spill] sm:$0xff] }
 0x6b8   : > { %v9485_v8 = vpop.xlane.xlu1 %9484  ;;  %15413 = vmatmul.mubr.bf16.vlgmr.msra.gmra.mxu0 %v9651_v40  ;;  %v9620_v42 = vmul.f32 %v16232_v14, %v23488_v49  ;;  %v23503_v49 = vld [vmem:[#allocation94_spill] sm:$0xff] }
 0x6b9   : > { %16245 = vrcp.f32 %v9485_v8  ;;  %v9487_v48 = vpop.xlane.xlu0 %9486  ;;  %v9658_v18 = vpack.c.bf16 %v9619_v5, %v9618_v59  ;;  %v23501_v59 = vld [vmem:[#allocation105_spill] sm:$0xff] }
 0x6ba   : > { %v16234_v47 = vpop.eup %16233  ;;  %16247 = vrcp.f32 %v9487_v48 }
 0x6bb   : > { %15444 = vmatprep.mubr.bf16.mxu1 %v9658_v18  ;;  %v9621_v30 = vmul.f32 %v16234_v47, %v23489_v62  ;;  %v23502_v18 = vld [vmem:[#allocation96_spill] sm:$0xff] }
 0x6bc   : > { %v9489_v4 = vpop.xlane.xlu1 %9488 }
 0x6bd   : > { %16249 = vrcp.f32 %v9489_v4  ;;  %v9463_v11 = vpop.xlane.xlu0 %9462  ;;  %v9659_v2 = vpack.c.bf16 %v9621_v30, %v9620_v42 }
 0x6be   : > { %v16236_v7 = vpop.eup %16235 }
 0x6bf   : > { %15445 = vmatmul.mubr.bf16.vlgmr.msra.gmra.mxu1 %v9659_v2  ;;  %v16238_v22 = vpop.eup %16237  ;;  %v9609_v1 = vmul.f32 %v16236_v7, %v23490_v51  ;;  %v23504_v7 = vld [vmem:[#allocation98_spill] sm:$0xff] }
 0x6c0   : > { %v9465_v31 = vpop.xlane.xlu1 %9464  ;;  %v16240_v60 = vpop.eup %16239  ;;  %v9606_v57 = vmul.f32 %v16238_v22, %v23491_v0 }
 0x6c1   : > { %v9459_v27 = vpop.xlane.xlu0 %9458  ;;  %16251 = vrcp.f32 %v9465_v31  ;;  %v9608_v32 = vmul.f32 %v16240_v60, %v23493_v38  ;;  %v23505_v31 = vld [vmem:[#allocation95_spill] sm:$0xff]  ;;  %v23507_v38 = vld [vmem:[#allocation86_spill] sm:$0xff] }
 0x6c2   : > { %v16242_v58 = vpop.eup %16241  ;;  %16253 = vrcp.f32 %v9459_v27 }
 0x6c3   : > { %v9607_v36 = vmul.f32 %v16242_v58, %v23492_v41  ;;  %v16244_v44 = vpop.eup %16243  ;;  %16255 = vrcp.f32 %v9463_v11  ;;  %v9653_v20 = vpack.c.bf16 %v9609_v1, %v9608_v32 }
 0x6c4   : > { %v9461_v43 = vpop.xlane.xlu1 %9460  ;;  %v9622_v33 = vmul.f32 %v16244_v44, %v23494_v53  ;;  %v23506_v44 = vld [vmem:[#allocation70_spill] sm:$0xff] }
 0x6c5   : > { %16257 = vrcp.f32 %v9461_v43  ;;  %v9491_v34 = vpop.xlane.xlu0 %9490  ;;  %v9652_v15 = vpack.c.bf16 %v9607_v36, %v9606_v57 }
 0x6c6   : > { %v16246_v46 = vpop.eup %16245  ;;  %16259 = vrcp.f32 %v9491_v34  ;;  %v23508_v34 = vld [vmem:[#allocation85_spill] sm:$0xff] }
 0x6c7   : > { %15416 = vmatprep.mubr.bf16.mxu0 %v9652_v15  ;;  %v9623_v28 = vmul.f32 %v16246_v46, %v23495_v3  ;;  %v16248_v61 = vpop.eup %16247 }
 0x6c8   : > { %v9493_v25 = vpop.xlane.xlu1 %9492  ;;  %15417 = vmatmul.mubr.bf16.gmra.mxu0 %v9653_v20  ;;  %v9624_v19 = vmul.f32 %v16248_v61, %v23496_v17  ;;  %v23509_v20 = vld [vmem:[#allocation92_spill] sm:$0xff]  ;;  %v23510_v61 = vld [vmem:[#allocation97_spill] sm:$0xff] }
 0x6c9   : > { %16261 = vrcp.f32 %v9493_v25  ;;  %v9495_v29 = vpop.xlane.xlu0 %9494  ;;  %v9660_v9 = vpack.c.bf16 %v9623_v28, %v9622_v33 }
 0x6ca   : > { %v16250_v6 = vpop.eup %16249  ;;  %16263 = vrcp.f32 %v9495_v29  ;;  %v23511_v29 = vld [vmem:[#allocation39_spill] sm:$0xff] }
 0x6cb   : > { %15448 = vmatprep.mubr.bf16.mxu1 %v9660_v9  ;;  %v9625_v37 = vmul.f32 %v16250_v6, %v23497_v35  ;;  %v23512_v35 = vld [vmem:[#allocation38_spill] sm:$0xff] }
 0x6cc   : > { %v9497_v24 = vpop.xlane.xlu1 %9496 }
 0x6cd   : > { %16265 = vrcp.f32 %v9497_v24  ;;  %v9661_v63 = vpack.c.bf16 %v9625_v37, %v9624_v19  ;;  %v9471_v21 = vpop.xlane.xlu0 %9470  ;;  %v23513_v24 = vld [vmem:[#allocation83_spill] sm:$0xff] }
 0x6ce   : > { %v16252_v26 = vpop.eup %16251 }
 0x6cf   : > { %15449 = vmatmul.mubr.bf16.gmra.mxu1 %v9661_v63  ;;  %v16254_v45 = vpop.eup %16253  ;;  %v9613_v23 = vmul.f32 %v16252_v26, %v23498_v13 }
 0x6d0   : > { %v16256_v56 = vpop.eup %16255  ;;  %v9473_v54 = vpop.xlane.xlu1 %9472  ;;  %v9610_v52 = vmul.f32 %v16254_v45, %v23499_v55 }
 0x6d1   : > { %v9612_v39 = vmul.f32 %v16256_v56, %v23501_v59  ;;  %16267 = vrcp.f32 %v9473_v54 }
 0x6d2   : > { %v16258_v12 = vpop.eup %16257 }
 0x6d3   : > { %v9611_v40 = vmul.f32 %v16258_v12, %v23500_v16  ;;  %v16260_v10 = vpop.eup %16259  ;;  %v9655_v48 = vpack.c.bf16 %v9613_v23, %v9612_v39 }
 0x6d4   : > { %v9467_v5 = vpop.xlane.xlu0 %9466  ;;  %v9626_v47 = vmul.f32 %v16260_v10, %v23502_v18 }
 0x6d5   : > { %v9654_v14 = vpack.c.bf16 %v9611_v40, %v9610_v52  ;;  %16269 = vrcp.f32 %v9467_v5 }
 0x6d6   : > { %v16262_v8 = vpop.eup %16261  ;;  %16271 = vrcp.f32 %v9471_v21  ;;  %v23514_v21 = vmov 0  }
 0x6d7   : > { %15420 = vmatprep.mubr.bf16.mxu0 %v9654_v14  ;;  %v9627_v42 = vmul.f32 %v16262_v8, %v23503_v49  ;;  %v16264_v62 = vpop.eup %16263  ;;  %v9469_v30 = vpop.xlane.xlu1 %9468 }
 0x6d8   : > { %15421 = vmatmul.mubr.bf16.gmra.mxu0 %v9655_v48  ;;  %16273 = vrcp.f32 %v9469_v30  ;;  %v9499_v4 = vpop.xlane.xlu0 %9498  ;;  %v9628_v22 = vmul.f32 %v16264_v62, %v23504_v7 }
 0x6d9   : > { %v9662_v11 = vpack.c.bf16 %v9627_v42, %v9626_v47  ;;  %16275 = vrcp.f32 %v9499_v4 }
 0x6da   : > { %v16266_v2 = vpop.eup %16265 }
 0x6db   : > { %15452 = vmatprep.mubr.bf16.mxu1 %v9662_v11  ;;  %v9629_v60 = vmul.f32 %v16266_v2, %v23505_v31 }
 0x6dc   : > { %v9501_v27 = vpop.xlane.xlu1 %9500 }
 0x6dd   : > { %16277 = vrcp.f32 %v9501_v27  ;;  %v9503_v58 = vpop.xlane.xlu0 %9502  ;;  %v9663_v51 = vpack.c.bf16 %v9629_v60, %v9628_v22 }
 0x6de   : > { %16279 = vrcp.f32 %v9503_v58  ;;  %v16268_v0 = vpop.eup %16267 }
 0x6df   : > { %15453 = vmatmul.mubr.bf16.gmra.mxu1 %v9663_v51  ;;  %v9617_v43 = vmul.f32 %v16268_v0, %v23506_v44 }
 0x6e0   : > { %v9505_v1 = vpop.xlane.xlu1 %9504 }
 0x6e1   : > { %16281 = vrcp.f32 %v9505_v1 }
 0x6e2   : > { %v16270_v57 = vpop.eup %16269 }
 0x6e3   : > { %v16272_v41 = vpop.eup %16271  ;;  %v9614_v32 = vmul.f32 %v16270_v57, %v23507_v38 }
 0x6e4   : > { %v9616_v53 = vmul.f32 %v16272_v41, %v23509_v20 }
 0x6e5   : > { %v16274_v36 = vpop.eup %16273 }
 0x6e6   : > { %v9615_v15 = vmul.f32 %v16274_v36, %v23508_v34  ;;  %v16276_v46 = vpop.eup %16275  ;;  %v9657_v28 = vpack.c.bf16 %v9617_v43, %v9616_v53 }
 0x6e7   : > { %v9630_v25 = vmul.f32 %v16276_v46, %v23510_v61 }
 0x6e8   : > { %v9656_v33 = vpack.c.bf16 %v9615_v15, %v9614_v32 }
 0x6ea   : > { %v16278_v3 = vpop.eup %16277  ;;  %15424 = vmatprep.mubr.bf16.mxu0 %v9656_v33  ;;  %v23519_v33 = vld [vmem:[#allocation43_spill] sm:$0xff] }
 0x6eb   : > { %v9631_v9 = vmul.f32 %v16278_v3, %v23511_v29  ;;  %v16280_v6 = vpop.eup %16279  ;;  %15425 = vmatmul.mubr.bf16.gmra.mxu0 %v9657_v28 }
 0x6ec   : > { %v9632_v37 = vmul.f32 %v16280_v6, %v23512_v35 }
 0x6ed   : > { %v9664_v17 = vpack.c.bf16 %v9631_v9, %v9630_v25 }
 0x6ee   : > { %v16282_v19 = vpop.eup %16281 }
 0x6ef   : > { %15456 = vmatprep.mubr.bf16.mxu1 %v9664_v17  ;;  %v9633_v63 = vmul.f32 %v16282_v19, %v23513_v24 }
 0x6f1   : > { %v9665_v26 = vpack.c.bf16 %v9633_v63, %v9632_v37 }
 0x6f3   : > { %15457 = vmatmul.mubr.bf16.gmra.mxu1 %v9665_v26 }
 0x6f4   : > { %13141 = vmatprep.mubr.bf16.mxu1 %v23514_v21 }
 0x72f   : > { %v15350_v45 = vpop.f32.mrf.mxu0 }
 0x731   : > { %v9700_v56 = vpop.f32.mrf.mxu0 }
 0x733   : > { %v15351_v54 = vpop.f32.mrf.mxu0 }
 0x735   : > { %v9703_v23 = vpop.f32.mrf.mxu0 }
 0x736   : > { %v15382_v12 = vpop.f32.mrf.mxu1 }
 0x738   : > { %v20924_v13 = vpop.f32.mrf.mxu1 }
 0x73a   : > { %v20928_v52 = vpop.f32.mrf.mxu1 }
 0x73c   : > { %v20932_v40 = vpop.f32.mrf.mxu1 }
 0x742   : > { %v20926_v55 = vpop.f32.mrf.mxu0 }
 0x744   : > { %v20930_v16 = vpop.f32.mrf.mxu0 }
 0x746   : > { %v20936_v59 = vpop.f32.mrf.mxu0 }
 0x748   : > { %v20940_v5 = vpop.f32.mrf.mxu0 }
 0x74a   : > { %v20934_v10 = vpop.f32.mrf.mxu1 }
 0x74c   : > { %v20938_v39 = vpop.f32.mrf.mxu1 }
 0x74e   : > { %v20944_v8 = vpop.f32.mrf.mxu1 }
 0x750   : > { %v20948_v18 = vpop.f32.mrf.mxu1 }
 0x756   : > { %v20942_v14 = vpop.f32.mrf.mxu0 }
 0x758   : > { %v20946_v48 = vpop.f32.mrf.mxu0 }
 0x75a   : > { %v20950_v47 = vpop.f32.mrf.mxu1  ;;  %v20952_v49 = vpop.f32.mrf.mxu0 }
 0x75c   : > { %v20954_v42 = vpop.f32.mrf.mxu1  ;;  %v20956_v62 = vpop.f32.mrf.mxu0 }
 0x75e   : > { %v20960_v4 = vpop.f32.mrf.mxu1 }
 0x760   : > { %v20964_v2 = vpop.f32.mrf.mxu1 }
 0x768   : > { %v20958_v30 = vpop.f32.mrf.mxu0 }
 0x76a   : > { %v20962_v11 = vpop.f32.mrf.mxu0 }
 0x76c   : > { %v20966_v7 = vpop.f32.mrf.mxu1  ;;  %v20968_v22 = vpop.f32.mrf.mxu0 }
 0x76d   : > { %23515 = vst [vmem:[#allocation84_spill] sm:$0xff] %v20966_v7 }
 0x76e   : > { %v20970_v31 = vpop.f32.mrf.mxu1  ;;  %v20972_v60 = vpop.f32.mrf.mxu0 }
 0x76f   : > { %23516 = vst [vmem:[#allocation69_spill] sm:$0xff] %v20970_v31 }
 0x770   : > { %v20974_v58 = vpop.f32.mrf.mxu1 }
 0x771   : > { %23517 = vst [vmem:[#allocation88_spill] sm:$0xff] %v20974_v58 }
 0x772   : > { %v20976_v0 = vpop.f32.mrf.mxu1 }
 0x773   : > { %23518 = vst [vmem:[#allocation87_spill] sm:$0xff] %v20976_v0 }
 0x778   : > { %v15414_v27 = vpop.f32.mrf.mxu0 }
 0x779   : > { %v10190_v57 = vcombine.low %v15350_v45, %v15414_v27  ;;  %v10191_v41 = vcombine.high %v15350_v45, %v15414_v27 }
 0x77a   : > { %v9894_v51 = vpop.f32.mrf.mxu0 }
 0x77b   : > { %v10054_v36 = vcombine.low %v9700_v56, %v9894_v51  ;;  %v10055_v44 = vcombine.high %v9700_v56, %v9894_v51  ;;  %v10198_v3 = vrot.slane %v10190_v57, %v23519_v33  ;;  %v10205_v28 = vrot.slane %v10191_v41, %v23519_v33 }
 0x77c   : > { %v15415_v1 = vpop.f32.mrf.mxu0 }
 0x77d   : > { %v10258_v38 = vcombine.low %v15351_v54, %v15415_v1  ;;  %v10259_v32 = vcombine.high %v15351_v54, %v15415_v1  ;;  %v10062_v61 = vrot.slane %v10054_v36, %v23519_v33  ;;  %v10069_v25 = vrot.slane %v10055_v44, %v23519_v33 }
 0x77e   : > { %v9897_v43 = vpop.f32.mrf.mxu0 }
 0x77f   : > { %v10122_v34 = vcombine.low %v9703_v23, %v9897_v43  ;;  %v10123_v15 = vcombine.high %v9703_v23, %v9897_v43  ;;  %v15446_v46 = vpop.f32.mrf.mxu1  ;;  %v10266_v35 = vrot.slane %v10258_v38, %v23519_v33  ;;  %v10273_v37 = vrot.slane %v10259_v32, %v23519_v33 }
 0x780   : > { %v10206_v20 = vcombine.low %v15382_v12, %v15446_v46  ;;  %v10207_v53 = vcombine.high %v15382_v12, %v15446_v46 }
 0x781   : > { %v9991_v29 = vpop.f32.mrf.mxu1  ;;  %v20989_v24 = vrot.slane %v10122_v34, %v23519_v33  ;;  %v20992_v63 = vrot.slane %v10123_v15, %v23519_v33 }
 0x782   : > { %v10214_v9 = vrot.slane %v10206_v20, %v23519_v33  ;;  %v10221_v6 = vrot.slane %v10207_v53, %v23519_v33  ;;  %v10070_v17 = vcombine.low %v20924_v13, %v9991_v29  ;;  %v10071_v19 = vcombine.high %v20924_v13, %v9991_v29 }
 0x783   : > { %v15447_v26 = vpop.f32.mrf.mxu1 }
 0x784   : > { %v10222_v45 = vcombine.low %v10198_v3, %v10214_v9  ;;  %v10223_v56 = vcombine.high %v10198_v3, %v10214_v9  ;;  %v10238_v12 = vcombine.low %v10205_v28, %v10221_v6  ;;  %v10239_v54 = vcombine.high %v10205_v28, %v10221_v6 }
 0x785   : > { %v10078_v23 = vrot.slane %v10070_v17, %v23519_v33  ;;  %v10085_v27 = vrot.slane %v10071_v19, %v23519_v33  ;;  %v10274_v13 = vcombine.low %v20928_v52, %v15447_v26  ;;  %v10275_v51 = vcombine.high %v20928_v52, %v15447_v26  ;;  %v9994_v29 = vpop.f32.mrf.mxu1 }
 0x786   : > { %v10230_v1 = vrot.slane %v10222_v45, %v23464_v50  ;;  %v10237_v57 = vrot.slane %v10223_v56, %v23464_v50  ;;  %v10246_v41 = vrot.slane %v10238_v12, %v23464_v50  ;;  %v10253_v36 = vrot.slane %v10239_v54, %v23464_v50 }
 0x787   : > { %v10086_v44 = vcombine.low %v10062_v61, %v10078_v23  ;;  %v10087_v43 = vcombine.high %v10062_v61, %v10078_v23  ;;  %v10102_v38 = vcombine.low %v10069_v25, %v10085_v27  ;;  %v10103_v32 = vcombine.high %v10069_v25, %v10085_v27 }
 0x788   : > { %v11278_v34 = vcombine.low %v10230_v1, %v10237_v57  ;;  %v14748_v15 = vcombine.high %v10230_v1, %v10237_v57  ;;  %v11294_v46 = vcombine.low %v10246_v41, %v10253_v36  ;;  %v14749_v20 = vcombine.high %v10246_v41, %v10253_v36  ;;  %v15418_v17 = vpop.f32.mrf.mxu0 }
 0x789   : > { %v10094_v53 = vrot.slane %v10086_v44, %v23464_v50  ;;  %v10101_v52 = vrot.slane %v10087_v43, %v23464_v50  ;;  %v10110_v3 = vrot.slane %v10102_v38, %v23464_v50  ;;  %v10117_v28 = vrot.slane %v10103_v32, %v23464_v50 }
 0x78a   : > { %v21007_v9 = vrot.slane %v11278_v34, %v23519_v33  ;;  %v21010_v61 = vrot.slane %v14748_v15, %v23519_v33  ;;  %v21013_v25 = vrot.slane %v11294_v46, %v23519_v33  ;;  %v21016_v6 = vrot.slane %v14749_v20, %v23519_v33  ;;  %v9910_v38 = vpop.f32.mrf.mxu0 }
 0x78b   : > { %v11142_v19 = vcombine.low %v10094_v53, %v10101_v52  ;;  %v14744_v26 = vcombine.high %v10094_v53, %v10101_v52  ;;  %v11158_v45 = vcombine.low %v10110_v3, %v10117_v28  ;;  %v14745_v56 = vcombine.high %v10110_v3, %v10117_v28 }
 0x78c   : > { %v10282_v12 = vrot.slane %v10274_v13, %v23519_v33  ;;  %v10289_v54 = vrot.slane %v10275_v51, %v23519_v33  ;;  %v10138_v23 = vcombine.low %v20932_v40, %v9994_v29  ;;  %v10139_v27 = vcombine.high %v20932_v40, %v9994_v29 }
 0x78d   : > { %v21023_v1 = vrot.slane %v11142_v19, %v23519_v33  ;;  %v21026_v57 = vrot.slane %v14744_v26, %v23519_v33  ;;  %v21029_v41 = vrot.slane %v11158_v45, %v23519_v33  ;;  %v21032_v36 = vrot.slane %v14745_v56, %v23519_v33  ;;  %v15419_v45 = vpop.f32.mrf.mxu0 }
 0x78e   : > { %v10290_v44 = vcombine.low %v10266_v35, %v10282_v12  ;;  %v10291_v13 = vcombine.high %v10266_v35, %v10282_v12  ;;  %v10306_v43 = vcombine.low %v10273_v37, %v10289_v54  ;;  %v10307_v51 = vcombine.high %v10273_v37, %v10289_v54 }
 0x78f   : > { %v10146_v32 = vrot.slane %v10138_v23, %v23519_v33  ;;  %v10153_v40 = vrot.slane %v10139_v27, %v23519_v33  ;;  %v10462_v34 = vcombine.low %v20926_v55, %v15418_v17  ;;  %v10463_v15 = vcombine.high %v20926_v55, %v15418_v17  ;;  %v15450_v29 = vpop.f32.mrf.mxu1 }
 0x790   : > { %v10298_v46 = vrot.slane %v10290_v44, %v23464_v50  ;;  %v10305_v20 = vrot.slane %v10291_v13, %v23464_v50  ;;  %v10314_v53 = vrot.slane %v10306_v43, %v23464_v50  ;;  %v10321_v52 = vrot.slane %v10307_v51, %v23464_v50 }
 0x791   : > { %v10154_v35 = vcombine.low %v20989_v24, %v10146_v32  ;;  %v10155_v37 = vcombine.high %v20989_v24, %v10146_v32  ;;  %v10170_v3 = vcombine.low %v20992_v63, %v10153_v40  ;;  %v10171_v28 = vcombine.high %v20992_v63, %v10153_v40  ;;  %v10007_v40 = vpop.f32.mrf.mxu1 }
 0x792   : > { %v11346_v19 = vcombine.low %v10298_v46, %v10305_v20  ;;  %v14750_v26 = vcombine.high %v10298_v46, %v10305_v20  ;;  %v11362_v55 = vcombine.low %v10314_v53, %v10321_v52  ;;  %v14751_v17 = vcombine.high %v10314_v53, %v10321_v52 }
 0x793   : > { %v10162_v56 = vrot.slane %v10154_v35, %v23464_v50  ;;  %v10169_v12 = vrot.slane %v10155_v37, %v23464_v50  ;;  %v10178_v54 = vrot.slane %v10170_v3, %v23464_v50  ;;  %v10185_v23 = vrot.slane %v10171_v28, %v23464_v50  ;;  %v9913_v35 = vpop.f32.mrf.mxu0 }
 0x794   : > { %v21051_v24 = vrot.slane %v11346_v19, %v23519_v33  ;;  %v21054_v27 = vrot.slane %v14750_v26, %v23519_v33  ;;  %v21057_v63 = vrot.slane %v11362_v55, %v23519_v33  ;;  %v21060_v44 = vrot.slane %v14751_v17, %v23519_v33 }
 0x795   : > { %v11210_v13 = vcombine.low %v10162_v56, %v10169_v12  ;;  %v14746_v43 = vcombine.high %v10162_v56, %v10169_v12  ;;  %v11226_v51 = vcombine.low %v10178_v54, %v10185_v23  ;;  %v14747_v32 = vcombine.high %v10178_v54, %v10185_v23  ;;  %v15451_v12 = vpop.f32.mrf.mxu1  ;;  %v15907_v54 = vld [vmem:[%s17100_s27 + $0x38] sm:$0xff]   ;;  %v15908_v23 = vld [vmem:[%s17100_s27 + $0x30] sm:$0xff]  }
 0x796   : > { %v10470_v46 = vrot.slane %v10462_v34, %v23519_v33  ;;  %v10477_v20 = vrot.slane %v10463_v15, %v23519_v33  ;;  %v10326_v53 = vcombine.low %v20930_v16, %v9910_v38  ;;  %v10327_v52 = vcombine.high %v20930_v16, %v9910_v38  ;;  %15460 = vmatprep.subr.bf16.mxu0 %v15907_v54 }
 0x797   : > { %v21067_v37 = vrot.slane %v11210_v13, %v23519_v33  ;;  %v21070_v3 = vrot.slane %v14746_v43, %v23519_v33  ;;  %v21073_v28 = vrot.slane %v11226_v51, %v23519_v33  ;;  %v21076_v34 = vrot.slane %v14747_v32, %v23519_v33  ;;  %15461 = vmatpush3.bf16.msra.mxu0 %v15907_v54 }
 0x798   : > { %v10334_v15 = vrot.slane %v10326_v53, %v23519_v33  ;;  %v10341_v19 = vrot.slane %v10327_v52, %v23519_v33  ;;  %v10530_v16 = vcombine.low %v20936_v59, %v15419_v45  ;;  %v10531_v38 = vcombine.high %v20936_v59, %v15419_v45  ;;  %15462 = vmatprep.subr.bf16.mxu0 %v15908_v23 }
 0x799   : > { %v10394_v26 = vcombine.low %v20940_v5, %v9913_v35  ;;  %v10395_v55 = vcombine.high %v20940_v5, %v9913_v35  ;;  %v10478_v17 = vcombine.low %v20934_v10, %v15450_v29  ;;  %v10479_v56 = vcombine.high %v20934_v10, %v15450_v29 }
 0x79a   : > { %v21089_v13 = vrot.slane %v10530_v16, %v23519_v33  ;;  %v21092_v43 = vrot.slane %v10531_v38, %v23519_v33  ;;  %v10342_v51 = vcombine.low %v20938_v39, %v10007_v40  ;;  %v10343_v59 = vcombine.high %v20938_v39, %v10007_v40 }
 0x79b   : > { %v21097_v5 = vrot.slane %v10394_v26, %v23519_v33  ;;  %v21100_v45 = vrot.slane %v10395_v55, %v23519_v33  ;;  %v10486_v10 = vrot.slane %v10478_v17, %v23519_v33  ;;  %v10493_v29 = vrot.slane %v10479_v56, %v23519_v33  ;;  %v15909_v26 = vld [vmem:[%s17100_s27 + $0x28] sm:$0xff]   ;;  %15463 = vmatpush3.bf16.msra.mxu0 %v15908_v23 }
 0x79c   : > { %v10350_v32 = vrot.slane %v10342_v51, %v23519_v33  ;;  %v10357_v53 = vrot.slane %v10343_v59, %v23519_v33  ;;  %v10546_v52 = vcombine.low %v20944_v8, %v15451_v12  ;;  %v10547_v39 = vcombine.high %v20944_v8, %v15451_v12  ;;  %15464 = vmatprep.subr.bf16.mxu0 %v15909_v26 }
 0x79d   : > { %v10494_v40 = vcombine.low %v10470_v46, %v10486_v10  ;;  %v10495_v35 = vcombine.high %v10470_v46, %v10486_v10  ;;  %v10510_v16 = vcombine.low %v10477_v20, %v10493_v29  ;;  %v10511_v38 = vcombine.high %v10477_v20, %v10493_v29 }
 0x79e   : > { %v10358_v55 = vcombine.low %v10334_v15, %v10350_v32  ;;  %v10359_v17 = vcombine.high %v10334_v15, %v10350_v32  ;;  %v10374_v21 = vcombine.low %v10341_v19, %v10357_v53  ;;  %v10375_v56 = vcombine.high %v10341_v19, %v10357_v53  ;;  %v15910_v32 = vld [vmem:[%s17100_s27 + $0x20] sm:$0xff]  }
 0x79f   : > { %v10502_v51 = vrot.slane %v10494_v40, %v23464_v50  ;;  %v10509_v59 = vrot.slane %v10495_v35, %v23464_v50  ;;  %v10518_v0 = vrot.slane %v10510_v16, %v23464_v50  ;;  %v10525_v8 = vrot.slane %v10511_v38, %v23464_v50  ;;  %v10010_v38 = vpop.f32.mrf.mxu1  ;;  %15465 = vmatpush3.bf16.msra.mxu0 %v15909_v26 }
 0x7a0   : > { %v10366_v12 = vrot.slane %v10358_v55, %v23464_v50  ;;  %v10373_v46 = vrot.slane %v10359_v17, %v23464_v50  ;;  %v10382_v20 = vrot.slane %v10374_v21, %v23464_v50  ;;  %v10389_v54 = vrot.slane %v10375_v56, %v23464_v50  ;;  %15466 = vmatprep.subr.bf16.mxu0 %v15910_v32 }
 0x7a1   : > { %v11550_v15 = vcombine.low %v10502_v51, %v10509_v59  ;;  %v14756_v10 = vcombine.high %v10502_v51, %v10509_v59  ;;  %v11566_v19 = vcombine.low %v10518_v0, %v10525_v8  ;;  %v14757_v29 = vcombine.high %v10518_v0, %v10525_v8 }
 0x7a2   : > { %v11414_v53 = vcombine.low %v10366_v12, %v10373_v46  ;;  %v14752_v40 = vcombine.high %v10366_v12, %v10373_v46  ;;  %v11430_v35 = vcombine.low %v10382_v20, %v10389_v54  ;;  %v14753_v16 = vcombine.high %v10382_v20, %v10389_v54 }
 0x7a3   : > { %v21119_v55 = vrot.slane %v11550_v15, %v23519_v33  ;;  %v21122_v17 = vrot.slane %v14756_v10, %v23519_v33  ;;  %v21125_v21 = vrot.slane %v11566_v19, %v23519_v33  ;;  %v21128_v23 = vrot.slane %v14757_v29, %v23519_v33  ;;  %15467 = vmatpush3.bf16.msra.mxu0 %v15910_v32 }
 0x7a4   : > { %v21131_v0 = vrot.slane %v11414_v53, %v23519_v33  ;;  %v21134_v56 = vrot.slane %v14752_v40, %v23519_v33  ;;  %v21137_v51 = vrot.slane %v11430_v35, %v23519_v33  ;;  %v21140_v59 = vrot.slane %v14753_v16, %v23519_v33 }
 0x7a5   : > { %v10554_v8 = vrot.slane %v10546_v52, %v23519_v33  ;;  %v10561_v12 = vrot.slane %v10547_v39, %v23519_v33  ;;  %v10410_v46 = vcombine.low %v20948_v18, %v10010_v38  ;;  %v10411_v20 = vcombine.high %v20948_v18, %v10010_v38 }
 0x7a6   : > { %v11310_v54 = vcombine.low %v21007_v9, %v21010_v61  ;;  %v11326_v15 = vcombine.low %v21013_v25, %v21016_v6  ;;  %v11378_v10 = vcombine.low %v21051_v24, %v21054_v27  ;;  %v11394_v26 = vcombine.low %v21057_v63, %v21060_v44 }
 0x7a7   : > { %v10562_v52 = vcombine.low %v21089_v13, %v10554_v8  ;;  %v10563_v39 = vcombine.high %v21089_v13, %v10554_v8  ;;  %v10578_v18 = vcombine.low %v21092_v43, %v10561_v12  ;;  %v10579_v19 = vcombine.high %v21092_v43, %v10561_v12 }
 0x7a8   : > { %v10418_v29 = vrot.slane %v10410_v46, %v23519_v33  ;;  %v10425_v53 = vrot.slane %v10411_v20, %v23519_v33  ;;  %v21161_v40 = vrot.slane %v11310_v54, %v23464_v50  ;;  %v21164_v35 = vrot.slane %v11326_v15, %v23464_v50  ;;  %v15911_v54 = vld [vmem:[%s17100_s27 + $0x18] sm:$0xff]  }
 0x7a9   : > { %v10570_v16 = vrot.slane %v10562_v52, %v23464_v50  ;;  %v10577_v13 = vrot.slane %v10563_v39, %v23464_v50  ;;  %v10586_v38 = vrot.slane %v10578_v18, %v23464_v50  ;;  %v10593_v8 = vrot.slane %v10579_v19, %v23464_v50  ;;  %v15422_v52 = vpop.f32.mrf.mxu0  ;;  %15468 = vmatprep.subr.bf16.mxu0 %v15911_v54 }
 0x7aa   : > { %23520 = vst [vmem:[#allocation90_spill] sm:$0xff] %v21161_v40  ;;  %23521 = vst [vmem:[#allocation89_spill] sm:$0xff] %v21164_v35  ;;  %v10426_v43 = vcombine.low %v21097_v5, %v10418_v29  ;;  %v10427_v12 = vcombine.high %v21097_v5, %v10418_v29  ;;  %v10442_v46 = vcombine.low %v21100_v45, %v10425_v53  ;;  %15469 = vmatpush3.bf16.msra.mxu0 %v15911_v54 }
 0x7ab   : > { %v10443_v20 = vcombine.high %v21100_v45, %v10425_v53  ;;  %v11618_v15 = vcombine.low %v10570_v16, %v10577_v13  ;;  %v14758_v58 = vcombine.high %v10570_v16, %v10577_v13  ;;  %v11634_v32 = vcombine.low %v10586_v38, %v10593_v8 }
 0x7ac   : > { %v14759_v31 = vcombine.high %v10586_v38, %v10593_v8  ;;  %v10434_v39 = vrot.slane %v10426_v43, %v23464_v50  ;;  %v10441_v18 = vrot.slane %v10427_v12, %v23464_v50  ;;  %v10450_v19 = vrot.slane %v10442_v46, %v23464_v50 }
 0x7ad   : > { %v10457_v7 = vrot.slane %v10443_v20, %v23464_v50  ;;  %v21180_v5 = vrot.slane %v11618_v15, %v23519_v33  ;;  %v21183_v45 = vrot.slane %v14758_v58, %v23519_v33  ;;  %v21186_v29 = vrot.slane %v11634_v32, %v23519_v33  ;;  %v9926_v20 = vpop.f32.mrf.mxu0 }
 0x7ae   : > { %v21189_v53 = vrot.slane %v14759_v31, %v23519_v33  ;;  %v11482_v16 = vcombine.low %v10434_v39, %v10441_v18  ;;  %v14754_v13 = vcombine.high %v10434_v39, %v10441_v18  ;;  %v11343_v43 = vcombine.high %v21161_v40, %v21164_v35 }
 0x7af   : > { %v11498_v38 = vcombine.low %v10450_v19, %v10457_v7  ;;  %v14755_v8 = vcombine.high %v10450_v19, %v10457_v7  ;;  %v21194_v12 = vrot.slane %v11378_v10, %v23464_v50  ;;  %v21197_v58 = vrot.slane %v11394_v26, %v23464_v50 }
 0x7b0   : > { %v10734_v46 = vcombine.low %v20942_v14, %v15422_v52  ;;  %v21201_v31 = vrot.slane %v11482_v16, %v23519_v33  ;;  %v21204_v54 = vrot.slane %v14754_v13, %v23519_v33  ;;  %v10735_v26 = vcombine.high %v20942_v14, %v15422_v52 }
 0x7b1   : > { %23522 = vst [vmem:[#allocation74_spill] sm:$0xff] %v21194_v12  ;;  %23523 = vst [vmem:[#allocation57_spill] sm:$0xff] %v21197_v58  ;;  %v21207_v7 = vrot.slane %v11498_v38, %v23519_v33  ;;  %v21210_v15 = vrot.slane %v14755_v8, %v23519_v33  ;;  %v11411_v10 = vcombine.high %v21194_v12, %v21197_v58  ;;  %v15912_v12 = vld [vmem:[%s17100_s27 + $0x10] sm:$0xff]  }
 0x7b2   : > { %v21216_v32 = vrot.slane %v10734_v46, %v23519_v33  ;;  %v11174_v39 = vcombine.low %v21023_v1, %v21026_v57  ;;  %v11190_v18 = vcombine.low %v21029_v41, %v21032_v36  ;;  %v11242_v19 = vcombine.low %v21067_v37, %v21070_v3  ;;  %v15423_v46 = vpop.f32.mrf.mxu0  ;;  %15470 = vmatprep.subr.bf16.mxu0 %v15912_v12 }
 0x7b3   : > { %v11258_v16 = vcombine.low %v21073_v28, %v21076_v34  ;;  %v10598_v13 = vcombine.low %v20946_v48, %v9926_v20  ;;  %v15755_v38 = vpack.i.bf16 %v11411_v10, %v11343_v43  ;;  %v21228_v14 = vrot.slane %v10735_v26, %v23519_v33  ;;  %v15454_v10 = vpop.f32.mrf.mxu1  ;;  %15471 = vmatpush3.bf16.msra.mxu0 %v15912_v12 }
 0x7b4   : > { %v21231_v52 = vrot.slane %v11174_v39, %v23464_v50  ;;  %v10599_v8 = vcombine.high %v20946_v48, %v9926_v20  ;;  %v21236_v58 = vrot.slane %v11190_v18, %v23464_v50  ;;  %v21239_v40 = vrot.slane %v11242_v19, %v23464_v50 }
 0x7b5   : > { %v21242_v35 = vrot.slane %v11258_v16, %v23464_v50  ;;  %v21245_v43 = vrot.slane %v10598_v13, %v23519_v33  ;;  %15756 = vrot.lane.b32.xlu1 %v15755_v38, %s16746_s1  ;;  %v11311_v20 = vcombine.high %v21007_v9, %v21010_v61  ;;  %v11327_v26 = vcombine.high %v21013_v25, %v21016_v6 }
 0x7b6   : > { %v21249_v48 = vrot.slane %v10599_v8, %v23519_v33  ;;  %v11379_v39 = vcombine.high %v21051_v24, %v21054_v27  ;;  %v11207_v18 = vcombine.high %v21231_v52, %v21236_v58  ;;  %v11395_v16 = vcombine.high %v21057_v63, %v21060_v44  ;;  %v9929_v24 = vpop.f32.mrf.mxu0  ;;  %v15913_v27 = vld [vmem:[%s17100_s27 + $0x8] sm:$0xff]  }
 0x7b7   : > { %v11275_v19 = vcombine.high %v21239_v40, %v21242_v35  ;;  %v10802_v13 = vcombine.low %v20952_v49, %v15423_v46  ;;  %v21265_v9 = vrot.slane %v11311_v20, %v23464_v50  ;;  %v21268_v61 = vrot.slane %v11327_v26, %v23464_v50  ;;  %v10023_v20 = vpop.f32.mrf.mxu1  ;;  %15472 = vmatprep.subr.bf16.mxu0 %v15913_v27 }
 0x7b8   : > { %v21271_v25 = vrot.slane %v11379_v39, %v23464_v50  ;;  %v10803_v6 = vcombine.high %v20952_v49, %v15423_v46  ;;  %v21276_v63 = vrot.slane %v11395_v16, %v23464_v50  ;;  %v11175_v8 = vcombine.high %v21023_v1, %v21026_v57  ;;  %15473 = vmatpush3.bf16.msra.mxu0 %v15913_v27 }
 0x7b9   : > { %v15765_v38 = vpack.i.bf16 %v11275_v19, %v11207_v18  ;;  %v21279_v44 = vrot.slane %v10802_v13, %v23519_v33  ;;  %v11344_v26 = vcombine.low %v21265_v9, %v21268_v61  ;;  %v11191_v49 = vcombine.high %v21029_v41, %v21032_v36 }
 0x7ba   : > { %v21286_v39 = vrot.slane %v10803_v6, %v23519_v33  ;;  %v11243_v12 = vcombine.high %v21067_v37, %v21070_v3  ;;  %v11412_v46 = vcombine.low %v21271_v25, %v21276_v63  ;;  %v11189_v1 = vrot.slane %v11175_v8, %v23464_v50 }
 0x7bb   : > { %15766 = vrot.lane.b32.xlu0 %v15765_v38, %s16746_s1  ;;  %v11259_v57 = vcombine.high %v21073_v28, %v21076_v34  ;;  %v10666_v18 = vcombine.low %v20956_v62, %v9929_v24  ;;  %v11205_v19 = vrot.slane %v11191_v49, %v23464_v50  ;;  %v10667_v36 = vcombine.high %v20956_v62, %v9929_v24  ;;  %v15455_v28 = vpop.f32.mrf.mxu1 }
 0x7bc   : > { %v11257_v41 = vrot.slane %v11243_v12, %v23464_v50  ;;  %v10750_v37 = vcombine.low %v20950_v47, %v15454_v10  ;;  %v15760_v3 = vpack.i.bf16 %v11412_v46, %v11344_v26  ;;  %v10751_v6 = vcombine.high %v20950_v47, %v15454_v10 }
 0x7bd   : > { %v11273_v16 = vrot.slane %v11259_v57, %v23464_v50  ;;  %v21305_v13 = vrot.slane %v10666_v18, %v23519_v33  ;;  %v11209_v34 = vcombine.high %v11189_v1, %v11205_v19  ;;  %v21309_v38 = vrot.slane %v10667_v36, %v23519_v33 }
 0x7be   : > { %v10758_v8 = vrot.slane %v10750_v37, %v23519_v33  ;;  %v11208_v49 = vcombine.low %v11189_v1, %v11205_v19  ;;  %15761 = vrot.lane.b32.xlu1 %v15760_v3, %s16745_s24  ;;  %v10765_v24 = vrot.slane %v10751_v6, %v23519_v33  ;;  %v10614_v26 = vcombine.low %v20954_v42, %v10023_v20 }
 0x7bf   : > { %v11277_v62 = vcombine.high %v11257_v41, %v11273_v16  ;;  %v11276_v27 = vcombine.low %v11257_v41, %v11273_v16  ;;  %v10615_v10 = vcombine.high %v20954_v42, %v10023_v20  ;;  %v10818_v46 = vcombine.low %v20960_v4, %v15455_v28 }
 0x7c0   : > { %v10766_v12 = vcombine.low %v21216_v32, %v10758_v8  ;;  %v10767_v47 = vcombine.high %v21216_v32, %v10758_v8  ;;  %v10782_v18 = vcombine.low %v21228_v14, %v10765_v24  ;;  %v10783_v1 = vcombine.high %v21228_v14, %v10765_v24  ;;  %v15914_v8 = vld [vmem:[%s17100_s27] sm:$0xff]  }
 0x7c1   : > { %v15775_v57 = vpack.i.bf16 %v11277_v62, %v11209_v34  ;;  %v15770_v19 = vpack.i.bf16 %v11276_v27, %v11208_v49  ;;  %v10622_v37 = vrot.slane %v10614_v26, %v23519_v33  ;;  %v10629_v3 = vrot.slane %v10615_v10, %v23519_v33  ;;  %15474 = vmatprep.subr.bf16.mxu0 %v15914_v8 }
 0x7c2   : > { %v10774_v36 = vrot.slane %v10766_v12, %v23464_v50  ;;  %v10781_v41 = vrot.slane %v10767_v47, %v23464_v50  ;;  %v10790_v42 = vrot.slane %v10782_v18, %v23464_v50  ;;  %v10797_v32 = vrot.slane %v10783_v1, %v23464_v50  ;;  %15475 = vmatpush3.bf16.msra.mxu0 %v15914_v8 }
 0x7c3   : > { %15776 = vrot.lane.b32.xlu0 %v15775_v57, %s16744_s3  ;;  %15771 = vrot.lane.b32.xlu1 %v15770_v19, %s16745_s24  ;;  %v10819_v20 = vcombine.high %v20960_v4, %v15455_v28  ;;  %v10630_v6 = vcombine.low %v21245_v43, %v10622_v37  ;;  %v10631_v34 = vcombine.high %v21245_v43, %v10622_v37 }
 0x7c4   : > { %v11822_v14 = vcombine.low %v10774_v36, %v10781_v41  ;;  %v14764_v16 = vcombine.high %v10774_v36, %v10781_v41  ;;  %v11838_v49 = vcombine.low %v10790_v42, %v10797_v32  ;;  %v14765_v62 = vcombine.high %v10790_v42, %v10797_v32  ;;  %v10026_v42 = vpop.f32.mrf.mxu1 }
 0x7c5   : > { %v10646_v24 = vcombine.low %v21249_v48, %v10629_v3  ;;  %v10647_v27 = vcombine.high %v21249_v48, %v10629_v3  ;;  %v10638_v4 = vrot.slane %v10630_v6, %v23464_v50  ;;  %v10645_v28 = vrot.slane %v10631_v34, %v23464_v50 }
 0x7c6   : > { %v21336_v26 = vrot.slane %v11822_v14, %v23519_v33  ;;  %v21339_v12 = vrot.slane %v14764_v16, %v23519_v33  ;;  %v21344_v43 = vrot.slane %v11838_v49, %v23519_v33  ;;  %v21347_v47 = vrot.slane %v14765_v62, %v23519_v33 }
 0x7c7   : > { %v10654_v10 = vrot.slane %v10646_v24, %v23464_v50  ;;  %v10661_v48 = vrot.slane %v10647_v27, %v23464_v50  ;;  %v11686_v57 = vcombine.low %v10638_v4, %v10645_v28  ;;  %v14760_v18 = vcombine.high %v10638_v4, %v10645_v28 }
 0x7c8   : > { %v10826_v1 = vrot.slane %v10818_v46, %v23519_v33  ;;  %v10833_v19 = vrot.slane %v10819_v20, %v23519_v33  ;;  %v11345_v37 = vcombine.high %v21265_v9, %v21268_v61  ;;  %v11413_v3 = vcombine.high %v21271_v25, %v21276_v63 }
 0x7c9   : > { %v11702_v36 = vcombine.low %v10654_v10, %v10661_v48  ;;  %v14761_v41 = vcombine.high %v10654_v10, %v10661_v48  ;;  %v21358_v32 = vrot.slane %v11686_v57, %v23519_v33  ;;  %v21361_v14 = vrot.slane %v14760_v18, %v23519_v33 }
 0x7ca   : > { %v10834_v16 = vcombine.low %v21279_v44, %v10826_v1  ;;  %v10835_v46 = vcombine.high %v21279_v44, %v10826_v1  ;;  %v10850_v9 = vcombine.low %v21286_v39, %v10833_v19  ;;  %v10851_v61 = vcombine.high %v21286_v39, %v10833_v19 }
 0x7cb   : > { %v21366_v20 = vrot.slane %v11702_v36, %v23519_v33  ;;  %v21369_v6 = vrot.slane %v14761_v41, %v23519_v33  ;;  %v15780_v34 = vpack.i.bf16 %v11413_v3, %v11345_v37  ;;  %v10682_v8 = vcombine.low %v20964_v2, %v10026_v42  ;;  %v15426_v41 = vpop.f32.mrf.mxu0 }
 0x7cc   : > { %v10842_v25 = vrot.slane %v10834_v16, %v23464_v50  ;;  %v10849_v63 = vrot.slane %v10835_v46, %v23464_v50  ;;  %v10858_v49 = vrot.slane %v10850_v9, %v23464_v50  ;;  %v10865_v44 = vrot.slane %v10851_v61, %v23464_v50 }
 0x7cd   : > { %v10683_v62 = vcombine.high %v20964_v2, %v10026_v42  ;;  %v11582_v24 = vcombine.low %v21119_v55, %v21122_v17  ;;  %15781 = vrot.lane.b32.xlu1 %v15780_v34, %s16744_s3  ;;  %v10690_v39 = vrot.slane %v10682_v8, %v23519_v33  ;;  %v11598_v28 = vcombine.low %v21125_v21, %v21128_v23 }
 0x7ce   : > { %v11890_v27 = vcombine.low %v10842_v25, %v10849_v63  ;;  %v14766_v4 = vcombine.high %v10842_v25, %v10849_v63  ;;  %v11906_v10 = vcombine.low %v10858_v49, %v10865_v44  ;;  %v14767_v48 = vcombine.high %v10858_v49, %v10865_v44 }
 0x7cf   : > { %v10697_v57 = vrot.slane %v10683_v62, %v23519_v33  ;;  %v21387_v18 = vrot.slane %v11582_v24, %v23464_v50  ;;  %v10698_v19 = vcombine.low %v21305_v13, %v10690_v39  ;;  %v10699_v36 = vcombine.high %v21305_v13, %v10690_v39 }
 0x7d0   : > { %v21390_v2 = vrot.slane %v11890_v27, %v23519_v33  ;;  %v21393_v1 = vrot.slane %v14766_v4, %v23519_v33  ;;  %v21398_v37 = vrot.slane %v11906_v10, %v23519_v33  ;;  %v21401_v3 = vrot.slane %v14767_v48, %v23519_v33 }
 0x7d1   : > { %v10714_v42 = vcombine.low %v21309_v38, %v10697_v57  ;;  %v10715_v16 = vcombine.high %v21309_v38, %v10697_v57  ;;  %v10706_v46 = vrot.slane %v10698_v19, %v23464_v50  ;;  %v10713_v9 = vrot.slane %v10699_v36, %v23464_v50 }
 0x7d2   : > { %v21408_v61 = vrot.slane %v11598_v28, %v23464_v50  ;;  %v11650_v13 = vcombine.low %v21180_v5, %v21183_v45  ;;  %v11666_v34 = vcombine.low %v21186_v29, %v21189_v53  ;;  %v11006_v8 = vcombine.low %v20958_v30, %v15426_v41  ;;  %v9942_v28 = vpop.f32.mrf.mxu0 }
 0x7d3   : > { %v10722_v25 = vrot.slane %v10714_v42, %v23464_v50  ;;  %v10729_v63 = vrot.slane %v10715_v16, %v23464_v50  ;;  %v11754_v38 = vcombine.low %v10706_v46, %v10713_v9  ;;  %v14762_v49 = vcombine.high %v10706_v46, %v10713_v9 }
 0x7d4   : > { %v11615_v44 = vcombine.high %v21387_v18, %v21408_v61  ;;  %v21420_v62 = vrot.slane %v11650_v13, %v23464_v50  ;;  %v21423_v4 = vrot.slane %v11666_v34, %v23464_v50  ;;  %v11007_v39 = vcombine.high %v20958_v30, %v15426_v41 }
 0x7d5   : > { %v11770_v24 = vcombine.low %v10722_v25, %v10729_v63  ;;  %v14763_v27 = vcombine.high %v10722_v25, %v10729_v63  ;;  %v21427_v10 = vrot.slane %v11754_v38, %v23519_v33  ;;  %v21430_v48 = vrot.slane %v14762_v49, %v23519_v33  ;;  %v15427_v38 = vpop.f32.mrf.mxu0 }
 0x7d6   : > { %v21433_v57 = vrot.slane %v11006_v8, %v23519_v33  ;;  %v11446_v19 = vcombine.low %v21131_v0, %v21134_v56  ;;  %v11683_v30 = vcombine.high %v21420_v62, %v21423_v4  ;;  %v21446_v41 = vrot.slane %v11007_v39, %v23519_v33 }
 0x7d7   : > { %v21438_v36 = vrot.slane %v11770_v24, %v23519_v33  ;;  %v21441_v42 = vrot.slane %v14763_v27, %v23519_v33  ;;  %v11462_v46 = vcombine.low %v21137_v51, %v21140_v59  ;;  %v11514_v9 = vcombine.low %v21201_v31, %v21204_v54 }
 0x7d8   : > { %v21449_v16 = vrot.slane %v11446_v19, %v23464_v50  ;;  %v11530_v13 = vcombine.low %v21207_v7, %v21210_v15  ;;  %v15785_v25 = vpack.i.bf16 %v11683_v30, %v11615_v44  ;;  %v10870_v63 = vcombine.low %v20962_v11, %v9942_v28 }
 0x7d9   : > { %v10871_v34 = vcombine.high %v20962_v11, %v9942_v28  ;;  %v11583_v8 = vcombine.high %v21119_v55, %v21122_v17  ;;  %v21462_v49 = vrot.slane %v11462_v46, %v23464_v50  ;;  %v21465_v24 = vrot.slane %v11514_v9, %v23464_v50 }
 0x7da   : > { %v21468_v27 = vrot.slane %v11530_v13, %v23464_v50  ;;  %v11599_v44 = vcombine.high %v21125_v21, %v21128_v23  ;;  %15786 = vrot.lane.b32.xlu1 %v15785_v25, %s16746_s1  ;;  %v21474_v11 = vrot.slane %v10870_v63, %v23519_v33  ;;  %v11651_v39 = vcombine.high %v21180_v5, %v21183_v45  ;;  %v9945_v45 = vpop.f32.mrf.mxu0  ;;  %v15458_v13 = vpop.f32.mrf.mxu1 }
 0x7db   : > { %v21477_v55 = vrot.slane %v10871_v34, %v23519_v33  ;;  %v11597_v17 = vrot.slane %v11583_v8, %v23464_v50  ;;  %v11479_v28 = vcombine.high %v21449_v16, %v21462_v49  ;;  %v11667_v23 = vcombine.high %v21186_v29, %v21189_v53 }
 0x7dc   : > { %v11547_v19 = vcombine.high %v21465_v24, %v21468_v27  ;;  %v11613_v21 = vrot.slane %v11599_v44, %v23464_v50  ;;  %v11665_v30 = vrot.slane %v11651_v39, %v23464_v50  ;;  %v11074_v46 = vcombine.low %v20968_v22, %v15427_v38 }
 0x7dd   : > { %v11075_v9 = vcombine.high %v20968_v22, %v15427_v38  ;;  %v11447_v5 = vcombine.high %v21131_v0, %v21134_v56  ;;  %v11681_v34 = vrot.slane %v11667_v23, %v23464_v50  ;;  %v11463_v8 = vcombine.high %v21137_v51, %v21140_v59 }
 0x7de   : > { %v15795_v25 = vpack.i.bf16 %v11547_v19, %v11479_v28  ;;  %v11616_v63 = vcombine.low %v11597_v17, %v11613_v21  ;;  %v21498_v29 = vrot.slane %v11074_v46, %v23519_v33  ;;  %v11515_v0 = vcombine.high %v21201_v31, %v21204_v54  ;;  %v23524_v28 = vld [vmem:[#allocation84_spill] sm:$0xff]  ;;  %v10039_v31 = vpop.f32.mrf.mxu1 }
 0x7df   : > { %v21501_v53 = vrot.slane %v11075_v9, %v23519_v33  ;;  %v21504_v22 = vrot.slane %v11447_v5, %v23464_v50  ;;  %v11684_v56 = vcombine.low %v11665_v30, %v11681_v34  ;;  %v21510_v38 = vrot.slane %v11463_v8, %v23464_v50 }
 0x7e0   : > { %15796 = vrot.lane.b32.xlu0 %v15795_v25, %s16746_s1  ;;  %v11531_v51 = vcombine.high %v21207_v7, %v21210_v15  ;;  %v10938_v59 = vcombine.low %v20972_v60, %v9945_v45  ;;  %v11529_v44 = vrot.slane %v11515_v0, %v23464_v50  ;;  %v10939_v39 = vcombine.high %v20972_v60, %v9945_v45 }
 0x7e1   : > { %v11022_v19 = vcombine.low %v23524_v28, %v15458_v13  ;;  %v11023_v23 = vcombine.high %v23524_v28, %v15458_v13  ;;  %v15790_v54 = vpack.i.bf16 %v11684_v56, %v11616_v63  ;;  %v11480_v46 = vcombine.low %v21504_v22, %v21510_v38  ;;  %v23525_v63 = vld [vmem:[#allocation69_spill] sm:$0xff] }
 0x7e2   : > { %v11545_v9 = vrot.slane %v11531_v51, %v23464_v50  ;;  %v21523_v5 = vrot.slane %v10938_v59, %v23519_v33  ;;  %v21526_v7 = vrot.slane %v10939_v39, %v23519_v33  ;;  %v11617_v45 = vcombine.high %v11597_v17, %v11613_v21 }
 0x7e3   : > { %v11030_v15 = vrot.slane %v11022_v19, %v23519_v33  ;;  %v11037_v60 = vrot.slane %v11023_v23, %v23519_v33  ;;  %15791 = vrot.lane.b32.xlu1 %v15790_v54, %s16745_s24  ;;  %v11685_v25 = vcombine.high %v11665_v30, %v11681_v34  ;;  %v10886_v8 = vcombine.low %v23525_v63, %v10039_v31  ;;  %v15459_v23 = vpop.f32.mrf.mxu1 }
 0x7e4   : > { %v11548_v13 = vcombine.low %v11529_v44, %v11545_v9  ;;  %v10887_v0 = vcombine.high %v23525_v63, %v10039_v31 }
 0x7e5   : > { %v11038_v56 = vcombine.low %v21433_v57, %v11030_v15  ;;  %v11039_v51 = vcombine.high %v21433_v57, %v11030_v15  ;;  %v11054_v59 = vcombine.low %v21446_v41, %v11037_v60  ;;  %v11055_v39 = vcombine.high %v21446_v41, %v11037_v60 }
 0x7e6   : > { %v15800_v28 = vpack.i.bf16 %v11548_v13, %v11480_v46  ;;  %v15810_v19 = vpack.i.bf16 %v11685_v25, %v11617_v45  ;;  %v10894_v17 = vrot.slane %v10886_v8, %v23519_v33  ;;  %v10901_v21 = vrot.slane %v10887_v0, %v23519_v33 }
 0x7e7   : > { %v11046_v30 = vrot.slane %v11038_v56, %v23464_v50  ;;  %v11053_v34 = vrot.slane %v11039_v51, %v23464_v50  ;;  %v11062_v31 = vrot.slane %v11054_v59, %v23464_v50  ;;  %v11069_v54 = vrot.slane %v11055_v39, %v23464_v50  ;;  %v10042_v56 = vpop.f32.mrf.mxu1 }
 0x7e8   : > { %15801 = vrot.lane.b32.xlu0 %v15800_v28, %s16745_s24  ;;  %15811 = vrot.lane.b32.xlu1 %v15810_v19, %s16744_s3  ;;  %v10902_v57 = vcombine.low %v21474_v11, %v10894_v17  ;;  %v10903_v41 = vcombine.high %v21474_v11, %v10894_v17  ;;  %v10918_v46 = vcombine.low %v21477_v55, %v10901_v21 }
 0x7e9   : > { %v12094_v15 = vcombine.low %v11046_v30, %v11053_v34  ;;  %v14772_v60 = vcombine.high %v11046_v30, %v11053_v34  ;;  %v12110_v45 = vcombine.low %v11062_v31, %v11069_v54  ;;  %v14773_v13 = vcombine.high %v11062_v31, %v11069_v54  ;;  %v23526_v30 = vld [vmem:[#allocation88_spill] sm:$0xff]  ;;  %v23527_v54 = vld [vmem:[#allocation87_spill] sm:$0xff] }
 0x7ea   : > { %v10910_v25 = vrot.slane %v10902_v57, %v23464_v50  ;;  %v10917_v63 = vrot.slane %v10903_v41, %v23464_v50  ;;  %v10919_v8 = vcombine.high %v21477_v55, %v10901_v21  ;;  %v10926_v0 = vrot.slane %v10918_v46, %v23464_v50 }
 0x7eb   : > { %v21553_v51 = vrot.slane %v12094_v15, %v23519_v33  ;;  %v21556_v11 = vrot.slane %v14772_v60, %v23519_v33  ;;  %v21559_v59 = vrot.slane %v12110_v45, %v23519_v33  ;;  %v21562_v39 = vrot.slane %v14773_v13, %v23519_v33 }
 0x7ec   : > { %v10933_v28 = vrot.slane %v10919_v8, %v23464_v50  ;;  %v11958_v19 = vcombine.low %v10910_v25, %v10917_v63  ;;  %v14768_v17 = vcombine.high %v10910_v25, %v10917_v63  ;;  %v11481_v55 = vcombine.high %v21504_v22, %v21510_v38 }
 0x7ed   : > { %v11549_v21 = vcombine.high %v11529_v44, %v11545_v9  ;;  %v11090_v34 = vcombine.low %v23526_v30, %v15459_v23  ;;  %v11091_v31 = vcombine.high %v23526_v30, %v15459_v23  ;;  %v10954_v57 = vcombine.low %v23527_v54, %v10042_v56 }
 0x7ee   : > { %v21571_v41 = vrot.slane %v11958_v19, %v23519_v33  ;;  %v21574_v46 = vrot.slane %v14768_v17, %v23519_v33  ;;  %v11974_v15 = vcombine.low %v10926_v0, %v10933_v28  ;;  %v14769_v60 = vcombine.high %v10926_v0, %v10933_v28 }
 0x7ef   : > { %v15805_v45 = vpack.i.bf16 %v11549_v21, %v11481_v55  ;;  %v11098_v13 = vrot.slane %v11090_v34, %v23519_v33  ;;  %v11105_v22 = vrot.slane %v11091_v31, %v23519_v33  ;;  %v10955_v38 = vcombine.high %v23527_v54, %v10042_v56 }
 0x7f0   : > { %v21580_v44 = vrot.slane %v11974_v15, %v23519_v33  ;;  %v21583_v9 = vrot.slane %v14769_v60, %v23519_v33  ;;  %v10962_v23 = vrot.slane %v10954_v57, %v23519_v33  ;;  %v11854_v25 = vcombine.low %v21336_v26, %v21339_v12 }
 0x7f1   : > { %15806 = vrot.lane.b32.xlu0 %v15805_v45, %s16744_s3  ;;  %v11106_v63 = vcombine.low %v21498_v29, %v11098_v13  ;;  %v11107_v8 = vcombine.high %v21498_v29, %v11098_v13  ;;  %v11122_v0 = vcombine.low %v21501_v53, %v11105_v22  ;;  %v11123_v56 = vcombine.high %v21501_v53, %v11105_v22 }
 0x7f2   : > { %v10969_v28 = vrot.slane %v10955_v38, %v23519_v33  ;;  %v10970_v19 = vcombine.low %v21523_v5, %v10962_v23  ;;  %v10971_v17 = vcombine.high %v21523_v5, %v10962_v23  ;;  %v21597_v55 = vrot.slane %v11854_v25, %v23464_v50 }
 0x7f3   : > { %v11114_v21 = vrot.slane %v11106_v63, %v23464_v50  ;;  %v11121_v30 = vrot.slane %v11107_v8, %v23464_v50  ;;  %v11130_v34 = vrot.slane %v11122_v0, %v23464_v50  ;;  %v11137_v29 = vrot.slane %v11123_v56, %v23464_v50 }
 0x7f4   : > { %v10978_v31 = vrot.slane %v10970_v19, %v23464_v50  ;;  %v10985_v53 = vrot.slane %v10971_v17, %v23464_v50  ;;  %v10986_v54 = vcombine.low %v21526_v7, %v10969_v28  ;;  %v10987_v57 = vcombine.high %v21526_v7, %v10969_v28 }
 0x7f5   : > { %v12162_v5 = vcombine.low %v11114_v21, %v11121_v30  ;;  %v14774_v15 = vcombine.high %v11114_v21, %v11121_v30  ;;  %v12178_v60 = vcombine.low %v11130_v34, %v11137_v29  ;;  %v14775_v45 = vcombine.high %v11130_v34, %v11137_v29 }
 0x7f6   : > { %v10994_v13 = vrot.slane %v10986_v54, %v23464_v50  ;;  %v11001_v22 = vrot.slane %v10987_v57, %v23464_v50  ;;  %v12026_v38 = vcombine.low %v10978_v31, %v10985_v53  ;;  %v14770_v23 = vcombine.high %v10978_v31, %v10985_v53 }
 0x7f7   : > { %v21610_v25 = vrot.slane %v12162_v5, %v23519_v33  ;;  %v21613_v63 = vrot.slane %v14774_v15, %v23519_v33  ;;  %v21616_v8 = vrot.slane %v12178_v60, %v23519_v33  ;;  %v21619_v7 = vrot.slane %v14775_v45, %v23519_v33 }
 0x7f8   : > { %v21622_v0 = vrot.slane %v12026_v38, %v23519_v33  ;;  %v21625_v56 = vrot.slane %v14770_v23, %v23519_v33  ;;  %v12042_v28 = vcombine.low %v10994_v13, %v11001_v22  ;;  %v14771_v19 = vcombine.high %v10994_v13, %v11001_v22 }
 0x7f9   : > { %v11870_v17 = vcombine.low %v21344_v43, %v21347_v47  ;;  %v11922_v21 = vcombine.low %v21390_v2, %v21393_v1  ;;  %v11938_v30 = vcombine.low %v21398_v37, %v21401_v3  ;;  %v11718_v34 = vcombine.low %v21358_v32, %v21361_v14 }
 0x7fa   : > { %v21636_v29 = vrot.slane %v12042_v28, %v23519_v33  ;;  %v21639_v31 = vrot.slane %v14771_v19, %v23519_v33  ;;  %v11734_v53 = vcombine.low %v21366_v20, %v21369_v6  ;;  %v11786_v54 = vcombine.low %v21427_v10, %v21430_v48 }
 0x7fb   : > { %v21646_v57 = vrot.slane %v11870_v17, %v23464_v50  ;;  %v21649_v5 = vrot.slane %v11922_v21, %v23464_v50  ;;  %v21652_v15 = vrot.slane %v11938_v30, %v23464_v50  ;;  %v21655_v60 = vrot.slane %v11718_v34, %v23464_v50 }
 0x7fc   : > { %v21658_v33 = vrot.slane %v11734_v53, %v23464_v50  ;;  %v21661_v45 = vrot.slane %v11786_v54, %v23464_v50  ;;  %v11802_v13 = vcombine.low %v21438_v36, %v21441_v42  ;;  %v11855_v22 = vcombine.high %v21336_v26, %v21339_v12 }
 0x7fd   : > { %v11887_v38 = vcombine.high %v21597_v55, %v21646_v57  ;;  %v11955_v23 = vcombine.high %v21649_v5, %v21652_v15  ;;  %v11871_v28 = vcombine.high %v21344_v43, %v21347_v47  ;;  %v11923_v19 = vcombine.high %v21390_v2, %v21393_v1 }
 0x7fe   : > { %v11751_v17 = vcombine.high %v21655_v60, %v21658_v33  ;;  %v21678_v21 = vrot.slane %v11802_v13, %v23464_v50  ;;  %v11869_v26 = vrot.slane %v11855_v22, %v23464_v50  ;;  %v11939_v12 = vcombine.high %v21398_v37, %v21401_v3 }
 0x7ff   : > { %v15815_v30 = vpack.i.bf16 %v11955_v23, %v11887_v38  ;;  %v11885_v34 = vrot.slane %v11871_v28, %v23464_v50  ;;  %v11937_v53 = vrot.slane %v11923_v19, %v23464_v50  ;;  %v11719_v43 = vcombine.high %v21358_v32, %v21361_v14 }
 0x800   : > { %v11819_v47 = vcombine.high %v21661_v45, %v21678_v21  ;;  %v11953_v2 = vrot.slane %v11939_v12, %v23464_v50  ;;  %v11735_v1 = vcombine.high %v21366_v20, %v21369_v6  ;;  %v11787_v54 = vcombine.high %v21427_v10, %v21430_v48 }
 0x801   : > { %15816 = vrot.lane.b32.xlu1 %v15815_v30, %s16746_s1  ;;  %v11888_v37 = vcombine.low %v11869_v26, %v11885_v34  ;;  %v11733_v3 = vrot.slane %v11719_v43, %v23464_v50  ;;  %v11803_v13 = vcombine.high %v21438_v36, %v21441_v42  ;;  %v11889_v32 = vcombine.high %v11869_v26, %v11885_v34 }
 0x802   : > { %v15825_v14 = vpack.i.bf16 %v11819_v47, %v11751_v17  ;;  %v11956_v22 = vcombine.low %v11937_v53, %v11953_v2  ;;  %v11749_v38 = vrot.slane %v11735_v1, %v23464_v50  ;;  %v11801_v23 = vrot.slane %v11787_v54, %v23464_v50 }
 0x803   : > { %v11817_v20 = vrot.slane %v11803_v13, %v23464_v50  ;;  %v11957_v6 = vcombine.high %v11937_v53, %v11953_v2  ;;  %v12126_v10 = vcombine.low %v21553_v51, %v21556_v11  ;;  %v12142_v48 = vcombine.low %v21559_v59, %v21562_v39 }
 0x804   : > { %15826 = vrot.lane.b32.xlu0 %v15825_v14, %s16746_s1  ;;  %v15820_v28 = vpack.i.bf16 %v11956_v22, %v11888_v37  ;;  %v11752_v36 = vcombine.low %v11733_v3, %v11749_v38  ;;  %v11753_v42 = vcombine.high %v11733_v3, %v11749_v38  ;;  %v12194_v19 = vcombine.low %v21610_v25, %v21613_v63 }
 0x805   : > { %v11820_v17 = vcombine.low %v11801_v23, %v11817_v20  ;;  %v15840_v26 = vpack.i.bf16 %v11957_v6, %v11889_v32  ;;  %v11821_v12 = vcombine.high %v11801_v23, %v11817_v20  ;;  %v21709_v30 = vrot.slane %v12126_v10, %v23464_v50 }
 0x806   : > { %15821 = vrot.lane.b32.xlu1 %v15820_v28, %s16745_s24  ;;  %v21713_v34 = vrot.slane %v12142_v48, %v23464_v50  ;;  %v21716_v53 = vrot.slane %v12194_v19, %v23464_v50  ;;  %v12210_v43 = vcombine.low %v21616_v8, %v21619_v7  ;;  %v11990_v47 = vcombine.low %v21571_v41, %v21574_v46 }
 0x807   : > { %v15830_v2 = vpack.i.bf16 %v11820_v17, %v11752_v36  ;;  %v15835_v1 = vpack.i.bf16 %v11821_v12, %v11753_v42  ;;  %v12006_v54 = vcombine.low %v21580_v44, %v21583_v9  ;;  %v12058_v37 = vcombine.low %v21622_v0, %v21625_v56 }
 0x808   : > { %v12159_v3 = vcombine.high %v21709_v30, %v21713_v34  ;;  %v21729_v13 = vrot.slane %v12210_v43, %v23464_v50  ;;  %v21732_v32 = vrot.slane %v11990_v47, %v23464_v50  ;;  %v12074_v14 = vcombine.low %v21636_v29, %v21639_v31 }
 0x809   : > { %15831 = vrot.lane.b32.xlu0 %v15830_v2, %s16745_s24  ;;  %v21738_v22 = vrot.slane %v12006_v54, %v23464_v50  ;;  %v21741_v38 = vrot.slane %v12058_v37, %v23464_v50  ;;  %v12127_v23 = vcombine.high %v21553_v51, %v21556_v11  ;;  %v12143_v20 = vcombine.high %v21559_v59, %v21562_v39 }
 0x80a   : > { %15841 = vrot.lane.b32.xlu1 %v15840_v26, %s16744_s3  ;;  %v12227_v6 = vcombine.high %v21716_v53, %v21729_v13  ;;  %v21751_v10 = vrot.slane %v12074_v14, %v23464_v50  ;;  %v12195_v48 = vcombine.high %v21610_v25, %v21613_v63  ;;  %v12211_v28 = vcombine.high %v21616_v8, %v21619_v7 }
 0x80b   : > { %v12023_v51 = vcombine.high %v21732_v32, %v21738_v22  ;;  %v12141_v11 = vrot.slane %v12127_v23, %v23464_v50  ;;  %v12157_v59 = vrot.slane %v12143_v20, %v23464_v50  ;;  %v11991_v39 = vcombine.high %v21571_v41, %v21574_v46 }
 0x80c   : > { %v15845_v36 = vpack.i.bf16 %v12227_v6, %v12159_v3  ;;  %v12091_v42 = vcombine.high %v21741_v38, %v21751_v10  ;;  %v12209_v19 = vrot.slane %v12195_v48, %v23464_v50  ;;  %v12225_v25 = vrot.slane %v12211_v28, %v23464_v50 }
 0x80d   : > { %15836 = vrot.lane.b32.xlu0 %v15835_v1, %s16744_s3  ;;  %v12005_v63 = vrot.slane %v11991_v39, %v23464_v50  ;;  %v12007_v8 = vcombine.high %v21580_v44, %v21583_v9  ;;  %v12059_v7 = vcombine.high %v21622_v0, %v21625_v56  ;;  %v12160_v46 = vcombine.low %v12141_v11, %v12157_v59 }
 0x80e   : > { %15846 = vrot.lane.b32.xlu1 %v15845_v36, %s16746_s1  ;;  %v15855_v41 = vpack.i.bf16 %v12091_v42, %v12023_v51  ;;  %v12228_v17 = vcombine.low %v12209_v19, %v12225_v25  ;;  %v12075_v26 = vcombine.high %v21636_v29, %v21639_v31  ;;  %v12229_v47 = vcombine.high %v12209_v19, %v12225_v25 }
 0x80f   : > { %v12021_v12 = vrot.slane %v12007_v8, %v23464_v50  ;;  %v12073_v43 = vrot.slane %v12059_v7, %v23464_v50  ;;  %v12161_v44 = vcombine.high %v12141_v11, %v12157_v59  ;;  %v11614_v54 = vcombine.low %v21387_v18, %v21408_v61 }
 0x810   : > { %v15850_v2 = vpack.i.bf16 %v12228_v17, %v12160_v46  ;;  %v12089_v1 = vrot.slane %v12075_v26, %v23464_v50  ;;  %v11682_v29 = vcombine.low %v21420_v62, %v21423_v4  ;;  %v11478_v31 = vcombine.low %v21449_v16, %v21462_v49 }
 0x811   : > { %15856 = vrot.lane.b32.xlu0 %v15855_v41, %s16746_s1  ;;  %v12024_v9 = vcombine.low %v12005_v63, %v12021_v12  ;;  %v15870_v56 = vpack.i.bf16 %v12229_v47, %v12161_v44  ;;  %v11546_v50 = vcombine.low %v21465_v24, %v21468_v27  ;;  %v11886_v37 = vcombine.low %v21597_v55, %v21646_v57 }
 0x812   : > { %15851 = vrot.lane.b32.xlu1 %v15850_v2, %s16745_s24  ;;  %v12092_v0 = vcombine.low %v12073_v43, %v12089_v1  ;;  %v11954_v3 = vcombine.low %v21649_v5, %v21652_v15  ;;  %v12093_v23 = vcombine.high %v12073_v43, %v12089_v1  ;;  %v11750_v20 = vcombine.low %v21655_v60, %v21658_v33 }
 0x813   : > { %v11818_v6 = vcombine.low %v21661_v45, %v21678_v21  ;;  %v12158_v48 = vcombine.low %v21709_v30, %v21713_v34  ;;  %v12226_v28 = vcombine.low %v21716_v53, %v21729_v13  ;;  %v12022_v51 = vcombine.low %v21732_v32, %v21738_v22 }
 0x814   : > { %v15860_v14 = vpack.i.bf16 %v12092_v0, %v12024_v9  ;;  %v12090_v11 = vcombine.low %v21741_v38, %v21751_v10  ;;  %v12025_v59 = vcombine.high %v12005_v63, %v12021_v12  ;;  %v11206_v7 = vcombine.low %v21231_v52, %v21236_v58  ;;  %v23533_v10 = vld [vmem:[#allocation29_spill] sm:$0xff] }
 0x815   : > { %v11274_v41 = vcombine.low %v21239_v40, %v21242_v35  ;;  %v23532_v38 = vmov 0  }
 0x816   : > { %15861 = vrot.lane.b32.xlu0 %v15860_v14, %s16745_s24  ;;  %15871 = vrot.lane.b32.xlu1 %v15870_v56, %s16744_s3  ;;  %v15865_v39 = vpack.i.bf16 %v12093_v23, %v12025_v59  ;;  %v23528_v14 = vld [vmem:[#allocation89_spill] sm:$0xff]  ;;  %v23529_v23 = vld [vmem:[#allocation90_spill] sm:$0xff] }
 0x817   : > { %v11342_v59 = vcombine.low %v23529_v23, %v23528_v14 }
 0x81a   : > { %15866 = vrot.lane.b32.xlu0 %v15865_v39, %s16744_s3  ;;  %v23530_v39 = vld [vmem:[#allocation57_spill] sm:$0xff] }
 0x827   : > { %v15757_v36 = vpop.permute.xlu1 %15756 }
 0x828   : > { %v15759_v52 = vunpack.i.h.bf16 %v15757_v36  ;;  %v15758_v9 = vunpack.i.l.bf16 %v15757_v36 }
 0x82d   : > { %v15767_v42 = vpop.permute.xlu0 %15766 }
 0x82e   : > { %v15769_v25 = vunpack.i.h.bf16 %v15767_v42  ;;  %v15768_v8 = vunpack.i.l.bf16 %v15767_v42  ;;  %v23531_v42 = vld [vmem:[#allocation74_spill] sm:$0xff] }
 0x830   : > { %v15762_v19 = vpop.permute.xlu1 %15761  ;;  %v12423_v63 = vsel %vm8333_vm0, %v11274_v41, %v15769_v25  ;;  %v12422_v12 = vsel %vm8333_vm0, %v11206_v7, %v15768_v8  ;;  %v11410_v25 = vcombine.low %v23531_v42, %v23530_v39  ;;  %v12424_v7 = vsel %vm8333_vm0, %v11342_v59, %v15758_v9 }
 0x831   : > { %v15764_v0 = vunpack.i.h.bf16 %v15762_v19  ;;  %v15763_v56 = vunpack.i.l.bf16 %v15762_v19 }
 0x832   : > { %v12425_v41 = vsel %vm8333_vm0, %v11410_v25, %v15759_v52 }
 0x835   : > { %v15777_v46 = vpop.permute.xlu0 %15776  ;;  %v15772_v17 = vpop.permute.xlu1 %15771 }
 0x836   : > { %v15774_v26 = vunpack.i.h.bf16 %v15772_v17  ;;  %v15773_v43 = vunpack.i.l.bf16 %v15772_v17  ;;  %v15779_v47 = vunpack.i.h.bf16 %v15777_v46  ;;  %v15778_v2 = vunpack.i.l.bf16 %v15777_v46 }
 0x838   : > { %v12439_v1 = vsel %vm12438_vm1, %v12422_v12, %v15773_v43  ;;  %v12440_v44 = vsel %vm12438_vm1, %v12423_v63, %v15774_v26  ;;  %v12441_v26 = vsel %vm12438_vm1, %v12424_v7, %v15763_v56  ;;  %v12442_v43 = vsel %vm12438_vm1, %v12425_v41, %v15764_v0 }
 0x839   : > { %v12456_v58 = vsel %vm12455_vm2, %v12439_v1, %v15778_v2  ;;  %v12457_v40 = vsel %vm12455_vm2, %v12440_v44, %v15779_v47 }
 0x83a   : > { %v12472_v35 = vpack.c.bf16 %v12457_v40, %v12456_v58 }
 0x83c   : > { %15476 = vmatprep.mubr.bf16.mxu0 %v12472_v35 }
 0x83f   : > { %v15782_v8 = vpop.permute.xlu1 %15781 }
 0x840   : > { %v15784_v46 = vunpack.i.h.bf16 %v15782_v8  ;;  %v15783_v17 = vunpack.i.l.bf16 %v15782_v8 }
 0x842   : > { %v12459_v36 = vsel %vm12455_vm2, %v12442_v43, %v15784_v46  ;;  %v12458_v19 = vsel %vm12455_vm2, %v12441_v26, %v15783_v17 }
 0x843   : > { %v12473_v63 = vpack.c.bf16 %v12459_v36, %v12458_v19 }
 0x845   : > { %15477 = vmatmul.mubr.bf16.vlgmr.msra.gmra.mxu0 %v12473_v63 }
 0x84c   : > { %v15787_v12 = vpop.permute.xlu1 %15786 }
 0x84d   : > { %v15789_v2 = vunpack.i.h.bf16 %v15787_v12  ;;  %v15788_v1 = vunpack.i.l.bf16 %v15787_v12 }
 0x84f   : > { %v12428_v52 = vsel %vm8333_vm0, %v11614_v54, %v15788_v1  ;;  %v12429_v9 = vsel %vm8333_vm0, %v11682_v29, %v15789_v2 }
 0x852   : > { %v15797_v44 = vpop.permute.xlu0 %15796 }
 0x853   : > { %v15799_v18 = vunpack.i.h.bf16 %v15797_v44  ;;  %v15798_v61 = vunpack.i.l.bf16 %v15797_v44 }
 0x855   : > { %v15792_v47 = vpop.permute.xlu1 %15791  ;;  %v12427_v62 = vsel %vm8333_vm0, %v11546_v50, %v15799_v18  ;;  %v12426_v4 = vsel %vm8333_vm0, %v11478_v31, %v15798_v61 }
 0x856   : > { %v15794_v58 = vunpack.i.h.bf16 %v15792_v47  ;;  %v15793_v40 = vunpack.i.l.bf16 %v15792_v47 }
 0x858   : > { %v12445_v14 = vsel %vm12438_vm1, %v12428_v52, %v15793_v40  ;;  %v12446_v23 = vsel %vm12438_vm1, %v12429_v9, %v15794_v58 }
 0x85a   : > { %v15812_v35 = vpop.permute.xlu1 %15811  ;;  %v15802_v59 = vpop.permute.xlu0 %15801 }
 0x85b   : > { %v15814_v0 = vunpack.i.h.bf16 %v15812_v35  ;;  %v15813_v56 = vunpack.i.l.bf16 %v15812_v35  ;;  %v15804_v54 = vunpack.i.h.bf16 %v15802_v59  ;;  %v15803_v8 = vunpack.i.l.bf16 %v15802_v59 }
 0x85d   : > { %v12462_v39 = vsel %vm12455_vm2, %v12445_v14, %v15813_v56  ;;  %v12463_v42 = vsel %vm12455_vm2, %v12446_v23, %v15814_v0  ;;  %v12443_v46 = vsel %vm12438_vm1, %v12426_v4, %v15803_v8  ;;  %v12444_v17 = vsel %vm12438_vm1, %v12427_v62, %v15804_v54 }
 0x85e   : > { %v12475_v25 = vpack.c.bf16 %v12463_v42, %v12462_v39 }
 0x863   : > { %v15807_v7 = vpop.permute.xlu0 %15806 }
 0x864   : > { %v15809_v29 = vunpack.i.h.bf16 %v15807_v7  ;;  %v15808_v41 = vunpack.i.l.bf16 %v15807_v7 }
 0x866   : > { %v12460_v26 = vsel %vm12455_vm2, %v12443_v46, %v15808_v41  ;;  %v12461_v43 = vsel %vm12455_vm2, %v12444_v17, %v15809_v29 }
 0x867   : > { %v12474_v36 = vpack.c.bf16 %v12461_v43, %v12460_v26 }
 0x869   : > { %15480 = vmatprep.mubr.bf16.mxu0 %v12474_v36 }
 0x86a   : > { %15481 = vmatmul.mubr.bf16.gmra.mxu0 %v12475_v25 }
 0x873   : > { %v15817_v24 = vpop.permute.xlu1 %15816 }
 0x874   : > { %v15819_v50 = vunpack.i.h.bf16 %v15817_v24  ;;  %v15818_v19 = vunpack.i.l.bf16 %v15817_v24 }
 0x876   : > { %v15827_v27 = vpop.permute.xlu0 %15826  ;;  %v12432_v47 = vsel %vm8333_vm0, %v11886_v37, %v15818_v19  ;;  %v12433_v2 = vsel %vm8333_vm0, %v11954_v3, %v15819_v50 }
 0x877   : > { %v15829_v63 = vunpack.i.h.bf16 %v15827_v27  ;;  %v15828_v1 = vunpack.i.l.bf16 %v15827_v27 }
 0x878   : > { %v15822_v16 = vpop.permute.xlu1 %15821 }
 0x879   : > { %v15824_v49 = vunpack.i.h.bf16 %v15822_v16  ;;  %v15823_v31 = vunpack.i.l.bf16 %v15822_v16  ;;  %v12431_v55 = vsel %vm8333_vm0, %v11818_v6, %v15829_v63  ;;  %v12430_v37 = vsel %vm8333_vm0, %v11750_v20, %v15828_v1  ;;  %v16316_v63 = vld [vmem:[#allocation2 + $0x30] sm:$0xff] }
 0x87b   : > { %v15832_v12 = vpop.permute.xlu0 %15831  ;;  %v12449_v9 = vsel %vm12438_vm1, %v12432_v47, %v15823_v31  ;;  %v12450_v0 = vsel %vm12438_vm1, %v12433_v2, %v15824_v49  ;;  %v16317_v2 = vld [vmem:[#allocation2 + $0x58] sm:$0xff] }
 0x87c   : > { %v15842_v44 = vpop.permute.xlu1 %15841  ;;  %v15834_v58 = vunpack.i.h.bf16 %v15832_v12  ;;  %v15833_v40 = vunpack.i.l.bf16 %v15832_v12 }
 0x87d   : > { %v15844_v35 = vunpack.i.h.bf16 %v15842_v44  ;;  %v15843_v52 = vunpack.i.l.bf16 %v15842_v44 }
 0x87e   : > { %v12447_v59 = vsel %vm12438_vm1, %v12430_v37, %v15833_v40  ;;  %v12448_v45 = vsel %vm12438_vm1, %v12431_v55, %v15834_v58  ;;  %v16318_v40 = vld [vmem:[#allocation2] sm:$0xff]  ;;  %v16320_v37 = vld [vmem:[#allocation2 + $0x50] sm:$0xff] }
 0x87f   : > { %v15837_v57 = vpop.permute.xlu0 %15836  ;;  %v12466_v5 = vsel %vm12455_vm2, %v12449_v9, %v15843_v52  ;;  %v12467_v15 = vsel %vm12455_vm2, %v12450_v0, %v15844_v35  ;;  %v16319_v9 = vld [vmem:[#allocation2 + $0x18] sm:$0xff] }
 0x880   : > { %v15839_v3 = vunpack.i.h.bf16 %v15837_v57  ;;  %v15838_v56 = vunpack.i.l.bf16 %v15837_v57  ;;  %v15847_v14 = vpop.permute.xlu1 %15846  ;;  %v12477_v23 = vpack.c.bf16 %v12467_v15, %v12466_v5 }
 0x881   : > { %v15849_v25 = vunpack.i.h.bf16 %v15847_v14  ;;  %v15848_v18 = vunpack.i.l.bf16 %v15847_v14  ;;  %v16321_v14 = vld [vmem:[#allocation2 + $0x8] sm:$0xff] }
 0x882   : > { %v12464_v21 = vsel %vm12455_vm2, %v12447_v59, %v15838_v56  ;;  %v12465_v6 = vsel %vm12455_vm2, %v12448_v45, %v15839_v3 }
 0x883   : > { %v12476_v39 = vpack.c.bf16 %v12465_v6, %v12464_v21  ;;  %v15857_v42 = vpop.permute.xlu0 %15856  ;;  %v12436_v20 = vsel %vm8333_vm0, %v12158_v48, %v15848_v18  ;;  %v12437_v54 = vsel %vm8333_vm0, %v12226_v28, %v15849_v25  ;;  %v16322_v21 = vld [vmem:[#allocation2 + $0x68] sm:$0xff] }
 0x884   : > { %v15852_v61 = vpop.permute.xlu1 %15851  ;;  %v15859_v62 = vunpack.i.h.bf16 %v15857_v42  ;;  %v15858_v4 = vunpack.i.l.bf16 %v15857_v42  ;;  %v16323_v42 = vld [vmem:[#allocation2 + $0x48] sm:$0xff] }
 0x885   : > { %15484 = vmatprep.mubr.bf16.mxu0 %v12476_v39  ;;  %v15854_v60 = vunpack.i.h.bf16 %v15852_v61  ;;  %v15853_v33 = vunpack.i.l.bf16 %v15852_v61 }
 0x886   : > { %15485 = vmatmul.mubr.bf16.gmra.mxu0 %v12477_v23  ;;  %v12435_v13 = vsel %vm8333_vm0, %v12090_v11, %v15859_v62  ;;  %v12434_v28 = vsel %vm8333_vm0, %v12022_v51, %v15858_v4  ;;  %v12659_v11 = vsub.s32 4, %v23533_v10  ;;  %v21903_v51 = vld [vmem:[%s17092_s16] sm:$0xff] }
 0x887   : > { %v12453_v46 = vsel %vm12438_vm1, %v12436_v20, %v15853_v33  ;;  %v12454_v17 = vsel %vm12438_vm1, %v12437_v54, %v15854_v60  ;;  %v16324_v20 = vld [vmem:[#allocation2 + $0x40] sm:$0xff] }
 0x888   : > { %v15862_v8 = vpop.permute.xlu0 %15861  ;;  %v15872_v7 = vpop.permute.xlu1 %15871  ;;  %v21906_v31 = vrot.slane %v21903_v51, %v12659_v11 }
 0x889   : > { %v15874_v29 = vunpack.i.h.bf16 %v15872_v7  ;;  %v15873_v41 = vunpack.i.l.bf16 %v15872_v7  ;;  %v15864_v26 = vunpack.i.h.bf16 %v15862_v8  ;;  %v15863_v43 = vunpack.i.l.bf16 %v15862_v8  ;;  %v16325_v7 = vld [vmem:[#allocation2 + $0x10] sm:$0xff] }
 0x88b   : > { %v12470_v30 = vsel %vm12455_vm2, %v12453_v46, %v15873_v41  ;;  %v12471_v34 = vsel %vm12455_vm2, %v12454_v17, %v15874_v29  ;;  %v12451_v27 = vsel %vm12438_vm1, %v12434_v28, %v15863_v43  ;;  %v12452_v50 = vsel %vm12438_vm1, %v12435_v13, %v15864_v26  ;;  %v16326_v41 = vld [vmem:[#allocation2 + $0x20] sm:$0xff]  ;;  %v16327_v26 = vld [vmem:[#allocation2 + $0x38] sm:$0xff] }
 0x88c   : > { %v15867_v48 = vpop.permute.xlu0 %15866  ;;  %v12479_v53 = vpack.c.bf16 %v12471_v34, %v12470_v30  ;;  %v16328_v13 = vld [vmem:[#allocation2 + $0x60] sm:$0xff] }
 0x88d   : > { %v15869_v36 = vunpack.i.h.bf16 %v15867_v48  ;;  %v15868_v24 = vunpack.i.l.bf16 %v15867_v48 }
 0x88f   : > { %v12468_v19 = vsel %vm12455_vm2, %v12451_v27, %v15868_v24  ;;  %v12469_v16 = vsel %vm12455_vm2, %v12452_v50, %v15869_v36  ;;  %v16329_v24 = vld [vmem:[#allocation2 + $0x78] sm:$0xff] }
 0x890   : > { %v12478_v49 = vpack.c.bf16 %v12469_v16, %v12468_v19  ;;  %v16330_v16 = vld [vmem:[#allocation2 + $0x70] sm:$0xff] }
 0x892   : > { %15488 = vmatprep.mubr.bf16.mxu0 %v12478_v49 }
 0x893   : > { %15489 = vmatmul.mubr.bf16.gmra.mxu0 %v12479_v53 }
 0x894   : > { %13254 = vmatprep.mubr.bf16.mxu0 %v23532_v38 }
 0x905   : > { %v15478_v32 = vpop.f32.mrf.mxu0 }
 0x906   : > { %v12643_v1 = vadd.f32 %v16317_v2, %v15478_v32  ;;  %v16331_v32 = vld [vmem:[#allocation2 + $0x28] sm:$0xff]  ;;  %v15917_v2 = vld [vmem:[%s17102_s23 + $0xe4] ss:$16 sps:$4 sm:$0xff]  }
 0x907   : > { %v12578_v22 = vpop.f32.mrf.mxu0  ;;  %13109 = vmatprep.subr.bf16.mxu1 %v15917_v2  ;;  %v15941_v2 = vld [vmem:[%s17102_s23 + $0x64] ss:$16 sps:$4 sm:$0xff]  }
 0x908   : > { %v12641_v12 = vadd.f32 %v16316_v63, %v12578_v22  ;;  %v21913_v52 = vadd.f32 %v21906_v31, %v12643_v1  ;;  %v15918_v1 = vld [vmem:[%s17102_s23 + $0xe8] ss:$16 sps:$4 sm:$0xff]  }
 0x909   : > { %v15479_v47 = vpop.f32.mrf.mxu0 }
 0x90a   : > { %v21909_v44 = vadd.f32 %v21906_v31, %v12641_v12  ;;  %v12644_v0 = vadd.f32 %v16319_v9, %v15479_v47  ;;  %v15915_v47 = vld [vmem:[%s17102_s23 + $0xe0] ss:$16 sps:$4 sm:$0xff]  }
 0x90b   : > { %v12581_v58 = vpop.f32.mrf.mxu0  ;;  %13110 = vmatpush1.bf16.msra.mxu1 %v15915_v47  ;;  %v15936_v47 = vld [vmem:[%s17102_s23 + $0x88] ss:$16 sps:$4 sm:$0xff]  }
 0x90c   : > { %v12642_v35 = vadd.f32 %v16318_v40, %v12581_v58  ;;  %12677 = vadd.xlane.f32.xlu0 %v21909_v44  ;;  %v21921_v57 = vadd.f32 %v21906_v31, %v12644_v0  ;;  %v15920_v58 = vld [vmem:[%s17102_s23 + $0xec] ss:$16 sps:$4 sm:$0xff]  }
 0x90d   : > { %13222 = vmatprep.subr.bf16.mxu0 %v15920_v58 }
 0x90e   : > { %v21916_v55 = vadd.f32 %v21906_v31, %v12642_v35  ;;  %13223 = vmatpush1.bf16.msra.mxu0 %v15918_v1  ;;  %v15944_v1 = vld [vmem:[%s17102_s23 + $0x6c] ss:$16 sps:$4 sm:$0xff]  }
 0x910   : > { %12681 = vadd.xlane.f32.xlu0 %v21913_v52  ;;  %12679 = vadd.xlane.f32.xlu1 %v21916_v55 }
 0x914   : > { %12683 = vadd.xlane.f32.xlu0 %v21921_v57 }
 0x92a   : > { %v15482_v5 = vpop.f32.mrf.mxu0 }
 0x92b   : > { %v12647_v23 = vadd.f32 %v16321_v14, %v15482_v5 }
 0x92c   : > { %v12594_v15 = vpop.f32.mrf.mxu0 }
 0x92d   : > { %v12645_v3 = vadd.f32 %v16320_v37, %v12594_v15  ;;  %v21929_v39 = vadd.f32 %v21906_v31, %v12647_v23 }
 0x92e   : > { %v15483_v56 = vpop.f32.mrf.mxu0 }
 0x92f   : > { %v21925_v59 = vadd.f32 %v21906_v31, %v12645_v3  ;;  %v12648_v25 = vadd.f32 %v16323_v42, %v15483_v56 }
 0x930   : > { %v12597_v45 = vpop.f32.mrf.mxu0 }
 0x931   : > { %v12646_v6 = vadd.f32 %v16322_v21, %v12597_v45  ;;  %12685 = vadd.xlane.f32.xlu0 %v21925_v59  ;;  %v21937_v61 = vadd.f32 %v21906_v31, %v12648_v25  ;;  %v15921_v25 = vld [vmem:[%s17102_s23 + $0xc0] ss:$16 sps:$4 sm:$0xff]  }
 0x933   : > { %v21932_v18 = vadd.f32 %v21906_v31, %v12646_v6 }
 0x935   : > { %12689 = vadd.xlane.f32.xlu0 %v21929_v39  ;;  %12687 = vadd.xlane.f32.xlu1 %v21932_v18 }
 0x939   : > { %12691 = vadd.xlane.f32.xlu1 %v21937_v61 }
 0x946   : > { %v15486_v60 = vpop.f32.mrf.mxu0 }
 0x947   : > { %v12651_v62 = vadd.f32 %v16325_v7, %v15486_v60  ;;  %v15923_v60 = vld [vmem:[%s17102_s23 + $0xc4] ss:$16 sps:$4 sm:$0xff]  }
 0x948   : > { %v12610_v33 = vpop.f32.mrf.mxu0  ;;  %13111 = vmatprep.subr.bf16.mxu1 %v15923_v60  ;;  %v15957_v60 = vld [vmem:[%s17102_s23] ss:$16 sps:$4 sm:$0xff]  }
 0x949   : > { %v12649_v54 = vadd.f32 %v16324_v20, %v12610_v33  ;;  %v21945_v17 = vadd.f32 %v21906_v31, %v12651_v62  ;;  %v15924_v33 = vld [vmem:[%s17102_s23 + $0xc8] ss:$16 sps:$4 sm:$0xff]   ;;  %13112 = vmatpush1.bf16.msra.mxu1 %v15921_v25 }
 0x94a   : > { %v15487_v8 = vpop.f32.mrf.mxu0 }
 0x94b   : > { %v21941_v4 = vadd.f32 %v21906_v31, %v12649_v54  ;;  %v12652_v43 = vadd.f32 %v16327_v26, %v15487_v8  ;;  %v15926_v54 = vld [vmem:[%s17102_s23 + $0xcc] ss:$16 sps:$4 sm:$0xff]  }
 0x94c   : > { %v12613_v29 = vpop.f32.mrf.mxu0  ;;  %13224 = vmatprep.subr.bf16.mxu0 %v15926_v54  ;;  %v15962_v54 = vld [vmem:[%s17102_s23 + $0xc] ss:$16 sps:$4 sm:$0xff]  }
 0x94d   : > { %v12650_v46 = vadd.f32 %v16326_v41, %v12613_v29  ;;  %12693 = vadd.xlane.f32.xlu0 %v21941_v4  ;;  %v21953_v34 = vadd.f32 %v21906_v31, %v12652_v43  ;;  %13225 = vmatpush1.bf16.msra.mxu0 %v15924_v33  ;;  %v15927_v41 = vld [vmem:[%s17102_s23 + $0xa0] ss:$16 sps:$4 sm:$0xff]   ;;  %v15959_v33 = vld [vmem:[%s17102_s23 + $0x4] ss:$16 sps:$4 sm:$0xff]  }
 0x94f   : > { %v21948_v30 = vadd.f32 %v21906_v31, %v12650_v46  ;;  %v15929_v46 = vld [vmem:[%s17102_s23 + $0xa4] ss:$16 sps:$4 sm:$0xff]  }
 0x950   : > { %13113 = vmatprep.subr.bf16.mxu1 %v15929_v46 }
 0x951   : > { %12697 = vadd.xlane.f32.xlu0 %v21945_v17  ;;  %12695 = vadd.xlane.f32.xlu1 %v21948_v30 }
 0x952   : > { %13114 = vmatpush1.bf16.msra.mxu1 %v15927_v41 }
 0x953   : > { %v15490_v48 = vpop.f32.mrf.mxu0 }
 0x954   : > { %v12655_v27 = vadd.f32 %v16329_v24, %v15490_v48 }
 0x955   : > { %12699 = vadd.xlane.f32.xlu1 %v21953_v34  ;;  %v12626_v53 = vpop.f32.mrf.mxu0 }
 0x956   : > { %v12653_v28 = vadd.f32 %v16328_v13, %v12626_v53  ;;  %v21961_v11 = vadd.f32 %v21906_v31, %v12655_v27  ;;  %v15930_v53 = vld [vmem:[%s17102_s23 + $0xa8] ss:$16 sps:$4 sm:$0xff]   ;;  %v15932_v13 = vld [vmem:[%s17102_s23 + $0xac] ss:$16 sps:$4 sm:$0xff]  }
 0x957   : > { %v15491_v36 = vpop.f32.mrf.mxu0  ;;  %13226 = vmatprep.subr.bf16.mxu0 %v15932_v13 }
 0x958   : > { %v21957_v50 = vadd.f32 %v21906_v31, %v12653_v28  ;;  %v12656_v22 = vadd.f32 %v16331_v32, %v15491_v36  ;;  %v15935_v28 = vld [vmem:[%s17102_s23 + $0x84] ss:$16 sps:$4 sm:$0xff]   ;;  %v15938_v36 = vld [vmem:[%s17102_s23 + $0x8c] ss:$16 sps:$4 sm:$0xff]   ;;  %13227 = vmatpush1.bf16.msra.mxu0 %v15930_v53 }
 0x959   : > { %v12629_v19 = vpop.f32.mrf.mxu0  ;;  %13115 = vmatprep.subr.bf16.mxu1 %v15935_v28  ;;  %13228 = vmatprep.subr.bf16.mxu0 %v15938_v36 }
 0x95a   : > { %v12654_v49 = vadd.f32 %v16330_v16, %v12629_v19  ;;  %12701 = vadd.xlane.f32.xlu0 %v21957_v50  ;;  %v21969_v12 = vadd.f32 %v21906_v31, %v12656_v22  ;;  %v15933_v16 = vld [vmem:[%s17102_s23 + $0x80] ss:$16 sps:$4 sm:$0xff]  }
 0x95b   : > { %13116 = vmatpush1.bf16.msra.mxu1 %v15933_v16 }
 0x95c   : > { %v21964_v63 = vadd.f32 %v21906_v31, %v12654_v49  ;;  %13229 = vmatpush1.bf16.msra.mxu0 %v15936_v47  ;;  %13117 = vmatprep.subr.bf16.mxu1 %v15941_v2 }
 0x95d   : > { %13230 = vmatprep.subr.bf16.mxu0 %v15944_v1 }
 0x95e   : > { %12705 = vadd.xlane.f32.xlu0 %v21961_v11  ;;  %12703 = vadd.xlane.f32.xlu1 %v21964_v63 }
 0x962   : > { %12707 = vadd.xlane.f32.xlu1 %v21969_v12 }
 0x995   : > { %v12678_v40 = vpop.xlane.xlu0 %12677 }
 0x996   : > { %v12709_v35 = vmul.f32 0.0078125, %v12678_v40  ;;  %v15939_v40 = vld [vmem:[%s17102_s23 + $0x60] ss:$16 sps:$4 sm:$0xff]  }
 0x997   : > { %13118 = vmatpush1.bf16.msra.mxu1 %v15939_v40 }
 0x998   : > { %v21977_v9 = vsub.f32 %v21909_v44, %v12709_v35 }
 0x999   : > { %v12682_v0 = vpop.xlane.xlu0 %12681  ;;  %v12680_v5 = vpop.xlane.xlu1 %12679 }
 0x99a   : > { %v12711_v31 = vmul.f32 0.0078125, %v12682_v0  ;;  %v12710_v15 = vmul.f32 0.0078125, %v12680_v5  ;;  %v12741_v37 = vmul.f32 %v21977_v9, %v21977_v9  ;;  %v15942_v0 = vld [vmem:[%s17102_s23 + $0x68] ss:$16 sps:$4 sm:$0xff]   ;;  %v15945_v5 = vld [vmem:[%s17102_s23 + $0x40] ss:$16 sps:$4 sm:$0xff]  }
 0x99b   : > { %13231 = vmatpush1.bf16.msra.mxu0 %v15942_v0 }
 0x99c   : > { %v21982_v3 = vsub.f32 %v21913_v52, %v12711_v31  ;;  %v21985_v56 = vsub.f32 %v21916_v55, %v12710_v15  ;;  %12757 = vadd.xlane.f32.xlu0 %v12741_v37  ;;  %v15947_v31 = vld [vmem:[%s17102_s23 + $0x44] ss:$16 sps:$4 sm:$0xff]   ;;  %v15948_v15 = vld [vmem:[%s17102_s23 + $0x48] ss:$16 sps:$4 sm:$0xff]   ;;  %v15950_v37 = vld [vmem:[%s17102_s23 + $0x4c] ss:$16 sps:$4 sm:$0xff]  }
 0x99d   : > { %v12684_v14 = vpop.xlane.xlu0 %12683  ;;  %13119 = vmatprep.subr.bf16.mxu1 %v15947_v31  ;;  %13232 = vmatprep.subr.bf16.mxu0 %v15950_v37 }
 0x99e   : > { %v12712_v23 = vmul.f32 0.0078125, %v12684_v14  ;;  %v12743_v45 = vmul.f32 %v21982_v3, %v21982_v3  ;;  %v12742_v21 = vmul.f32 %v21985_v56, %v21985_v56  ;;  %13120 = vmatpush1.bf16.msra.mxu1 %v15945_v5  ;;  %v15951_v14 = vld [vmem:[%s17102_s23 + $0x20] ss:$16 sps:$4 sm:$0xff]  }
 0x99f   : > { %13233 = vmatpush1.bf16.msra.mxu0 %v15948_v15 }
 0x9a0   : > { %v21992_v6 = vsub.f32 %v21921_v57, %v12712_v23  ;;  %12761 = vadd.xlane.f32.xlu0 %v12743_v45  ;;  %12759 = vadd.xlane.f32.xlu1 %v12742_v21  ;;  %v15953_v23 = vld [vmem:[%s17102_s23 + $0x24] ss:$16 sps:$4 sm:$0xff]   ;;  %v15954_v45 = vld [vmem:[%s17102_s23 + $0x28] ss:$16 sps:$4 sm:$0xff]   ;;  %v15956_v21 = vld [vmem:[%s17102_s23 + $0x2c] ss:$16 sps:$4 sm:$0xff]  }
 0x9a1   : > { %13121 = vmatprep.subr.bf16.mxu1 %v15953_v23  ;;  %13234 = vmatprep.subr.bf16.mxu0 %v15956_v21  ;;  %v15963_v21 = vld [vmem:[%s17104_s9 + $0x78] sm:$0xff]  }
 0x9a2   : > { %v12744_v42 = vmul.f32 %v21992_v6, %v21992_v6  ;;  %13122 = vmatpush1.bf16.msra.mxu1 %v15951_v14 }
 0x9a3   : > { %13235 = vmatpush1.bf16.msra.mxu0 %v15954_v45  ;;  %13123 = vmatprep.subr.bf16.mxu1 %v15959_v33 }
 0x9a4   : > { %12763 = vadd.xlane.f32.xlu1 %v12744_v42  ;;  %13236 = vmatprep.subr.bf16.mxu0 %v15962_v54 }
 0x9a6   : > { %13124 = vmatpush1.bf16.msra.mxu1 %v15957_v60 }
 0x9a7   : > { %15028 = vmatprep.subr.bf16.mxu1 %v15963_v21 }
 0x9ba   : > { %v12686_v20 = vpop.xlane.xlu0 %12685 }
 0x9bb   : > { %v12713_v8 = vmul.f32 0.0078125, %v12686_v20  ;;  %v15960_v20 = vld [vmem:[%s17102_s23 + $0x8] ss:$16 sps:$4 sm:$0xff]  }
 0x9bc   : > { %13237 = vmatpush1.bf16.msra.mxu0 %v15960_v20 }
 0x9bd   : > { %v22001_v7 = vsub.f32 %v21925_v59, %v12713_v8 }
 0x9be   : > { %v12690_v62 = vpop.xlane.xlu0 %12689  ;;  %v12688_v29 = vpop.xlane.xlu1 %12687 }
 0x9bf   : > { %v12715_v26 = vmul.f32 0.0078125, %v12690_v62  ;;  %v12714_v43 = vmul.f32 0.0078125, %v12688_v29  ;;  %v12745_v48 = vmul.f32 %v22001_v7, %v22001_v7 }
 0x9c1   : > { %v22012_v24 = vsub.f32 %v21929_v39, %v12715_v26  ;;  %v22015_v27 = vsub.f32 %v21932_v18, %v12714_v43  ;;  %12765 = vadd.xlane.f32.xlu0 %v12745_v48 }
 0x9c2   : > { %v12692_v19 = vpop.xlane.xlu1 %12691 }
 0x9c3   : > { %v12716_v49 = vmul.f32 0.0078125, %v12692_v19  ;;  %v12747_v32 = vmul.f32 %v22012_v24, %v22012_v24  ;;  %v12746_v22 = vmul.f32 %v22015_v27, %v22015_v27 }
 0x9c5   : > { %v22026_v58 = vsub.f32 %v21937_v61, %v12716_v49  ;;  %12769 = vadd.xlane.f32.xlu0 %v12747_v32  ;;  %12767 = vadd.xlane.f32.xlu1 %v12746_v22 }
 0x9c7   : > { %v12748_v35 = vmul.f32 %v22026_v58, %v22026_v58 }
 0x9c9   : > { %12771 = vadd.xlane.f32.xlu1 %v12748_v35 }
 0x9d6   : > { %v12694_v42 = vpop.xlane.xlu0 %12693 }
 0x9d7   : > { %v12717_v25 = vmul.f32 0.0078125, %v12694_v42  ;;  %v22086_v42 = vld [vmem:[%s17104_s9 + $0xf8] sm:$0xff]  }
 0x9d8   : > { %15092 = vmatprep.subr.bf16.mxu0 %v22086_v42 }
 0x9d9   : > { %v22045_v8 = vsub.f32 %v21941_v4, %v12717_v25 }
 0x9da   : > { %v12698_v62 = vpop.xlane.xlu0 %12697  ;;  %v12696_v29 = vpop.xlane.xlu1 %12695 }
 0x9db   : > { %v12719_v41 = vmul.f32 0.0078125, %v12698_v62  ;;  %v12718_v46 = vmul.f32 0.0078125, %v12696_v29  ;;  %v12749_v26 = vmul.f32 %v22045_v8, %v22045_v8 }
 0x9dd   : > { %v22050_v43 = vsub.f32 %v21945_v17, %v12719_v41  ;;  %v22053_v48 = vsub.f32 %v21948_v30, %v12718_v46  ;;  %12773 = vadd.xlane.f32.xlu0 %v12749_v26 }
 0x9de   : > { %v12700_v53 = vpop.xlane.xlu1 %12699 }
 0x9df   : > { %v12720_v13 = vmul.f32 0.0078125, %v12700_v53  ;;  %v12751_v28 = vmul.f32 %v22050_v43, %v22050_v43  ;;  %v12750_v36 = vmul.f32 %v22053_v48, %v22053_v48 }
 0x9e1   : > { %v22060_v19 = vsub.f32 %v21953_v34, %v12720_v13  ;;  %12777 = vadd.xlane.f32.xlu0 %v12751_v28  ;;  %12775 = vadd.xlane.f32.xlu1 %v12750_v36  ;;  %v12855_v28 = vsub.s32 2, %v23533_v10 }
 0x9e3   : > { %v12752_v16 = vmul.f32 %v22060_v19, %v22060_v19  ;;  %v12702_v49 = vpop.xlane.xlu0 %12701 }
 0x9e4   : > { %v12721_v32 = vmul.f32 0.0078125, %v12702_v49  ;;  %v22094_v49 = vrot.slane %v21903_v51, %v12855_v28 }
 0x9e5   : > { %12779 = vadd.xlane.f32.xlu1 %v12752_v16 }
 0x9e6   : > { %v22065_v22 = vsub.f32 %v21957_v50, %v12721_v32  ;;  %v12875_v32 = vsub.s32 3, %v23533_v10 }
 0x9e7   : > { %v12706_v47 = vpop.xlane.xlu0 %12705  ;;  %v12704_v2 = vpop.xlane.xlu1 %12703 }
 0x9e8   : > { %v12723_v1 = vmul.f32 0.0078125, %v12706_v47  ;;  %v12722_v40 = vmul.f32 0.0078125, %v12704_v2  ;;  %v12753_v35 = vmul.f32 %v22065_v22, %v22065_v22 }
 0x9ea   : > { %v22070_v0 = vsub.f32 %v21961_v11, %v12723_v1  ;;  %v22073_v5 = vsub.f32 %v21964_v63, %v12722_v40  ;;  %12781 = vadd.xlane.f32.xlu0 %v12753_v35  ;;  %v22100_v40 = vrot.slane %v21903_v51, %v12875_v32 }
 0x9eb   : > { %v12708_v31 = vpop.xlane.xlu1 %12707 }
 0x9ec   : > { %v12724_v15 = vmul.f32 0.0078125, %v12708_v31  ;;  %v12755_v37 = vmul.f32 %v22070_v0, %v22070_v0  ;;  %v12754_v14 = vmul.f32 %v22073_v5, %v22073_v5 }
 0x9ee   : > { %v22080_v23 = vsub.f32 %v21969_v12, %v12724_v15  ;;  %12785 = vadd.xlane.f32.xlu0 %v12755_v37  ;;  %12783 = vadd.xlane.f32.xlu1 %v12754_v14 }
 0x9f0   : > { %v12756_v45 = vmul.f32 %v22080_v23, %v22080_v23 }
 0x9f2   : > { %12787 = vadd.xlane.f32.xlu1 %v12756_v45 }
 0xa25   : > { %v12758_v25 = vpop.xlane.xlu0 %12757 }
 0xa26   : > { %v12789_v60 = vmul.f32 0.0078125, %v12758_v25  ;;  %v15964_v25 = vld [vmem:[%s17104_s9 + $0x38] sm:$0xff]  }
 0xa28   : > { %v12805_v33 = vadd.f32 1e-05, %v12789_v60  ;;  %v22110_v60 = vld [vmem:[%s17104_s9 + $0xb8] sm:$0xff]  }
 0xa29   : > { %v12762_v20 = vpop.xlane.xlu0 %12761  ;;  %v12760_v54 = vpop.xlane.xlu1 %12759 }
 0xa2a   : > { %16283 = vrsqrt.f32 %v12805_v33  ;;  %v12791_v62 = vmul.f32 0.0078125, %v12762_v20  ;;  %v12790_v29 = vmul.f32 0.0078125, %v12760_v54  ;;  %v15965_v33 = vld [vmem:[%s17104_s9 + $0x70] sm:$0xff]  }
 0xa2b   : > { %v22114_v20 = vld [vmem:[%s17104_s9 + $0xf0] sm:$0xff]  }
 0xa2c   : > { %v12806_v41 = vadd.f32 1e-05, %v12790_v29  ;;  %v12807_v46 = vadd.f32 1e-05, %v12791_v62  ;;  %v15966_v54 = vld [vmem:[%s17104_s9 + $0x30] sm:$0xff]   ;;  %v15967_v29 = vld [vmem:[%s17104_s9 + $0x68] sm:$0xff]  }
 0xa2d   : > { %v12764_v26 = vpop.xlane.xlu1 %12763  ;;  %v22123_v62 = vld [vmem:[%s17104_s9 + $0xb0] sm:$0xff]  }
 0xa2e   : > { %v12792_v53 = vmul.f32 0.0078125, %v12764_v26  ;;  %16285 = vrsqrt.f32 %v12806_v41  ;;  %v22128_v41 = vld [vmem:[%s17104_s9 + $0xe8] sm:$0xff]  }
 0xa2f   : > { %16287 = vrsqrt.f32 %v12807_v46 }
 0xa30   : > { %v12808_v13 = vadd.f32 1e-05, %v12792_v53 }
 0xa32   : > { %16289 = vrsqrt.f32 %v12808_v13 }
 0xa37   : > { %v16284_v36 = vpop.eup %16283 }
 0xa38   : > { %v12837_v16 = vmul.f32 %v16284_v36, %v21977_v9  ;;  %v15968_v36 = vld [vmem:[%s17104_s9 + $0x28] sm:$0xff]  }
 0xa3a   : > { %v12857_v1 = vmul.f32 %v22094_v49, %v12837_v16  ;;  %v22134_v16 = vld [vmem:[%s17104_s9 + $0xa8] sm:$0xff]  }
 0xa3b   : > { %v16286_v47 = vpop.eup %16285 }
 0xa3c   : > { %v12838_v2 = vmul.f32 %v16286_v47, %v21985_v56  ;;  %v16288_v9 = vpop.eup %16287  ;;  %v12877_v37 = vadd.f32 %v22100_v40, %v12857_v1  ;;  %v15969_v47 = vld [vmem:[%s17104_s9 + $0x60] sm:$0xff]  }
 0xa3d   : > { %v12839_v45 = vmul.f32 %v16288_v9, %v21982_v3 }
 0xa3e   : > { %v12858_v31 = vmul.f32 %v22094_v49, %v12838_v2  ;;  %v22139_v2 = vld [vmem:[%s17104_s9 + $0xe0] sm:$0xff]  }
 0xa3f   : > { %v16290_v35 = vpop.eup %16289 }
 0xa40   : > { %v12840_v15 = vmul.f32 %v16290_v35, %v21992_v6  ;;  %v12878_v14 = vadd.f32 %v22100_v40, %v12858_v31  ;;  %v12859_v6 = vmul.f32 %v22094_v49, %v12839_v45  ;;  %v15971_v45 = vld [vmem:[%s17104_s9 + $0x58] sm:$0xff]  }
 0xa42   : > { %v12893_v56 = vpack.c.bf16 %v12878_v14, %v12877_v37  ;;  %v12860_v21 = vmul.f32 %v22094_v49, %v12840_v15  ;;  %v12879_v26 = vadd.f32 %v22100_v40, %v12859_v6  ;;  %v15970_v15 = vld [vmem:[%s17104_s9 + $0x20] sm:$0xff]   ;;  %v15973_v6 = vld [vmem:[%s17104_s9 + $0x18] sm:$0xff]  }
 0xa43   : > { %v22146_v37 = vld [vmem:[%s17104_s9 + $0xa0] sm:$0xff]  }
 0xa44   : > { %13142 = vmatmul.mubr.bf16.vlgmr.msra.gmra.mxu1 %v12893_v56  ;;  %13255 = vmatmul.mubr.bf16.vlgmr.msra.gmra.mxu0 %v12893_v56  ;;  %v12880_v3 = vadd.f32 %v22100_v40, %v12860_v21  ;;  %v22151_v56 = vld [vmem:[%s17104_s9 + $0xd8] sm:$0xff]  }
 0xa45   : > { %13151 = vmatprep.mubr.bf16.mxu1 %v23532_v38  ;;  %13264 = vmatprep.mubr.bf16.mxu0 %v23532_v38 }
 0xa46   : > { %15029 = vmatpush3.bf16.msra.mxu1 %v15964_v25  ;;  %15093 = vmatpush3.bf16.msra.mxu0 %v22110_v60  ;;  %v12894_v13 = vpack.c.bf16 %v12880_v3, %v12879_v26  ;;  %v22156_v3 = vld [vmem:[%s17104_s9 + $0x98] sm:$0xff]   ;;  %v15983_v26 = vld [vmem:[%s17104_s9 + $0x48] sm:$0xff]  }
 0xa47   : > { %15030 = vmatprep.subr.bf16.mxu1 %v15965_v33  ;;  %15094 = vmatprep.subr.bf16.mxu0 %v22114_v20 }
 0xa4a   : > { %v12766_v46 = vpop.xlane.xlu0 %12765  ;;  %15031 = vmatpush3.bf16.msra.mxu1 %v15966_v54  ;;  %15095 = vmatpush3.bf16.msra.mxu0 %v22123_v62 }
 0xa4b   : > { %v12793_v53 = vmul.f32 0.0078125, %v12766_v46  ;;  %15032 = vmatprep.subr.bf16.mxu1 %v15967_v29  ;;  %15096 = vmatprep.subr.bf16.mxu0 %v22128_v41  ;;  %v15977_v29 = vld [vmem:[%s17104_s9 + $0x50] sm:$0xff]  }
 0xa4c   : > { %13152 = vmatmul.mubr.bf16.gmra.mxu1 %v12894_v13  ;;  %13265 = vmatmul.mubr.bf16.gmra.mxu0 %v12894_v13  ;;  %v15978_v46 = vld [vmem:[%s17104_s9 + $0x10] sm:$0xff]   ;;  %v15984_v13 = vld [vmem:[%s17104_s9 + $0x8] sm:$0xff]  }
 0xa4d   : > { %v12809_v32 = vadd.f32 1e-05, %v12793_v53  ;;  %13161 = vmatprep.mubr.bf16.mxu1 %v23532_v38  ;;  %13274 = vmatprep.mubr.bf16.mxu0 %v23532_v38 }
 0xa4e   : > { %v12770_v1 = vpop.xlane.xlu0 %12769  ;;  %v12768_v9 = vpop.xlane.xlu1 %12767  ;;  %15033 = vmatpush3.bf16.msra.mxu1 %v15968_v36  ;;  %15097 = vmatpush3.bf16.msra.mxu0 %v22134_v16 }
 0xa4f   : > { %16291 = vrsqrt.f32 %v12809_v32  ;;  %v12795_v35 = vmul.f32 0.0078125, %v12770_v1  ;;  %v12794_v31 = vmul.f32 0.0078125, %v12768_v9  ;;  %15034 = vmatprep.subr.bf16.mxu1 %v15969_v47  ;;  %15098 = vmatprep.subr.bf16.mxu0 %v22139_v2 }
 0xa51   : > { %v12810_v14 = vadd.f32 1e-05, %v12794_v31  ;;  %v12811_v21 = vadd.f32 1e-05, %v12795_v35 }
 0xa52   : > { %v12772_v25 = vpop.xlane.xlu1 %12771  ;;  %15035 = vmatpush3.bf16.msra.mxu1 %v15970_v15  ;;  %15099 = vmatpush3.bf16.msra.mxu0 %v22146_v37 }
 0xa53   : > { %v12796_v33 = vmul.f32 0.0078125, %v12772_v25  ;;  %16293 = vrsqrt.f32 %v12810_v14  ;;  %15036 = vmatprep.subr.bf16.mxu1 %v15971_v45  ;;  %15100 = vmatprep.subr.bf16.mxu0 %v22151_v56 }
 0xa54   : > { %16295 = vrsqrt.f32 %v12811_v21 }
 0xa55   : > { %v12812_v54 = vadd.f32 1e-05, %v12796_v33 }
 0xa56   : > { %15037 = vmatpush3.bf16.msra.mxu1 %v15973_v6  ;;  %15101 = vmatpush3.bf16.msra.mxu0 %v22156_v3 }
 0xa57   : > { %16297 = vrsqrt.f32 %v12812_v54  ;;  %15038 = vmatprep.subr.bf16.mxu1 %v15977_v29 }
 0xa5a   : > { %15039 = vmatpush3.bf16.msra.mxu1 %v15978_v46 }
 0xa5b   : > { %15040 = vmatprep.subr.bf16.mxu1 %v15983_v26 }
 0xa5c   : > { %v16292_v53 = vpop.eup %16291 }
 0xa5d   : > { %v12841_v36 = vmul.f32 %v16292_v53, %v22001_v7 }
 0xa5e   : > { %15041 = vmatpush3.bf16.msra.mxu1 %v15984_v13 }
 0xa5f   : > { %v12861_v1 = vmul.f32 %v22094_v49, %v12841_v36 }
 0xa60   : > { %v16294_v32 = vpop.eup %16293 }
 0xa61   : > { %v12842_v47 = vmul.f32 %v16294_v32, %v22015_v27  ;;  %v16296_v9 = vpop.eup %16295  ;;  %v12881_v45 = vadd.f32 %v22100_v40, %v12861_v1 }
 0xa62   : > { %v12843_v25 = vmul.f32 %v16296_v9, %v22012_v24 }
 0xa63   : > { %v12862_v31 = vmul.f32 %v22094_v49, %v12842_v47 }
 0xa64   : > { %v16298_v35 = vpop.eup %16297  ;;  %v12863_v46 = vmul.f32 %v22094_v49, %v12843_v25 }
 0xa65   : > { %v12844_v15 = vmul.f32 %v16298_v35, %v22026_v58  ;;  %v12882_v21 = vadd.f32 %v22100_v40, %v12862_v31 }
 0xa66   : > { %v12774_v14 = vpop.xlane.xlu0 %12773  ;;  %v12883_v32 = vadd.f32 %v22100_v40, %v12863_v46 }
 0xa67   : > { %v12797_v7 = vmul.f32 0.0078125, %v12774_v14  ;;  %v12895_v33 = vpack.c.bf16 %v12882_v21, %v12881_v45  ;;  %v12864_v6 = vmul.f32 %v22094_v49, %v12844_v15 }
 0xa69   : > { %v12813_v27 = vadd.f32 1e-05, %v12797_v7  ;;  %13162 = vmatmul.mubr.bf16.gmra.mxu1 %v12895_v33  ;;  %13275 = vmatmul.mubr.bf16.gmra.mxu0 %v12895_v33  ;;  %v12884_v24 = vadd.f32 %v22100_v40, %v12864_v6 }
 0xa6a   : > { %v12778_v54 = vpop.xlane.xlu0 %12777  ;;  %v12776_v29 = vpop.xlane.xlu1 %12775  ;;  %13171 = vmatprep.mubr.bf16.mxu1 %v23532_v38  ;;  %13284 = vmatprep.mubr.bf16.mxu0 %v23532_v38 }
 0xa6b   : > { %16299 = vrsqrt.f32 %v12813_v27  ;;  %v12799_v58 = vmul.f32 0.0078125, %v12778_v54  ;;  %v12798_v26 = vmul.f32 0.0078125, %v12776_v29  ;;  %v12896_v1 = vpack.c.bf16 %v12884_v24, %v12883_v32 }
 0xa6d   : > { %v12814_v53 = vadd.f32 1e-05, %v12798_v26  ;;  %v12815_v13 = vadd.f32 1e-05, %v12799_v58 }
 0xa6e   : > { %v12780_v36 = vpop.xlane.xlu1 %12779 }
 0xa6f   : > { %v12800_v47 = vmul.f32 0.0078125, %v12780_v36  ;;  %16301 = vrsqrt.f32 %v12814_v53 }
 0xa70   : > { %16303 = vrsqrt.f32 %v12815_v13 }
 0xa71   : > { %v12816_v9 = vadd.f32 1e-05, %v12800_v47  ;;  %13172 = vmatmul.mubr.bf16.gmra.mxu1 %v12896_v1  ;;  %13285 = vmatmul.mubr.bf16.gmra.mxu0 %v12896_v1 }
 0xa72   : > { %13181 = vmatprep.mubr.bf16.mxu1 %v23532_v38  ;;  %13294 = vmatprep.mubr.bf16.mxu0 %v23532_v38 }
 0xa73   : > { %16305 = vrsqrt.f32 %v12816_v9  ;;  %v12782_v35 = vpop.xlane.xlu0 %12781 }
 0xa74   : > { %v12801_v31 = vmul.f32 0.0078125, %v12782_v35 }
 0xa76   : > { %v12817_v15 = vadd.f32 1e-05, %v12801_v31 }
 0xa77   : > { %v12786_v14 = vpop.xlane.xlu0 %12785  ;;  %v12784_v45 = vpop.xlane.xlu1 %12783 }
 0xa78   : > { %v16300_v21 = vpop.eup %16299  ;;  %16307 = vrsqrt.f32 %v12817_v15  ;;  %v12802_v25 = vmul.f32 0.0078125, %v12784_v45  ;;  %v12803_v7 = vmul.f32 0.0078125, %v12786_v14 }
 0xa79   : > { %v12845_v6 = vmul.f32 %v16300_v21, %v22045_v8  ;;  %v22197_v21 = vld [vmem:[%s17104_s9 + $0xd0] sm:$0xff]  }
 0xa7a   : > { %v12818_v33 = vadd.f32 1e-05, %v12802_v25  ;;  %v12819_v46 = vadd.f32 1e-05, %v12803_v7  ;;  %15102 = vmatprep.subr.bf16.mxu0 %v22197_v21 }
 0xa7b   : > { %v12788_v27 = vpop.xlane.xlu1 %12787  ;;  %v12865_v24 = vmul.f32 %v22094_v49, %v12845_v6 }
 0xa7c   : > { %v12804_v54 = vmul.f32 0.0078125, %v12788_v27  ;;  %v16302_v29 = vpop.eup %16301  ;;  %16309 = vrsqrt.f32 %v12818_v33  ;;  %v22201_v33 = vld [vmem:[%s17104_s9 + $0x90] sm:$0xff]  }
 0xa7d   : > { %v12846_v26 = vmul.f32 %v16302_v29, %v22053_v48  ;;  %v16304_v53 = vpop.eup %16303  ;;  %v12885_v8 = vadd.f32 %v22100_v40, %v12865_v24  ;;  %15103 = vmatpush3.bf16.msra.mxu0 %v22201_v33  ;;  %v22217_v24 = vld [vmem:[%s17104_s9 + $0x88] sm:$0xff]  }
 0xa7e   : > { %v12820_v58 = vadd.f32 1e-05, %v12804_v54  ;;  %v12847_v1 = vmul.f32 %v16304_v53, %v22050_v43  ;;  %v15989_v54 = vld [vmem:[%s17104_s9 + $0x40] sm:$0xff]  }
 0xa7f   : > { %v12866_v36 = vmul.f32 %v22094_v49, %v12846_v26  ;;  %15042 = vmatprep.subr.bf16.mxu1 %v15989_v54  ;;  %v22214_v26 = vld [vmem:[%s17104_s9 + $0xc8] sm:$0xff]  }
 0xa80   : > { %v16306_v13 = vpop.eup %16305  ;;  %16311 = vrsqrt.f32 %v12820_v58  ;;  %v12867_v31 = vmul.f32 %v22094_v49, %v12847_v1  ;;  %v15990_v58 = vld [vmem:[%s17104_s9] sm:$0xff]   ;;  %15104 = vmatprep.subr.bf16.mxu0 %v22214_v26 }
 0xa81   : > { %v12848_v32 = vmul.f32 %v16306_v13, %v22060_v19  ;;  %16313 = vrsqrt.f32 %v12819_v46  ;;  %v12886_v47 = vadd.f32 %v22100_v40, %v12866_v36  ;;  %15043 = vmatpush3.bf16.msra.mxu1 %v15990_v58  ;;  %v22222_v36 = vld [vmem:[%s17104_s9 + $0xc0] sm:$0xff]   ;;  %15105 = vmatpush3.bf16.msra.mxu0 %v22217_v24 }
 0xa82   : > { %v12887_v43 = vadd.f32 %v22100_v40, %v12867_v31  ;;  %15524 = vmatprep.subr.bf16.mxu1 %v22086_v42  ;;  %15106 = vmatprep.subr.bf16.mxu0 %v22222_v36  ;;  %v12935_v42 = vsub.s32 6, %v23533_v10 }
 0xa83   : > { %v12897_v9 = vpack.c.bf16 %v12886_v47, %v12885_v8  ;;  %v12868_v48 = vmul.f32 %v22094_v49, %v12848_v32 }
 0xa85   : > { %v16308_v35 = vpop.eup %16307  ;;  %13182 = vmatmul.mubr.bf16.gmra.mxu1 %v12897_v9  ;;  %13295 = vmatmul.mubr.bf16.gmra.mxu0 %v12897_v9  ;;  %v12888_v19 = vadd.f32 %v22100_v40, %v12868_v48  ;;  %v631_v9 = vld [vmem:[%s17092_s16 + $0x8] sm:$0xff]  ;;  %v633_v48 = vld [vmem:[%s17092_s16 + $0x18] sm:$0xff] }
 0xa86   : > { %13191 = vmatprep.mubr.bf16.mxu1 %v23532_v38  ;;  %13304 = vmatprep.mubr.bf16.mxu0 %v23532_v38  ;;  %v12849_v15 = vmul.f32 %v16308_v35, %v22065_v22  ;;  %v632_v35 = vld [vmem:[%s17092_s16 + $0x10] sm:$0xff] }
 0xa87   : > { %v12898_v25 = vpack.c.bf16 %v12888_v19, %v12887_v43  ;;  %v22241_v19 = vrot.slane %v631_v9, %v12935_v42 }
 0xa88   : > { %v12869_v7 = vmul.f32 %v22094_v49, %v12849_v15  ;;  %v22243_v15 = vrot.slane %v633_v48, %v12935_v42 }
 0xa89   : > { %v16310_v14 = vpop.eup %16309 }
 0xa8a   : > { %v12850_v45 = vmul.f32 %v16310_v14, %v22073_v5  ;;  %v12889_v29 = vadd.f32 %v22100_v40, %v12869_v7  ;;  %v22248_v14 = vrot.slane %v632_v35, %v12935_v42 }
 0xa8c   : > { %v12870_v27 = vmul.f32 %v22094_v49, %v12850_v45 }
 0xa8d   : > { %v16312_v6 = vpop.eup %16311  ;;  %13192 = vmatmul.mubr.bf16.gmra.mxu1 %v12898_v25  ;;  %13305 = vmatmul.mubr.bf16.gmra.mxu0 %v12898_v25 }
 0xa8e   : > { %v16314_v22 = vpop.eup %16313  ;;  %13201 = vmatprep.mubr.bf16.mxu1 %v23532_v38  ;;  %13314 = vmatprep.mubr.bf16.mxu0 %v23532_v38  ;;  %v12890_v5 = vadd.f32 %v22100_v40, %v12870_v27  ;;  %v12852_v46 = vmul.f32 %v16312_v6, %v22080_v23  ;;  %v22227_v23 = vld [vmem:[%s17104_s9 + $0x80] sm:$0xff]  }
 0xa8f   : > { %v12851_v13 = vmul.f32 %v16314_v22, %v22070_v0  ;;  %15107 = vmatpush3.bf16.msra.mxu0 %v22227_v23 }
 0xa90   : > { %v12899_v53 = vpack.c.bf16 %v12890_v5, %v12889_v29  ;;  %v12872_v32 = vmul.f32 %v22094_v49, %v12852_v46 }
 0xa91   : > { %v12871_v0 = vmul.f32 %v22094_v49, %v12851_v13 }
 0xa92   : > { %v12892_v8 = vadd.f32 %v22100_v40, %v12872_v32 }
 0xa93   : > { %v12891_v47 = vadd.f32 %v22100_v40, %v12871_v0 }
 0xa95   : > { %13202 = vmatmul.mubr.bf16.gmra.mxu1 %v12899_v53  ;;  %13315 = vmatmul.mubr.bf16.gmra.mxu0 %v12899_v53  ;;  %v12900_v1 = vpack.c.bf16 %v12892_v8, %v12891_v47 }
 0xa96   : > { %13211 = vmatprep.mubr.bf16.mxu1 %v23532_v38  ;;  %13324 = vmatprep.mubr.bf16.mxu0 %v23532_v38  ;;  %v22246_v38 = vrot.slane %v21903_v51, %v12935_v42 }
 0xa9d   : > { %13212 = vmatmul.mubr.bf16.gmra.mxu1 %v12900_v1  ;;  %13325 = vmatmul.mubr.bf16.gmra.mxu0 %v12900_v1 }
 0xb04   : > { %v13143_v31 = vpop.f32.mrf.mxu1  ;;  %v13256_v49 = vpop.f32.mrf.mxu0 }
 0xb05   : > { %v13144_v5 = vadd.f32 %v13143_v31, %v22246_v38  ;;  %v13257_v54 = vadd.f32 %v13256_v49, %v22248_v14 }
 0xb06   : > { %v13145_v40 = vpop.f32.mrf.mxu1  ;;  %v13258_v43 = vpop.f32.mrf.mxu0 }
 0xb07   : > { %v13146_v7 = vadd.f32 %v13145_v40, %v22241_v19  ;;  %v13259_v6 = vadd.f32 %v13258_v43, %v22243_v15  ;;  %v13335_v9 = vmax.f32 %v13144_v5, 0.0  ;;  %v13337_v48 = vmax.f32 %v13257_v54, 0.0 }
 0xb08   : > { %v13147_v45 = vpop.f32.mrf.mxu1  ;;  %v13260_v25 = vpop.f32.mrf.mxu0 }
 0xb09   : > { %v13148_v27 = vadd.f32 %v13147_v45, %v22246_v38  ;;  %v13261_v22 = vadd.f32 %v13260_v25, %v22248_v14  ;;  %v13336_v8 = vmax.f32 %v13146_v7, 0.0  ;;  %v13338_v47 = vmax.f32 %v13259_v6, 0.0 }
 0xb0a   : > { %v13149_v51 = vpop.f32.mrf.mxu1  ;;  %v13262_v29 = vpop.f32.mrf.mxu0 }
 0xb0b   : > { %v13150_v46 = vadd.f32 %v13149_v51, %v22241_v19  ;;  %v13263_v58 = vadd.f32 %v13262_v29, %v22243_v15  ;;  %v13339_v53 = vmax.f32 %v13148_v27, 0.0  ;;  %v13341_v13 = vmax.f32 %v13261_v22, 0.0 }
 0xb0c   : > { %v13153_v32 = vpop.f32.mrf.mxu1  ;;  %v13266_v0 = vpop.f32.mrf.mxu0 }
 0xb0d   : > { %v13340_v1 = vmax.f32 %v13150_v46, 0.0  ;;  %v13342_v42 = vmax.f32 %v13263_v58, 0.0  ;;  %v13399_v43 = vpack.c.bf16 %v13339_v53, %v13335_v9  ;;  %v13401_v45 = vpack.c.bf16 %v13341_v13, %v13337_v48 }
 0xb0e   : > { %v13155_v35 = vpop.f32.mrf.mxu1  ;;  %v13268_v31 = vpop.f32.mrf.mxu0  ;;  %v13154_v6 = vadd.f32 %v13153_v32, %v22246_v38  ;;  %v13267_v5 = vadd.f32 %v13266_v0, %v22248_v14 }
 0xb0f   : > { %v13400_v40 = vpack.c.bf16 %v13340_v1, %v13336_v8  ;;  %v13402_v49 = vpack.c.bf16 %v13342_v42, %v13338_v47  ;;  %v13156_v25 = vadd.f32 %v13155_v35, %v22241_v19  ;;  %v13269_v27 = vadd.f32 %v13268_v31, %v22243_v15 }
 0xb10   : > { %v13157_v51 = vpop.f32.mrf.mxu1  ;;  %v13270_v29 = vpop.f32.mrf.mxu0  ;;  %v13343_v9 = vmax.f32 %v13154_v6, 0.0  ;;  %v13345_v0 = vmax.f32 %v13267_v5, 0.0 }
 0xb11   : > { %v13158_v22 = vadd.f32 %v13157_v51, %v22246_v38  ;;  %v13271_v7 = vadd.f32 %v13270_v29, %v22248_v14  ;;  %13719 = vmatprep.mubr.bf16.mxu1 %v13400_v40  ;;  %13816 = vmatprep.mubr.bf16.mxu0 %v13402_v49  ;;  %v13344_v47 = vmax.f32 %v13156_v25, 0.0  ;;  %v13346_v1 = vmax.f32 %v13269_v27, 0.0 }
 0xb12   : > { %v13159_v54 = vpop.f32.mrf.mxu1  ;;  %v13272_v46 = vpop.f32.mrf.mxu0  ;;  %13720 = vmatmul.mubr.bf16.vlgmr.msra.gmra.mxu1 %v13399_v43  ;;  %13817 = vmatmul.mubr.bf16.vlgmr.msra.gmra.mxu0 %v13401_v45 }
 0xb13   : > { %v13160_v58 = vadd.f32 %v13159_v54, %v22241_v19  ;;  %v13273_v53 = vadd.f32 %v13272_v46, %v22243_v15  ;;  %15532 = vmatpush3.bf16.msra.mxu1 %v22110_v60  ;;  %v13347_v13 = vmax.f32 %v13158_v22, 0.0  ;;  %v13349_v8 = vmax.f32 %v13271_v7, 0.0 }
 0xb14   : > { %15525 = vmatprep.subr.bf16.mxu1 %v22114_v20 }
 0xb15   : > { %v13348_v42 = vmax.f32 %v13160_v58, 0.0  ;;  %v13350_v32 = vmax.f32 %v13273_v53, 0.0  ;;  %v13403_v31 = vpack.c.bf16 %v13347_v13, %v13343_v9  ;;  %v13405_v40 = vpack.c.bf16 %v13349_v8, %v13345_v0 }
 0xb17   : > { %v13404_v48 = vpack.c.bf16 %v13348_v42, %v13344_v47  ;;  %v13406_v35 = vpack.c.bf16 %v13350_v32, %v13346_v1  ;;  %15533 = vmatpush3.bf16.msra.mxu1 %v22123_v62 }
 0xb18   : > { %15526 = vmatprep.subr.bf16.mxu1 %v22128_v41 }
 0xb19   : > { %13727 = vmatprep.mubr.bf16.mxu1 %v13404_v48  ;;  %13824 = vmatprep.mubr.bf16.mxu0 %v13406_v35 }
 0xb1a   : > { %13728 = vmatmul.mubr.bf16.gmra.mxu1 %v13403_v31  ;;  %13825 = vmatmul.mubr.bf16.gmra.mxu0 %v13405_v40 }
 0xb1b   : > { %15534 = vmatpush3.bf16.msra.mxu1 %v22134_v16 }
 0xb1c   : > { %15527 = vmatprep.subr.bf16.mxu1 %v22139_v2 }
 0xb1f   : > { %15535 = vmatpush3.bf16.msra.mxu1 %v22146_v37 }
 0xb20   : > { %15528 = vmatprep.subr.bf16.mxu1 %v22151_v56 }
 0xb23   : > { %15536 = vmatpush3.bf16.msra.mxu1 %v22156_v3 }
 0xb24   : > { %15529 = vmatprep.subr.bf16.mxu1 %v22197_v21 }
 0xb27   : > { %15537 = vmatpush3.bf16.msra.mxu1 %v22201_v33 }
 0xb28   : > { %15530 = vmatprep.subr.bf16.mxu1 %v22214_v26 }
 0xb29   : > { %v13163_v60 = vpop.f32.mrf.mxu1  ;;  %v13276_v20 = vpop.f32.mrf.mxu0 }
 0xb2a   : > { %v13164_v33 = vadd.f32 %v13163_v60, %v22246_v38  ;;  %v13277_v26 = vadd.f32 %v13276_v20, %v22248_v14 }
 0xb2b   : > { %v13165_v62 = vpop.f32.mrf.mxu1  ;;  %v13278_v41 = vpop.f32.mrf.mxu0  ;;  %15538 = vmatpush3.bf16.msra.mxu1 %v22217_v24 }
 0xb2c   : > { %15531 = vmatprep.subr.bf16.mxu1 %v22222_v36  ;;  %v13166_v37 = vadd.f32 %v13165_v62, %v22241_v19  ;;  %v13279_v56 = vadd.f32 %v13278_v41, %v22243_v15  ;;  %v13351_v5 = vmax.f32 %v13164_v33, 0.0  ;;  %v13353_v54 = vmax.f32 %v13277_v26, 0.0 }
 0xb2d   : > { %v13167_v16 = vpop.f32.mrf.mxu1  ;;  %v13280_v2 = vpop.f32.mrf.mxu0 }
 0xb2e   : > { %v13168_v3 = vadd.f32 %v13167_v16, %v22246_v38  ;;  %v13281_v21 = vadd.f32 %v13280_v2, %v22248_v14  ;;  %v13352_v27 = vmax.f32 %v13166_v37, 0.0  ;;  %v13354_v22 = vmax.f32 %v13279_v56, 0.0 }
 0xb2f   : > { %v13169_v49 = vpop.f32.mrf.mxu1  ;;  %v13282_v43 = vpop.f32.mrf.mxu0  ;;  %15539 = vmatpush3.bf16.msra.mxu1 %v22227_v23 }
 0xb30   : > { %v13170_v24 = vadd.f32 %v13169_v49, %v22241_v19  ;;  %v13283_v45 = vadd.f32 %v13282_v43, %v22243_v15  ;;  %v13355_v36 = vmax.f32 %v13168_v3, 0.0  ;;  %v13357_v25 = vmax.f32 %v13281_v21, 0.0 }
 0xb31   : > { %v13173_v51 = vpop.f32.mrf.mxu1  ;;  %v13286_v29 = vpop.f32.mrf.mxu0 }
 0xb32   : > { %v13356_v7 = vmax.f32 %v13170_v24, 0.0  ;;  %v13358_v6 = vmax.f32 %v13283_v45, 0.0  ;;  %v13407_v8 = vpack.c.bf16 %v13355_v36, %v13351_v5  ;;  %v13409_v47 = vpack.c.bf16 %v13357_v25, %v13353_v54 }
 0xb33   : > { %v13175_v46 = vpop.f32.mrf.mxu1  ;;  %v13288_v58 = vpop.f32.mrf.mxu0  ;;  %v13174_v48 = vadd.f32 %v13173_v51, %v22246_v38  ;;  %v13287_v35 = vadd.f32 %v13286_v29, %v22248_v14 }
 0xb34   : > { %v13408_v53 = vpack.c.bf16 %v13356_v7, %v13352_v27  ;;  %v13410_v13 = vpack.c.bf16 %v13358_v6, %v13354_v22  ;;  %v13176_v1 = vadd.f32 %v13175_v46, %v22241_v19  ;;  %v13289_v32 = vadd.f32 %v13288_v58, %v22243_v15 }
 0xb35   : > { %v13177_v42 = vpop.f32.mrf.mxu1  ;;  %v13290_v23 = vpop.f32.mrf.mxu0  ;;  %v13359_v3 = vmax.f32 %v13174_v48, 0.0  ;;  %v13361_v21 = vmax.f32 %v13287_v35, 0.0 }
 0xb36   : > { %v13178_v9 = vadd.f32 %v13177_v42, %v22246_v38  ;;  %v13291_v0 = vadd.f32 %v13290_v23, %v22248_v14  ;;  %13735 = vmatprep.mubr.bf16.mxu1 %v13408_v53  ;;  %13832 = vmatprep.mubr.bf16.mxu0 %v13410_v13  ;;  %v13360_v16 = vmax.f32 %v13176_v1, 0.0  ;;  %v13362_v2 = vmax.f32 %v13289_v32, 0.0 }
 0xb37   : > { %v13179_v31 = vpop.f32.mrf.mxu1  ;;  %v13292_v40 = vpop.f32.mrf.mxu0  ;;  %13736 = vmatmul.mubr.bf16.gmra.mxu1 %v13407_v8  ;;  %13833 = vmatmul.mubr.bf16.gmra.mxu0 %v13409_v47 }
 0xb38   : > { %v13180_v60 = vadd.f32 %v13179_v31, %v22241_v19  ;;  %v13293_v20 = vadd.f32 %v13292_v40, %v22243_v15  ;;  %v13363_v62 = vmax.f32 %v13178_v9, 0.0  ;;  %v13365_v41 = vmax.f32 %v13291_v0, 0.0 }
 0xb3a   : > { %v13364_v37 = vmax.f32 %v13180_v60, 0.0  ;;  %v13366_v56 = vmax.f32 %v13293_v20, 0.0  ;;  %v13411_v49 = vpack.c.bf16 %v13363_v62, %v13359_v3  ;;  %v13413_v43 = vpack.c.bf16 %v13365_v41, %v13361_v21 }
 0xb3c   : > { %v13412_v33 = vpack.c.bf16 %v13364_v37, %v13360_v16  ;;  %v13414_v26 = vpack.c.bf16 %v13366_v56, %v13362_v2 }
 0xb3e   : > { %13743 = vmatprep.mubr.bf16.mxu1 %v13412_v33  ;;  %13840 = vmatprep.mubr.bf16.mxu0 %v13414_v26 }
 0xb3f   : > { %13744 = vmatmul.mubr.bf16.gmra.mxu1 %v13411_v49  ;;  %13841 = vmatmul.mubr.bf16.gmra.mxu0 %v13413_v43 }
 0xb45   : > { %v13183_v24 = vpop.f32.mrf.mxu1  ;;  %v13296_v45 = vpop.f32.mrf.mxu0 }
 0xb46   : > { %v13184_v5 = vadd.f32 %v13183_v24, %v22246_v38  ;;  %v13297_v54 = vadd.f32 %v13296_v45, %v22248_v14 }
 0xb47   : > { %v13185_v36 = vpop.f32.mrf.mxu1  ;;  %v13298_v25 = vpop.f32.mrf.mxu0 }
 0xb48   : > { %v13186_v27 = vadd.f32 %v13185_v36, %v22241_v19  ;;  %v13299_v22 = vadd.f32 %v13298_v25, %v22243_v15  ;;  %v13367_v48 = vmax.f32 %v13184_v5, 0.0  ;;  %v13369_v35 = vmax.f32 %v13297_v54, 0.0 }
 0xb49   : > { %v13187_v51 = vpop.f32.mrf.mxu1  ;;  %v13300_v29 = vpop.f32.mrf.mxu0 }
 0xb4a   : > { %v13188_v7 = vadd.f32 %v13187_v51, %v22246_v38  ;;  %v13301_v6 = vadd.f32 %v13300_v29, %v22248_v14  ;;  %v13368_v23 = vmax.f32 %v13186_v27, 0.0  ;;  %v13370_v32 = vmax.f32 %v13299_v22, 0.0 }
 0xb4b   : > { %v13189_v46 = vpop.f32.mrf.mxu1  ;;  %v13302_v58 = vpop.f32.mrf.mxu0 }
 0xb4c   : > { %v13190_v53 = vadd.f32 %v13189_v46, %v22241_v19  ;;  %v13303_v13 = vadd.f32 %v13302_v58, %v22243_v15  ;;  %v13371_v8 = vmax.f32 %v13188_v7, 0.0  ;;  %v13373_v47 = vmax.f32 %v13301_v6, 0.0 }
 0xb4d   : > { %v13193_v1 = vpop.f32.mrf.mxu1  ;;  %v13306_v42 = vpop.f32.mrf.mxu0 }
 0xb4e   : > { %v13372_v9 = vmax.f32 %v13190_v53, 0.0  ;;  %v13374_v0 = vmax.f32 %v13303_v13, 0.0  ;;  %v13415_v62 = vpack.c.bf16 %v13371_v8, %v13367_v48  ;;  %v13417_v41 = vpack.c.bf16 %v13373_v47, %v13369_v35 }
 0xb4f   : > { %v13195_v31 = vpop.f32.mrf.mxu1  ;;  %v13308_v40 = vpop.f32.mrf.mxu0  ;;  %v13194_v33 = vadd.f32 %v13193_v1, %v22246_v38  ;;  %v13307_v26 = vadd.f32 %v13306_v42, %v22248_v14 }
 0xb50   : > { %v13416_v60 = vpack.c.bf16 %v13372_v9, %v13368_v23  ;;  %v13418_v20 = vpack.c.bf16 %v13374_v0, %v13370_v32  ;;  %v13196_v16 = vadd.f32 %v13195_v31, %v22241_v19  ;;  %v13309_v56 = vadd.f32 %v13308_v40, %v22243_v15 }
 0xb51   : > { %v13197_v2 = vpop.f32.mrf.mxu1  ;;  %v13310_v37 = vpop.f32.mrf.mxu0  ;;  %v13375_v5 = vmax.f32 %v13194_v33, 0.0  ;;  %v13377_v54 = vmax.f32 %v13307_v26, 0.0 }
 0xb52   : > { %v13198_v3 = vadd.f32 %v13197_v2, %v22246_v38  ;;  %v13311_v21 = vadd.f32 %v13310_v37, %v22248_v14  ;;  %13751 = vmatprep.mubr.bf16.mxu1 %v13416_v60  ;;  %13848 = vmatprep.mubr.bf16.mxu0 %v13418_v20  ;;  %v13376_v27 = vmax.f32 %v13196_v16, 0.0  ;;  %v13378_v22 = vmax.f32 %v13309_v56, 0.0 }
 0xb53   : > { %v13199_v49 = vpop.f32.mrf.mxu1  ;;  %v13312_v43 = vpop.f32.mrf.mxu0  ;;  %13752 = vmatmul.mubr.bf16.gmra.mxu1 %v13415_v62  ;;  %13849 = vmatmul.mubr.bf16.gmra.mxu0 %v13417_v41 }
 0xb54   : > { %v13200_v24 = vadd.f32 %v13199_v49, %v22241_v19  ;;  %v13313_v45 = vadd.f32 %v13312_v43, %v22243_v15  ;;  %v13379_v36 = vmax.f32 %v13198_v3, 0.0  ;;  %v13381_v25 = vmax.f32 %v13311_v21, 0.0 }
 0xb55   : > { %v13203_v51 = vpop.f32.mrf.mxu1  ;;  %v13316_v29 = vpop.f32.mrf.mxu0 }
 0xb56   : > { %v13380_v7 = vmax.f32 %v13200_v24, 0.0  ;;  %v13382_v6 = vmax.f32 %v13313_v45, 0.0  ;;  %v13419_v8 = vpack.c.bf16 %v13379_v36, %v13375_v5  ;;  %v13421_v47 = vpack.c.bf16 %v13381_v25, %v13377_v54 }
 0xb57   : > { %v13205_v46 = vpop.f32.mrf.mxu1  ;;  %v13318_v58 = vpop.f32.mrf.mxu0  ;;  %v13204_v9 = vadd.f32 %v13203_v51, %v22246_v38 }
 0xb58   : > { %v13420_v53 = vpack.c.bf16 %v13380_v7, %v13376_v27  ;;  %v13422_v13 = vpack.c.bf16 %v13382_v6, %v13378_v22  ;;  %v13206_v23 = vadd.f32 %v13205_v46, %v22241_v19  ;;  %v13319_v45 = vadd.f32 %v13318_v58, %v22243_v15 }
 0xb59   : > { %v13207_v1 = vpop.f32.mrf.mxu1  ;;  %v13320_v42 = vpop.f32.mrf.mxu0  ;;  %v13383_v41 = vmax.f32 %v13204_v9, 0.0 }
 0xb5a   : > { %v13208_v32 = vadd.f32 %v13207_v1, %v22246_v38  ;;  %13759 = vmatprep.mubr.bf16.mxu1 %v13420_v53  ;;  %13856 = vmatprep.mubr.bf16.mxu0 %v13422_v13  ;;  %v13384_v20 = vmax.f32 %v13206_v23, 0.0  ;;  %v13386_v5 = vmax.f32 %v13319_v45, 0.0  ;;  %v13321_v46 = vadd.f32 %v13320_v42, %v22248_v14 }
 0xb5b   : > { %v13209_v0 = vpop.f32.mrf.mxu1  ;;  %v13322_v48 = vpop.f32.mrf.mxu0  ;;  %13760 = vmatmul.mubr.bf16.gmra.mxu1 %v13419_v8  ;;  %13857 = vmatmul.mubr.bf16.gmra.mxu0 %v13421_v47  ;;  %v13317_v8 = vadd.f32 %v13316_v29, %v22248_v14 }
 0xb5c   : > { %v13210_v35 = vadd.f32 %v13209_v0, %v22241_v19  ;;  %v13387_v31 = vmax.f32 %v13208_v32, 0.0  ;;  %v13323_v21 = vadd.f32 %v13322_v48, %v22243_v15  ;;  %v13389_v58 = vmax.f32 %v13321_v46, 0.0 }
 0xb5d   : > { %v13213_v40 = vpop.f32.mrf.mxu1  ;;  %v13326_v60 = vpop.f32.mrf.mxu0  ;;  %v13385_v1 = vmax.f32 %v13317_v8, 0.0 }
 0xb5e   : > { %v13388_v62 = vmax.f32 %v13210_v35, 0.0  ;;  %v13423_v56 = vpack.c.bf16 %v13387_v31, %v13383_v41  ;;  %v13214_v49 = vadd.f32 %v13213_v40, %v22246_v38  ;;  %v13390_v51 = vmax.f32 %v13323_v21, 0.0 }
 0xb5f   : > { %v13215_v16 = vpop.f32.mrf.mxu1  ;;  %v13328_v2 = vpop.f32.mrf.mxu0  ;;  %v13425_v32 = vpack.c.bf16 %v13389_v58, %v13385_v1  ;;  %v13327_v42 = vadd.f32 %v13326_v60, %v22248_v14  ;;  %v13899_v40 = vsub.s32 5, %v23533_v10 }
 0xb60   : > { %v13424_v37 = vpack.c.bf16 %v13388_v62, %v13384_v20  ;;  %v13216_v33 = vadd.f32 %v13215_v16, %v22241_v19  ;;  %v13391_v7 = vmax.f32 %v13214_v49, 0.0  ;;  %v13426_v13 = vpack.c.bf16 %v13390_v51, %v13386_v5 }
 0xb61   : > { %v13217_v3 = vpop.f32.mrf.mxu1  ;;  %v13330_v43 = vpop.f32.mrf.mxu0  ;;  %v13393_v35 = vmax.f32 %v13327_v42, 0.0 }
 0xb62   : > { %v13218_v26 = vadd.f32 %v13217_v3, %v22246_v38  ;;  %13767 = vmatprep.mubr.bf16.mxu1 %v13424_v37  ;;  %v13392_v27 = vmax.f32 %v13216_v33, 0.0  ;;  %v13331_v9 = vadd.f32 %v13330_v43, %v22248_v14  ;;  %v16332_v3 = vld [vmem:[%s17092_s16] sm:$0xff] }
 0xb63   : > { %v13219_v24 = vpop.f32.mrf.mxu1  ;;  %13768 = vmatmul.mubr.bf16.gmra.mxu1 %v13423_v56  ;;  %v13332_v6 = vpop.f32.mrf.mxu0  ;;  %v22331_v14 = vrot.slane %v16332_v3, %v13899_v40 }
 0xb64   : > { %v13220_v36 = vadd.f32 %v13219_v24, %v22241_v19  ;;  %v13395_v25 = vmax.f32 %v13218_v26, 0.0  ;;  %v13333_v38 = vadd.f32 %v13332_v6, %v22243_v15  ;;  %v13329_v19 = vadd.f32 %v13328_v2, %v22243_v15 }
 0xb65   : > { %v13397_v48 = vmax.f32 %v13331_v9, 0.0 }
 0xb66   : > { %v13396_v22 = vmax.f32 %v13220_v36, 0.0  ;;  %v13427_v53 = vpack.c.bf16 %v13395_v25, %v13391_v7  ;;  %v13398_v47 = vmax.f32 %v13333_v38, 0.0  ;;  %v13394_v23 = vmax.f32 %v13329_v19, 0.0 }
 0xb67   : > { %v13429_v29 = vpack.c.bf16 %v13397_v48, %v13393_v35 }
 0xb68   : > { %v13428_v54 = vpack.c.bf16 %v13396_v22, %v13392_v27  ;;  %v13430_v0 = vpack.c.bf16 %v13398_v47, %v13394_v23 }
 0xb6a   : > { %13775 = vmatprep.mubr.bf16.mxu1 %v13428_v54 }
 0xb6b   : > { %13776 = vmatmul.mubr.bf16.gmra.mxu1 %v13427_v53 }
 0xb6c   : > { %13864 = vmatprep.mubr.bf16.mxu1 %v13426_v13 }
 0xb73   : > { %13865 = vmatmul.mubr.bf16.vlgmr.msra.gmra.mxu1 %v13425_v32 }
 0xb74   : > { %13872 = vmatprep.mubr.bf16.mxu1 %v13430_v0 }
 0xb7b   : > { %13873 = vmatmul.mubr.bf16.gmra.mxu1 %v13429_v29 }
 0xbd2   : > { %v15044_v31 = vpop.f32.mrf.mxu1  ;;  %v15108_v15 = vpop.f32.mrf.mxu0 }
 0xbd4   : > { %v15045_v20 = vpop.f32.mrf.mxu1  ;;  %v15109_v62 = vpop.f32.mrf.mxu0 }
 0xbd5   : > { %v15046_v41 = vadd.f32 %v15045_v20, %v15044_v31  ;;  %v15110_v16 = vadd.f32 %v15109_v62, %v15108_v15 }
 0xbd6   : > { %v15047_v2 = vpop.f32.mrf.mxu1  ;;  %v15111_v37 = vpop.f32.mrf.mxu0 }
 0xbd7   : > { %v13819_v56 = vadd.f32 %v15110_v16, %v15046_v41 }
 0xbd8   : > { %v15048_v60 = vpop.f32.mrf.mxu1  ;;  %v15112_v21 = vpop.f32.mrf.mxu0 }
 0xbd9   : > { %v13881_v33 = vadd.f32 %v13819_v56, %v21909_v44  ;;  %v15049_v26 = vadd.f32 %v15048_v60, %v15047_v2  ;;  %v15113_v49 = vadd.f32 %v15112_v21, %v15111_v37 }
 0xbda   : > { %v15050_v43 = vpop.f32.mrf.mxu1  ;;  %v15114_v24 = vpop.f32.mrf.mxu0 }
 0xbdb   : > { %v22335_v10 = vadd.f32 %v22331_v14, %v13881_v33  ;;  %v13822_v45 = vadd.f32 %v15113_v49, %v15049_v26 }
 0xbdc   : > { %v15051_v36 = vpop.f32.mrf.mxu1  ;;  %v15115_v25 = vpop.f32.mrf.mxu0 }
 0xbdd   : > { %13917 = vst [vmem:[#allocation2 + $0x30] sm:$0xff] %v22335_v10  ;;  %v13882_v51 = vadd.f32 %v13822_v45, %v21916_v55  ;;  %v15052_v27 = vadd.f32 %v15051_v36, %v15050_v43  ;;  %v15116_v22 = vadd.f32 %v15115_v25, %v15114_v24 }
 0xbde   : > { %v15053_v7 = vpop.f32.mrf.mxu1  ;;  %v15117_v6 = vpop.f32.mrf.mxu0 }
 0xbdf   : > { %v22340_v44 = vadd.f32 %v22331_v14, %v13882_v51  ;;  %v13827_v5 = vadd.f32 %v15116_v22, %v15052_v27 }
 0xbe0   : > { %v15054_v54 = vpop.f32.mrf.mxu1  ;;  %v15118_v46 = vpop.f32.mrf.mxu0 }
 0xbe1   : > { %13918 = vst [vmem:[#allocation2] sm:$0xff] %v22340_v44  ;;  %v13883_v53 = vadd.f32 %v13827_v5, %v21913_v52  ;;  %v15055_v13 = vadd.f32 %v15054_v54, %v15053_v7  ;;  %v15119_v38 = vadd.f32 %v15118_v46, %v15117_v6 }
 0xbe3   : > { %v22345_v8 = vadd.f32 %v22331_v14, %v13883_v53  ;;  %v13830_v55 = vadd.f32 %v15119_v38, %v15055_v13 }
 0xbe5   : > { %13919 = vst [vmem:[#allocation2 + $0x58] sm:$0xff] %v22345_v8  ;;  %v13884_v19 = vadd.f32 %v13830_v55, %v21921_v57 }
 0xbe7   : > { %v22350_v58 = vadd.f32 %v22331_v14, %v13884_v19 }
 0xbe9   : > { %13920 = vst [vmem:[#allocation2 + $0x18] sm:$0xff] %v22350_v58 }
 0xbf7   : > { %v15056_v47 = vpop.f32.mrf.mxu1  ;;  %v15120_v1 = vpop.f32.mrf.mxu0 }
 0xbf9   : > { %v15057_v23 = vpop.f32.mrf.mxu1  ;;  %v15121_v32 = vpop.f32.mrf.mxu0 }
 0xbfa   : > { %v15058_v52 = vadd.f32 %v15057_v23, %v15056_v47  ;;  %v15122_v9 = vadd.f32 %v15121_v32, %v15120_v1 }
 0xbfb   : > { %v15059_v0 = vpop.f32.mrf.mxu1  ;;  %v15123_v42 = vpop.f32.mrf.mxu0 }
 0xbfc   : > { %v13835_v48 = vadd.f32 %v15122_v9, %v15058_v52 }
 0xbfd   : > { %v15060_v35 = vpop.f32.mrf.mxu1  ;;  %v15124_v29 = vpop.f32.mrf.mxu0 }
 0xbfe   : > { %v13885_v31 = vadd.f32 %v13835_v48, %v21925_v59  ;;  %v15061_v15 = vadd.f32 %v15060_v35, %v15059_v0  ;;  %v15125_v57 = vadd.f32 %v15124_v29, %v15123_v42 }
 0xbff   : > { %v15062_v40 = vpop.f32.mrf.mxu1  ;;  %v15126_v20 = vpop.f32.mrf.mxu0 }
 0xc00   : > { %v22355_v62 = vadd.f32 %v22331_v14, %v13885_v31  ;;  %v13838_v41 = vadd.f32 %v15125_v57, %v15061_v15 }
 0xc01   : > { %v15063_v16 = vpop.f32.mrf.mxu1  ;;  %v15127_v2 = vpop.f32.mrf.mxu0 }
 0xc02   : > { %13921 = vst [vmem:[#allocation2 + $0x50] sm:$0xff] %v22355_v62  ;;  %v13886_v37 = vadd.f32 %v13838_v41, %v21932_v18  ;;  %v15064_v56 = vadd.f32 %v15063_v16, %v15062_v40  ;;  %v15128_v3 = vadd.f32 %v15127_v2, %v15126_v20 }
 0xc03   : > { %v15065_v60 = vpop.f32.mrf.mxu1  ;;  %v15129_v21 = vpop.f32.mrf.mxu0 }
 0xc04   : > { %v22360_v59 = vadd.f32 %v22331_v14, %v13886_v37  ;;  %v13843_v33 = vadd.f32 %v15128_v3, %v15064_v56 }
 0xc05   : > { %v15066_v26 = vpop.f32.mrf.mxu1  ;;  %v15130_v49 = vpop.f32.mrf.mxu0 }
 0xc06   : > { %13922 = vst [vmem:[#allocation2 + $0x68] sm:$0xff] %v22360_v59  ;;  %v13887_v43 = vadd.f32 %v13843_v33, %v21929_v39  ;;  %v15067_v24 = vadd.f32 %v15066_v26, %v15065_v60  ;;  %v15131_v45 = vadd.f32 %v15130_v49, %v15129_v21 }
 0xc08   : > { %v22365_v36 = vadd.f32 %v22331_v14, %v13887_v43  ;;  %v13846_v18 = vadd.f32 %v15131_v45, %v15067_v24 }
 0xc0a   : > { %13923 = vst [vmem:[#allocation2 + $0x8] sm:$0xff] %v22365_v36  ;;  %v13888_v25 = vadd.f32 %v13846_v18, %v21937_v61 }
 0xc0c   : > { %v22370_v51 = vadd.f32 %v22331_v14, %v13888_v25 }
 0xc0e   : > { %13924 = vst [vmem:[#allocation2 + $0x48] sm:$0xff] %v22370_v51 }
 0xc13   : > { %v15068_v27 = vpop.f32.mrf.mxu1  ;;  %v15132_v22 = vpop.f32.mrf.mxu0 }
 0xc15   : > { %v15069_v7 = vpop.f32.mrf.mxu1  ;;  %v15133_v6 = vpop.f32.mrf.mxu0 }
 0xc16   : > { %v15070_v39 = vadd.f32 %v15069_v7, %v15068_v27  ;;  %v15134_v5 = vadd.f32 %v15133_v6, %v15132_v22 }
 0xc17   : > { %v15071_v54 = vpop.f32.mrf.mxu1  ;;  %v15135_v46 = vpop.f32.mrf.mxu0 }
 0xc18   : > { %v13851_v53 = vadd.f32 %v15134_v5, %v15070_v39 }
 0xc19   : > { %v15072_v13 = vpop.f32.mrf.mxu1  ;;  %v15136_v38 = vpop.f32.mrf.mxu0 }
 0xc1a   : > { %v13889_v55 = vadd.f32 %v13851_v53, %v21941_v4  ;;  %v15073_v19 = vadd.f32 %v15072_v13, %v15071_v54  ;;  %v15137_v61 = vadd.f32 %v15136_v38, %v15135_v46 }
 0xc1b   : > { %v15074_v47 = vpop.f32.mrf.mxu1  ;;  %v15138_v1 = vpop.f32.mrf.mxu0 }
 0xc1c   : > { %v22375_v23 = vadd.f32 %v22331_v14, %v13889_v55  ;;  %v13854_v32 = vadd.f32 %v15137_v61, %v15073_v19 }
 0xc1d   : > { %v15075_v52 = vpop.f32.mrf.mxu1  ;;  %v15139_v9 = vpop.f32.mrf.mxu0 }
 0xc1e   : > { %13925 = vst [vmem:[#allocation2 + $0x40] sm:$0xff] %v22375_v23  ;;  %v13890_v0 = vadd.f32 %v13854_v32, %v21948_v30  ;;  %v15076_v42 = vadd.f32 %v15075_v52, %v15074_v47  ;;  %v15140_v48 = vadd.f32 %v15139_v9, %v15138_v1 }
 0xc1f   : > { %v15077_v35 = vpop.f32.mrf.mxu1  ;;  %v15141_v29 = vpop.f32.mrf.mxu0 }
 0xc20   : > { %v22380_v4 = vadd.f32 %v22331_v14, %v13890_v0  ;;  %v13859_v31 = vadd.f32 %v15140_v48, %v15076_v42 }
 0xc21   : > { %v15078_v15 = vpop.f32.mrf.mxu1  ;;  %v15142_v57 = vpop.f32.mrf.mxu0 }
 0xc22   : > { %13926 = vst [vmem:[#allocation2 + $0x20] sm:$0xff] %v22380_v4  ;;  %v13891_v40 = vadd.f32 %v13859_v31, %v21945_v17  ;;  %v15079_v20 = vadd.f32 %v15078_v15, %v15077_v35  ;;  %v15143_v41 = vadd.f32 %v15142_v57, %v15141_v29 }
 0xc23   : > { %v15080_v16 = vpop.f32.mrf.mxu1 }
 0xc24   : > { %v22385_v2 = vadd.f32 %v22331_v14, %v13891_v40  ;;  %v13862_v30 = vadd.f32 %v15143_v41, %v15079_v20 }
 0xc25   : > { %v15081_v37 = vpop.f32.mrf.mxu1 }
 0xc26   : > { %13927 = vst [vmem:[#allocation2 + $0x10] sm:$0xff] %v22385_v2  ;;  %v13892_v56 = vadd.f32 %v13862_v30, %v21953_v34  ;;  %v15082_v45 = vadd.f32 %v15081_v37, %v15080_v16 }
 0xc27   : > { %v15083_v3 = vpop.f32.mrf.mxu1 }
 0xc28   : > { %v22390_v60 = vadd.f32 %v22331_v14, %v13892_v56 }
 0xc29   : > { %v15084_v21 = vpop.f32.mrf.mxu1 }
 0xc2a   : > { %13928 = vst [vmem:[#allocation2 + $0x38] sm:$0xff] %v22390_v60  ;;  %v15085_v7 = vadd.f32 %v15084_v21, %v15083_v3 }
 0xc2b   : > { %v15086_v17 = vpop.f32.mrf.mxu1 }
 0xc2d   : > { %v15087_v33 = vpop.f32.mrf.mxu1 }
 0xc2e   : > { %v15088_v53 = vadd.f32 %v15087_v33, %v15086_v17 }
 0xc2f   : > { %v15089_v26 = vpop.f32.mrf.mxu1 }
 0xc31   : > { %v15090_v49 = vpop.f32.mrf.mxu1 }
 0xc33   : > { %v15144_v43 = vpop.f32.mrf.mxu1 }
 0xc35   : > { %v15145_v24 = vpop.f32.mrf.mxu1 }
 0xc36   : > { %v15146_v18 = vadd.f32 %v15145_v24, %v15144_v43 }
 0xc37   : > { %v15147_v25 = vpop.f32.mrf.mxu1 }
 0xc38   : > { %v13867_v27 = vadd.f32 %v15146_v18, %v15082_v45 }
 0xc39   : > { %v15148_v22 = vpop.f32.mrf.mxu1 }
 0xc3a   : > { %v13893_v34 = vadd.f32 %v13867_v27, %v21957_v50  ;;  %v15149_v6 = vadd.f32 %v15148_v22, %v15147_v25  ;;  %v15091_v50 = vadd.f32 %v15090_v49, %v15089_v26 }
 0xc3b   : > { %v15150_v39 = vpop.f32.mrf.mxu1 }
 0xc3c   : > { %v22395_v5 = vadd.f32 %v22331_v14, %v13893_v34  ;;  %v13870_v54 = vadd.f32 %v15149_v6, %v15085_v7 }
 0xc3d   : > { %v15151_v46 = vpop.f32.mrf.mxu1 }
 0xc3e   : > { %13929 = vst [vmem:[#allocation2 + $0x60] sm:$0xff] %v22395_v5  ;;  %v13894_v13 = vadd.f32 %v13870_v54, %v21964_v63  ;;  %v15152_v38 = vadd.f32 %v15151_v46, %v15150_v39 }
 0xc3f   : > { %v15153_v55 = vpop.f32.mrf.mxu1 }
 0xc40   : > { %v22400_v19 = vadd.f32 %v22331_v14, %v13894_v13  ;;  %v13875_v61 = vadd.f32 %v15152_v38, %v15088_v53 }
 0xc41   : > { %v15154_v47 = vpop.f32.mrf.mxu1 }
 0xc42   : > { %13930 = vst [vmem:[#allocation2 + $0x70] sm:$0xff] %v22400_v19  ;;  %v13895_v1 = vadd.f32 %v13875_v61, %v21961_v11  ;;  %v15155_v32 = vadd.f32 %v15154_v47, %v15153_v55 }
 0xc44   : > { %v22405_v52 = vadd.f32 %v22331_v14, %v13895_v1  ;;  %v13878_v9 = vadd.f32 %v15155_v32, %v15091_v50 }
 0xc46   : > { %13931 = vst [vmem:[#allocation2 + $0x78] sm:$0xff] %v22405_v52  ;;  %v13896_v63 = vadd.f32 %v13878_v9, %v21969_v12  ;;  %13936 = sbr.rel (%p14848_p5) target bundleno = 3689 (0xe69), region = 96 }
 0xc48   : > { %v22410_v0 = vadd.f32 %v22331_v14, %v13896_v63 }
 0xc4a   : > { %13932 = vst [vmem:[#allocation2 + $0x28] sm:$0xff] %v22410_v0 }
 0xc4b   : > { %13938 = vadd.xlane.f32.xlu0 %v22335_v10  ;;  %13954 = vadd.xlane.f32.xlu1 %v22375_v23  ;;  %v16333_v46 = vld [vmem:[#allocation13 + $0x38] sm:$0xff]  }
 0xc4c   : > { %15492 = vmatprep.subr.bf16.mxu0 %v16333_v46  ;;  %15540 = vmatprep.subr.bf16.mxu1 %v16333_v46 }
 0xc4d   : > { %15493 = vmatpush3.bf16.msra.mxu0 %v16333_v46  ;;  %15548 = vmatpush3.bf16.msra.mxu1 %v16333_v46 }
 0xc4f   : > { %13940 = vadd.xlane.f32.xlu0 %v22340_v44  ;;  %13956 = vadd.xlane.f32.xlu1 %v22380_v4 }
 0xc53   : > { %13942 = vadd.xlane.f32.xlu0 %v22345_v8  ;;  %13944 = vadd.xlane.f32.xlu1 %v22350_v58 }
 0xc57   : > { %13958 = vadd.xlane.f32.xlu0 %v22385_v2  ;;  %13960 = vadd.xlane.f32.xlu1 %v22390_v60 }
 0xc5b   : > { %13946 = vadd.xlane.f32.xlu0 %v22355_v62  ;;  %13948 = vadd.xlane.f32.xlu1 %v22360_v59 }
 0xc5f   : > { %13962 = vadd.xlane.f32.xlu0 %v22395_v5  ;;  %13964 = vadd.xlane.f32.xlu1 %v22400_v19 }
 0xc63   : > { %13950 = vadd.xlane.f32.xlu0 %v22365_v36  ;;  %13952 = vadd.xlane.f32.xlu1 %v22370_v51 }
 0xc67   : > { %13966 = vadd.xlane.f32.xlu0 %v22405_v52  ;;  %13968 = vadd.xlane.f32.xlu1 %v22410_v0 }
 0xcd4   : > { %v13939_v11 = vpop.xlane.xlu0 %13938  ;;  %v13955_v12 = vpop.xlane.xlu1 %13954 }
 0xcd5   : > { %v13970_v14 = vmul.f32 0.0078125, %v13939_v11  ;;  %v13978_v42 = vmul.f32 0.0078125, %v13955_v12 }
 0xcd7   : > { %v22431_v48 = vsub.f32 %v22335_v10, %v13970_v14  ;;  %v22434_v35 = vsub.f32 %v22375_v23, %v13978_v42 }
 0xcd8   : > { %v13941_v29 = vpop.xlane.xlu0 %13940  ;;  %v13957_v31 = vpop.xlane.xlu1 %13956 }
 0xcd9   : > { %v13971_v15 = vmul.f32 0.0078125, %v13941_v29  ;;  %v14002_v57 = vmul.f32 %v22431_v48, %v22431_v48  ;;  %v13979_v40 = vmul.f32 0.0078125, %v13957_v31  ;;  %v14010_v10 = vmul.f32 %v22434_v35, %v22434_v35  ;;  %v16336_v31 = vld [vmem:[#allocation13 + $0x20] sm:$0xff]  }
 0xcdb   : > { %v22439_v20 = vsub.f32 %v22340_v44, %v13971_v15  ;;  %14018 = vadd.xlane.f32.xlu0 %v14002_v57  ;;  %v22442_v41 = vsub.f32 %v22380_v4, %v13979_v40  ;;  %v16338_v15 = vld [vmem:[#allocation13 + $0x10] sm:$0xff]   ;;  %v16339_v57 = vld [vmem:[#allocation13 + $0x8] sm:$0xff]   ;;  %v16340_v40 = vld [vmem:[#allocation13] sm:$0xff]  }
 0xcdc   : > { %v13943_v16 = vpop.xlane.xlu0 %13942  ;;  %v13945_v23 = vpop.xlane.xlu1 %13944 }
 0xcdd   : > { %v13972_v30 = vmul.f32 0.0078125, %v13943_v16  ;;  %v14003_v37 = vmul.f32 %v22439_v20, %v22439_v20  ;;  %v13973_v56 = vmul.f32 0.0078125, %v13945_v23  ;;  %v14011_v4 = vmul.f32 %v22442_v41, %v22442_v41 }
 0xcdf   : > { %v22449_v3 = vsub.f32 %v22345_v8, %v13972_v30  ;;  %14034 = vadd.xlane.f32.xlu0 %v14010_v10  ;;  %14020 = vadd.xlane.f32.xlu1 %v14003_v37  ;;  %v22452_v44 = vsub.f32 %v22350_v58, %v13973_v56 }
 0xce0   : > { %v13959_v21 = vpop.xlane.xlu0 %13958  ;;  %v13961_v17 = vpop.xlane.xlu1 %13960 }
 0xce1   : > { %v13980_v33 = vmul.f32 0.0078125, %v13959_v21  ;;  %v14004_v26 = vmul.f32 %v22449_v3, %v22449_v3  ;;  %v13981_v49 = vmul.f32 0.0078125, %v13961_v17  ;;  %v14005_v58 = vmul.f32 %v22452_v44, %v22452_v44 }
 0xce3   : > { %v22459_v43 = vsub.f32 %v22385_v2, %v13980_v33  ;;  %14036 = vadd.xlane.f32.xlu1 %v14011_v4  ;;  %14022 = vadd.xlane.f32.xlu0 %v14004_v26  ;;  %v22462_v8 = vsub.f32 %v22390_v60, %v13981_v49 }
 0xce4   : > { %v13947_v24 = vpop.xlane.xlu0 %13946  ;;  %v13949_v45 = vpop.xlane.xlu1 %13948 }
 0xce5   : > { %v13974_v18 = vmul.f32 0.0078125, %v13947_v24  ;;  %v14012_v25 = vmul.f32 %v22459_v43, %v22459_v43  ;;  %v13975_v27 = vmul.f32 0.0078125, %v13949_v45  ;;  %v14013_v60 = vmul.f32 %v22462_v8, %v22462_v8 }
 0xce7   : > { %v22469_v22 = vsub.f32 %v22355_v62, %v13974_v18  ;;  %14024 = vadd.xlane.f32.xlu1 %v14005_v58  ;;  %14038 = vadd.xlane.f32.xlu0 %v14012_v25  ;;  %v22472_v2 = vsub.f32 %v22360_v59, %v13975_v27 }
 0xce8   : > { %v13963_v7 = vpop.xlane.xlu0 %13962  ;;  %v13965_v34 = vpop.xlane.xlu1 %13964 }
 0xce9   : > { %v13982_v6 = vmul.f32 0.0078125, %v13963_v7  ;;  %v14006_v39 = vmul.f32 %v22469_v22, %v22469_v22  ;;  %v13983_v54 = vmul.f32 0.0078125, %v13965_v34  ;;  %v14007_v59 = vmul.f32 %v22472_v2, %v22472_v2 }
 0xceb   : > { %v22479_v53 = vsub.f32 %v22395_v5, %v13982_v6  ;;  %14040 = vadd.xlane.f32.xlu1 %v14013_v60  ;;  %14026 = vadd.xlane.f32.xlu0 %v14006_v39  ;;  %v22482_v62 = vsub.f32 %v22400_v19, %v13983_v54  ;;  %v16334_v5 = vld [vmem:[#allocation13 + $0x30] sm:$0xff]   ;;  %v22513_v6 = vld [vmem:[%s23535_s28] sm:$0xff] }
 0xcec   : > { %v13951_v13 = vpop.xlane.xlu0 %13950  ;;  %v13953_v38 = vpop.xlane.xlu1 %13952  ;;  %15494 = vmatprep.subr.bf16.mxu0 %v16334_v5  ;;  %15541 = vmatprep.subr.bf16.mxu1 %v16334_v5 }
 0xced   : > { %v13976_v55 = vmul.f32 0.0078125, %v13951_v13  ;;  %v14014_v61 = vmul.f32 %v22479_v53, %v22479_v53  ;;  %v13977_v47 = vmul.f32 0.0078125, %v13953_v38  ;;  %v14015_v1 = vmul.f32 %v22482_v62, %v22482_v62  ;;  %15495 = vmatpush3.bf16.msra.mxu0 %v16334_v5  ;;  %15549 = vmatpush3.bf16.msra.mxu1 %v16334_v5  ;;  %v23536_v38 = vld [vmem:[#allocation29_spill] sm:$0xff] }
 0xcef   : > { %v22489_v50 = vsub.f32 %v22365_v36, %v13976_v55  ;;  %14028 = vadd.xlane.f32.xlu1 %v14007_v59  ;;  %14042 = vadd.xlane.f32.xlu0 %v14014_v61  ;;  %v22492_v19 = vsub.f32 %v22370_v51, %v13977_v47  ;;  %v16335_v36 = vld [vmem:[#allocation13 + $0x28] sm:$0xff]   ;;  %v23537_v55 = vsub.s32 0, %v23536_v38 }
 0xcf0   : > { %v13967_v32 = vpop.xlane.xlu0 %13966  ;;  %v13969_v9 = vpop.xlane.xlu1 %13968  ;;  %15496 = vmatprep.subr.bf16.mxu0 %v16335_v36  ;;  %15542 = vmatprep.subr.bf16.mxu1 %v16335_v36 }
 0xcf1   : > { %v13984_v63 = vmul.f32 0.0078125, %v13967_v32  ;;  %v14008_v11 = vmul.f32 %v22489_v50, %v22489_v50  ;;  %v13985_v12 = vmul.f32 0.0078125, %v13969_v9  ;;  %v14009_v42 = vmul.f32 %v22492_v19, %v22492_v19  ;;  %15497 = vmatpush3.bf16.msra.mxu0 %v16335_v36  ;;  %15550 = vmatpush3.bf16.msra.mxu1 %v16335_v36 }
 0xcf2   : > { %15498 = vmatprep.subr.bf16.mxu0 %v16336_v31  ;;  %15543 = vmatprep.subr.bf16.mxu1 %v16336_v31  ;;  %v22518_v61 = vrot.slane %v22513_v6, %v23537_v55 }
 0xcf3   : > { %v22499_v14 = vsub.f32 %v22405_v52, %v13984_v63  ;;  %14044 = vadd.xlane.f32.xlu1 %v14015_v1  ;;  %14030 = vadd.xlane.f32.xlu0 %v14008_v11  ;;  %v22502_v51 = vsub.f32 %v22410_v0, %v13985_v12  ;;  %v16337_v0 = vld [vmem:[#allocation13 + $0x18] sm:$0xff]  }
 0xcf5   : > { %v14016_v29 = vmul.f32 %v22499_v14, %v22499_v14  ;;  %v14017_v52 = vmul.f32 %v22502_v51, %v22502_v51  ;;  %15499 = vmatpush3.bf16.msra.mxu0 %v16336_v31  ;;  %15551 = vmatpush3.bf16.msra.mxu1 %v16336_v31 }
 0xcf6   : > { %15500 = vmatprep.subr.bf16.mxu0 %v16337_v0  ;;  %15544 = vmatprep.subr.bf16.mxu1 %v16337_v0 }
 0xcf7   : > { %14032 = vadd.xlane.f32.xlu1 %v14009_v42  ;;  %14046 = vadd.xlane.f32.xlu0 %v14016_v29  ;;  %v23538_v42 = vsub.s32 1, %v23536_v38 }
 0xcf9   : > { %15501 = vmatpush3.bf16.msra.mxu0 %v16337_v0  ;;  %15552 = vmatpush3.bf16.msra.mxu1 %v16337_v0  ;;  %v22525_v29 = vrot.slane %v22513_v6, %v23538_v42 }
 0xcfa   : > { %15502 = vmatprep.subr.bf16.mxu0 %v16338_v15  ;;  %15545 = vmatprep.subr.bf16.mxu1 %v16338_v15 }
 0xcfb   : > { %14048 = vadd.xlane.f32.xlu1 %v14017_v52 }
 0xcfd   : > { %15503 = vmatpush3.bf16.msra.mxu0 %v16338_v15  ;;  %15553 = vmatpush3.bf16.msra.mxu1 %v16338_v15 }
 0xcfe   : > { %15504 = vmatprep.subr.bf16.mxu0 %v16339_v57  ;;  %15546 = vmatprep.subr.bf16.mxu1 %v16339_v57 }
 0xd01   : > { %15505 = vmatpush3.bf16.msra.mxu0 %v16339_v57  ;;  %15554 = vmatpush3.bf16.msra.mxu1 %v16339_v57 }
 0xd02   : > { %15506 = vmatprep.subr.bf16.mxu0 %v16340_v40  ;;  %15547 = vmatprep.subr.bf16.mxu1 %v16340_v40 }
 0xd05   : > { %15507 = vmatpush3.bf16.msra.mxu0 %v16340_v40  ;;  %15555 = vmatpush3.bf16.msra.mxu1 %v16340_v40 }
 0xd64   : > { %v14019_v10 = vpop.xlane.xlu0 %14018 }
 0xd65   : > { %v14050_v16 = vmul.f32 0.0078125, %v14019_v10 }
 0xd67   : > { %v14066_v23 = vadd.f32 1e-05, %v14050_v16 }
 0xd68   : > { %v14021_v30 = vpop.xlane.xlu1 %14020  ;;  %v14035_v37 = vpop.xlane.xlu0 %14034 }
 0xd69   : > { %16341 = vrsqrt.f32 %v14066_v23  ;;  %v14051_v56 = vmul.f32 0.0078125, %v14021_v30  ;;  %v14058_v4 = vmul.f32 0.0078125, %v14035_v37 }
 0xd6b   : > { %v14067_v21 = vadd.f32 1e-05, %v14051_v56  ;;  %v14074_v17 = vadd.f32 1e-05, %v14058_v4 }
 0xd6c   : > { %v14037_v33 = vpop.xlane.xlu1 %14036  ;;  %v14023_v26 = vpop.xlane.xlu0 %14022 }
 0xd6d   : > { %16343 = vrsqrt.f32 %v14067_v21  ;;  %v14059_v49 = vmul.f32 0.0078125, %v14037_v33  ;;  %v14052_v58 = vmul.f32 0.0078125, %v14023_v26 }
 0xd6e   : > { %16345 = vrsqrt.f32 %v14074_v17 }
 0xd6f   : > { %v14075_v24 = vadd.f32 1e-05, %v14059_v49  ;;  %v14068_v45 = vadd.f32 1e-05, %v14052_v58 }
 0xd70   : > { %v14025_v18 = vpop.xlane.xlu1 %14024  ;;  %v14039_v25 = vpop.xlane.xlu0 %14038 }
 0xd71   : > { %16347 = vrsqrt.f32 %v14075_v24  ;;  %v14053_v27 = vmul.f32 0.0078125, %v14025_v18  ;;  %v14060_v60 = vmul.f32 0.0078125, %v14039_v25 }
 0xd72   : > { %16349 = vrsqrt.f32 %v14068_v45 }
 0xd73   : > { %v14069_v7 = vadd.f32 1e-05, %v14053_v27  ;;  %v14076_v34 = vadd.f32 1e-05, %v14060_v60 }
 0xd74   : > { %v14041_v39 = vpop.xlane.xlu1 %14040  ;;  %v14027_v54 = vpop.xlane.xlu0 %14026 }
 0xd75   : > { %16351 = vrsqrt.f32 %v14069_v7  ;;  %v14061_v46 = vmul.f32 0.0078125, %v14041_v39  ;;  %v14054_v59 = vmul.f32 0.0078125, %v14027_v54 }
 0xd76   : > { %v16342_v13 = vpop.eup %16341  ;;  %16353 = vrsqrt.f32 %v14076_v34 }
 0xd77   : > { %v14077_v47 = vadd.f32 1e-05, %v14061_v46  ;;  %v14070_v5 = vadd.f32 1e-05, %v14054_v59  ;;  %v14098_v1 = vmul.f32 %v16342_v13, %v22431_v48 }
 0xd78   : > { %v14029_v32 = vpop.xlane.xlu1 %14028  ;;  %v14043_v9 = vpop.xlane.xlu0 %14042 }
 0xd79   : > { %16355 = vrsqrt.f32 %v14077_v47  ;;  %v14055_v63 = vmul.f32 0.0078125, %v14029_v32  ;;  %v14062_v11 = vmul.f32 0.0078125, %v14043_v9  ;;  %v14118_v36 = vmul.f32 %v22518_v61, %v14098_v1 }
 0xd7a   : > { %v16344_v12 = vpop.eup %16343  ;;  %16357 = vrsqrt.f32 %v14070_v5 }
 0xd7b   : > { %v16346_v31 = vpop.eup %16345  ;;  %v14071_v52 = vadd.f32 1e-05, %v14055_v63  ;;  %v14078_v0 = vadd.f32 1e-05, %v14062_v11  ;;  %v14099_v15 = vmul.f32 %v16344_v12, %v22439_v20  ;;  %v14138_v37 = vadd.f32 %v22525_v29, %v14118_v36 }
 0xd7c   : > { %v14045_v48 = vpop.xlane.xlu1 %14044  ;;  %v14031_v57 = vpop.xlane.xlu0 %14030  ;;  %v14106_v40 = vmul.f32 %v16346_v31, %v22434_v35 }
 0xd7d   : > { %16359 = vrsqrt.f32 %v14071_v52  ;;  %v14063_v10 = vmul.f32 0.0078125, %v14045_v48  ;;  %v14056_v16 = vmul.f32 0.0078125, %v14031_v57  ;;  %v14119_v23 = vmul.f32 %v22518_v61, %v14099_v15 }
 0xd7e   : > { %v16348_v30 = vpop.eup %16347  ;;  %16361 = vrsqrt.f32 %v14078_v0  ;;  %v14126_v35 = vmul.f32 %v22518_v61, %v14106_v40 }
 0xd7f   : > { %v16350_v56 = vpop.eup %16349  ;;  %v14079_v4 = vadd.f32 1e-05, %v14063_v10  ;;  %v14072_v21 = vadd.f32 1e-05, %v14056_v16  ;;  %v14139_v17 = vadd.f32 %v22525_v29, %v14119_v23  ;;  %v14107_v20 = vmul.f32 %v16348_v30, %v22442_v41 }
 0xd80   : > { %v14033_v33 = vpop.xlane.xlu1 %14032  ;;  %v14047_v26 = vpop.xlane.xlu0 %14046  ;;  %v14100_v49 = vmul.f32 %v16350_v56, %v22449_v3  ;;  %v14146_v54 = vadd.f32 %v22525_v29, %v14126_v35 }
 0xd81   : > { %16363 = vrsqrt.f32 %v14079_v4  ;;  %v14057_v58 = vmul.f32 0.0078125, %v14033_v33  ;;  %v14064_v24 = vmul.f32 0.0078125, %v14047_v26  ;;  %v14154_v45 = vpack.c.bf16 %v14139_v17, %v14138_v37 }
 0xd82   : > { %v16352_v18 = vpop.eup %16351  ;;  %16365 = vrsqrt.f32 %v14072_v21  ;;  %v14127_v25 = vmul.f32 %v22518_v61, %v14107_v20  ;;  %v14120_v27 = vmul.f32 %v22518_v61, %v14100_v49 }
 0xd83   : > { %v16354_v60 = vpop.eup %16353  ;;  %v14073_v7 = vadd.f32 1e-05, %v14057_v58  ;;  %v14080_v34 = vadd.f32 1e-05, %v14064_v24  ;;  %15508 = vmatprep.mubr.bf16.mxu0 %v14154_v45  ;;  %v14101_v41 = vmul.f32 %v16352_v18, %v22452_v44 }
 0xd84   : > { %v14049_v39 = vpop.xlane.xlu1 %14048  ;;  %v14147_v3 = vadd.f32 %v22525_v29, %v14127_v25  ;;  %v14108_v46 = vmul.f32 %v16354_v60, %v22459_v43  ;;  %v14140_v5 = vadd.f32 %v22525_v29, %v14120_v27  ;;  %v14181_v60 = vrot.slane %v22513_v6, %v12855_v28 }
 0xd85   : > { %16367 = vrsqrt.f32 %v14073_v7  ;;  %v14065_v59 = vmul.f32 0.0078125, %v14049_v39  ;;  %v14121_v13 = vmul.f32 %v22518_v61, %v14101_v41 }
 0xd86   : > { %v16356_v55 = vpop.eup %16355  ;;  %16369 = vrsqrt.f32 %v14080_v34  ;;  %v14158_v47 = vpack.c.bf16 %v14147_v3, %v14146_v54  ;;  %v14128_v63 = vmul.f32 %v22518_v61, %v14108_v46 }
 0xd87   : > { %v16358_v1 = vpop.eup %16357  ;;  %v14081_v32 = vadd.f32 1e-05, %v14065_v59  ;;  %v14141_v44 = vadd.f32 %v22525_v29, %v14121_v13  ;;  %v14109_v9 = vmul.f32 %v16356_v55, %v22462_v8 }
 0xd88   : > { %15516 = vmatprep.mubr.bf16.mxu1 %v14158_v47  ;;  %v14102_v43 = vmul.f32 %v16358_v1, %v22469_v22  ;;  %v14148_v31 = vadd.f32 %v22525_v29, %v14128_v63 }
 0xd89   : > { %16371 = vrsqrt.f32 %v14081_v32  ;;  %v14155_v11 = vpack.c.bf16 %v14141_v44, %v14140_v5  ;;  %v14129_v12 = vmul.f32 %v22518_v61, %v14109_v9 }
 0xd8a   : > { %v16360_v36 = vpop.eup %16359  ;;  %v14122_v8 = vmul.f32 %v22518_v61, %v14102_v43 }
 0xd8b   : > { %v16362_v42 = vpop.eup %16361  ;;  %15509 = vmatmul.mubr.bf16.vlgmr.msra.gmra.mxu0 %v14155_v11  ;;  %v14149_v52 = vadd.f32 %v22525_v29, %v14129_v12  ;;  %v14103_v0 = vmul.f32 %v16360_v36, %v22472_v2 }
 0xd8c   : > { %v14110_v15 = vmul.f32 %v16362_v42, %v22479_v53  ;;  %v14142_v10 = vadd.f32 %v22525_v29, %v14122_v8 }
 0xd8d   : > { %v14159_v48 = vpack.c.bf16 %v14149_v52, %v14148_v31  ;;  %v14123_v22 = vmul.f32 %v22518_v61, %v14103_v0 }
 0xd8e   : > { %v16364_v57 = vpop.eup %16363  ;;  %v14130_v30 = vmul.f32 %v22518_v61, %v14110_v15 }
 0xd8f   : > { %v16366_v40 = vpop.eup %16365  ;;  %15517 = vmatmul.mubr.bf16.vlgmr.msra.gmra.mxu1 %v14159_v48  ;;  %v14143_v16 = vadd.f32 %v22525_v29, %v14123_v22  ;;  %v14111_v23 = vmul.f32 %v16364_v57, %v22482_v62 }
 0xd90   : > { %v14104_v2 = vmul.f32 %v16366_v40, %v22489_v50  ;;  %v14150_v21 = vadd.f32 %v22525_v29, %v14130_v30 }
 0xd91   : > { %v14156_v37 = vpack.c.bf16 %v14143_v16, %v14142_v10  ;;  %v14131_v56 = vmul.f32 %v22518_v61, %v14111_v23 }
 0xd92   : > { %v16368_v53 = vpop.eup %16367  ;;  %v14124_v33 = vmul.f32 %v22518_v61, %v14104_v2 }
 0xd93   : > { %v16370_v4 = vpop.eup %16369  ;;  %15512 = vmatprep.mubr.bf16.mxu0 %v14156_v37  ;;  %v14151_v17 = vadd.f32 %v22525_v29, %v14131_v56  ;;  %v14105_v20 = vmul.f32 %v16368_v53, %v22492_v19 }
 0xd94   : > { %v14112_v62 = vmul.f32 %v16370_v4, %v22499_v14  ;;  %v14144_v49 = vadd.f32 %v22525_v29, %v14124_v33 }
 0xd95   : > { %v14160_v26 = vpack.c.bf16 %v14151_v17, %v14150_v21  ;;  %v14125_v35 = vmul.f32 %v22518_v61, %v14105_v20 }
 0xd96   : > { %v16372_v50 = vpop.eup %16371  ;;  %v14132_v45 = vmul.f32 %v22518_v61, %v14112_v62 }
 0xd97   : > { %15520 = vmatprep.mubr.bf16.mxu1 %v14160_v26  ;;  %v14145_v58 = vadd.f32 %v22525_v29, %v14125_v35  ;;  %v14113_v24 = vmul.f32 %v16372_v50, %v22502_v51 }
 0xd98   : > { %v14152_v14 = vadd.f32 %v22525_v29, %v14132_v45 }
 0xd99   : > { %v14157_v19 = vpack.c.bf16 %v14145_v58, %v14144_v49  ;;  %v14133_v18 = vmul.f32 %v22518_v61, %v14113_v24 }
 0xd9b   : > { %15513 = vmatmul.mubr.bf16.gmra.mxu0 %v14157_v19  ;;  %v14153_v25 = vadd.f32 %v22525_v29, %v14133_v18 }
 0xd9d   : > { %v14161_v27 = vpack.c.bf16 %v14153_v25, %v14152_v14 }
 0xd9f   : > { %15521 = vmatmul.mubr.bf16.gmra.mxu1 %v14161_v27 }
 0xe4b   : > { %v15510_v51 = vpop.f32.mrf.mxu0 }
 0xe4c   : > { %v14273_v7 = vadd.f32 %v15510_v51, %v14181_v60 }
 0xe4d   : > { %v14264_v34 = vpop.f32.mrf.mxu0 }
 0xe4e   : > { %14329 = vst [vmem:[%s17110_s29 + $0x10] sm:$0xff] %v14273_v7  ;;  %v14265_v61 = vadd.f32 %v14264_v34, %v14181_v60 }
 0xe4f   : > { %v15511_v41 = vpop.f32.mrf.mxu0  ;;  %v15518_v39 = vpop.f32.mrf.mxu1 }
 0xe50   : > { %14327 = vst [vmem:[%s17110_s29] sm:$0xff] %v14265_v61  ;;  %v14276_v29 = vadd.f32 %v15511_v41, %v14181_v60  ;;  %v14305_v54 = vadd.f32 %v15518_v39, %v14181_v60 }
 0xe51   : > { %v14267_v3 = vpop.f32.mrf.mxu0  ;;  %v14296_v46 = vpop.f32.mrf.mxu1 }
 0xe52   : > { %14330 = vst [vmem:[%s17110_s29 + $0x18] sm:$0xff] %v14276_v29  ;;  %14337 = vst [vmem:[%s17110_s29 + $0x50] sm:$0xff] %v14305_v54  ;;  %v14268_v28 = vadd.f32 %v14267_v3, %v14181_v60  ;;  %v14297_v6 = vadd.f32 %v14296_v46, %v14181_v60 }
 0xe53   : > { %v15519_v38 = vpop.f32.mrf.mxu1 }
 0xe54   : > { %14328 = vst [vmem:[%s17110_s29 + $0x8] sm:$0xff] %v14268_v28  ;;  %14335 = vst [vmem:[%s17110_s29 + $0x40] sm:$0xff] %v14297_v6  ;;  %v14308_v59 = vadd.f32 %v15519_v38, %v14181_v60 }
 0xe55   : > { %v14299_v13 = vpop.f32.mrf.mxu1 }
 0xe56   : > { %14338 = vst [vmem:[%s17110_s29 + $0x58] sm:$0xff] %v14308_v59  ;;  %v14300_v55 = vadd.f32 %v14299_v13, %v14181_v60 }
 0xe58   : > { %14336 = vst [vmem:[%s17110_s29 + $0x48] sm:$0xff] %v14300_v55 }
 0xe5b   : > { %v15514_v47 = vpop.f32.mrf.mxu0 }
 0xe5c   : > { %v14289_v5 = vadd.f32 %v15514_v47, %v14181_v60 }
 0xe5d   : > { %v14280_v1 = vpop.f32.mrf.mxu0 }
 0xe5e   : > { %14333 = vst [vmem:[%s17110_s29 + $0x30] sm:$0xff] %v14289_v5  ;;  %v14281_v32 = vadd.f32 %v14280_v1, %v14181_v60 }
 0xe5f   : > { %v15515_v44 = vpop.f32.mrf.mxu0  ;;  %v15522_v9 = vpop.f32.mrf.mxu1 }
 0xe60   : > { %14331 = vst [vmem:[%s17110_s29 + $0x20] sm:$0xff] %v14281_v32  ;;  %v14292_v63 = vadd.f32 %v15515_v44, %v14181_v60  ;;  %v14321_v43 = vadd.f32 %v15522_v9, %v14181_v60 }
 0xe61   : > { %v14283_v11 = vpop.f32.mrf.mxu0  ;;  %v14312_v12 = vpop.f32.mrf.mxu1 }
 0xe62   : > { %14334 = vst [vmem:[%s17110_s29 + $0x38] sm:$0xff] %v14292_v63  ;;  %14341 = vst [vmem:[%s17110_s29 + $0x70] sm:$0xff] %v14321_v43  ;;  %v14284_v36 = vadd.f32 %v14283_v11, %v14181_v60  ;;  %v14313_v42 = vadd.f32 %v14312_v12, %v14181_v60 }
 0xe63   : > { %v15523_v31 = vpop.f32.mrf.mxu1 }
 0xe64   : > { %14332 = vst [vmem:[%s17110_s29 + $0x28] sm:$0xff] %v14284_v36  ;;  %14339 = vst [vmem:[%s17110_s29 + $0x60] sm:$0xff] %v14313_v42  ;;  %v14324_v52 = vadd.f32 %v15523_v31, %v14181_v60 }
 0xe65   : > { %v14315_v0 = vpop.f32.mrf.mxu1 }
 0xe66   : > { %14342 = vst [vmem:[%s17110_s29 + $0x78] sm:$0xff] %v14324_v52  ;;  %v14316_v8 = vadd.f32 %v14315_v0, %v14181_v60 }
 0xe68   : > { %14340 = vst [vmem:[%s17110_s29 + $0x68] sm:$0xff] %v14316_v8 }
 0xe69 PF: > { %s23539_s8 = sld [smem:[#allocation23_spill]]  ;;  %s14357_s15 = sshll.u32 %s17110_s29, 4  ;;  %s22599_s15 = int_to_ptr.vmem [resolvable:$true] %s14357_s15 }
 0xe6a   : > { %s23540_s21 = sld [smem:[#allocation134_spill]]  ;;  %s22603_s26 = scalar_lea.sflag [#allocation5], %s460_s20 }
 0xe6b   : > { %s16593_s5 = scalar_lea.vmem %s22599_s15, 2048  ;;  %p23541_p10 = scmp.ne.s32.totalorder %s22991_s25, 0 }
 0xe6c   : > { %p16594_p0 = scmp.ne.s32.totalorder %s22599_s15, %s16593_s5  ;;  %s16749_s0 = smov [#allocation14]  }
 0xe6d   : > { %s16597_s27 = sshll.u32 %s16749_s0, 4  ;;  %s16598_s27 = int_to_ptr.vmem [resolvable:$false] %s16597_s27 }
 0xe6e   : > { %p16595_p3 = pnand %p16594_p0, %p23541_p10  ;;  %s16599_s23 = scalar_lea.vmem %s16598_s27, 4096 }
 0xe6f   : > { %s14867_s7 = sshll.u32 %s23539_s8, 11  ;;  %p16600_p6 = scmp.lt.s32.totalorder %s22599_s15, %s16598_s27 }
 0xe70   : > { %s22596_s16 = scalar_lea.hbm %s23540_s21, %s14867_s7  ;;  %p16596_p2 = pneg %p16595_p3 }
 0xe71   : > { %p16601_p9 = scmp.lt.s32.totalorder %s16599_s23, %s16593_s5 }
 0xe73   : > { %p16602_p4 = por %p16601_p9, %p16600_p6 }
 0xe75   : > { %p16603_p1 = pnand %p16602_p4, %p16596_p2 }
 0xe77   : > { %16606 = shalt.err (!%p16603_p1)
}
 0xe78   : > { %s16607_s20 = scalar_lea.hbm %s22596_s16, 2048  ;;  %s16611_s18 = scalar_lea.hbm %s23540_s21, 4096 }
 0xe79   : > { %p16608_p8 = scmp.ne.s32.totalorder %s22596_s16, %s16607_s20  ;;  %p16612_p7 = scmp.lt.s32.totalorder %s22596_s16, %s23540_s21 }
 0xe7a   : > { %p16613_p11 = scmp.lt.s32.totalorder %s16611_s18, %s16607_s20 }
 0xe7b   : > { %p16609_p13 = pnand %p16608_p8, %p23541_p10 }
 0xe7c   : > { %p16614_p5 = por %p16613_p11, %p16612_p7 }
 0xe7d   : > { %p16610_p12 = pneg %p16609_p13 }
 0xe7f   : > { %p16615_p0 = pnand %p16614_p5, %p16610_p12 }
 0xe81   : > { %16618 = shalt.err (!%p16615_p0)
}
 0xe82   : > { %s16750_s1 = smov 128   ;;  %s16751_s11 = smov 8  }
 0xe83   : > { %15611 = dma.vmem_to_hbm [thread:$0]  (%p23541_p10), %s22599_s15, 2048, %s22596_s16, %s22603_s26, %s16750_s1, %s16750_s1, %s16751_s11  }
 0xe84 PF: > { %p15648_p3 = scmp.ge.s32.totalorder %s16725_s19, 2  ;;  %s14372_s2 = sand.u32 1, %s16697_s12  }
 0xe85   : > { %p23542_p2 = scmp.ne.s32.totalorder %s22992_s30, 0  ;;  %s14373_s22 = scalar_lea.sflag [#allocation5], %s14372_s2 }
 0xe87   : > { %p15640_p6 = pnand %p15648_p3, %p23542_p2 }
 0xe89   : > { %p15641_p9 = pneg %p15640_p6 }
 0xe8b   : > { %16680 = dma.done.wait (%p15641_p9), %s14373_s22, 2048  }
 0xe8c   : > { %16682 = vsyncadd (%p15641_p9), %s14373_s22, 4294965248  ;;  %s26_s19 = sadd.s32 1, %s16725_s19   ;;  %s23543_s28 = sld [smem:[#allocation20_spill]] }
 0xe8d   : > { %p23_p4 = scmp.ge.s32.totalorder %s26_s19, 6   ;;  %s23544_s11 = sld [smem:[#allocation27_spill]] }
 0xe8e   : > { %s23545_s25 = sld [smem:[#allocation21_spill]]  ;;  %s23550_s30 = smov %s16689_s10 }
 0xe8f   : > { %s23546_s14 = sld [smem:[#allocation28_spill]]  ;;  %s23552_s12 = smov %s16701_s13 }
 0xe90   : > { %s23547_s16 = sld [smem:[#allocation24_spill]]  ;;  %s23554_s15 = smov %s16717_s17 }
 0xe91   : > { %s23548_s8 = sld [smem:[#allocation25_spill]] }
 0xe92   : > { %s23549_s18 = sld [smem:[#allocation26_spill]]  ;;  %s23551_s10 = smov %s23543_s28 }
 0xe93   :  { %25 = sbr.rel (!%p23_p4) target bundleno = 20 (0x14), region = 172 }
 0xe94   : > { %s23553_s13 = smov %s23545_s25 }
 0xe97   : > { %s23555_s17 = smov %s23548_s8 }
 0xe98   :  { %14378 = vsyncpa [#allocation4], 1 }
 0xe99   :  { %14380 = vsyncpa [#allocation4 + $0x1], 1 }
 0xe9a   :  { %14381 = vsyncpa [#allocation7], 1 }
 0xe9b   :  { %14382 = vsyncpa [#allocation5], 1 }
 0xe9c   :  { %14384 = vsyncpa [#allocation5 + $0x1], 1 }

</bundles_post_ra>
